<compile_context>
chip_gen: v7x
topology: tpu7x:2x2x1
jax: 0.10.0
libtpu: 0.0.40
codegen_flags: <defaults>
</compile_context>

<pallas_src>
import functools

import numpy as np
import jax
import jax.numpy as jnp
from jax import lax
from jax.experimental import pallas as pl
from jax.experimental.pallas import tpu as pltpu


# ------------------------------ Pallas kernel ------------------------------ #

def _matmul_bias_act_kernel(x_ref, w_ref, b_ref, o_ref, *, apply_tanh):
    # DEFAULT MXU precision (single bf16 pass, f32 accumulate).
    acc = jnp.dot(x_ref[...], w_ref[...], preferred_element_type=jnp.float32)
    acc = acc + b_ref[...]            # f32 bias add
    if apply_tanh:
        acc = jnp.tanh(acc)           # f32 tanh on the EUP
    o_ref[...] = acc.astype(o_ref.dtype)


def pallas_matmul_bias_act(x, w, b, apply_tanh):
    """x:(M,K) f32, w:(K,N) f32, b:(N,) f32 -> (M,N) f32 = act(x @ w + b)."""
    M, K = x.shape
    Kw, N = w.shape
    assert K == Kw
    # Split M into two "parallel" blocks only when there is enough work; this
    # lets both TensorCores run on v7x and is a no-op cost on v5e/v6e.
    m_blocks = 2 if (M >= 256 and M % 16 == 0) else 1
    tm = M // m_blocks

    kernel = functools.partial(_matmul_bias_act_kernel, apply_tanh=apply_tanh)
    return pl.pallas_call(
        kernel,
        out_shape=jax.ShapeDtypeStruct((M, N), jnp.float32),
        grid_spec=pltpu.PrefetchScalarGridSpec(
            num_scalar_prefetch=0,
            grid=(m_blocks,),
            in_specs=[
                pl.BlockSpec((tm, K), lambda i: (i, 0)),
                pl.BlockSpec((K, N), lambda i: (0, 0)),
                pl.BlockSpec((1, N), lambda i: (0, 0)),
            ],
            out_specs=pl.BlockSpec((tm, N), lambda i: (i, 0)),
        ),
        compiler_params=pltpu.CompilerParams(
            dimension_semantics=("parallel",)),
    )(x, w, b.reshape(1, N))


# ------------------------- conv lowering (XLA glue) ------------------------- #

def _im2col_nhwc(xp, kh, kw, sh, sw):
    """xp:(N,Hp,Wp,C) already padded -> ((N*Ho*Wo, kh*kw*C), (N,Ho,Wo)).

    Built from kh*kw static strided slices (no gather). Feature ordering is
    (dy, dx, c), matching the (kh, kw, Cin, Cout) weight reshape.
    """
    n, hp, wp, c = xp.shape
    ho = (hp - kh) // sh + 1
    wo = (wp - kw) // sw + 1
    taps = []
    for dy in range(kh):
        for dx in range(kw):
            taps.append(lax.slice(
                xp,
                (0, dy, dx, 0),
                (n, dy + (ho - 1) * sh + 1, dx + (wo - 1) * sw + 1, c),
                (1, sh, sw, 1)))                       # (N, Ho, Wo, C)
    patches = jnp.concatenate(taps, axis=-1)           # (N, Ho, Wo, kh*kw*C)
    return patches.reshape(n * ho * wo, kh * kw * c), (n, ho, wo)


def conv2d_nhwc(x, wm, b, kh, kw, stride, padding, apply_tanh):
    """PyTorch nn.Conv2d on NHWC input. wm:(kh*kw*Cin, Cout)."""
    sh, sw = stride
    ph, pw = padding
    pad_cfg = ((0, 0, 0), (ph, ph, 0), (pw, pw, 0), (0, 0, 0))
    xp = lax.pad(x, jnp.array(0.0, x.dtype), pad_cfg)
    patches, (n, ho, wo) = _im2col_nhwc(xp, kh, kw, sh, sw)
    out = pallas_matmul_bias_act(patches, wm, b, apply_tanh)
    return out.reshape(n, ho, wo, wm.shape[1])


def conv_transpose2d_nhwc(x, wm, b, kh, kw, stride, padding, output_padding,
                          apply_tanh):
    """PyTorch nn.ConvTranspose2d on NHWC input.

    wm already holds the spatially-flipped, channel-swapped weight as
    (kh*kw*Cin, Cout). Input dilation + edge padding is a single lax.pad with
    interior padding; then it is an ordinary stride-1 conv.
    """
    sh, sw = stride
    ph, pw = padding
    oph, opw = output_padding
    pad_cfg = ((0, 0, 0),
               (kh - 1 - ph, kh - 1 - ph + oph, sh - 1),
               (kw - 1 - pw, kw - 1 - pw + opw, sw - 1),
               (0, 0, 0))
    xp = lax.pad(x, jnp.array(0.0, x.dtype), pad_cfg)
    patches, (n, ho, wo) = _im2col_nhwc(xp, kh, kw, 1, 1)
    out = pallas_matmul_bias_act(patches, wm, b, apply_tanh)
    return out.reshape(n, ho, wo, wm.shape[1])


# ------------------------------ model params ------------------------------- #

def _init_conv(key, cout, cin, kh, kw):
    k1, k2 = jax.random.split(key)
    bound = 1.0 / np.sqrt(cin * kh * kw)
    w = jax.random.uniform(k1, (cout, cin, kh, kw), jnp.float32, -bound, bound)
    b = jax.random.uniform(k2, (cout,), jnp.float32, -bound, bound)
    return w, b


def _init_convT(key, cin, cout, kh, kw):
    k1, k2 = jax.random.split(key)
    bound = 1.0 / np.sqrt(cout * kh * kw)
    w = jax.random.uniform(k1, (cin, cout, kh, kw), jnp.float32, -bound, bound)
    b = jax.random.uniform(k2, (cout,), jnp.float32, -bound, bound)
    return w, b


def init_params(key):
    ks = jax.random.split(key, 9)
    return {
        # encoder (PyTorch Conv2d layout: (Cout, Cin, kh, kw))
        "e1": _init_conv(ks[0], 32, 2, 3, 3),
        "e2": _init_conv(ks[1], 64, 32, 3, 3),
        "e3": _init_conv(ks[2], 128, 64, 3, 3),
        "e4": _init_conv(ks[3], 2, 128, 3, 3),
        # decoder (PyTorch ConvTranspose2d layout: (Cin, Cout, kh, kw))
        "d1": _init_convT(ks[4], 2, 128, 3, 3),
        "d2": _init_convT(ks[5], 128, 64, 3, 3),
        "d3": _init_convT(ks[6], 64, 32, 3, 3),
        "d4": _init_convT(ks[7], 32, 16, 3, 3),
        "d5": _init_convT(ks[8], 16, 2, 3, 3),
    }


def _conv_weight_to_matmul(w):
    """(Cout, Cin, kh, kw) -> (kh*kw*Cin, Cout), row order (dy, dx, cin)."""
    cout, cin, kh, kw = w.shape
    return w.transpose(2, 3, 1, 0).reshape(kh * kw * cin, cout)


def _convT_weight_to_matmul(w):
    """(Cin, Cout, kh, kw) -> flipped equivalent-conv weight (kh*kw*Cin, Cout)."""
    cin, cout, kh, kw = w.shape
    w_eq = jnp.flip(w, axis=(2, 3)).transpose(2, 3, 0, 1)   # (kh, kw, Cin, Cout)
    return w_eq.reshape(kh * kw * cin, cout)


def prepare_params(params):
    """One-time re-layout of weights into matmul form (done outside jit)."""
    prepped = {}
    for name in ("e1", "e2", "e3", "e4"):
        w, b = params[name]
        prepped[name] = (_conv_weight_to_matmul(w), b)
    for name in ("d1", "d2", "d3", "d4", "d5"):
        w, b = params[name]
        prepped[name] = (_convT_weight_to_matmul(w), b)
    return prepped


def cnn_autoencoder_forward(prepped, x_nchw):
    h = x_nchw.transpose(0, 2, 3, 1)                 # NCHW -> NHWC (once)
    # Encoder
    h = conv2d_nhwc(h, *prepped["e1"], 3, 3, (2, 2), (1, 1), True)
    h = conv2d_nhwc(h, *prepped["e2"], 3, 3, (2, 2), (1, 1), True)
    h = conv2d_nhwc(h, *prepped["e3"], 3, 3, (2, 2), (1, 1), True)
    h = conv2d_nhwc(h, *prepped["e4"], 3, 3, (2, 2), (1, 0), False)
    # Decoder
    h = conv_transpose2d_nhwc(h, *prepped["d1"], 3, 3, (2, 2), (1, 1), (1, 1), True)
    h = conv_transpose2d_nhwc(h, *prepped["d2"], 3, 3, (2, 2), (1, 0), (1, 0), True)
    h = conv_transpose2d_nhwc(h, *prepped["d3"], 3, 3, (2, 2), (1, 1), (1, 1), True)
    h = conv_transpose2d_nhwc(h, *prepped["d4"], 3, 3, (2, 2), (1, 1), (1, 1), True)
    h = conv_transpose2d_nhwc(h, *prepped["d5"], 3, 3, (1, 1), (1, 1), (0, 0), True)
    return h.transpose(0, 3, 1, 2)                   # NHWC -> NCHW (once)


# ---------------------- pure-JAX reference (for check) ---------------------- #

def _ref_conv2d(x, w, b, stride, padding, tanh_):
    out = lax.conv_general_dilated(
        x, w, stride, [(padding[0], padding[0]), (padding[1], padding[1])],
        dimension_numbers=("NCHW", "OIHW", "NCHW"))
    out = out + b[None, :, None, None]
    return jnp.tanh(out) if tanh_ else out


def _ref_convT(x, w, b, stride, padding, out_pad, tanh_):
    kh, kw = w.shape[2], w.shape[3]
    w_eq = jnp.flip(w, (2, 3)).transpose(1, 0, 2, 3)
    pad = [(kh - 1 - padding[0], kh - 1 - padding[0] + out_pad[0]),
           (kw - 1 - padding[1], kw - 1 - padding[1] + out_pad[1])]
    out = lax.conv_general_dilated(
        x, w_eq, (1, 1), pad, lhs_dilation=stride,
        dimension_numbers=("NCHW", "OIHW", "NCHW"))
    out = out + b[None, :, None, None]
    return jnp.tanh(out) if tanh_ else out


def reference_forward(params, x):
    h = _ref_conv2d(x, *params["e1"], (2, 2), (1, 1), True)
    h = _ref_conv2d(h, *params["e2"], (2, 2), (1, 1), True)
    h = _ref_conv2d(h, *params["e3"], (2, 2), (1, 1), True)
    h = _ref_conv2d(h, *params["e4"], (2, 2), (1, 0), False)
    h = _ref_convT(h, *params["d1"], (2, 2), (1, 1), (1, 1), True)
    h = _ref_convT(h, *params["d2"], (2, 2), (1, 0), (1, 0), True)
    h = _ref_convT(h, *params["d3"], (2, 2), (1, 1), (1, 1), True)
    h = _ref_convT(h, *params["d4"], (2, 2), (1, 1), (1, 1), True)
    h = _ref_convT(h, *params["d5"], (1, 1), (1, 1), (0, 0), True)
    return h


# ---------------------------------- main ----------------------------------- #

if __name__ == "__main__":
    key = jax.random.PRNGKey(0)
    k_params, k_x = jax.random.split(key)
    params = init_params(k_params)
    prepped = prepare_params(params)   # one-time weight re-layout

    # NCHW input with 2 channels (real/imag), small spatial size.
    x = jax.random.normal(k_x, (2, 2, 32, 32), dtype=jnp.float32)

    fwd = jax.jit(cnn_autoencoder_forward)
    out = jax.block_until_ready(fwd(prepped, x))

    ref = jax.block_until_ready(reference_forward(params, x))
    assert out.shape == ref.shape, (out.shape, ref.shape)
    # Both paths use the MXU default (single-pass) precision; any lowering bug
    # would produce O(0.1..1) errors, so this tolerance is still a tight check.
    assert jnp.allclose(out, ref, rtol=5e-3, atol=5e-3), "mismatch vs reference"

    print("KERNEL_OK")
</pallas_src>

<mosaic_0001>
module attributes {stable_mosaic.version = 11 : i64} {
  func.func @_matmul_bias_act_kernel(%arg0: i32, %arg1: memref<256x18xf32, #tpu.memory_space<vmem>>, %arg2: memref<18x32xf32, #tpu.memory_space<vmem>>, %arg3: memref<1x32xf32, #tpu.memory_space<vmem>>, %arg4: memref<256x32xf32, #tpu.memory_space<vmem>>) attributes {dimension_semantics = [#tpu.dimension_semantics<parallel>], iteration_bounds = array<i64: 2>, scalar_prefetch = 0 : i64, scratch_operands = 0 : i64, tpu.core_type = #tpu.core_type<tc>, window_params = [{transform_indices = @transform_0, window_bounds = array<i64: 256, 18>}, {pipeline_mode = #tpu.pipeline_mode<synchronous>, transform_indices = @transform_1, window_bounds = array<i64: 18, 32>}, {pipeline_mode = #tpu.pipeline_mode<synchronous>, transform_indices = @transform_2, window_bounds = array<i64: 1, 32>}, {transform_indices = @transform_3, window_bounds = array<i64: 256, 32>}]} {
    %c0 = arith.constant 0 : index
    %c0_0 = arith.constant 0 : index
    %0 = vector.load %arg1[%c0, %c0_0] : memref<256x18xf32, #tpu.memory_space<vmem>>, vector<256x18xf32>
    %c0_1 = arith.constant 0 : index
    %c0_2 = arith.constant 0 : index
    %1 = vector.load %arg2[%c0_1, %c0_2] : memref<18x32xf32, #tpu.memory_space<vmem>>, vector<18x32xf32>
    %cst = arith.constant dense<0.000000e+00> : vector<256x32xf32>
    %2 = tpu.matmul %0, %1, %cst {dimension_numbers = #tpu.dot_dimension_numbers<[1], [0], [0], [1], [0, 0, 1, 1], [], []>} : vector<256x18xf32>, vector<18x32xf32>, vector<256x32xf32> -> vector<256x32xf32>
    %c0_3 = arith.constant 0 : index
    %c0_4 = arith.constant 0 : index
    %3 = vector.load %arg3[%c0_3, %c0_4] : memref<1x32xf32, #tpu.memory_space<vmem>>, vector<1x32xf32>
    %4 = vector.broadcast %3 : vector<1x32xf32> to vector<256x32xf32>
    %5 = arith.addf %2, %4 : vector<256x32xf32>
    %6 = math.tanh %5 : vector<256x32xf32>
    %c0_5 = arith.constant 0 : index
    %c0_6 = arith.constant 0 : index
    %7 = vector.load %arg4[%c0_5, %c0_6] : memref<256x32xf32, #tpu.memory_space<vmem>>, vector<256x32xf32>
    tpu.vector_store %arg4[%c0_5, %c0_6], %6 {strides = array<i32>} : memref<256x32xf32, #tpu.memory_space<vmem>>, vector<256x32xf32>,
    return
  }
  func.func @transform_0(%arg0: i32) -> (i32, i32) {
    %c0_i32 = arith.constant 0 : i32
    %c0_i32_0 = arith.constant 0 : i32
    return %arg0, %c0_i32 : i32, i32
  }
  func.func @transform_1(%arg0: i32) -> (i32, i32) {
    %c0_i32 = arith.constant 0 : i32
    %c0_i32_0 = arith.constant 0 : i32
    %c0_i32_1 = arith.constant 0 : i32
    return %c0_i32, %c0_i32_0 : i32, i32
  }
  func.func @transform_2(%arg0: i32) -> (i32, i32) {
    %c0_i32 = arith.constant 0 : i32
    %c0_i32_0 = arith.constant 0 : i32
    %c0_i32_1 = arith.constant 0 : i32
    return %c0_i32, %c0_i32_0 : i32, i32
  }
  func.func @transform_3(%arg0: i32) -> (i32, i32) {
    %c0_i32 = arith.constant 0 : i32
    %c0_i32_0 = arith.constant 0 : i32
    return %arg0, %c0_i32 : i32, i32
  }
}

module attributes {stable_mosaic.version = 11 : i64} {
  func.func @_matmul_bias_act_kernel(%arg0: i32, %arg1: memref<128x288xf32, #tpu.memory_space<vmem>>, %arg2: memref<288x64xf32, #tpu.memory_space<vmem>>, %arg3: memref<1x64xf32, #tpu.memory_space<vmem>>, %arg4: memref<128x64xf32, #tpu.memory_space<vmem>>) attributes {dimension_semantics = [#tpu.dimension_semantics<parallel>], iteration_bounds = array<i64: 1>, scalar_prefetch = 0 : i64, scratch_operands = 0 : i64, tpu.core_type = #tpu.core_type<tc>, window_params = [{transform_indices = @transform_0, window_bounds = array<i64: 128, 288>}, {pipeline_mode = #tpu.pipeline_mode<synchronous>, transform_indices = @transform_1, window_bounds = array<i64: 288, 64>}, {pipeline_mode = #tpu.pipeline_mode<synchronous>, transform_indices = @transform_2, window_bounds = array<i64: 1, 64>}, {transform_indices = @transform_3, window_bounds = array<i64: 128, 64>}]} {
    %c0 = arith.constant 0 : index
    %c0_0 = arith.constant 0 : index
    %0 = vector.load %arg1[%c0, %c0_0] : memref<128x288xf32, #tpu.memory_space<vmem>>, vector<128x288xf32>
    %c0_1 = arith.constant 0 : index
    %c0_2 = arith.constant 0 : index
    %1 = vector.load %arg2[%c0_1, %c0_2] : memref<288x64xf32, #tpu.memory_space<vmem>>, vector<288x64xf32>
    %cst = arith.constant dense<0.000000e+00> : vector<128x64xf32>
    %2 = tpu.matmul %0, %1, %cst {dimension_numbers = #tpu.dot_dimension_numbers<[1], [0], [0], [1], [0, 0, 1, 1], [], []>} : vector<128x288xf32>, vector<288x64xf32>, vector<128x64xf32> -> vector<128x64xf32>
    %c0_3 = arith.constant 0 : index
    %c0_4 = arith.constant 0 : index
    %3 = vector.load %arg3[%c0_3, %c0_4] : memref<1x64xf32, #tpu.memory_space<vmem>>, vector<1x64xf32>
    %4 = vector.broadcast %3 : vector<1x64xf32> to vector<128x64xf32>
    %5 = arith.addf %2, %4 : vector<128x64xf32>
    %6 = math.tanh %5 : vector<128x64xf32>
    %c0_5 = arith.constant 0 : index
    %c0_6 = arith.constant 0 : index
    %7 = vector.load %arg4[%c0_5, %c0_6] : memref<128x64xf32, #tpu.memory_space<vmem>>, vector<128x64xf32>
    tpu.vector_store %arg4[%c0_5, %c0_6], %6 {strides = array<i32>} : memref<128x64xf32, #tpu.memory_space<vmem>>, vector<128x64xf32>,
    return
  }
  func.func @transform_0(%arg0: i32) -> (i32, i32) {
    %c0_i32 = arith.constant 0 : i32
    %c0_i32_0 = arith.constant 0 : i32
    return %arg0, %c0_i32 : i32, i32
  }
  func.func @transform_1(%arg0: i32) -> (i32, i32) {
    %c0_i32 = arith.constant 0 : i32
    %c0_i32_0 = arith.constant 0 : i32
    %c0_i32_1 = arith.constant 0 : i32
    return %c0_i32, %c0_i32_0 : i32, i32
  }
  func.func @transform_2(%arg0: i32) -> (i32, i32) {
    %c0_i32 = arith.constant 0 : i32
    %c0_i32_0 = arith.constant 0 : i32
    %c0_i32_1 = arith.constant 0 : i32
    return %c0_i32, %c0_i32_0 : i32, i32
  }
  func.func @transform_3(%arg0: i32) -> (i32, i32) {
    %c0_i32 = arith.constant 0 : i32
    %c0_i32_0 = arith.constant 0 : i32
    return %arg0, %c0_i32 : i32, i32
  }
}

module attributes {stable_mosaic.version = 11 : i64} {
  func.func @_matmul_bias_act_kernel(%arg0: i32, %arg1: memref<32x576xf32, #tpu.memory_space<vmem>>, %arg2: memref<576x128xf32, #tpu.memory_space<vmem>>, %arg3: memref<1x128xf32, #tpu.memory_space<vmem>>, %arg4: memref<32x128xf32, #tpu.memory_space<vmem>>) attributes {dimension_semantics = [#tpu.dimension_semantics<parallel>], iteration_bounds = array<i64: 1>, scalar_prefetch = 0 : i64, scratch_operands = 0 : i64, tpu.core_type = #tpu.core_type<tc>, window_params = [{transform_indices = @transform_0, window_bounds = array<i64: 32, 576>}, {pipeline_mode = #tpu.pipeline_mode<synchronous>, transform_indices = @transform_1, window_bounds = array<i64: 576, 128>}, {pipeline_mode = #tpu.pipeline_mode<synchronous>, transform_indices = @transform_2, window_bounds = array<i64: 1, 128>}, {transform_indices = @transform_3, window_bounds = array<i64: 32, 128>}]} {
    %c0 = arith.constant 0 : index
    %c0_0 = arith.constant 0 : index
    %0 = vector.load %arg1[%c0, %c0_0] : memref<32x576xf32, #tpu.memory_space<vmem>>, vector<32x576xf32>
    %c0_1 = arith.constant 0 : index
    %c0_2 = arith.constant 0 : index
    %1 = vector.load %arg2[%c0_1, %c0_2] : memref<576x128xf32, #tpu.memory_space<vmem>>, vector<576x128xf32>
    %cst = arith.constant dense<0.000000e+00> : vector<32x128xf32>
    %2 = tpu.matmul %0, %1, %cst {dimension_numbers = #tpu.dot_dimension_numbers<[1], [0], [0], [1], [0, 0, 1, 1], [], []>} : vector<32x576xf32>, vector<576x128xf32>, vector<32x128xf32> -> vector<32x128xf32>
    %c0_3 = arith.constant 0 : index
    %c0_4 = arith.constant 0 : index
    %3 = vector.load %arg3[%c0_3, %c0_4] : memref<1x128xf32, #tpu.memory_space<vmem>>, vector<1x128xf32>
    %4 = vector.broadcast %3 : vector<1x128xf32> to vector<32x128xf32>
    %5 = arith.addf %2, %4 : vector<32x128xf32>
    %6 = math.tanh %5 : vector<32x128xf32>
    %c0_5 = arith.constant 0 : index
    %c0_6 = arith.constant 0 : index
    %7 = vector.load %arg4[%c0_5, %c0_6] : memref<32x128xf32, #tpu.memory_space<vmem>>, vector<32x128xf32>
    tpu.vector_store %arg4[%c0_5, %c0_6], %6 {strides = array<i32>} : memref<32x128xf32, #tpu.memory_space<vmem>>, vector<32x128xf32>,
    return
  }
  func.func @transform_0(%arg0: i32) -> (i32, i32) {
    %c0_i32 = arith.constant 0 : i32
    %c0_i32_0 = arith.constant 0 : i32
    return %arg0, %c0_i32 : i32, i32
  }
  func.func @transform_1(%arg0: i32) -> (i32, i32) {
    %c0_i32 = arith.constant 0 : i32
    %c0_i32_0 = arith.constant 0 : i32
    %c0_i32_1 = arith.constant 0 : i32
    return %c0_i32, %c0_i32_0 : i32, i32
  }
  func.func @transform_2(%arg0: i32) -> (i32, i32) {
    %c0_i32 = arith.constant 0 : i32
    %c0_i32_0 = arith.constant 0 : i32
    %c0_i32_1 = arith.constant 0 : i32
    return %c0_i32, %c0_i32_0 : i32, i32
  }
  func.func @transform_3(%arg0: i32) -> (i32, i32) {
    %c0_i32 = arith.constant 0 : i32
    %c0_i32_0 = arith.constant 0 : i32
    return %arg0, %c0_i32 : i32, i32
  }
}

module attributes {stable_mosaic.version = 11 : i64} {
  func.func @_matmul_bias_act_kernel(%arg0: i32, %arg1: memref<4x1152xf32, #tpu.memory_space<vmem>>, %arg2: memref<1152x2xf32, #tpu.memory_space<vmem>>, %arg3: memref<1x2xf32, #tpu.memory_space<vmem>>, %arg4: memref<4x2xf32, #tpu.memory_space<vmem>>) attributes {dimension_semantics = [#tpu.dimension_semantics<parallel>], iteration_bounds = array<i64: 1>, scalar_prefetch = 0 : i64, scratch_operands = 0 : i64, tpu.core_type = #tpu.core_type<tc>, window_params = [{transform_indices = @transform_0, window_bounds = array<i64: 4, 1152>}, {pipeline_mode = #tpu.pipeline_mode<synchronous>, transform_indices = @transform_1, window_bounds = array<i64: 1152, 2>}, {pipeline_mode = #tpu.pipeline_mode<synchronous>, transform_indices = @transform_2, window_bounds = array<i64: 1, 2>}, {transform_indices = @transform_3, window_bounds = array<i64: 4, 2>}]} {
    %c0 = arith.constant 0 : index
    %c0_0 = arith.constant 0 : index
    %0 = vector.load %arg1[%c0, %c0_0] : memref<4x1152xf32, #tpu.memory_space<vmem>>, vector<4x1152xf32>
    %c0_1 = arith.constant 0 : index
    %c0_2 = arith.constant 0 : index
    %1 = vector.load %arg2[%c0_1, %c0_2] : memref<1152x2xf32, #tpu.memory_space<vmem>>, vector<1152x2xf32>
    %cst = arith.constant dense<0.000000e+00> : vector<4x2xf32>
    %2 = tpu.matmul %0, %1, %cst {dimension_numbers = #tpu.dot_dimension_numbers<[1], [0], [0], [1], [0, 0, 1, 1], [], []>} : vector<4x1152xf32>, vector<1152x2xf32>, vector<4x2xf32> -> vector<4x2xf32>
    %c0_3 = arith.constant 0 : index
    %c0_4 = arith.constant 0 : index
    %3 = vector.load %arg3[%c0_3, %c0_4] : memref<1x2xf32, #tpu.memory_space<vmem>>, vector<1x2xf32>
    %4 = vector.broadcast %3 : vector<1x2xf32> to vector<4x2xf32>
    %5 = arith.addf %2, %4 : vector<4x2xf32>
    %c0_5 = arith.constant 0 : index
    %c0_6 = arith.constant 0 : index
    %6 = vector.load %arg4[%c0_5, %c0_6] : memref<4x2xf32, #tpu.memory_space<vmem>>, vector<4x2xf32>
    tpu.vector_store %arg4[%c0_5, %c0_6], %5 {strides = array<i32>} : memref<4x2xf32, #tpu.memory_space<vmem>>, vector<4x2xf32>,
    return
  }
  func.func @transform_0(%arg0: i32) -> (i32, i32) {
    %c0_i32 = arith.constant 0 : i32
    %c0_i32_0 = arith.constant 0 : i32
    return %arg0, %c0_i32 : i32, i32
  }
  func.func @transform_1(%arg0: i32) -> (i32, i32) {
    %c0_i32 = arith.constant 0 : i32
    %c0_i32_0 = arith.constant 0 : i32
    %c0_i32_1 = arith.constant 0 : i32
    return %c0_i32, %c0_i32_0 : i32, i32
  }
  func.func @transform_2(%arg0: i32) -> (i32, i32) {
    %c0_i32 = arith.constant 0 : i32
    %c0_i32_0 = arith.constant 0 : i32
    %c0_i32_1 = arith.constant 0 : i32
    return %c0_i32, %c0_i32_0 : i32, i32
  }
  func.func @transform_3(%arg0: i32) -> (i32, i32) {
    %c0_i32 = arith.constant 0 : i32
    %c0_i32_0 = arith.constant 0 : i32
    return %arg0, %c0_i32 : i32, i32
  }
}

module attributes {stable_mosaic.version = 11 : i64} {
  func.func @_matmul_bias_act_kernel(%arg0: i32, %arg1: memref<16x18xf32, #tpu.memory_space<vmem>>, %arg2: memref<18x128xf32, #tpu.memory_space<vmem>>, %arg3: memref<1x128xf32, #tpu.memory_space<vmem>>, %arg4: memref<16x128xf32, #tpu.memory_space<vmem>>) attributes {dimension_semantics = [#tpu.dimension_semantics<parallel>], iteration_bounds = array<i64: 1>, scalar_prefetch = 0 : i64, scratch_operands = 0 : i64, tpu.core_type = #tpu.core_type<tc>, window_params = [{transform_indices = @transform_0, window_bounds = array<i64: 16, 18>}, {pipeline_mode = #tpu.pipeline_mode<synchronous>, transform_indices = @transform_1, window_bounds = array<i64: 18, 128>}, {pipeline_mode = #tpu.pipeline_mode<synchronous>, transform_indices = @transform_2, window_bounds = array<i64: 1, 128>}, {transform_indices = @transform_3, window_bounds = array<i64: 16, 128>}]} {
    %c0 = arith.constant 0 : index
    %c0_0 = arith.constant 0 : index
    %0 = vector.load %arg1[%c0, %c0_0] : memref<16x18xf32, #tpu.memory_space<vmem>>, vector<16x18xf32>
    %c0_1 = arith.constant 0 : index
    %c0_2 = arith.constant 0 : index
    %1 = vector.load %arg2[%c0_1, %c0_2] : memref<18x128xf32, #tpu.memory_space<vmem>>, vector<18x128xf32>
    %cst = arith.constant dense<0.000000e+00> : vector<16x128xf32>
    %2 = tpu.matmul %0, %1, %cst {dimension_numbers = #tpu.dot_dimension_numbers<[1], [0], [0], [1], [0, 0, 1, 1], [], []>} : vector<16x18xf32>, vector<18x128xf32>, vector<16x128xf32> -> vector<16x128xf32>
    %c0_3 = arith.constant 0 : index
    %c0_4 = arith.constant 0 : index
    %3 = vector.load %arg3[%c0_3, %c0_4] : memref<1x128xf32, #tpu.memory_space<vmem>>, vector<1x128xf32>
    %4 = vector.broadcast %3 : vector<1x128xf32> to vector<16x128xf32>
    %5 = arith.addf %2, %4 : vector<16x128xf32>
    %6 = math.tanh %5 : vector<16x128xf32>
    %c0_5 = arith.constant 0 : index
    %c0_6 = arith.constant 0 : index
    %7 = vector.load %arg4[%c0_5, %c0_6] : memref<16x128xf32, #tpu.memory_space<vmem>>, vector<16x128xf32>
    tpu.vector_store %arg4[%c0_5, %c0_6], %6 {strides = array<i32>} : memref<16x128xf32, #tpu.memory_space<vmem>>, vector<16x128xf32>,
    return
  }
  func.func @transform_0(%arg0: i32) -> (i32, i32) {
    %c0_i32 = arith.constant 0 : i32
    %c0_i32_0 = arith.constant 0 : i32
    return %arg0, %c0_i32 : i32, i32
  }
  func.func @transform_1(%arg0: i32) -> (i32, i32) {
    %c0_i32 = arith.constant 0 : i32
    %c0_i32_0 = arith.constant 0 : i32
    %c0_i32_1 = arith.constant 0 : i32
    return %c0_i32, %c0_i32_0 : i32, i32
  }
  func.func @transform_2(%arg0: i32) -> (i32, i32) {
    %c0_i32 = arith.constant 0 : i32
    %c0_i32_0 = arith.constant 0 : i32
    %c0_i32_1 = arith.constant 0 : i32
    return %c0_i32, %c0_i32_0 : i32, i32
  }
  func.func @transform_3(%arg0: i32) -> (i32, i32) {
    %c0_i32 = arith.constant 0 : i32
    %c0_i32_0 = arith.constant 0 : i32
    return %arg0, %c0_i32 : i32, i32
  }
}

module attributes {stable_mosaic.version = 11 : i64} {
  func.func @_matmul_bias_act_kernel(%arg0: i32, %arg1: memref<80x1152xf32, #tpu.memory_space<vmem>>, %arg2: memref<1152x64xf32, #tpu.memory_space<vmem>>, %arg3: memref<1x64xf32, #tpu.memory_space<vmem>>, %arg4: memref<80x64xf32, #tpu.memory_space<vmem>>) attributes {dimension_semantics = [#tpu.dimension_semantics<parallel>], iteration_bounds = array<i64: 1>, scalar_prefetch = 0 : i64, scratch_operands = 0 : i64, tpu.core_type = #tpu.core_type<tc>, window_params = [{transform_indices = @transform_0, window_bounds = array<i64: 80, 1152>}, {pipeline_mode = #tpu.pipeline_mode<synchronous>, transform_indices = @transform_1, window_bounds = array<i64: 1152, 64>}, {pipeline_mode = #tpu.pipeline_mode<synchronous>, transform_indices = @transform_2, window_bounds = array<i64: 1, 64>}, {transform_indices = @transform_3, window_bounds = array<i64: 80, 64>}]} {
    %c0 = arith.constant 0 : index
    %c0_0 = arith.constant 0 : index
    %0 = vector.load %arg1[%c0, %c0_0] : memref<80x1152xf32, #tpu.memory_space<vmem>>, vector<80x1152xf32>
    %c0_1 = arith.constant 0 : index
    %c0_2 = arith.constant 0 : index
    %1 = vector.load %arg2[%c0_1, %c0_2] : memref<1152x64xf32, #tpu.memory_space<vmem>>, vector<1152x64xf32>
    %cst = arith.constant dense<0.000000e+00> : vector<80x64xf32>
    %2 = tpu.matmul %0, %1, %cst {dimension_numbers = #tpu.dot_dimension_numbers<[1], [0], [0], [1], [0, 0, 1, 1], [], []>} : vector<80x1152xf32>, vector<1152x64xf32>, vector<80x64xf32> -> vector<80x64xf32>
    %c0_3 = arith.constant 0 : index
    %c0_4 = arith.constant 0 : index
    %3 = vector.load %arg3[%c0_3, %c0_4] : memref<1x64xf32, #tpu.memory_space<vmem>>, vector<1x64xf32>
    %4 = vector.broadcast %3 : vector<1x64xf32> to vector<80x64xf32>
    %5 = arith.addf %2, %4 : vector<80x64xf32>
    %6 = math.tanh %5 : vector<80x64xf32>
    %c0_5 = arith.constant 0 : index
    %c0_6 = arith.constant 0 : index
    %7 = vector.load %arg4[%c0_5, %c0_6] : memref<80x64xf32, #tpu.memory_space<vmem>>, vector<80x64xf32>
    tpu.vector_store %arg4[%c0_5, %c0_6], %6 {strides = array<i32>} : memref<80x64xf32, #tpu.memory_space<vmem>>, vector<80x64xf32>,
    return
  }
  func.func @transform_0(%arg0: i32) -> (i32, i32) {
    %c0_i32 = arith.constant 0 : i32
    %c0_i32_0 = arith.constant 0 : i32
    return %arg0, %c0_i32 : i32, i32
  }
  func.func @transform_1(%arg0: i32) -> (i32, i32) {
    %c0_i32 = arith.constant 0 : i32
    %c0_i32_0 = arith.constant 0 : i32
    %c0_i32_1 = arith.constant 0 : i32
    return %c0_i32, %c0_i32_0 : i32, i32
  }
  func.func @transform_2(%arg0: i32) -> (i32, i32) {
    %c0_i32 = arith.constant 0 : i32
    %c0_i32_0 = arith.constant 0 : i32
    %c0_i32_1 = arith.constant 0 : i32
    return %c0_i32, %c0_i32_0 : i32, i32
  }
  func.func @transform_3(%arg0: i32) -> (i32, i32) {
    %c0_i32 = arith.constant 0 : i32
    %c0_i32_0 = arith.constant 0 : i32
    return %arg0, %c0_i32 : i32, i32
  }
}

module attributes {stable_mosaic.version = 11 : i64} {
  func.func @_matmul_bias_act_kernel(%arg0: i32, %arg1: memref<160x576xf32, #tpu.memory_space<vmem>>, %arg2: memref<576x32xf32, #tpu.memory_space<vmem>>, %arg3: memref<1x32xf32, #tpu.memory_space<vmem>>, %arg4: memref<160x32xf32, #tpu.memory_space<vmem>>) attributes {dimension_semantics = [#tpu.dimension_semantics<parallel>], iteration_bounds = array<i64: 2>, scalar_prefetch = 0 : i64, scratch_operands = 0 : i64, tpu.core_type = #tpu.core_type<tc>, window_params = [{transform_indices = @transform_0, window_bounds = array<i64: 160, 576>}, {pipeline_mode = #tpu.pipeline_mode<synchronous>, transform_indices = @transform_1, window_bounds = array<i64: 576, 32>}, {pipeline_mode = #tpu.pipeline_mode<synchronous>, transform_indices = @transform_2, window_bounds = array<i64: 1, 32>}, {transform_indices = @transform_3, window_bounds = array<i64: 160, 32>}]} {
    %c0 = arith.constant 0 : index
    %c0_0 = arith.constant 0 : index
    %0 = vector.load %arg1[%c0, %c0_0] : memref<160x576xf32, #tpu.memory_space<vmem>>, vector<160x576xf32>
    %c0_1 = arith.constant 0 : index
    %c0_2 = arith.constant 0 : index
    %1 = vector.load %arg2[%c0_1, %c0_2] : memref<576x32xf32, #tpu.memory_space<vmem>>, vector<576x32xf32>
    %cst = arith.constant dense<0.000000e+00> : vector<160x32xf32>
    %2 = tpu.matmul %0, %1, %cst {dimension_numbers = #tpu.dot_dimension_numbers<[1], [0], [0], [1], [0, 0, 1, 1], [], []>} : vector<160x576xf32>, vector<576x32xf32>, vector<160x32xf32> -> vector<160x32xf32>
    %c0_3 = arith.constant 0 : index
    %c0_4 = arith.constant 0 : index
    %3 = vector.load %arg3[%c0_3, %c0_4] : memref<1x32xf32, #tpu.memory_space<vmem>>, vector<1x32xf32>
    %4 = vector.broadcast %3 : vector<1x32xf32> to vector<160x32xf32>
    %5 = arith.addf %2, %4 : vector<160x32xf32>
    %6 = math.tanh %5 : vector<160x32xf32>
    %c0_5 = arith.constant 0 : index
    %c0_6 = arith.constant 0 : index
    %7 = vector.load %arg4[%c0_5, %c0_6] : memref<160x32xf32, #tpu.memory_space<vmem>>, vector<160x32xf32>
    tpu.vector_store %arg4[%c0_5, %c0_6], %6 {strides = array<i32>} : memref<160x32xf32, #tpu.memory_space<vmem>>, vector<160x32xf32>,
    return
  }
  func.func @transform_0(%arg0: i32) -> (i32, i32) {
    %c0_i32 = arith.constant 0 : i32
    %c0_i32_0 = arith.constant 0 : i32
    return %arg0, %c0_i32 : i32, i32
  }
  func.func @transform_1(%arg0: i32) -> (i32, i32) {
    %c0_i32 = arith.constant 0 : i32
    %c0_i32_0 = arith.constant 0 : i32
    %c0_i32_1 = arith.constant 0 : i32
    return %c0_i32, %c0_i32_0 : i32, i32
  }
  func.func @transform_2(%arg0: i32) -> (i32, i32) {
    %c0_i32 = arith.constant 0 : i32
    %c0_i32_0 = arith.constant 0 : i32
    %c0_i32_1 = arith.constant 0 : i32
    return %c0_i32, %c0_i32_0 : i32, i32
  }
  func.func @transform_3(%arg0: i32) -> (i32, i32) {
    %c0_i32 = arith.constant 0 : i32
    %c0_i32_0 = arith.constant 0 : i32
    return %arg0, %c0_i32 : i32, i32
  }
}

module attributes {stable_mosaic.version = 11 : i64} {
  func.func @_matmul_bias_act_kernel(%arg0: i32, %arg1: memref<640x288xf32, #tpu.memory_space<vmem>>, %arg2: memref<288x16xf32, #tpu.memory_space<vmem>>, %arg3: memref<1x16xf32, #tpu.memory_space<vmem>>, %arg4: memref<640x16xf32, #tpu.memory_space<vmem>>) attributes {dimension_semantics = [#tpu.dimension_semantics<parallel>], iteration_bounds = array<i64: 2>, scalar_prefetch = 0 : i64, scratch_operands = 0 : i64, tpu.core_type = #tpu.core_type<tc>, window_params = [{transform_indices = @transform_0, window_bounds = array<i64: 640, 288>}, {pipeline_mode = #tpu.pipeline_mode<synchronous>, transform_indices = @transform_1, window_bounds = array<i64: 288, 16>}, {pipeline_mode = #tpu.pipeline_mode<synchronous>, transform_indices = @transform_2, window_bounds = array<i64: 1, 16>}, {transform_indices = @transform_3, window_bounds = array<i64: 640, 16>}]} {
    %c0 = arith.constant 0 : index
    %c0_0 = arith.constant 0 : index
    %0 = vector.load %arg1[%c0, %c0_0] : memref<640x288xf32, #tpu.memory_space<vmem>>, vector<640x288xf32>
    %c0_1 = arith.constant 0 : index
    %c0_2 = arith.constant 0 : index
    %1 = vector.load %arg2[%c0_1, %c0_2] : memref<288x16xf32, #tpu.memory_space<vmem>>, vector<288x16xf32>
    %cst = arith.constant dense<0.000000e+00> : vector<640x16xf32>
    %2 = tpu.matmul %0, %1, %cst {dimension_numbers = #tpu.dot_dimension_numbers<[1], [0], [0], [1], [0, 0, 1, 1], [], []>} : vector<640x288xf32>, vector<288x16xf32>, vector<640x16xf32> -> vector<640x16xf32>
    %c0_3 = arith.constant 0 : index
    %c0_4 = arith.constant 0 : index
    %3 = vector.load %arg3[%c0_3, %c0_4] : memref<1x16xf32, #tpu.memory_space<vmem>>, vector<1x16xf32>
    %4 = vector.broadcast %3 : vector<1x16xf32> to vector<640x16xf32>
    %5 = arith.addf %2, %4 : vector<640x16xf32>
    %6 = math.tanh %5 : vector<640x16xf32>
    %c0_5 = arith.constant 0 : index
    %c0_6 = arith.constant 0 : index
    %7 = vector.load %arg4[%c0_5, %c0_6] : memref<640x16xf32, #tpu.memory_space<vmem>>, vector<640x16xf32>
    tpu.vector_store %arg4[%c0_5, %c0_6], %6 {strides = array<i32>} : memref<640x16xf32, #tpu.memory_space<vmem>>, vector<640x16xf32>,
    return
  }
  func.func @transform_0(%arg0: i32) -> (i32, i32) {
    %c0_i32 = arith.constant 0 : i32
    %c0_i32_0 = arith.constant 0 : i32
    return %arg0, %c0_i32 : i32, i32
  }
  func.func @transform_1(%arg0: i32) -> (i32, i32) {
    %c0_i32 = arith.constant 0 : i32
    %c0_i32_0 = arith.constant 0 : i32
    %c0_i32_1 = arith.constant 0 : i32
    return %c0_i32, %c0_i32_0 : i32, i32
  }
  func.func @transform_2(%arg0: i32) -> (i32, i32) {
    %c0_i32 = arith.constant 0 : i32
    %c0_i32_0 = arith.constant 0 : i32
    %c0_i32_1 = arith.constant 0 : i32
    return %c0_i32, %c0_i32_0 : i32, i32
  }
  func.func @transform_3(%arg0: i32) -> (i32, i32) {
    %c0_i32 = arith.constant 0 : i32
    %c0_i32_0 = arith.constant 0 : i32
    return %arg0, %c0_i32 : i32, i32
  }
}

module attributes {stable_mosaic.version = 11 : i64} {
  func.func @_matmul_bias_act_kernel(%arg0: i32, %arg1: memref<640x144xf32, #tpu.memory_space<vmem>>, %arg2: memref<144x2xf32, #tpu.memory_space<vmem>>, %arg3: memref<1x2xf32, #tpu.memory_space<vmem>>, %arg4: memref<640x2xf32, #tpu.memory_space<vmem>>) attributes {dimension_semantics = [#tpu.dimension_semantics<parallel>], iteration_bounds = array<i64: 2>, scalar_prefetch = 0 : i64, scratch_operands = 0 : i64, tpu.core_type = #tpu.core_type<tc>, window_params = [{transform_indices = @transform_0, window_bounds = array<i64: 640, 144>}, {pipeline_mode = #tpu.pipeline_mode<synchronous>, transform_indices = @transform_1, window_bounds = array<i64: 144, 2>}, {pipeline_mode = #tpu.pipeline_mode<synchronous>, transform_indices = @transform_2, window_bounds = array<i64: 1, 2>}, {transform_indices = @transform_3, window_bounds = array<i64: 640, 2>}]} {
    %c0 = arith.constant 0 : index
    %c0_0 = arith.constant 0 : index
    %0 = vector.load %arg1[%c0, %c0_0] : memref<640x144xf32, #tpu.memory_space<vmem>>, vector<640x144xf32>
    %c0_1 = arith.constant 0 : index
    %c0_2 = arith.constant 0 : index
    %1 = vector.load %arg2[%c0_1, %c0_2] : memref<144x2xf32, #tpu.memory_space<vmem>>, vector<144x2xf32>
    %cst = arith.constant dense<0.000000e+00> : vector<640x2xf32>
    %2 = tpu.matmul %0, %1, %cst {dimension_numbers = #tpu.dot_dimension_numbers<[1], [0], [0], [1], [0, 0, 1, 1], [], []>} : vector<640x144xf32>, vector<144x2xf32>, vector<640x2xf32> -> vector<640x2xf32>
    %c0_3 = arith.constant 0 : index
    %c0_4 = arith.constant 0 : index
    %3 = vector.load %arg3[%c0_3, %c0_4] : memref<1x2xf32, #tpu.memory_space<vmem>>, vector<1x2xf32>
    %4 = vector.broadcast %3 : vector<1x2xf32> to vector<640x2xf32>
    %5 = arith.addf %2, %4 : vector<640x2xf32>
    %6 = math.tanh %5 : vector<640x2xf32>
    %c0_5 = arith.constant 0 : index
    %c0_6 = arith.constant 0 : index
    %7 = vector.load %arg4[%c0_5, %c0_6] : memref<640x2xf32, #tpu.memory_space<vmem>>, vector<640x2xf32>
    tpu.vector_store %arg4[%c0_5, %c0_6], %6 {strides = array<i32>} : memref<640x2xf32, #tpu.memory_space<vmem>>, vector<640x2xf32>,
    return
  }
  func.func @transform_0(%arg0: i32) -> (i32, i32) {
    %c0_i32 = arith.constant 0 : i32
    %c0_i32_0 = arith.constant 0 : i32
    return %arg0, %c0_i32 : i32, i32
  }
  func.func @transform_1(%arg0: i32) -> (i32, i32) {
    %c0_i32 = arith.constant 0 : i32
    %c0_i32_0 = arith.constant 0 : i32
    %c0_i32_1 = arith.constant 0 : i32
    return %c0_i32, %c0_i32_0 : i32, i32
  }
  func.func @transform_2(%arg0: i32) -> (i32, i32) {
    %c0_i32 = arith.constant 0 : i32
    %c0_i32_0 = arith.constant 0 : i32
    %c0_i32_1 = arith.constant 0 : i32
    return %c0_i32, %c0_i32_0 : i32, i32
  }
  func.func @transform_3(%arg0: i32) -> (i32, i32) {
    %c0_i32 = arith.constant 0 : i32
    %c0_i32_0 = arith.constant 0 : i32
    return %arg0, %c0_i32 : i32, i32
  }
}

</mosaic_0001>

<bundles_post_ra>
// kernel: cnn_autoencoder_forward.9
= control target key start
LH: loop header
LB: loop body
LE: loop exit
PB: predicated region body
PF: predicated region fallthrough
CT: control target
= control target key end

     0   :  { %8 = vsyncpa [#allocation3], 0  ;;  %s1320_s0 = inlined_call_operand.vmem [shape: f32[512,18], index: 0, kind: input, shape index: {}]   ;;  %s1321_s1 = inlined_call_operand.hbm [shape: f32[18,32], index: 1, kind: input, shape index: {}]   ;;  %s1322_s2 = inlined_call_operand.hbm [shape: f32[1,32], index: 2, kind: input, shape index: {}]   ;;  %s1323_s3 = inlined_call_operand.vmem [shape: f32[512,32], index: 3, kind: output, shape index: {}]  }
   0x1   :  { %9 = vsyncpa [#allocation5], 0  ;;  %s1050_s12 = smov 0  }
   0x2 LB: > { %s713_s13 = sadd.s32 4294967295, %s1024_s12   ;;  %p715_p0 = scmp.ge.s32.totalorder %s1024_s12, 1  ;;  %s1024_s12 = sphi %s1050_s12, %s15_s12  }
   0x3   : > { %p114_p1 = scmp.lt.s32.totalorder %s1024_s12, 3  ;;  %s1026_s14 = smov [#allocation2]  }
   0x4   : > { %s126_s15 = sshll.u32 %s1026_s14, 4  ;;  %p1064_p3 = scmp.eq.s32.totalorder %s713_s13, 0  ;;  %s127_s15 = int_to_ptr.vmem [resolvable:$true] %s126_s15 }
   0x5   : > { %p1058_p2 = pnand %p715_p0, %p114_p1  ;;  %s1027_s18 = smov [#allocation4]  }
   0x6   : > { %s1328_s17 = scalar_select %p1064_p3, 1, 0 }
   0x7   : > { %s1327_s16 = scalar_select %p1058_p2, 1, 0 }
   0x8   : > { %p867_p4 = pneg %p1058_p2  ;;  %s140_s19 = sshll.u32 %s1027_s18, 4  ;;  %s1076_s19 = int_to_ptr.vmem [resolvable:$true] %s140_s19 }
   0x9   : > { %s954_s23 = scalar_lea.hbm %s1321_s1, 384 }
   0xa   : > { %p1072_p5 = pnand %p1064_p3, %p867_p4  ;;  %p955_p6 = scmp.ne.s32.totalorder %s1321_s1, %s954_s23 }
   0xb   : > { %p961_p10 = scmp.lt.u32.totalorder %s954_s23, %s1321_s1 }
   0xc   : > { %p956_p7 = pneg %p1072_p5 }
   0xe   : > { %p957_p8 = pnand %p956_p7, %p955_p6 }
  0x10   : > { %p958_p9 = pneg %p957_p8 }
  0x12   : > { %p963_p11 = pnand %p961_p10, %p958_p9 }
  0x14   : > { %966 = shalt.err (!%p963_p11)
}
  0x15   : > { %s967_s28 = scalar_lea.vmem %s127_s15, 384  ;;  %p975_p1 = scmp.lt.s32.totalorder %s127_s15, %s127_s15 }
  0x16   : > { %p968_p12 = scmp.ne.s32.totalorder %s127_s15, %s967_s28  ;;  %p976_p4 = scmp.lt.s32.totalorder %s967_s28, %s967_s28 }
  0x18   : > { %p970_p13 = pnand %p968_p12, %p956_p7  ;;  %p977_p3 = por %p976_p4, %p975_p1 }
  0x1a   : > { %p971_p0 = pneg %p970_p13 }
  0x1c   : > { %p978_p2 = pnand %p977_p3, %p971_p0 }
  0x1e   : > { %981 = shalt.err (!%p978_p2)
}
  0x1f   : > { %s1028_s29 = smov 128   ;;  %s1029_s30 = smov 8  }
  0x20   : > { %870 = dma.hbm_to_vmem [thread:$0]  (!%p1072_p5), %s1321_s1, 384, %s127_s15, [#allocation3], %s1028_s29, %s1028_s29, %s1029_s30  }
  0x21   : > { %s982_s8 = scalar_lea.hbm %s1322_s2, 16 }
  0x22   : > { %p983_p6 = scmp.ne.s32.totalorder %s1322_s2, %s982_s8  ;;  %p989_p8 = scmp.lt.u32.totalorder %s982_s8, %s1322_s2 }
  0x24   : > { %p985_p2 = pnand %p983_p6, %p956_p7 }
  0x26   : > { %p986_p3 = pneg %p985_p2 }
  0x28   : > { %p991_p9 = pnand %p989_p8, %p986_p3 }
  0x2a   : > { %994 = shalt.err (!%p991_p9)
}
  0x2b   : > { %s995_s15 = scalar_lea.vmem %s1076_s19, 16  ;;  %s1002_s18 = scalar_lea.vmem %s1076_s19, 32 }
  0x2c   : > { %p996_p10 = scmp.ne.s32.totalorder %s1076_s19, %s995_s15  ;;  %p1003_p13 = scmp.lt.s32.totalorder %s1076_s19, %s1076_s19 }
  0x2d   : > { %p1004_p0 = scmp.lt.s32.totalorder %s1002_s18, %s995_s15 }
  0x2e   : > { %p998_p11 = pnand %p996_p10, %p956_p7 }
  0x2f   : > { %p1005_p1 = por %p1004_p0, %p1003_p13 }
  0x30   : > { %p999_p12 = pneg %p998_p11 }
  0x32   : > { %p1006_p4 = pnand %p1005_p1, %p999_p12 }
  0x34   : > { %1009 = shalt.err (!%p1006_p4)
}
  0x35   : > { %873 = dma.hbm_to_vmem [thread:$0]  (!%p1072_p5), %s1322_s2, 16, %s1076_s19, [#allocation5]  }
  0x36   : > { %p1330_p6 = scmp.ne.s32.totalorder %s1327_s16, 0 }
  0x37   : > { %p1331_p7 = scmp.ne.s32.totalorder (!%p1330_p6), %s1328_s17, 0 }
  0x38   : > { %162 = sbr.rel (%p1330_p6) target bundleno = 333 (0x14d), region = 32 }
  0x3f   : > { %1015 = dma.done.wait (%p1331_p7), [#allocation3], 384  }
  0x40   : > { %1017 = vsyncadd (%p1331_p7), [#allocation3], 4294966912 }
  0x41   : > { %1019 = dma.done.wait (%p1331_p7), [#allocation5], 16  }
  0x42   : > { %1021 = vsyncadd (%p1331_p7), [#allocation5], 4294967280  ;;  %s722_s20 = sshll.u32 %s713_s13, 5  ;;  %vm244_vm0 = vcmask 146432   ;;  %v234_v0 = vld [vmem:[#allocation2] sm:$0xff]  ;;  %v235_v1 = vld [vmem:[#allocation2 + $0x8] sm:$0xff] }
  0x43   : > { %p191_p2 = scmp.lt.s32.totalorder %s722_s20, 63  ;;  %v851_v2 = vpack.c.bf16 %v235_v1, %v234_v0  ;;  %v236_v5 = vld [vmem:[#allocation2 + $0x10] sm:$0x3]  ;;  %vm341_vm1 = vcmask 1041408   ;;  %v1212_v36 = vld [vmem:[#allocation4] ss:$0 sm:$0xff] }
  0x44   : > { %vm602_vm2 = vcmask 261120  }
  0x45   : > { %s1333_s20 = smov (!%p191_p2, %s722_s20), 63  ;;  %852 = vmatprep.subr.bf16.mxu0 %v851_v2  ;;  %855 = vmatprep.subr.bf16.mxu1 %v851_v2 }
  0x46   : > { %s723_s16 = sshll.u32 %s1333_s20, 3  ;;  %854 = vmatpush3.bf16.msra.mxu0 %v851_v2  ;;  %857 = vmatpush3.bf16.msra.mxu1 %v851_v2 }
  0x47   : > { %s1146_s24 = scalar_lea.vmem %s1320_s0, %s723_s16  ;;  %801 = vmatprep.subr.msk.mxu0 %vm341_vm1, %v236_v5  ;;  %856 = vmatprep.subr.msk.mxu1 %vm341_vm1, %v236_v5  ;;  %s1231_s25 = scalar_lea.vmem %s1323_s3, %s723_s16 }
  0x48   : > { %v202_v3 = vld [vmem:[%s1146_s24] sm:$0xff]  ;;  %v203_v6 = vld [vmem:[%s1146_s24 + $0x8] sm:$0xff]  ;;  %v204_v8 = vld [vmem:[%s1146_s24 + $0x10] sm:$0xff] }
  0x49   : > { %v218_v4 = vld [vmem:[%s1146_s24 + $0x80] sm:$0xff]  ;;  %803 = vmatprep.mubr.msk.f32.mxu0 %vm244_vm0, %v202_v3  ;;  %v219_v7 = vld [vmem:[%s1146_s24 + $0x88] sm:$0xff]  ;;  %v220_v9 = vld [vmem:[%s1146_s24 + $0x90] sm:$0xff] }
  0x4a   : > { %827 = vmatprep.mubr.msk.f32.mxu1 %vm244_vm0, %v218_v4  ;;  %802 = vmatpush3.msk.msra.mxu0 %vm341_vm1, %v236_v5  ;;  %v205_v10 = vld [vmem:[%s1146_s24 + $0x18] sm:$0xff]  ;;  %v206_v12 = vld [vmem:[%s1146_s24 + $0x20] sm:$0xff]  ;;  %v207_v14 = vld [vmem:[%s1146_s24 + $0x28] sm:$0xff] }
  0x4b   : > { %858 = vmatpush3.msk.msra.mxu1 %vm341_vm1, %v236_v5  ;;  %804 = vmatmul.mubr.msk.f32.vlgmr.msra.gmra.mrb[0].mxu0 %vm244_vm0, %v203_v6  ;;  %v221_v11 = vld [vmem:[%s1146_s24 + $0x98] sm:$0xff]  ;;  %v222_v13 = vld [vmem:[%s1146_s24 + $0xa0] sm:$0xff]  ;;  %v223_v15 = vld [vmem:[%s1146_s24 + $0xa8] sm:$0xff] }
  0x4c   : > { %828 = vmatmul.mubr.msk.f32.vlgmr.msra.gmra.mrb[0].mxu1 %vm244_vm0, %v219_v7  ;;  %806 = vmatprep.mubr.msk.f32.mxu0 %vm244_vm0, %v204_v8  ;;  %v208_v16 = vld [vmem:[%s1146_s24 + $0x30] sm:$0xff]  ;;  %v209_v18 = vld [vmem:[%s1146_s24 + $0x38] sm:$0xff]  ;;  %v210_v20 = vld [vmem:[%s1146_s24 + $0x40] sm:$0xff] }
  0x4d   : > { %830 = vmatprep.mubr.msk.f32.mxu1 %vm244_vm0, %v220_v9  ;;  %v224_v17 = vld [vmem:[%s1146_s24 + $0xb0] sm:$0xff]  ;;  %v225_v19 = vld [vmem:[%s1146_s24 + $0xb8] sm:$0xff]  ;;  %v226_v21 = vld [vmem:[%s1146_s24 + $0xc0] sm:$0xff] }
  0x4e   : > { %v211_v22 = vld [vmem:[%s1146_s24 + $0x48] sm:$0xff]  ;;  %v212_v24 = vld [vmem:[%s1146_s24 + $0x50] sm:$0xff]  ;;  %v213_v26 = vld [vmem:[%s1146_s24 + $0x58] sm:$0xff] }
  0x4f   : > { %807 = vmatmul.mubr.msk.f32.gmra.mrb[2].mxu0 %vm244_vm0, %v205_v10  ;;  %v227_v23 = vld [vmem:[%s1146_s24 + $0xc8] sm:$0xff]  ;;  %v228_v25 = vld [vmem:[%s1146_s24 + $0xd0] sm:$0xff]  ;;  %v229_v27 = vld [vmem:[%s1146_s24 + $0xd8] sm:$0xff] }
  0x50   : > { %831 = vmatmul.mubr.msk.f32.gmra.mrb[2].mxu1 %vm244_vm0, %v221_v11  ;;  %809 = vmatprep.mubr.msk.f32.mxu0 %vm244_vm0, %v206_v12  ;;  %v214_v28 = vld [vmem:[%s1146_s24 + $0x60] sm:$0xff]  ;;  %v215_v30 = vld [vmem:[%s1146_s24 + $0x68] sm:$0xff]  ;;  %v216_v32 = vld [vmem:[%s1146_s24 + $0x70] sm:$0xff] }
  0x51   : > { %833 = vmatprep.mubr.msk.f32.mxu1 %vm244_vm0, %v222_v13  ;;  %v230_v29 = vld [vmem:[%s1146_s24 + $0xe0] sm:$0xff]  ;;  %v231_v31 = vld [vmem:[%s1146_s24 + $0xe8] sm:$0xff]  ;;  %v232_v33 = vld [vmem:[%s1146_s24 + $0xf0] sm:$0xff] }
  0x52   : > { %v217_v34 = vld [vmem:[%s1146_s24 + $0x78] sm:$0xff] }
  0x53   : > { %810 = vmatmul.mubr.msk.f32.gmra.mrb[4].mxu0 %vm244_vm0, %v207_v14  ;;  %v233_v35 = vld [vmem:[%s1146_s24 + $0xf8] sm:$0xff] }
  0x54   : > { %834 = vmatmul.mubr.msk.f32.gmra.mrb[4].mxu1 %vm244_vm0, %v223_v15  ;;  %812 = vmatprep.mubr.msk.f32.mxu0 %vm244_vm0, %v208_v16 }
  0x55   : > { %836 = vmatprep.mubr.msk.f32.mxu1 %vm244_vm0, %v224_v17 }
  0x57   : > { %813 = vmatmul.mubr.msk.f32.gmra.mrb[6].mxu0 %vm244_vm0, %v209_v18 }
  0x58   : > { %837 = vmatmul.mubr.msk.f32.gmra.mrb[6].mxu1 %vm244_vm0, %v225_v19  ;;  %815 = vmatprep.mubr.msk.f32.mxu0 %vm244_vm0, %v210_v20 }
  0x59   : > { %839 = vmatprep.mubr.msk.f32.mxu1 %vm244_vm0, %v226_v21 }
  0x5b   : > { %816 = vmatmul.mubr.msk.f32.gmra.mrb[8].mxu0 %vm244_vm0, %v211_v22 }
  0x5c   : > { %840 = vmatmul.mubr.msk.f32.gmra.mrb[8].mxu1 %vm244_vm0, %v227_v23  ;;  %818 = vmatprep.mubr.msk.f32.mxu0 %vm244_vm0, %v212_v24 }
  0x5d   : > { %842 = vmatprep.mubr.msk.f32.mxu1 %vm244_vm0, %v228_v25 }
  0x5f   : > { %819 = vmatmul.mubr.msk.f32.gmra.mrb[10].mxu0 %vm244_vm0, %v213_v26 }
  0x60   : > { %843 = vmatmul.mubr.msk.f32.gmra.mrb[10].mxu1 %vm244_vm0, %v229_v27  ;;  %821 = vmatprep.mubr.msk.f32.mxu0 %vm244_vm0, %v214_v28 }
  0x61   : > { %845 = vmatprep.mubr.msk.f32.mxu1 %vm244_vm0, %v230_v29 }
  0x63   : > { %822 = vmatmul.mubr.msk.f32.gmra.mrb[12].mxu0 %vm244_vm0, %v215_v30 }
  0x64   : > { %846 = vmatmul.mubr.msk.f32.gmra.mrb[12].mxu1 %vm244_vm0, %v231_v31  ;;  %824 = vmatprep.mubr.msk.f32.mxu0 %vm244_vm0, %v216_v32 }
  0x65   : > { %848 = vmatprep.mubr.msk.f32.mxu1 %vm244_vm0, %v232_v33 }
  0x67   : > { %825 = vmatmul.mubr.msk.f32.gmra.mrb[14].mxu0 %vm244_vm0, %v217_v34 }
  0x68   : > { %849 = vmatmul.mubr.msk.f32.gmra.mrb[14].mxu1 %vm244_vm0, %v233_v35 }
 0x11e   : > { %v805_v37 = vpop.f32.mrb[0].mxu0 }
 0x11f   : > { %v829_v38 = vpop.f32.mrb[0].mxu1  ;;  %v417_v39 = vadd.f32 %v805_v37, %v1212_v36  ;;  %v411_v41 = vpop.f32.mrb[1].mxu0 }
 0x120   : > { %v497_v40 = vadd.f32 %v829_v38, %v1212_v36  ;;  %v491_v42 = vpop.f32.mrb[1].mxu1  ;;  %v412_v43 = vadd.f32 %v1212_v36, %v411_v41 }
 0x121   : > { %v492_v44 = vadd.f32 %v1212_v36, %v491_v42  ;;  %890 = vtanh.f32 %v417_v39 }
 0x122   : > { %892 = vtanh.f32 %v497_v40  ;;  %v808_v45 = vpop.f32.mrb[2].mxu0 }
 0x123   : > { %v832_v46 = vpop.f32.mrb[2].mxu1  ;;  %894 = vtanh.f32 %v412_v43  ;;  %v427_v47 = vadd.f32 %v808_v45, %v1212_v36  ;;  %v421_v49 = vpop.f32.mrb[3].mxu0 }
 0x124   : > { %v507_v48 = vadd.f32 %v832_v46, %v1212_v36  ;;  %v501_v50 = vpop.f32.mrb[3].mxu1  ;;  %896 = vtanh.f32 %v492_v44  ;;  %v422_v51 = vadd.f32 %v1212_v36, %v421_v49 }
 0x125   : > { %v502_v52 = vadd.f32 %v1212_v36, %v501_v50  ;;  %898 = vtanh.f32 %v427_v47 }
 0x126   : > { %900 = vtanh.f32 %v507_v48  ;;  %v811_v53 = vpop.f32.mrb[4].mxu0 }
 0x127   : > { %v835_v54 = vpop.f32.mrb[4].mxu1  ;;  %902 = vtanh.f32 %v422_v51  ;;  %v437_v55 = vadd.f32 %v811_v53, %v1212_v36  ;;  %v431_v57 = vpop.f32.mrb[5].mxu0 }
 0x128   : > { %v517_v56 = vadd.f32 %v835_v54, %v1212_v36  ;;  %v511_v58 = vpop.f32.mrb[5].mxu1  ;;  %904 = vtanh.f32 %v502_v52  ;;  %v432_v59 = vadd.f32 %v1212_v36, %v431_v57 }
 0x129   : > { %v512_v60 = vadd.f32 %v1212_v36, %v511_v58  ;;  %906 = vtanh.f32 %v437_v55 }
 0x12a   : > { %908 = vtanh.f32 %v517_v56  ;;  %v814_v61 = vpop.f32.mrb[6].mxu0 }
 0x12b   : > { %v838_v62 = vpop.f32.mrb[6].mxu1  ;;  %v891_v63 = vpop.eup %890  ;;  %910 = vtanh.f32 %v432_v59  ;;  %v447_v0 = vadd.f32 %v814_v61, %v1212_v36 }
 0x12c   : > { %v527_v1 = vadd.f32 %v838_v62, %v1212_v36  ;;  %v441_v2 = vpop.f32.mrb[7].mxu0  ;;  %v521_v3 = vpop.f32.mrb[7].mxu1  ;;  %604 = vst.msk [vmem:[%s1231_s25 + $0x8] sm:$0xff] %vm602_vm2, %v891_v63  ;;  %912 = vtanh.f32 %v512_v60 }
 0x12d   : > { %v893_v4 = vpop.eup %892  ;;  %v442_v5 = vadd.f32 %v1212_v36, %v441_v2  ;;  %v522_v6 = vadd.f32 %v1212_v36, %v521_v3  ;;  %914 = vtanh.f32 %v447_v0 }
 0x12e   : > { %v895_v7 = vpop.eup %894  ;;  %620 = vst.msk [vmem:[%s1231_s25 + $0x88] sm:$0xff] %vm602_vm2, %v893_v4  ;;  %916 = vtanh.f32 %v527_v1  ;;  %v817_v9 = vpop.f32.mrb[8].mxu0 }
 0x12f   : > { %v897_v8 = vpop.eup %896  ;;  %603 = vst.msk [vmem:[%s1231_s25] sm:$0xff] %vm602_vm2, %v895_v7  ;;  %v841_v10 = vpop.f32.mrb[8].mxu1  ;;  %918 = vtanh.f32 %v442_v5  ;;  %v457_v12 = vadd.f32 %v817_v9, %v1212_v36 }
 0x130   : > { %v899_v11 = vpop.eup %898  ;;  %619 = vst.msk [vmem:[%s1231_s25 + $0x80] sm:$0xff] %vm602_vm2, %v897_v8  ;;  %v537_v13 = vadd.f32 %v841_v10, %v1212_v36  ;;  %v451_v14 = vpop.f32.mrb[9].mxu0  ;;  %920 = vtanh.f32 %v522_v6 }
 0x131   : > { %v531_v15 = vpop.f32.mrb[9].mxu1  ;;  %v901_v16 = vpop.eup %900  ;;  %606 = vst.msk [vmem:[%s1231_s25 + $0x18] sm:$0xff] %vm602_vm2, %v899_v11  ;;  %v452_v17 = vadd.f32 %v1212_v36, %v451_v14  ;;  %922 = vtanh.f32 %v457_v12 }
 0x132   : > { %v532_v18 = vadd.f32 %v1212_v36, %v531_v15  ;;  %v903_v19 = vpop.eup %902  ;;  %622 = vst.msk [vmem:[%s1231_s25 + $0x98] sm:$0xff] %vm602_vm2, %v901_v16  ;;  %924 = vtanh.f32 %v537_v13  ;;  %v820_v21 = vpop.f32.mrb[10].mxu0 }
 0x133   : > { %v905_v20 = vpop.eup %904  ;;  %605 = vst.msk [vmem:[%s1231_s25 + $0x10] sm:$0xff] %vm602_vm2, %v903_v19  ;;  %v844_v22 = vpop.f32.mrb[10].mxu1  ;;  %926 = vtanh.f32 %v452_v17  ;;  %v467_v24 = vadd.f32 %v820_v21, %v1212_v36 }
 0x134   : > { %v907_v23 = vpop.eup %906  ;;  %621 = vst.msk [vmem:[%s1231_s25 + $0x90] sm:$0xff] %vm602_vm2, %v905_v20  ;;  %v547_v25 = vadd.f32 %v844_v22, %v1212_v36  ;;  %v461_v26 = vpop.f32.mrb[11].mxu0  ;;  %928 = vtanh.f32 %v532_v18 }
 0x135   : > { %v541_v27 = vpop.f32.mrb[11].mxu1  ;;  %v909_v28 = vpop.eup %908  ;;  %608 = vst.msk [vmem:[%s1231_s25 + $0x28] sm:$0xff] %vm602_vm2, %v907_v23  ;;  %v462_v29 = vadd.f32 %v1212_v36, %v461_v26  ;;  %930 = vtanh.f32 %v467_v24 }
 0x136   : > { %v542_v30 = vadd.f32 %v1212_v36, %v541_v27  ;;  %v911_v31 = vpop.eup %910  ;;  %624 = vst.msk [vmem:[%s1231_s25 + $0xa8] sm:$0xff] %vm602_vm2, %v909_v28  ;;  %932 = vtanh.f32 %v547_v25  ;;  %v823_v33 = vpop.f32.mrb[12].mxu0 }
 0x137   : > { %v913_v32 = vpop.eup %912  ;;  %607 = vst.msk [vmem:[%s1231_s25 + $0x20] sm:$0xff] %vm602_vm2, %v911_v31  ;;  %v847_v34 = vpop.f32.mrb[12].mxu1  ;;  %934 = vtanh.f32 %v462_v29  ;;  %v477_v37 = vadd.f32 %v823_v33, %v1212_v36 }
 0x138   : > { %v915_v35 = vpop.eup %914  ;;  %623 = vst.msk [vmem:[%s1231_s25 + $0xa0] sm:$0xff] %vm602_vm2, %v913_v32  ;;  %v557_v38 = vadd.f32 %v847_v34, %v1212_v36  ;;  %v471_v39 = vpop.f32.mrb[13].mxu0  ;;  %936 = vtanh.f32 %v542_v30 }
 0x139   : > { %v551_v40 = vpop.f32.mrb[13].mxu1  ;;  %v917_v41 = vpop.eup %916  ;;  %610 = vst.msk [vmem:[%s1231_s25 + $0x38] sm:$0xff] %vm602_vm2, %v915_v35  ;;  %v472_v42 = vadd.f32 %v1212_v36, %v471_v39  ;;  %938 = vtanh.f32 %v477_v37 }
 0x13a   : > { %v552_v43 = vadd.f32 %v1212_v36, %v551_v40  ;;  %v919_v44 = vpop.eup %918  ;;  %626 = vst.msk [vmem:[%s1231_s25 + $0xb8] sm:$0xff] %vm602_vm2, %v917_v41  ;;  %940 = vtanh.f32 %v557_v38  ;;  %v826_v46 = vpop.f32.mrb[14].mxu0 }
 0x13b   : > { %v921_v45 = vpop.eup %920  ;;  %609 = vst.msk [vmem:[%s1231_s25 + $0x30] sm:$0xff] %vm602_vm2, %v919_v44  ;;  %v850_v47 = vpop.f32.mrb[14].mxu1  ;;  %942 = vtanh.f32 %v472_v42  ;;  %v487_v49 = vadd.f32 %v826_v46, %v1212_v36 }
 0x13c   : > { %v923_v48 = vpop.eup %922  ;;  %625 = vst.msk [vmem:[%s1231_s25 + $0xb0] sm:$0xff] %vm602_vm2, %v921_v45  ;;  %v567_v50 = vadd.f32 %v850_v47, %v1212_v36  ;;  %v481_v51 = vpop.f32.mrb[15].mxu0  ;;  %944 = vtanh.f32 %v552_v43 }
 0x13d   : > { %v561_v52 = vpop.f32.mrb[15].mxu1  ;;  %v925_v53 = vpop.eup %924  ;;  %612 = vst.msk [vmem:[%s1231_s25 + $0x48] sm:$0xff] %vm602_vm2, %v923_v48  ;;  %v482_v54 = vadd.f32 %v1212_v36, %v481_v51  ;;  %946 = vtanh.f32 %v487_v49 }
 0x13e   : > { %v562_v55 = vadd.f32 %v1212_v36, %v561_v52  ;;  %v927_v56 = vpop.eup %926  ;;  %628 = vst.msk [vmem:[%s1231_s25 + $0xc8] sm:$0xff] %vm602_vm2, %v925_v53  ;;  %948 = vtanh.f32 %v567_v50 }
 0x13f   : > { %v929_v57 = vpop.eup %928  ;;  %611 = vst.msk [vmem:[%s1231_s25 + $0x40] sm:$0xff] %vm602_vm2, %v927_v56  ;;  %950 = vtanh.f32 %v482_v54 }
 0x140   : > { %v931_v58 = vpop.eup %930  ;;  %627 = vst.msk [vmem:[%s1231_s25 + $0xc0] sm:$0xff] %vm602_vm2, %v929_v57  ;;  %952 = vtanh.f32 %v562_v55 }
 0x141   : > { %v933_v59 = vpop.eup %932  ;;  %614 = vst.msk [vmem:[%s1231_s25 + $0x58] sm:$0xff] %vm602_vm2, %v931_v58 }
 0x142   : > { %v935_v36 = vpop.eup %934  ;;  %630 = vst.msk [vmem:[%s1231_s25 + $0xd8] sm:$0xff] %vm602_vm2, %v933_v59 }
 0x143   : > { %v937_v60 = vpop.eup %936  ;;  %613 = vst.msk [vmem:[%s1231_s25 + $0x50] sm:$0xff] %vm602_vm2, %v935_v36 }
 0x144   : > { %v939_v61 = vpop.eup %938  ;;  %629 = vst.msk [vmem:[%s1231_s25 + $0xd0] sm:$0xff] %vm602_vm2, %v937_v60 }
 0x145   : > { %v941_v62 = vpop.eup %940  ;;  %616 = vst.msk [vmem:[%s1231_s25 + $0x68] sm:$0xff] %vm602_vm2, %v939_v61 }
 0x146   : > { %v943_v63 = vpop.eup %942  ;;  %632 = vst.msk [vmem:[%s1231_s25 + $0xe8] sm:$0xff] %vm602_vm2, %v941_v62 }
 0x147   : > { %v945_v0 = vpop.eup %944  ;;  %615 = vst.msk [vmem:[%s1231_s25 + $0x60] sm:$0xff] %vm602_vm2, %v943_v63 }
 0x148   : > { %v947_v1 = vpop.eup %946  ;;  %631 = vst.msk [vmem:[%s1231_s25 + $0xe0] sm:$0xff] %vm602_vm2, %v945_v0 }
 0x149   : > { %v949_v2 = vpop.eup %948  ;;  %618 = vst.msk [vmem:[%s1231_s25 + $0x78] sm:$0xff] %vm602_vm2, %v947_v1 }
 0x14a   : > { %v951_v3 = vpop.eup %950  ;;  %634 = vst.msk [vmem:[%s1231_s25 + $0xf8] sm:$0xff] %vm602_vm2, %v949_v2 }
 0x14b   : > { %v953_v4 = vpop.eup %952  ;;  %617 = vst.msk [vmem:[%s1231_s25 + $0x70] sm:$0xff] %vm602_vm2, %v951_v3 }
 0x14c   : > { %633 = vst.msk [vmem:[%s1231_s25 + $0xf0] sm:$0xff] %vm602_vm2, %v953_v4 }
 0x14d PF: > { %s15_s12 = sadd.s32 1, %s1024_s12  }
 0x14e   : > { %p12_p5 = scmp.ge.s32.totalorder %s15_s12, 4  }
 0x150   :  { %14 = sbr.rel (!%p12_p5) target bundleno = 2 (0x2), region = 71 }
 0x157   :  { %657 = vsyncpa [#allocation3], 1 }
 0x158   :  { %659 = vsyncpa [#allocation3 + $0x1], 1 }
 0x159   :  { %660 = vsyncpa [#allocation5], 1 }

// kernel: cnn_autoencoder_forward.10
= control target key start
LH: loop header
LB: loop body
LE: loop exit
PB: predicated region body
PF: predicated region fallthrough
CT: control target
= control target key end

     0   :  { %vm105_vm0 = vcmask 261120   ;;  %vm460_vm1 = vcmask 523264   ;;  %s1103_s1 = inlined_call_operand.vmem [shape: f32[288,64], index: 1, kind: input, shape index: {}]   ;;  %s1104_s0 = inlined_call_operand.vmem [shape: f32[128,288], index: 0, kind: input, shape index: {}]   ;;  %s1105_s2 = inlined_call_operand.vmem [shape: f32[1,64], index: 2, kind: input, shape index: {}]   ;;  %s1106_s3 = inlined_call_operand.vmem [shape: f32[128,64], index: 3, kind: output, shape index: {}]  }
   0x1   :  { %v78_v0 = vld [vmem:[%s1103_s1 + $0x80] sm:$0xff]  ;;  %v79_v1 = vld [vmem:[%s1103_s1 + $0x88] sm:$0xff]  ;;  %v80_v5 = vld [vmem:[%s1103_s1 + $0x90] sm:$0xff] }
   0x2   :  { %v62_v2 = vld [vmem:[%s1103_s1] sm:$0xff]  ;;  %v630_v3 = vpack.c.bf16 %v79_v1, %v78_v0  ;;  %v63_v4 = vld [vmem:[%s1103_s1 + $0x8] sm:$0xff]  ;;  %v81_v6 = vld [vmem:[%s1103_s1 + $0x98] sm:$0xff] }
   0x3   :  { %v632_v7 = vpack.c.bf16 %v63_v4, %v62_v2  ;;  %v634_v8 = vpack.c.bf16 %v81_v6, %v80_v5  ;;  %v64_v9 = vld [vmem:[%s1103_s1 + $0x10] sm:$0xff]  ;;  %v65_v10 = vld [vmem:[%s1103_s1 + $0x18] sm:$0xff]  ;;  %v82_v11 = vld [vmem:[%s1103_s1 + $0xa0] sm:$0xff] }
   0x4   :  { %631 = vmatprep.subr.bf16.mxu0 %v630_v3  ;;  %670 = vmatprep.subr.bf16.mxu1 %v630_v3  ;;  %v83_v12 = vld [vmem:[%s1103_s1 + $0xa8] sm:$0xff]  ;;  %v636_v13 = vpack.c.bf16 %v65_v10, %v64_v9  ;;  %v66_v15 = vld [vmem:[%s1103_s1 + $0x20] sm:$0xff]  ;;  %v84_v17 = vld [vmem:[%s1103_s1 + $0xb0] sm:$0xff] }
   0x5   :  { %633 = vmatpush3.bf16.msra.mxu0 %v632_v7  ;;  %678 = vmatpush3.bf16.msra.mxu1 %v632_v7  ;;  %v638_v14 = vpack.c.bf16 %v83_v12, %v82_v11  ;;  %v67_v16 = vld [vmem:[%s1103_s1 + $0x28] sm:$0xff]  ;;  %v85_v18 = vld [vmem:[%s1103_s1 + $0xb8] sm:$0xff]  ;;  %v68_v21 = vld [vmem:[%s1103_s1 + $0x30] sm:$0xff] }
   0x6   :  { %635 = vmatprep.subr.bf16.mxu0 %v634_v8  ;;  %671 = vmatprep.subr.bf16.mxu1 %v634_v8  ;;  %v640_v19 = vpack.c.bf16 %v67_v16, %v66_v15  ;;  %v642_v20 = vpack.c.bf16 %v85_v18, %v84_v17  ;;  %v69_v22 = vld [vmem:[%s1103_s1 + $0x38] sm:$0xff]  ;;  %v86_v23 = vld [vmem:[%s1103_s1 + $0xc0] sm:$0xff]  ;;  %v87_v24 = vld [vmem:[%s1103_s1 + $0xc8] sm:$0xff] }
   0x7   :  { %v15_v25 = vld [vmem:[%s1104_s0 + $0x8] sm:$0xff]  ;;  %v644_v27 = vpack.c.bf16 %v69_v22, %v68_v21  ;;  %v646_v28 = vpack.c.bf16 %v87_v24, %v86_v23  ;;  %v70_v29 = vld [vmem:[%s1103_s1 + $0x40] sm:$0xff]  ;;  %v88_v31 = vld [vmem:[%s1103_s1 + $0xd0] sm:$0xff] }
   0x8   :  { %218 = vmatprep.mubr.f32.mxu0 %v15_v25  ;;  %v51_v26 = vld [vmem:[%s1104_s0 + $0x128] sm:$0xff]  ;;  %v89_v32 = vld [vmem:[%s1103_s1 + $0xd8] sm:$0xff]  ;;  %v72_v35 = vld [vmem:[%s1103_s1 + $0x50] sm:$0xff] }
   0x9   :  { %637 = vmatpush3.bf16.msra.mxu0 %v636_v13  ;;  %679 = vmatpush3.bf16.msra.mxu1 %v636_v13  ;;  %v71_v30 = vld [vmem:[%s1103_s1 + $0x48] sm:$0xff]  ;;  %v650_v34 = vpack.c.bf16 %v89_v32, %v88_v31  ;;  %v73_v36 = vld [vmem:[%s1103_s1 + $0x58] sm:$0xff]  ;;  %v90_v37 = vld [vmem:[%s1103_s1 + $0xe0] sm:$0xff] }
   0xa   :  { %639 = vmatprep.subr.bf16.mxu0 %v638_v14  ;;  %672 = vmatprep.subr.bf16.mxu1 %v638_v14  ;;  %v648_v33 = vpack.c.bf16 %v71_v30, %v70_v29  ;;  %v91_v38 = vld [vmem:[%s1103_s1 + $0xe8] sm:$0xff]  ;;  %v652_v39 = vpack.c.bf16 %v73_v36, %v72_v35  ;;  %v74_v41 = vld [vmem:[%s1103_s1 + $0x60] sm:$0xff]  ;;  %v92_v43 = vld [vmem:[%s1103_s1 + $0xf0] sm:$0xff] }
   0xb   :  { %278 = vmatprep.mubr.f32.mxu1 %v51_v26  ;;  %v654_v40 = vpack.c.bf16 %v91_v38, %v90_v37  ;;  %v75_v42 = vld [vmem:[%s1103_s1 + $0x68] sm:$0xff]  ;;  %v93_v44 = vld [vmem:[%s1103_s1 + $0xf8] sm:$0xff]  ;;  %v76_v47 = vld [vmem:[%s1103_s1 + $0x70] sm:$0xff] }
   0xc   :  { %v656_v45 = vpack.c.bf16 %v75_v42, %v74_v41  ;;  %v658_v46 = vpack.c.bf16 %v93_v44, %v92_v43  ;;  %v77_v48 = vld [vmem:[%s1103_s1 + $0x78] sm:$0xff]  ;;  %v94_v49 = vld [vmem:[%s1103_s1 + $0x100] sm:$0xff]  ;;  %v95_v50 = vld [vmem:[%s1103_s1 + $0x108] sm:$0xff] }
   0xd   :  { %641 = vmatpush3.bf16.msra.mxu0 %v640_v19  ;;  %680 = vmatpush3.bf16.msra.mxu1 %v640_v19  ;;  %v660_v51 = vpack.c.bf16 %v77_v48, %v76_v47  ;;  %v662_v52 = vpack.c.bf16 %v95_v50, %v94_v49  ;;  %v96_v53 = vld [vmem:[%s1103_s1 + $0x110] sm:$0xff]  ;;  %v97_v54 = vld [vmem:[%s1103_s1 + $0x118] sm:$0xff]  ;;  %v14_v55 = vld [vmem:[%s1104_s0] sm:$0xff] }
   0xe   :  { %643 = vmatprep.subr.bf16.mxu0 %v642_v20  ;;  %673 = vmatprep.subr.bf16.mxu1 %v642_v20  ;;  %v50_v56 = vld [vmem:[%s1104_s0 + $0x120] sm:$0xff]  ;;  %v666_v59 = vpack.c.bf16 %v97_v54, %v96_v53  ;;  %v17_v60 = vld [vmem:[%s1104_s0 + $0x18] sm:$0xff]  ;;  %v20_v0 = vld [vmem:[%s1104_s0 + $0x30] sm:$0xff] }
   0xf   :  { %v18_v57 = vld [vmem:[%s1104_s0 + $0x20] sm:$0xff]  ;;  %v53_v61 = vld [vmem:[%s1104_s0 + $0x138] sm:$0xff]  ;;  %v56_v1 = vld [vmem:[%s1104_s0 + $0x150] sm:$0xff] }
  0x10   :  { %v54_v58 = vld [vmem:[%s1104_s0 + $0x140] sm:$0xff]  ;;  %v21_v62 = vld [vmem:[%s1104_s0 + $0x38] sm:$0xff]  ;;  %v24_v2 = vld [vmem:[%s1104_s0 + $0x50] sm:$0xff] }
  0x11   :  { %645 = vmatpush3.bf16.msra.mxu0 %v644_v27  ;;  %681 = vmatpush3.bf16.msra.mxu1 %v644_v27  ;;  %v57_v63 = vld [vmem:[%s1104_s0 + $0x158] sm:$0xff]  ;;  %v60_v3 = vld [vmem:[%s1104_s0 + $0x170] sm:$0xff]  ;;  %v23_v4 = vld [vmem:[%s1104_s0 + $0x48] sm:$0xff] }
  0x12   :  { %647 = vmatprep.subr.bf16.mxu0 %v646_v28  ;;  %674 = vmatprep.subr.bf16.mxu1 %v646_v28  ;;  %v59_v5 = vld [vmem:[%s1104_s0 + $0x168] sm:$0xff]  ;;  %v16_v7 = vld [vmem:[%s1104_s0 + $0x10] sm:$0xff]  ;;  %v26_v8 = vld [vmem:[%s1104_s0 + $0x60] sm:$0xff] }
  0x13   :  { %v27_v6 = vld [vmem:[%s1104_s0 + $0x68] sm:$0xff]  ;;  %v30_v10 = vld [vmem:[%s1104_s0 + $0x80] sm:$0xff]  ;;  %v29_v12 = vld [vmem:[%s1104_s0 + $0x78] sm:$0xff] }
  0x14   :  { %v19_v9 = vld [vmem:[%s1104_s0 + $0x28] sm:$0xff]  ;;  %v22_v11 = vld [vmem:[%s1104_s0 + $0x40] sm:$0xff]  ;;  %v25_v13 = vld [vmem:[%s1104_s0 + $0x58] sm:$0xff] }
  0x15   :  { %649 = vmatpush3.bf16.msra.mxu0 %v648_v33  ;;  %682 = vmatpush3.bf16.msra.mxu1 %v648_v33  ;;  %v33_v14 = vld [vmem:[%s1104_s0 + $0x98] sm:$0xff]  ;;  %v28_v15 = vld [vmem:[%s1104_s0 + $0x70] sm:$0xff]  ;;  %v31_v17 = vld [vmem:[%s1104_s0 + $0x88] sm:$0xff] }
  0x16   :  { %651 = vmatprep.subr.bf16.mxu0 %v650_v34  ;;  %675 = vmatprep.subr.bf16.mxu1 %v650_v34  ;;  %v32_v16 = vld [vmem:[%s1104_s0 + $0x90] sm:$0xff]  ;;  %v34_v19 = vld [vmem:[%s1104_s0 + $0xa0] sm:$0xff]  ;;  %v35_v20 = vld [vmem:[%s1104_s0 + $0xa8] sm:$0xff] }
  0x17   :  { %v36_v18 = vld [vmem:[%s1104_s0 + $0xb0] sm:$0xff]  ;;  %v37_v21 = vld [vmem:[%s1104_s0 + $0xb8] sm:$0xff]  ;;  %v39_v22 = vld [vmem:[%s1104_s0 + $0xc8] sm:$0xff] }
  0x18   :  { %v40_v23 = vld [vmem:[%s1104_s0 + $0xd0] sm:$0xff]  ;;  %v38_v24 = vld [vmem:[%s1104_s0 + $0xc0] sm:$0xff]  ;;  %v43_v25 = vld [vmem:[%s1104_s0 + $0xe8] sm:$0xff] }
  0x19   :  { %653 = vmatpush3.bf16.msra.mxu0 %v652_v39  ;;  %683 = vmatpush3.bf16.msra.mxu1 %v652_v39  ;;  %v42_v26 = vld [vmem:[%s1104_s0 + $0xe0] sm:$0xff]  ;;  %v41_v28 = vld [vmem:[%s1104_s0 + $0xd8] sm:$0xff]  ;;  %v52_v31 = vld [vmem:[%s1104_s0 + $0x130] sm:$0xff] }
  0x1a   :  { %655 = vmatprep.subr.bf16.mxu0 %v654_v40  ;;  %676 = vmatprep.subr.bf16.mxu1 %v654_v40  ;;  %v46_v27 = vld [vmem:[%s1104_s0 + $0x100] sm:$0xff]  ;;  %v49_v29 = vld [vmem:[%s1104_s0 + $0x118] sm:$0xff]  ;;  %v44_v32 = vld [vmem:[%s1104_s0 + $0xf0] sm:$0xff] }
  0x1b   :  { %v45_v30 = vld [vmem:[%s1104_s0 + $0xf8] sm:$0xff]  ;;  %v55_v33 = vld [vmem:[%s1104_s0 + $0x148] sm:$0xff]  ;;  %v48_v34 = vld [vmem:[%s1104_s0 + $0x110] sm:$0xff] }
  0x1c   :  { %v58_v35 = vld [vmem:[%s1104_s0 + $0x160] sm:$0xff]  ;;  %v47_v36 = vld [vmem:[%s1104_s0 + $0x108] sm:$0xff]  ;;  %v61_v37 = vld [vmem:[%s1104_s0 + $0x178] sm:$0xff] }
  0x1d   :  { %657 = vmatpush3.bf16.msra.mxu0 %v656_v45  ;;  %684 = vmatpush3.bf16.msra.mxu1 %v656_v45 }
  0x1e   :  { %659 = vmatprep.subr.bf16.mxu0 %v658_v46  ;;  %677 = vmatprep.subr.bf16.mxu1 %v658_v46 }
  0x21   :  { %661 = vmatpush3.bf16.msra.mxu0 %v660_v51  ;;  %685 = vmatpush3.bf16.msra.mxu1 %v660_v51 }
  0x22   :  { %663 = vmatprep.subr.bf16.mxu1 %v662_v52 }
  0x24   :  { %219 = vmatmul.mubr.f32.vlgmr.msra.gmra.mrb[0].mxu0 %v14_v55  ;;  %279 = vmatmul.mubr.f32.vlgmr.msra.gmra.mrb[0].mxu1 %v50_v56 }
  0x25   :  { %223 = vmatprep.mubr.f32.mxu0 %v18_v57  ;;  %283 = vmatprep.mubr.f32.mxu1 %v54_v58 }
  0x26   :  { %665 = vmatpush3.bf16.msra.mxu1 %v662_v52 }
  0x27   :  { %667 = vmatprep.subr.bf16.mxu1 %v666_v59 }
  0x28   :  { %224 = vmatmul.mubr.f32.gmra.mrb[2].mxu0 %v17_v60  ;;  %284 = vmatmul.mubr.f32.gmra.mrb[2].mxu1 %v53_v61  ;;  %v1015_v60 = vld [vmem:[%s1105_s2] ss:$0 sm:$0xff] }
  0x29   :  { %228 = vmatprep.mubr.f32.mxu0 %v21_v62  ;;  %288 = vmatprep.mubr.f32.mxu1 %v57_v63 }
  0x2a   :  { %669 = vmatpush3.bf16.msra.mxu1 %v666_v59 }
  0x2c   :  { %229 = vmatmul.mubr.f32.gmra.mrb[4].mxu0 %v20_v0  ;;  %289 = vmatmul.mubr.f32.gmra.mrb[4].mxu1 %v56_v1 }
  0x2d   :  { %233 = vmatprep.mubr.f32.mxu0 %v24_v2  ;;  %293 = vmatprep.mubr.f32.mxu1 %v60_v3 }
  0x30   :  { %234 = vmatmul.mubr.f32.gmra.mrb[6].mxu0 %v23_v4  ;;  %294 = vmatmul.mubr.f32.gmra.mrb[6].mxu1 %v59_v5 }
  0x31   :  { %238 = vmatprep.mubr.f32.mxu0 %v27_v6  ;;  %606 = vmatprep.mubr.msk.f32.mxu1 %vm105_vm0, %v16_v7 }
  0x34   :  { %239 = vmatmul.mubr.f32.gmra.mrb[8].mxu0 %v26_v8  ;;  %607 = vmatmul.mubr.msk.f32.vlgmr.msra.gmra.mrb[8].mxu1 %vm105_vm0, %v19_v9 }
  0x35   :  { %243 = vmatprep.mubr.f32.mxu0 %v30_v10  ;;  %609 = vmatprep.mubr.msk.f32.mxu1 %vm105_vm0, %v22_v11 }
  0x38   :  { %244 = vmatmul.mubr.f32.gmra.mrb[10].mxu0 %v29_v12  ;;  %610 = vmatmul.mubr.msk.f32.gmra.mrb[10].mxu1 %vm105_vm0, %v25_v13 }
  0x39   :  { %248 = vmatprep.mubr.f32.mxu0 %v33_v14  ;;  %612 = vmatprep.mubr.msk.f32.mxu1 %vm105_vm0, %v28_v15 }
  0x3c   :  { %249 = vmatmul.mubr.f32.gmra.mrb[12].mxu0 %v32_v16  ;;  %613 = vmatmul.mubr.msk.f32.gmra.mrb[12].mxu1 %vm105_vm0, %v31_v17 }
  0x3d   :  { %253 = vmatprep.mubr.f32.mxu0 %v36_v18  ;;  %615 = vmatprep.mubr.msk.f32.mxu1 %vm105_vm0, %v34_v19 }
  0x40   :  { %254 = vmatmul.mubr.f32.gmra.mrb[14].mxu0 %v35_v20  ;;  %616 = vmatmul.mubr.msk.f32.gmra.mrb[14].mxu1 %vm105_vm0, %v37_v21 }
  0x41   :  { %258 = vmatprep.mubr.f32.mxu0 %v39_v22  ;;  %618 = vmatprep.mubr.msk.f32.mxu1 %vm105_vm0, %v40_v23 }
  0x44   :  { %259 = vmatmul.mubr.f32.gmra.mrb[16].mxu0 %v38_v24  ;;  %619 = vmatmul.mubr.msk.f32.gmra.mrb[16].mxu1 %vm105_vm0, %v43_v25 }
  0x45   :  { %263 = vmatprep.mubr.f32.mxu0 %v42_v26  ;;  %621 = vmatprep.mubr.msk.f32.mxu1 %vm105_vm0, %v46_v27 }
  0x48   :  { %264 = vmatmul.mubr.f32.gmra.mrb[18].mxu0 %v41_v28  ;;  %622 = vmatmul.mubr.msk.f32.gmra.mrb[18].mxu1 %vm105_vm0, %v49_v29 }
  0x49   :  { %268 = vmatprep.mubr.f32.mxu0 %v45_v30  ;;  %624 = vmatprep.mubr.msk.f32.mxu1 %vm105_vm0, %v52_v31 }
  0x4c   :  { %269 = vmatmul.mubr.f32.gmra.mrb[20].mxu0 %v44_v32  ;;  %625 = vmatmul.mubr.msk.f32.gmra.mrb[20].mxu1 %vm105_vm0, %v55_v33 }
  0x4d   :  { %273 = vmatprep.mubr.f32.mxu0 %v48_v34  ;;  %627 = vmatprep.mubr.msk.f32.mxu1 %vm105_vm0, %v58_v35 }
  0x50   :  { %274 = vmatmul.mubr.f32.gmra.mrb[22].mxu0 %v47_v36  ;;  %628 = vmatmul.mubr.msk.f32.gmra.mrb[22].mxu1 %vm105_vm0, %v61_v37 }
  0xf7   :  { %v530_v38 = vpop.f32.mrb[0].mxu0  ;;  %v566_v39 = vpop.f32.mrb[0].mxu1 }
  0xf8   :  { %v531_v40 = vpop.f32.mrb[1].mxu0  ;;  %v567_v41 = vpop.f32.mrb[1].mxu1 }
  0xf9   :  { %v532_v42 = vadd.f32 %v531_v40, %v530_v38  ;;  %v1006_v43 = vadd.f32 %v567_v41, %v566_v39 }
  0xfb   :  { %v533_v44 = vpop.f32.mrb[2].mxu0  ;;  %v569_v45 = vpop.f32.mrb[2].mxu1  ;;  %v221_v2 = vadd.f32 %v532_v42, %v1015_v60 }
  0xfc   :  { %v534_v46 = vpop.f32.mrb[3].mxu0  ;;  %v570_v47 = vpop.f32.mrb[3].mxu1 }
  0xfd   :  { %v535_v48 = vadd.f32 %v534_v46, %v533_v44  ;;  %v1008_v49 = vadd.f32 %v570_v47, %v569_v45 }
  0xff   :  { %v536_v50 = vpop.f32.mrb[4].mxu0  ;;  %v572_v51 = vpop.f32.mrb[4].mxu1  ;;  %v226_v63 = vadd.f32 %v535_v48, %v1015_v60 }
 0x100   :  { %v537_v52 = vpop.f32.mrb[5].mxu0  ;;  %v573_v53 = vpop.f32.mrb[5].mxu1 }
 0x101   :  { %v538_v54 = vadd.f32 %v537_v52, %v536_v50  ;;  %v1010_v55 = vadd.f32 %v573_v53, %v572_v51 }
 0x103   :  { %v539_v56 = vpop.f32.mrb[6].mxu0  ;;  %v575_v57 = vpop.f32.mrb[6].mxu1  ;;  %v231_v11 = vadd.f32 %v538_v54, %v1015_v60 }
 0x104   :  { %v540_v58 = vpop.f32.mrb[7].mxu0  ;;  %v576_v59 = vpop.f32.mrb[7].mxu1 }
 0x105   :  { %v541_v61 = vadd.f32 %v540_v58, %v539_v56  ;;  %v1017_v62 = vadd.f32 %v576_v59, %v575_v57  ;;  %v286_v56 = vadd.f32 %v1008_v49, %v1015_v60 }
 0x107   :  { %v542_v0 = vpop.f32.mrb[8].mxu0  ;;  %v608_v1 = vpop.f32.mrb[8].mxu1  ;;  %v236_v8 = vadd.f32 %v541_v61, %v1015_v60  ;;  %v281_v61 = vadd.f32 %v1006_v43, %v1015_v60 }
 0x108   :  { %v371_v3 = vadd.f32 %v608_v1, %v226_v63  ;;  %v543_v4 = vpop.f32.mrb[9].mxu0  ;;  %v365_v5 = vpop.f32.mrb[9].mxu1 }
 0x109   :  { %v544_v6 = vadd.f32 %v543_v4, %v542_v0  ;;  %v366_v7 = vadd.f32 %v365_v5, %v221_v2  ;;  %v296_v5 = vadd.f32 %v1017_v62, %v1015_v60 }
 0x10a   :  { %686 = vtanh.f32 %v371_v3 }
 0x10b   :  { %688 = vtanh.f32 %v366_v7  ;;  %v545_v9 = vpop.f32.mrb[10].mxu0  ;;  %v611_v10 = vpop.f32.mrb[10].mxu1  ;;  %v241_v20 = vadd.f32 %v544_v6, %v1015_v60 }
 0x10c   :  { %v381_v12 = vadd.f32 %v611_v10, %v236_v8  ;;  %v546_v13 = vpop.f32.mrb[11].mxu0  ;;  %v375_v14 = vpop.f32.mrb[11].mxu1  ;;  %v291_v8 = vadd.f32 %v1010_v55, %v1015_v60 }
 0x10d   :  { %v547_v15 = vadd.f32 %v546_v13, %v545_v9  ;;  %v376_v16 = vadd.f32 %v375_v14, %v231_v11 }
 0x10e   :  { %690 = vtanh.f32 %v381_v12 }
 0x10f   :  { %692 = vtanh.f32 %v376_v16  ;;  %v548_v17 = vpop.f32.mrb[12].mxu0  ;;  %v246_v18 = vadd.f32 %v547_v15, %v1015_v60  ;;  %v614_v19 = vpop.f32.mrb[12].mxu1 }
 0x110   :  { %v549_v21 = vpop.f32.mrb[13].mxu0  ;;  %v385_v22 = vpop.f32.mrb[13].mxu1 }
 0x111   :  { %v391_v23 = vadd.f32 %v614_v19, %v246_v18  ;;  %v550_v24 = vadd.f32 %v549_v21, %v548_v17  ;;  %v386_v25 = vadd.f32 %v385_v22, %v241_v20 }
 0x113   :  { %694 = vtanh.f32 %v391_v23  ;;  %v551_v26 = vpop.f32.mrb[14].mxu0  ;;  %v617_v27 = vpop.f32.mrb[14].mxu1  ;;  %v251_v28 = vadd.f32 %v550_v24, %v1015_v60 }
 0x114   :  { %v687_v29 = vpop.eup %686  ;;  %696 = vtanh.f32 %v386_v25  ;;  %v552_v30 = vpop.f32.mrb[15].mxu0 }
 0x115   :  { %v395_v31 = vpop.f32.mrb[15].mxu1  ;;  %v689_v32 = vpop.eup %688  ;;  %462 = vst.msk [vmem:[%s1106_s3 + $0x8] sm:$0xff] %vm460_vm1, %v687_v29  ;;  %v553_v33 = vadd.f32 %v552_v30, %v551_v26 }
 0x116   :  { %v396_v34 = vadd.f32 %v395_v31, %v251_v28  ;;  %461 = vst.msk [vmem:[%s1106_s3] sm:$0xff] %vm460_vm1, %v689_v32 }
 0x117   :  { %v256_v35 = vadd.f32 %v553_v33, %v1015_v60  ;;  %v554_v36 = vpop.f32.mrb[16].mxu0  ;;  %v620_v37 = vpop.f32.mrb[16].mxu1 }
 0x118   :  { %698 = vtanh.f32 %v396_v34  ;;  %v691_v38 = vpop.eup %690  ;;  %v555_v39 = vpop.f32.mrb[17].mxu0 }
 0x119   :  { %v405_v40 = vpop.f32.mrb[17].mxu1  ;;  %v693_v41 = vpop.eup %692  ;;  %464 = vst.msk [vmem:[%s1106_s3 + $0x18] sm:$0xff] %vm460_vm1, %v691_v38  ;;  %v401_v42 = vadd.f32 %v617_v27, %v256_v35  ;;  %v556_v44 = vadd.f32 %v555_v39, %v554_v36 }
 0x11a   :  { %463 = vst.msk [vmem:[%s1106_s3 + $0x10] sm:$0xff] %vm460_vm1, %v693_v41 }
 0x11b   :  { %700 = vtanh.f32 %v401_v42  ;;  %v557_v45 = vpop.f32.mrb[18].mxu0  ;;  %v261_v46 = vadd.f32 %v556_v44, %v1015_v60  ;;  %v623_v47 = vpop.f32.mrb[18].mxu1 }
 0x11c   :  { %v558_v48 = vpop.f32.mrb[19].mxu0  ;;  %v415_v50 = vpop.f32.mrb[19].mxu1 }
 0x11d   :  { %v695_v51 = vpop.eup %694  ;;  %v406_v52 = vadd.f32 %v405_v40, %v261_v46  ;;  %v559_v53 = vadd.f32 %v558_v48, %v557_v45 }
 0x11e   :  { %v697_v54 = vpop.eup %696  ;;  %466 = vst.msk [vmem:[%s1106_s3 + $0x28] sm:$0xff] %vm460_vm1, %v695_v51 }
 0x11f   :  { %465 = vst.msk [vmem:[%s1106_s3 + $0x20] sm:$0xff] %vm460_vm1, %v697_v54  ;;  %702 = vtanh.f32 %v406_v52  ;;  %v266_v57 = vadd.f32 %v559_v53, %v1015_v60  ;;  %v560_v58 = vpop.f32.mrb[20].mxu0  ;;  %v626_v59 = vpop.f32.mrb[20].mxu1 }
 0x120   :  { %v431_v63 = vadd.f32 %v626_v59, %v286_v56  ;;  %v561_v0 = vpop.f32.mrb[21].mxu0  ;;  %v425_v1 = vpop.f32.mrb[21].mxu1 }
 0x121   :  { %v411_v3 = vadd.f32 %v620_v37, %v266_v57  ;;  %v562_v4 = vadd.f32 %v561_v0, %v560_v58  ;;  %v426_v49 = vadd.f32 %v425_v1, %v281_v61 }
 0x122   :  { %v699_v2 = vpop.eup %698  ;;  %704 = vtanh.f32 %v431_v63 }
 0x123   :  { %467 = vst.msk [vmem:[%s1106_s3 + $0x30] sm:$0xff] %vm460_vm1, %v699_v2  ;;  %706 = vtanh.f32 %v411_v3  ;;  %v271_v6 = vadd.f32 %v562_v4, %v1015_v60  ;;  %v563_v43 = vpop.f32.mrb[22].mxu0  ;;  %v629_v7 = vpop.f32.mrb[22].mxu1 }
 0x124   :  { %708 = vtanh.f32 %v426_v49  ;;  %v441_v9 = vadd.f32 %v629_v7, %v296_v5  ;;  %v564_v10 = vpop.f32.mrb[23].mxu0  ;;  %v435_v11 = vpop.f32.mrb[23].mxu1 }
 0x125   :  { %v701_v12 = vpop.eup %700  ;;  %v416_v13 = vadd.f32 %v415_v50, %v271_v6  ;;  %v565_v14 = vadd.f32 %v564_v10, %v563_v43  ;;  %v436_v15 = vadd.f32 %v435_v11, %v291_v8 }
 0x126   :  { %468 = vst.msk [vmem:[%s1106_s3 + $0x38] sm:$0xff] %vm460_vm1, %v701_v12  ;;  %710 = vtanh.f32 %v441_v9 }
 0x127   :  { %712 = vtanh.f32 %v416_v13  ;;  %v276_v62 = vadd.f32 %v565_v14, %v1015_v60 }
 0x128   :  { %714 = vtanh.f32 %v436_v15 }
 0x129   :  { %v703_v16 = vpop.eup %702  ;;  %v421_v55 = vadd.f32 %v623_v47, %v276_v62 }
 0x12a   :  { %469 = vst.msk [vmem:[%s1106_s3 + $0x40] sm:$0xff] %vm460_vm1, %v703_v16 }
 0x12b   :  { %716 = vtanh.f32 %v421_v55 }
 0x12c   :  { %v705_v17 = vpop.eup %704 }
 0x12d   :  { %v707_v18 = vpop.eup %706  ;;  %474 = vst.msk [vmem:[%s1106_s3 + $0x68] sm:$0xff] %vm460_vm1, %v705_v17 }
 0x12e   :  { %v709_v19 = vpop.eup %708  ;;  %470 = vst.msk [vmem:[%s1106_s3 + $0x48] sm:$0xff] %vm460_vm1, %v707_v18 }
 0x12f   :  { %473 = vst.msk [vmem:[%s1106_s3 + $0x60] sm:$0xff] %vm460_vm1, %v709_v19 }
 0x130   :  { %v711_v60 = vpop.eup %710 }
 0x131   :  { %v713_v20 = vpop.eup %712  ;;  %476 = vst.msk [vmem:[%s1106_s3 + $0x78] sm:$0xff] %vm460_vm1, %v711_v60 }
 0x132   :  { %v715_v21 = vpop.eup %714  ;;  %471 = vst.msk [vmem:[%s1106_s3 + $0x50] sm:$0xff] %vm460_vm1, %v713_v20 }
 0x133   :  { %475 = vst.msk [vmem:[%s1106_s3 + $0x70] sm:$0xff] %vm460_vm1, %v715_v21 }
 0x135   :  { %v717_v22 = vpop.eup %716 }
 0x136   :  { %472 = vst.msk [vmem:[%s1106_s3 + $0x58] sm:$0xff] %vm460_vm1, %v717_v22 }

// kernel: cnn_autoencoder_forward.11
= control target key start
LH: loop header
LB: loop body
LE: loop exit
PB: predicated region body
PF: predicated region fallthrough
CT: control target
= control target key end

     0   :  { %vm113_vm0 = vcmask 523264   ;;  %s927_s1 = inlined_call_operand.vmem [shape: f32[576,128], index: 1, kind: input, shape index: {}]   ;;  %s928_s0 = inlined_call_operand.vmem [shape: f32[32,576], index: 0, kind: input, shape index: {}]   ;;  %s929_s2 = inlined_call_operand.vmem [shape: f32[1,128], index: 2, kind: input, shape index: {}]   ;;  %s930_s3 = inlined_call_operand.vmem [shape: f32[32,128], index: 3, kind: output, shape index: {}]  }
   0x1   :  { %v50_v0 = vld [vmem:[%s927_s1 + $0x80] sm:$0xff]  ;;  %v51_v1 = vld [vmem:[%s927_s1 + $0x88] sm:$0xff]  ;;  %v52_v11 = vld [vmem:[%s927_s1 + $0x90] sm:$0xff] }
   0x2   :  { %v82_v2 = vld [vmem:[%s927_s1 + $0x180] sm:$0xff]  ;;  %v520_v3 = vpack.c.bf16 %v51_v1, %v50_v0  ;;  %v83_v4 = vld [vmem:[%s927_s1 + $0x188] sm:$0xff]  ;;  %v53_v13 = vld [vmem:[%s927_s1 + $0x98] sm:$0xff] }
   0x3   :  { %v34_v5 = vld [vmem:[%s927_s1] sm:$0xff]  ;;  %v35_v6 = vld [vmem:[%s927_s1 + $0x8] sm:$0xff]  ;;  %v552_v7 = vpack.c.bf16 %v83_v4, %v82_v2  ;;  %v84_v14 = vld [vmem:[%s927_s1 + $0x190] sm:$0xff]  ;;  %v524_v16 = vpack.c.bf16 %v53_v13, %v52_v11 }
   0x4   :  { %v522_v8 = vpack.c.bf16 %v35_v6, %v34_v5  ;;  %v66_v9 = vld [vmem:[%s927_s1 + $0x100] sm:$0xff]  ;;  %v67_v10 = vld [vmem:[%s927_s1 + $0x108] sm:$0xff]  ;;  %521 = vmatprep.subr.bf16.mxu0 %v520_v3  ;;  %v85_v15 = vld [vmem:[%s927_s1 + $0x198] sm:$0xff] }
   0x5   :  { %v554_v12 = vpack.c.bf16 %v67_v10, %v66_v9  ;;  %553 = vmatprep.subr.bf16.mxu1 %v552_v7  ;;  %v556_v17 = vpack.c.bf16 %v85_v15, %v84_v14  ;;  %v36_v18 = vld [vmem:[%s927_s1 + $0x10] sm:$0xff]  ;;  %v37_v19 = vld [vmem:[%s927_s1 + $0x18] sm:$0xff]  ;;  %v54_v23 = vld [vmem:[%s927_s1 + $0xa0] sm:$0xff] }
   0x6   :  { %523 = vmatpush3.bf16.msra.mxu0 %v522_v8  ;;  %v68_v20 = vld [vmem:[%s927_s1 + $0x110] sm:$0xff]  ;;  %v526_v21 = vpack.c.bf16 %v37_v19, %v36_v18  ;;  %v69_v22 = vld [vmem:[%s927_s1 + $0x118] sm:$0xff]  ;;  %v55_v24 = vld [vmem:[%s927_s1 + $0xa8] sm:$0xff] }
   0x7   :  { %555 = vmatpush3.bf16.msra.mxu1 %v554_v12  ;;  %525 = vmatprep.subr.bf16.mxu0 %v524_v16  ;;  %v558_v25 = vpack.c.bf16 %v69_v22, %v68_v20  ;;  %v528_v26 = vpack.c.bf16 %v55_v24, %v54_v23  ;;  %v86_v27 = vld [vmem:[%s927_s1 + $0x1a0] sm:$0xff]  ;;  %v87_v28 = vld [vmem:[%s927_s1 + $0x1a8] sm:$0xff]  ;;  %v56_v35 = vld [vmem:[%s927_s1 + $0xb0] sm:$0xff] }
   0x8   :  { %557 = vmatprep.subr.bf16.mxu1 %v556_v17  ;;  %v38_v29 = vld [vmem:[%s927_s1 + $0x20] sm:$0xff]  ;;  %v560_v30 = vpack.c.bf16 %v87_v28, %v86_v27  ;;  %v39_v31 = vld [vmem:[%s927_s1 + $0x28] sm:$0xff]  ;;  %v57_v36 = vld [vmem:[%s927_s1 + $0xb8] sm:$0xff] }
   0x9   :  { %v70_v32 = vld [vmem:[%s927_s1 + $0x120] sm:$0xff]  ;;  %v71_v33 = vld [vmem:[%s927_s1 + $0x128] sm:$0xff]  ;;  %v530_v34 = vpack.c.bf16 %v39_v31, %v38_v29  ;;  %v88_v37 = vld [vmem:[%s927_s1 + $0x1b0] sm:$0xff]  ;;  %v532_v39 = vpack.c.bf16 %v57_v36, %v56_v35 }
   0xa   :  { %527 = vmatpush3.bf16.msra.mxu0 %v526_v21  ;;  %v562_v38 = vpack.c.bf16 %v71_v33, %v70_v32  ;;  %v89_v40 = vld [vmem:[%s927_s1 + $0x1b8] sm:$0xff]  ;;  %v40_v41 = vld [vmem:[%s927_s1 + $0x30] sm:$0xff]  ;;  %v58_v46 = vld [vmem:[%s927_s1 + $0xc0] sm:$0xff] }
   0xb   :  { %559 = vmatpush3.bf16.msra.mxu1 %v558_v25  ;;  %529 = vmatprep.subr.bf16.mxu0 %v528_v26  ;;  %v41_v42 = vld [vmem:[%s927_s1 + $0x38] sm:$0xff]  ;;  %v564_v43 = vpack.c.bf16 %v89_v40, %v88_v37  ;;  %v72_v44 = vld [vmem:[%s927_s1 + $0x130] sm:$0xff]  ;;  %v59_v47 = vld [vmem:[%s927_s1 + $0xc8] sm:$0xff] }
   0xc   :  { %561 = vmatprep.subr.bf16.mxu1 %v560_v30  ;;  %v73_v45 = vld [vmem:[%s927_s1 + $0x138] sm:$0xff]  ;;  %v90_v48 = vld [vmem:[%s927_s1 + $0x1c0] sm:$0xff]  ;;  %v91_v49 = vld [vmem:[%s927_s1 + $0x1c8] sm:$0xff]  ;;  %v534_v50 = vpack.c.bf16 %v41_v42, %v40_v41  ;;  %v536_v52 = vpack.c.bf16 %v59_v47, %v58_v46 }
   0xd   :  { %v566_v51 = vpack.c.bf16 %v73_v45, %v72_v44  ;;  %v42_v53 = vld [vmem:[%s927_s1 + $0x40] sm:$0xff]  ;;  %v43_v54 = vld [vmem:[%s927_s1 + $0x48] sm:$0xff]  ;;  %v568_v56 = vpack.c.bf16 %v91_v49, %v90_v48  ;;  %v60_v58 = vld [vmem:[%s927_s1 + $0xd0] sm:$0xff] }
   0xe   :  { %531 = vmatpush3.bf16.msra.mxu0 %v530_v34  ;;  %v74_v55 = vld [vmem:[%s927_s1 + $0x140] sm:$0xff]  ;;  %v75_v57 = vld [vmem:[%s927_s1 + $0x148] sm:$0xff]  ;;  %v61_v59 = vld [vmem:[%s927_s1 + $0xd8] sm:$0xff]  ;;  %v538_v62 = vpack.c.bf16 %v43_v54, %v42_v53 }
   0xf   :  { %563 = vmatpush3.bf16.msra.mxu1 %v562_v38  ;;  %533 = vmatprep.subr.bf16.mxu0 %v532_v39  ;;  %v92_v60 = vld [vmem:[%s927_s1 + $0x1d0] sm:$0xff]  ;;  %v93_v61 = vld [vmem:[%s927_s1 + $0x1d8] sm:$0xff]  ;;  %v570_v63 = vpack.c.bf16 %v75_v57, %v74_v55  ;;  %v540_v0 = vpack.c.bf16 %v61_v59, %v60_v58  ;;  %v62_v6 = vld [vmem:[%s927_s1 + $0xe0] sm:$0xff] }
  0x10   :  { %565 = vmatprep.subr.bf16.mxu1 %v564_v43  ;;  %v44_v1 = vld [vmem:[%s927_s1 + $0x50] sm:$0xff]  ;;  %v45_v2 = vld [vmem:[%s927_s1 + $0x58] sm:$0xff]  ;;  %v572_v4 = vpack.c.bf16 %v93_v61, %v92_v60  ;;  %v63_v7 = vld [vmem:[%s927_s1 + $0xe8] sm:$0xff] }
  0x11   :  { %v76_v3 = vld [vmem:[%s927_s1 + $0x150] sm:$0xff]  ;;  %v77_v5 = vld [vmem:[%s927_s1 + $0x158] sm:$0xff]  ;;  %v94_v8 = vld [vmem:[%s927_s1 + $0x1e0] sm:$0xff]  ;;  %v542_v10 = vpack.c.bf16 %v45_v2, %v44_v1  ;;  %v544_v14 = vpack.c.bf16 %v63_v7, %v62_v6 }
  0x12   :  { %535 = vmatpush3.bf16.msra.mxu0 %v534_v50  ;;  %v95_v9 = vld [vmem:[%s927_s1 + $0x1e8] sm:$0xff]  ;;  %v46_v11 = vld [vmem:[%s927_s1 + $0x60] sm:$0xff]  ;;  %v574_v13 = vpack.c.bf16 %v77_v5, %v76_v3  ;;  %v17_v17 = vld [vmem:[%s928_s0 + $0x18] sm:$0xff] }
  0x13   :  { %567 = vmatpush3.bf16.msra.mxu1 %v566_v51  ;;  %537 = vmatprep.subr.bf16.mxu0 %v536_v52  ;;  %v47_v12 = vld [vmem:[%s927_s1 + $0x68] sm:$0xff]  ;;  %v78_v15 = vld [vmem:[%s927_s1 + $0x160] sm:$0xff]  ;;  %v576_v18 = vpack.c.bf16 %v95_v9, %v94_v8  ;;  %v64_v20 = vld [vmem:[%s927_s1 + $0xf0] sm:$0xff] }
  0x14   :  { %569 = vmatprep.subr.bf16.mxu1 %v568_v56  ;;  %v15_v16 = vld [vmem:[%s928_s0 + $0x8] sm:$0xff]  ;;  %v65_v21 = vld [vmem:[%s927_s1 + $0xf8] sm:$0xff]  ;;  %v96_v22 = vld [vmem:[%s927_s1 + $0x1f0] sm:$0xff]  ;;  %275 = vmatprep.mubr.f32.mxu1 %v17_v17  ;;  %v546_v24 = vpack.c.bf16 %v47_v12, %v46_v11 }
  0x15   :  { %v79_v19 = vld [vmem:[%s927_s1 + $0x168] sm:$0xff]  ;;  %190 = vmatprep.mubr.f32.mxu0 %v15_v16  ;;  %v97_v23 = vld [vmem:[%s927_s1 + $0x1f8] sm:$0xff]  ;;  %v548_v26 = vpack.c.bf16 %v65_v21, %v64_v20  ;;  %v48_v27 = vld [vmem:[%s927_s1 + $0x70] sm:$0xff] }
  0x16   :  { %539 = vmatpush3.bf16.msra.mxu0 %v538_v62  ;;  %v578_v25 = vpack.c.bf16 %v79_v19, %v78_v15  ;;  %v49_v28 = vld [vmem:[%s927_s1 + $0x78] sm:$0xff]  ;;  %v80_v29 = vld [vmem:[%s927_s1 + $0x170] sm:$0xff]  ;;  %v580_v30 = vpack.c.bf16 %v97_v23, %v96_v22  ;;  %v98_v32 = vld [vmem:[%s927_s1 + $0x200] sm:$0xff] }
  0x17   :  { %571 = vmatpush3.bf16.msra.mxu1 %v570_v63  ;;  %541 = vmatprep.subr.bf16.mxu0 %v540_v0  ;;  %v81_v31 = vld [vmem:[%s927_s1 + $0x178] sm:$0xff]  ;;  %v99_v33 = vld [vmem:[%s927_s1 + $0x208] sm:$0xff]  ;;  %v550_v34 = vpack.c.bf16 %v49_v28, %v48_v27  ;;  %v100_v37 = vld [vmem:[%s927_s1 + $0x210] sm:$0xff] }
  0x18   :  { %573 = vmatprep.subr.bf16.mxu1 %v572_v4  ;;  %v582_v35 = vpack.c.bf16 %v81_v31, %v80_v29  ;;  %v584_v36 = vpack.c.bf16 %v99_v33, %v98_v32  ;;  %v101_v38 = vld [vmem:[%s927_s1 + $0x218] sm:$0xff]  ;;  %v14_v39 = vld [vmem:[%s928_s0] sm:$0xff]  ;;  %v16_v40 = vld [vmem:[%s928_s0 + $0x10] sm:$0xff] }
  0x19   :  { %v20_v41 = vld [vmem:[%s928_s0 + $0x30] sm:$0xff]  ;;  %v588_v42 = vpack.c.bf16 %v101_v38, %v100_v37  ;;  %v22_v43 = vld [vmem:[%s928_s0 + $0x40] sm:$0xff]  ;;  %v103_v45 = vld [vmem:[%s927_s1 + $0x228] sm:$0xff] }
  0x1a   :  { %543 = vmatpush3.bf16.msra.mxu0 %v542_v10  ;;  %v102_v44 = vld [vmem:[%s927_s1 + $0x220] sm:$0xff]  ;;  %v19_v46 = vld [vmem:[%s928_s0 + $0x28] sm:$0xff]  ;;  %v21_v47 = vld [vmem:[%s928_s0 + $0x38] sm:$0xff] }
  0x1b   :  { %575 = vmatpush3.bf16.msra.mxu1 %v574_v13  ;;  %545 = vmatprep.subr.bf16.mxu0 %v544_v14  ;;  %v25_v48 = vld [vmem:[%s928_s0 + $0x58] sm:$0xff]  ;;  %v592_v49 = vpack.c.bf16 %v103_v45, %v102_v44  ;;  %v27_v50 = vld [vmem:[%s928_s0 + $0x68] sm:$0xff]  ;;  %v104_v51 = vld [vmem:[%s927_s1 + $0x230] sm:$0xff] }
  0x1c   :  { %577 = vmatprep.subr.bf16.mxu1 %v576_v18  ;;  %v105_v52 = vld [vmem:[%s927_s1 + $0x238] sm:$0xff]  ;;  %v24_v53 = vld [vmem:[%s928_s0 + $0x50] sm:$0xff]  ;;  %v26_v54 = vld [vmem:[%s928_s0 + $0x60] sm:$0xff] }
  0x1d   :  { %v30_v55 = vld [vmem:[%s928_s0 + $0x80] sm:$0xff]  ;;  %v596_v56 = vpack.c.bf16 %v105_v52, %v104_v51  ;;  %v32_v57 = vld [vmem:[%s928_s0 + $0x90] sm:$0xff]  ;;  %v29_v58 = vld [vmem:[%s928_s0 + $0x78] sm:$0xff] }
  0x1e   :  { %547 = vmatpush3.bf16.msra.mxu0 %v546_v24  ;;  %v31_v59 = vld [vmem:[%s928_s0 + $0x88] sm:$0xff]  ;;  %v18_v60 = vld [vmem:[%s928_s0 + $0x20] sm:$0xff]  ;;  %v28_v61 = vld [vmem:[%s928_s0 + $0x70] sm:$0xff] }
  0x1f   :  { %579 = vmatpush3.bf16.msra.mxu1 %v578_v25  ;;  %549 = vmatprep.subr.bf16.mxu0 %v548_v26  ;;  %v23_v62 = vld [vmem:[%s928_s0 + $0x48] sm:$0xff]  ;;  %v33_v63 = vld [vmem:[%s928_s0 + $0x98] sm:$0xff]  ;;  %v393_v1 = vld [vmem:[%s929_s2] ss:$0 sm:$0xff] }
  0x20   :  { %581 = vmatprep.subr.bf16.mxu1 %v580_v30 }
  0x22   :  { %551 = vmatpush3.bf16.msra.mxu0 %v550_v34 }
  0x23   :  { %583 = vmatpush3.bf16.msra.mxu1 %v582_v35  ;;  %585 = vmatprep.subr.bf16.mxu0 %v584_v36 }
  0x24   :  { %600 = vmatprep.subr.bf16.mxu1 %v584_v36 }
  0x25   :  { %191 = vmatmul.mubr.f32.vlgmr.msra.gmra.mrb[0].mxu0 %v14_v39 }
  0x26   :  { %276 = vmatmul.mubr.f32.vlgmr.msra.gmra.mrb[0].mxu1 %v16_v40  ;;  %587 = vmatpush3.bf16.msra.mxu0 %v584_v36 }
  0x27   :  { %604 = vmatpush3.bf16.msra.mxu1 %v584_v36  ;;  %195 = vmatprep.mubr.f32.mxu0 %v20_v41 }
  0x28   :  { %280 = vmatprep.mubr.f32.mxu1 %v22_v43  ;;  %589 = vmatprep.subr.bf16.mxu0 %v588_v42 }
  0x29   :  { %196 = vmatmul.mubr.f32.gmra.mrb[2].mxu0 %v19_v46  ;;  %601 = vmatprep.subr.bf16.mxu1 %v588_v42 }
  0x2a   :  { %281 = vmatmul.mubr.f32.gmra.mrb[2].mxu1 %v21_v47  ;;  %591 = vmatpush3.bf16.msra.mxu0 %v588_v42 }
  0x2b   :  { %605 = vmatpush3.bf16.msra.mxu1 %v588_v42  ;;  %200 = vmatprep.mubr.f32.mxu0 %v25_v48 }
  0x2c   :  { %285 = vmatprep.mubr.f32.mxu1 %v27_v50  ;;  %593 = vmatprep.subr.bf16.mxu0 %v592_v49 }
  0x2d   :  { %201 = vmatmul.mubr.f32.gmra.mrb[4].mxu0 %v24_v53  ;;  %602 = vmatprep.subr.bf16.mxu1 %v592_v49 }
  0x2e   :  { %286 = vmatmul.mubr.f32.gmra.mrb[4].mxu1 %v26_v54  ;;  %595 = vmatpush3.bf16.msra.mxu0 %v592_v49 }
  0x2f   :  { %606 = vmatpush3.bf16.msra.mxu1 %v592_v49  ;;  %205 = vmatprep.mubr.f32.mxu0 %v30_v55 }
  0x30   :  { %290 = vmatprep.mubr.f32.mxu1 %v32_v57  ;;  %597 = vmatprep.subr.bf16.mxu0 %v596_v56 }
  0x31   :  { %206 = vmatmul.mubr.f32.gmra.mrb[6].mxu0 %v29_v58  ;;  %603 = vmatprep.subr.bf16.mxu1 %v596_v56 }
  0x32   :  { %291 = vmatmul.mubr.f32.gmra.mrb[6].mxu1 %v31_v59  ;;  %599 = vmatpush3.bf16.msra.mxu0 %v596_v56 }
  0x33   :  { %607 = vmatpush3.bf16.msra.mxu1 %v596_v56  ;;  %514 = vmatprep.mubr.msk.f32.mxu0 %vm113_vm0, %v18_v60 }
  0x34   :  { %517 = vmatprep.mubr.msk.f32.mxu1 %vm113_vm0, %v28_v61 }
  0x35   :  { %515 = vmatmul.mubr.msk.f32.vlgmr.msra.gmra.mrb[8].mxu0 %vm113_vm0, %v23_v62 }
  0x36   :  { %518 = vmatmul.mubr.msk.f32.vlgmr.msra.gmra.mrb[8].mxu1 %vm113_vm0, %v33_v63 }
  0xf8   :  { %v430_v0 = vpop.f32.mrb[0].mxu0 }
  0xf9   :  { %v431_v2 = vpop.f32.mrb[1].mxu0  ;;  %v474_v3 = vpop.f32.mrb[0].mxu1 }
  0xfa   :  { %v432_v4 = vadd.f32 %v431_v2, %v430_v0  ;;  %v475_v5 = vpop.f32.mrb[1].mxu1 }
  0xfb   :  { %v476_v6 = vadd.f32 %v475_v5, %v474_v3 }
  0xfc   :  { %v193_v7 = vadd.f32 %v432_v4, %v393_v1  ;;  %v433_v8 = vpop.f32.mrb[2].mxu0 }
  0xfd   :  { %v434_v9 = vpop.f32.mrb[3].mxu0  ;;  %v477_v10 = vpop.f32.mrb[2].mxu1 }
  0xfe   :  { %v435_v11 = vadd.f32 %v434_v9, %v433_v8  ;;  %v478_v12 = vpop.f32.mrb[3].mxu1  ;;  %v278_v13 = vadd.f32 %v476_v6, %v193_v7 }
  0xff   :  { %v479_v14 = vadd.f32 %v478_v12, %v477_v10 }
 0x100   :  { %v198_v15 = vadd.f32 %v435_v11, %v393_v1  ;;  %v436_v16 = vpop.f32.mrb[4].mxu0 }
 0x101   :  { %v437_v17 = vpop.f32.mrb[5].mxu0  ;;  %v480_v18 = vpop.f32.mrb[4].mxu1 }
 0x102   :  { %v438_v19 = vadd.f32 %v437_v17, %v436_v16  ;;  %v481_v20 = vpop.f32.mrb[5].mxu1  ;;  %v283_v21 = vadd.f32 %v479_v14, %v198_v15 }
 0x103   :  { %v482_v22 = vadd.f32 %v481_v20, %v480_v18 }
 0x104   :  { %v203_v23 = vadd.f32 %v438_v19, %v393_v1  ;;  %v439_v24 = vpop.f32.mrb[6].mxu0 }
 0x105   :  { %v440_v25 = vpop.f32.mrb[7].mxu0  ;;  %v483_v26 = vpop.f32.mrb[6].mxu1 }
 0x106   :  { %v441_v27 = vadd.f32 %v440_v25, %v439_v24  ;;  %v484_v28 = vpop.f32.mrb[7].mxu1  ;;  %v288_v29 = vadd.f32 %v482_v22, %v203_v23 }
 0x107   :  { %v485_v30 = vadd.f32 %v484_v28, %v483_v26 }
 0x108   :  { %v208_v31 = vadd.f32 %v441_v27, %v393_v1  ;;  %v516_v32 = vpop.f32.mrb[8].mxu0 }
 0x109   :  { %v368_v33 = vadd.f32 %v516_v32, %v283_v21  ;;  %v519_v34 = vpop.f32.mrb[8].mxu1  ;;  %v362_v35 = vpop.f32.mrb[9].mxu0 }
 0x10a   :  { %v293_v36 = vadd.f32 %v485_v30, %v208_v31  ;;  %v363_v37 = vadd.f32 %v362_v35, %v278_v13  ;;  %v372_v38 = vpop.f32.mrb[9].mxu1 }
 0x10b   :  { %608 = vtanh.f32 %v368_v33  ;;  %v373_v39 = vadd.f32 %v372_v38, %v288_v29 }
 0x10c   :  { %v378_v40 = vadd.f32 %v519_v34, %v293_v36  ;;  %610 = vtanh.f32 %v363_v37 }
 0x10d   :  { %612 = vtanh.f32 %v373_v39 }
 0x10e   :  { %614 = vtanh.f32 %v378_v40 }
 0x115   :  { %v609_v41 = vpop.eup %608 }
 0x116   :  { %v611_v42 = vpop.eup %610  ;;  %386 = vst [vmem:[%s930_s3 + $0x8] sm:$0xff] %v609_v41 }
 0x117   :  { %v613_v43 = vpop.eup %612  ;;  %385 = vst [vmem:[%s930_s3] sm:$0xff] %v611_v42 }
 0x118   :  { %v615_v44 = vpop.eup %614  ;;  %387 = vst [vmem:[%s930_s3 + $0x10] sm:$0xff] %v613_v43 }
 0x119   :  { %388 = vst [vmem:[%s930_s3 + $0x18] sm:$0xff] %v615_v44 }

// kernel: cnn_autoencoder_forward.12
= control target key start
LH: loop header
LB: loop body
LE: loop exit
PB: predicated region body
PF: predicated region fallthrough
CT: control target
= control target key end

     0   :  { %vm891_vm0 = vmmov 0   ;;  %vm532_vm1 = vcmask 11264   ;;  %s1381_s1 = inlined_call_operand.vmem [shape: f32[1152,2], index: 1, kind: input, shape index: {}]   ;;  %s1382_s0 = inlined_call_operand.vmem [shape: f32[4,1152], index: 0, kind: input, shape index: {}]   ;;  %s1383_s2 = inlined_call_operand.vmem [shape: f32[1,2], index: 2, kind: input, shape index: {}]   ;;  %s1384_s3 = inlined_call_operand.vmem [shape: f32[4,2], index: 3, kind: output, shape index: {}]  }
   0x1   :  { %v35_v0 = vld [vmem:[%s1381_s1 + $0x80] sm:$0xff]  ;;  %v36_v1 = vld [vmem:[%s1381_s1 + $0x88] sm:$0xff]  ;;  %v37_v11 = vld [vmem:[%s1381_s1 + $0x90] sm:$0xff] }
   0x2   :  { %v19_v2 = vld [vmem:[%s1381_s1] sm:$0xff]  ;;  %v731_v3 = vpack.c.bf16 %v36_v1, %v35_v0  ;;  %v20_v4 = vld [vmem:[%s1381_s1 + $0x8] sm:$0xff]  ;;  %v38_v13 = vld [vmem:[%s1381_s1 + $0x98] sm:$0xff] }
   0x3   :  { %v67_v5 = vld [vmem:[%s1381_s1 + $0x180] sm:$0xff]  ;;  %v68_v6 = vld [vmem:[%s1381_s1 + $0x188] sm:$0xff]  ;;  %v733_v7 = vpack.c.bf16 %v20_v4, %v19_v2  ;;  %v21_v14 = vld [vmem:[%s1381_s1 + $0x10] sm:$0xff]  ;;  %v735_v16 = vpack.c.bf16 %v38_v13, %v37_v11 }
   0x4   :  { %v763_v8 = vpack.c.bf16 %v68_v6, %v67_v5  ;;  %v51_v9 = vld [vmem:[%s1381_s1 + $0x100] sm:$0xff]  ;;  %v52_v10 = vld [vmem:[%s1381_s1 + $0x108] sm:$0xff]  ;;  %732 = vmatprep.subr.bf16.mxu0 %v731_v3  ;;  %v22_v15 = vld [vmem:[%s1381_s1 + $0x18] sm:$0xff] }
   0x5   :  { %v765_v12 = vpack.c.bf16 %v52_v10, %v51_v9  ;;  %734 = vmatpush3.bf16.msra.mxu0 %v733_v7  ;;  %v737_v17 = vpack.c.bf16 %v22_v15, %v21_v14  ;;  %v69_v18 = vld [vmem:[%s1381_s1 + $0x190] sm:$0xff]  ;;  %v70_v19 = vld [vmem:[%s1381_s1 + $0x198] sm:$0xff]  ;;  %v39_v23 = vld [vmem:[%s1381_s1 + $0xa0] sm:$0xff] }
   0x6   :  { %764 = vmatprep.subr.bf16.mxu1 %v763_v8  ;;  %v53_v20 = vld [vmem:[%s1381_s1 + $0x110] sm:$0xff]  ;;  %v767_v21 = vpack.c.bf16 %v70_v19, %v69_v18  ;;  %v54_v22 = vld [vmem:[%s1381_s1 + $0x118] sm:$0xff]  ;;  %v40_v24 = vld [vmem:[%s1381_s1 + $0xa8] sm:$0xff]  ;;  %736 = vmatprep.subr.bf16.mxu0 %v735_v16 }
   0x7   :  { %766 = vmatpush3.bf16.msra.mxu1 %v765_v12  ;;  %v769_v25 = vpack.c.bf16 %v54_v22, %v53_v20  ;;  %v739_v26 = vpack.c.bf16 %v40_v24, %v39_v23  ;;  %v23_v27 = vld [vmem:[%s1381_s1 + $0x20] sm:$0xff]  ;;  %v24_v28 = vld [vmem:[%s1381_s1 + $0x28] sm:$0xff]  ;;  %v41_v35 = vld [vmem:[%s1381_s1 + $0xb0] sm:$0xff] }
   0x8   :  { %v71_v29 = vld [vmem:[%s1381_s1 + $0x1a0] sm:$0xff]  ;;  %768 = vmatprep.subr.bf16.mxu1 %v767_v21  ;;  %v72_v30 = vld [vmem:[%s1381_s1 + $0x1a8] sm:$0xff]  ;;  %v741_v33 = vpack.c.bf16 %v24_v28, %v23_v27  ;;  %v42_v36 = vld [vmem:[%s1381_s1 + $0xb8] sm:$0xff] }
   0x9   :  { %v55_v31 = vld [vmem:[%s1381_s1 + $0x120] sm:$0xff]  ;;  %v56_v32 = vld [vmem:[%s1381_s1 + $0x128] sm:$0xff]  ;;  %738 = vmatpush3.bf16.msra.mxu0 %v737_v17  ;;  %v771_v34 = vpack.c.bf16 %v72_v30, %v71_v29  ;;  %v25_v37 = vld [vmem:[%s1381_s1 + $0x30] sm:$0xff]  ;;  %v743_v39 = vpack.c.bf16 %v42_v36, %v41_v35 }
   0xa   :  { %740 = vmatprep.subr.bf16.mxu0 %v739_v26  ;;  %v773_v38 = vpack.c.bf16 %v56_v32, %v55_v31  ;;  %v26_v40 = vld [vmem:[%s1381_s1 + $0x38] sm:$0xff]  ;;  %v73_v41 = vld [vmem:[%s1381_s1 + $0x1b0] sm:$0xff]  ;;  %v43_v46 = vld [vmem:[%s1381_s1 + $0xc0] sm:$0xff] }
   0xb   :  { %770 = vmatpush3.bf16.msra.mxu1 %v769_v25  ;;  %v74_v42 = vld [vmem:[%s1381_s1 + $0x1b8] sm:$0xff]  ;;  %v57_v44 = vld [vmem:[%s1381_s1 + $0x130] sm:$0xff]  ;;  %v44_v47 = vld [vmem:[%s1381_s1 + $0xc8] sm:$0xff]  ;;  %v745_v48 = vpack.c.bf16 %v26_v40, %v25_v37 }
   0xc   :  { %772 = vmatprep.subr.bf16.mxu1 %v771_v34  ;;  %v775_v43 = vpack.c.bf16 %v74_v42, %v73_v41  ;;  %v58_v45 = vld [vmem:[%s1381_s1 + $0x138] sm:$0xff]  ;;  %v75_v49 = vld [vmem:[%s1381_s1 + $0x1c0] sm:$0xff]  ;;  %v76_v50 = vld [vmem:[%s1381_s1 + $0x1c8] sm:$0xff]  ;;  %v747_v52 = vpack.c.bf16 %v44_v47, %v43_v46 }
   0xd   :  { %742 = vmatpush3.bf16.msra.mxu0 %v741_v33  ;;  %v777_v51 = vpack.c.bf16 %v58_v45, %v57_v44  ;;  %v27_v53 = vld [vmem:[%s1381_s1 + $0x40] sm:$0xff]  ;;  %v28_v54 = vld [vmem:[%s1381_s1 + $0x48] sm:$0xff]  ;;  %v779_v56 = vpack.c.bf16 %v76_v50, %v75_v49  ;;  %v45_v58 = vld [vmem:[%s1381_s1 + $0xd0] sm:$0xff] }
   0xe   :  { %744 = vmatprep.subr.bf16.mxu0 %v743_v39  ;;  %v59_v55 = vld [vmem:[%s1381_s1 + $0x140] sm:$0xff]  ;;  %v60_v57 = vld [vmem:[%s1381_s1 + $0x148] sm:$0xff]  ;;  %v46_v59 = vld [vmem:[%s1381_s1 + $0xd8] sm:$0xff]  ;;  %v749_v62 = vpack.c.bf16 %v28_v54, %v27_v53 }
   0xf   :  { %774 = vmatpush3.bf16.msra.mxu1 %v773_v38  ;;  %v77_v60 = vld [vmem:[%s1381_s1 + $0x1d0] sm:$0xff]  ;;  %v78_v61 = vld [vmem:[%s1381_s1 + $0x1d8] sm:$0xff]  ;;  %v781_v63 = vpack.c.bf16 %v60_v57, %v59_v55  ;;  %v751_v0 = vpack.c.bf16 %v46_v59, %v45_v58  ;;  %v47_v6 = vld [vmem:[%s1381_s1 + $0xe0] sm:$0xff] }
  0x10   :  { %776 = vmatprep.subr.bf16.mxu1 %v775_v43  ;;  %v29_v1 = vld [vmem:[%s1381_s1 + $0x50] sm:$0xff]  ;;  %v30_v2 = vld [vmem:[%s1381_s1 + $0x58] sm:$0xff]  ;;  %v783_v4 = vpack.c.bf16 %v78_v61, %v77_v60  ;;  %v48_v7 = vld [vmem:[%s1381_s1 + $0xe8] sm:$0xff] }
  0x11   :  { %746 = vmatpush3.bf16.msra.mxu0 %v745_v48  ;;  %v61_v3 = vld [vmem:[%s1381_s1 + $0x150] sm:$0xff]  ;;  %v62_v5 = vld [vmem:[%s1381_s1 + $0x158] sm:$0xff]  ;;  %v79_v8 = vld [vmem:[%s1381_s1 + $0x1e0] sm:$0xff]  ;;  %v753_v10 = vpack.c.bf16 %v30_v2, %v29_v1  ;;  %v755_v14 = vpack.c.bf16 %v48_v7, %v47_v6 }
  0x12   :  { %748 = vmatprep.subr.bf16.mxu0 %v747_v52  ;;  %v80_v9 = vld [vmem:[%s1381_s1 + $0x1e8] sm:$0xff]  ;;  %v31_v11 = vld [vmem:[%s1381_s1 + $0x60] sm:$0xff]  ;;  %v785_v13 = vpack.c.bf16 %v62_v5, %v61_v3  ;;  %v49_v20 = vld [vmem:[%s1381_s1 + $0xf0] sm:$0xff] }
  0x13   :  { %778 = vmatpush3.bf16.msra.mxu1 %v777_v51  ;;  %v1075_v12 = vld [vmem:[%s1382_s0] sm:$0xff]  ;;  %v32_v15 = vld [vmem:[%s1381_s1 + $0x68] sm:$0xff]  ;;  %v787_v19 = vpack.c.bf16 %v80_v9, %v79_v8  ;;  %v50_v21 = vld [vmem:[%s1381_s1 + $0xf8] sm:$0xff] }
  0x14   :  { %780 = vmatprep.subr.bf16.mxu1 %v779_v56  ;;  %v63_v16 = vld [vmem:[%s1381_s1 + $0x160] sm:$0xff]  ;;  %v64_v17 = vld [vmem:[%s1381_s1 + $0x168] sm:$0xff]  ;;  %v174_v18 = vcombine.high %v1075_v12, %v1075_v12  ;;  %v81_v23 = vld [vmem:[%s1381_s1 + $0x1f0] sm:$0xff]  ;;  %v757_v26 = vpack.c.bf16 %v32_v15, %v31_v11  ;;  %v759_v28 = vpack.c.bf16 %v50_v21, %v49_v20 }
  0x15   :  { %750 = vmatpush3.bf16.msra.mxu0 %v749_v62  ;;  %v15_v22 = vld [vmem:[%s1382_s0 + $0x8] sm:$0xff]  ;;  %v82_v24 = vld [vmem:[%s1381_s1 + $0x1f8] sm:$0xff]  ;;  %v789_v27 = vpack.c.bf16 %v64_v17, %v63_v16  ;;  %v33_v29 = vld [vmem:[%s1381_s1 + $0x70] sm:$0xff] }
  0x16   :  { %752 = vmatprep.subr.bf16.mxu0 %v751_v0  ;;  %246 = vmatprep.mubr.f32.mxu0 %v174_v18  ;;  %v175_v25 = vcombine.high %v15_v22, %v15_v22  ;;  %v34_v30 = vld [vmem:[%s1381_s1 + $0x78] sm:$0xff]  ;;  %v65_v31 = vld [vmem:[%s1381_s1 + $0x170] sm:$0xff]  ;;  %v791_v32 = vpack.c.bf16 %v82_v24, %v81_v23  ;;  %v99_v34 = vld [vmem:[%s1381_s1 + $0x280] sm:$0xff] }
  0x17   :  { %782 = vmatpush3.bf16.msra.mxu1 %v781_v63  ;;  %v66_v33 = vld [vmem:[%s1381_s1 + $0x178] sm:$0xff]  ;;  %v100_v35 = vld [vmem:[%s1381_s1 + $0x288] sm:$0xff]  ;;  %v131_v36 = vld [vmem:[%s1381_s1 + $0x380] sm:$0xff]  ;;  %v761_v38 = vpack.c.bf16 %v34_v30, %v33_v29 }
  0x18   :  { %784 = vmatprep.subr.bf16.mxu1 %v783_v4  ;;  %316 = vmatprep.mubr.f32.mxu1 %v175_v25  ;;  %v132_v37 = vld [vmem:[%s1381_s1 + $0x388] sm:$0xff]  ;;  %v793_v39 = vpack.c.bf16 %v66_v33, %v65_v31  ;;  %v795_v40 = vpack.c.bf16 %v100_v35, %v99_v34  ;;  %v83_v41 = vld [vmem:[%s1381_s1 + $0x200] sm:$0xff]  ;;  %v101_v46 = vld [vmem:[%s1381_s1 + $0x290] sm:$0xff] }
  0x19   :  { %754 = vmatpush3.bf16.msra.mxu0 %v753_v10  ;;  %v84_v42 = vld [vmem:[%s1381_s1 + $0x208] sm:$0xff]  ;;  %v115_v43 = vld [vmem:[%s1381_s1 + $0x300] sm:$0xff]  ;;  %v827_v44 = vpack.c.bf16 %v132_v37, %v131_v36  ;;  %v102_v47 = vld [vmem:[%s1381_s1 + $0x298] sm:$0xff] }
  0x1a   :  { %756 = vmatprep.subr.bf16.mxu0 %v755_v14  ;;  %v116_v45 = vld [vmem:[%s1381_s1 + $0x308] sm:$0xff]  ;;  %v133_v48 = vld [vmem:[%s1381_s1 + $0x390] sm:$0xff]  ;;  %v134_v49 = vld [vmem:[%s1381_s1 + $0x398] sm:$0xff]  ;;  %v797_v50 = vpack.c.bf16 %v84_v42, %v83_v41  ;;  %v799_v52 = vpack.c.bf16 %v102_v47, %v101_v46 }
  0x1b   :  { %786 = vmatpush3.bf16.msra.mxu1 %v785_v13  ;;  %v829_v51 = vpack.c.bf16 %v116_v45, %v115_v43  ;;  %v85_v53 = vld [vmem:[%s1381_s1 + $0x210] sm:$0xff]  ;;  %v86_v54 = vld [vmem:[%s1381_s1 + $0x218] sm:$0xff]  ;;  %v831_v56 = vpack.c.bf16 %v134_v49, %v133_v48  ;;  %v103_v58 = vld [vmem:[%s1381_s1 + $0x2a0] sm:$0xff] }
  0x1c   :  { %788 = vmatprep.subr.bf16.mxu1 %v787_v19  ;;  %v117_v55 = vld [vmem:[%s1381_s1 + $0x310] sm:$0xff]  ;;  %v118_v57 = vld [vmem:[%s1381_s1 + $0x318] sm:$0xff]  ;;  %v104_v59 = vld [vmem:[%s1381_s1 + $0x2a8] sm:$0xff]  ;;  %v801_v62 = vpack.c.bf16 %v86_v54, %v85_v53 }
  0x1d   :  { %758 = vmatpush3.bf16.msra.mxu0 %v757_v26  ;;  %v135_v60 = vld [vmem:[%s1381_s1 + $0x3a0] sm:$0xff]  ;;  %v136_v61 = vld [vmem:[%s1381_s1 + $0x3a8] sm:$0xff]  ;;  %v833_v63 = vpack.c.bf16 %v118_v57, %v117_v55  ;;  %v803_v0 = vpack.c.bf16 %v104_v59, %v103_v58  ;;  %v105_v6 = vld [vmem:[%s1381_s1 + $0x2b0] sm:$0xff] }
  0x1e   :  { %760 = vmatprep.subr.bf16.mxu0 %v759_v28  ;;  %v87_v1 = vld [vmem:[%s1381_s1 + $0x220] sm:$0xff]  ;;  %v88_v2 = vld [vmem:[%s1381_s1 + $0x228] sm:$0xff]  ;;  %v835_v4 = vpack.c.bf16 %v136_v61, %v135_v60  ;;  %v106_v7 = vld [vmem:[%s1381_s1 + $0x2b8] sm:$0xff] }
  0x1f   :  { %790 = vmatpush3.bf16.msra.mxu1 %v789_v27  ;;  %v119_v3 = vld [vmem:[%s1381_s1 + $0x320] sm:$0xff]  ;;  %v120_v5 = vld [vmem:[%s1381_s1 + $0x328] sm:$0xff]  ;;  %v137_v8 = vld [vmem:[%s1381_s1 + $0x3b0] sm:$0xff]  ;;  %v805_v10 = vpack.c.bf16 %v88_v2, %v87_v1  ;;  %v807_v13 = vpack.c.bf16 %v106_v7, %v105_v6 }
  0x20   :  { %792 = vmatprep.subr.bf16.mxu1 %v791_v32  ;;  %v138_v9 = vld [vmem:[%s1381_s1 + $0x3b8] sm:$0xff]  ;;  %v89_v11 = vld [vmem:[%s1381_s1 + $0x230] sm:$0xff]  ;;  %v107_v18 = vld [vmem:[%s1381_s1 + $0x2c0] sm:$0xff] }
  0x21   :  { %762 = vmatpush3.bf16.msra.mxu0 %v761_v38  ;;  %v90_v14 = vld [vmem:[%s1381_s1 + $0x238] sm:$0xff]  ;;  %v121_v15 = vld [vmem:[%s1381_s1 + $0x330] sm:$0xff]  ;;  %v839_v17 = vpack.c.bf16 %v138_v9, %v137_v8  ;;  %v108_v19 = vld [vmem:[%s1381_s1 + $0x2c8] sm:$0xff] }
  0x22   :  { %796 = vmatprep.subr.bf16.mxu0 %v795_v40  ;;  %v122_v16 = vld [vmem:[%s1381_s1 + $0x338] sm:$0xff]  ;;  %v1221_v20 = vld [vmem:[%s1382_s0 + $0x10] sm:$0xff]  ;;  %v139_v21 = vld [vmem:[%s1381_s1 + $0x3c0] sm:$0xff]  ;;  %v809_v25 = vpack.c.bf16 %v90_v14, %v89_v11  ;;  %v811_v28 = vpack.c.bf16 %v108_v19, %v107_v18  ;;  %v890_v11 = vmov 0.0|0.0  }
  0x23   :  { %794 = vmatpush3.bf16.msra.mxu1 %v793_v39  ;;  %v176_v23 = vcombine.high %v1221_v20, %v1221_v20  ;;  %v1234_v24 = vld [vmem:[%s1382_s0 + $0x18] sm:$0xff]  ;;  %v841_v27 = vpack.c.bf16 %v122_v16, %v121_v15  ;;  %v91_v29 = vld [vmem:[%s1381_s1 + $0x240] sm:$0xff]  ;;  %v92_v30 = vld [vmem:[%s1381_s1 + $0x248] sm:$0xff] }
  0x24   :  { %828 = vmatprep.subr.bf16.mxu1 %v827_v44  ;;  %247 = vmatmul.mubr.f32.vlgmr.msra.gmra.mrb[0].mxu0 %v1075_v12  ;;  %v837_v12 = vpack.c.bf16 %v120_v5, %v119_v3  ;;  %v177_v26 = vcombine.high %v1234_v24, %v1234_v24  ;;  %v123_v31 = vld [vmem:[%s1381_s1 + $0x340] sm:$0xff]  ;;  %v124_v33 = vld [vmem:[%s1381_s1 + $0x348] sm:$0xff]  ;;  %v109_v34 = vld [vmem:[%s1381_s1 + $0x2d0] sm:$0xff]  ;;  %v813_v38 = vpack.c.bf16 %v92_v30, %v91_v29 }
  0x25   :  { %798 = vmatpush3.bf16.msra.mxu0 %v797_v50  ;;  %v110_v35 = vld [vmem:[%s1381_s1 + $0x2d8] sm:$0xff]  ;;  %386 = vmatprep.mubr.f32.mxu0 %v176_v23  ;;  %v141_v36 = vld [vmem:[%s1381_s1 + $0x3d0] sm:$0xff]  ;;  %v845_v39 = vpack.c.bf16 %v124_v33, %v123_v31  ;;  %v111_v46 = vld [vmem:[%s1381_s1 + $0x2e0] sm:$0xff] }
  0x26   :  { %317 = vmatmul.mubr.f32.vlgmr.msra.gmra.mrb[0].mxu1 %v15_v22  ;;  %800 = vmatprep.subr.bf16.mxu0 %v799_v52  ;;  %v140_v22 = vld [vmem:[%s1381_s1 + $0x3c8] sm:$0xff]  ;;  %v142_v37 = vld [vmem:[%s1381_s1 + $0x3d8] sm:$0xff]  ;;  %v815_v40 = vpack.c.bf16 %v110_v35, %v109_v34  ;;  %v93_v41 = vld [vmem:[%s1381_s1 + $0x250] sm:$0xff] }
  0x27   :  { %830 = vmatpush3.bf16.msra.mxu1 %v829_v51  ;;  %v843_v32 = vpack.c.bf16 %v140_v22, %v139_v21  ;;  %456 = vmatprep.mubr.f32.mxu1 %v177_v26  ;;  %v94_v42 = vld [vmem:[%s1381_s1 + $0x258] sm:$0xff]  ;;  %v125_v43 = vld [vmem:[%s1381_s1 + $0x350] sm:$0xff]  ;;  %v847_v44 = vpack.c.bf16 %v142_v37, %v141_v36  ;;  %v112_v47 = vld [vmem:[%s1381_s1 + $0x2e8] sm:$0xff] }
  0x28   :  { %832 = vmatprep.subr.bf16.mxu1 %v831_v56  ;;  %v126_v45 = vld [vmem:[%s1381_s1 + $0x358] sm:$0xff]  ;;  %v143_v48 = vld [vmem:[%s1381_s1 + $0x3e0] sm:$0xff]  ;;  %v144_v49 = vld [vmem:[%s1381_s1 + $0x3e8] sm:$0xff]  ;;  %v817_v50 = vpack.c.bf16 %v94_v42, %v93_v41  ;;  %v819_v52 = vpack.c.bf16 %v112_v47, %v111_v46 }
  0x29   :  { %802 = vmatpush3.bf16.msra.mxu0 %v801_v62  ;;  %v849_v51 = vpack.c.bf16 %v126_v45, %v125_v43  ;;  %v95_v53 = vld [vmem:[%s1381_s1 + $0x260] sm:$0xff]  ;;  %v96_v54 = vld [vmem:[%s1381_s1 + $0x268] sm:$0xff]  ;;  %v851_v56 = vpack.c.bf16 %v144_v49, %v143_v48  ;;  %v113_v58 = vld [vmem:[%s1381_s1 + $0x2f0] sm:$0xff] }
  0x2a   :  { %804 = vmatprep.subr.bf16.mxu0 %v803_v0  ;;  %v127_v55 = vld [vmem:[%s1381_s1 + $0x360] sm:$0xff]  ;;  %v128_v57 = vld [vmem:[%s1381_s1 + $0x368] sm:$0xff]  ;;  %v114_v59 = vld [vmem:[%s1381_s1 + $0x2f8] sm:$0xff]  ;;  %v821_v62 = vpack.c.bf16 %v96_v54, %v95_v53 }
  0x2b   :  { %834 = vmatpush3.bf16.msra.mxu1 %v833_v63  ;;  %v145_v60 = vld [vmem:[%s1381_s1 + $0x3f0] sm:$0xff]  ;;  %v146_v61 = vld [vmem:[%s1381_s1 + $0x3f8] sm:$0xff]  ;;  %v853_v63 = vpack.c.bf16 %v128_v57, %v127_v55  ;;  %v823_v0 = vpack.c.bf16 %v114_v59, %v113_v58  ;;  %v147_v8 = vld [vmem:[%s1381_s1 + $0x400] sm:$0xff] }
  0x2c   :  { %836 = vmatprep.subr.bf16.mxu1 %v835_v4  ;;  %v97_v1 = vld [vmem:[%s1381_s1 + $0x270] sm:$0xff]  ;;  %v98_v2 = vld [vmem:[%s1381_s1 + $0x278] sm:$0xff]  ;;  %v855_v3 = vpack.c.bf16 %v146_v61, %v145_v60  ;;  %v148_v9 = vld [vmem:[%s1381_s1 + $0x408] sm:$0xff] }
  0x2d   :  { %806 = vmatpush3.bf16.msra.mxu0 %v805_v10  ;;  %v129_v4 = vld [vmem:[%s1381_s1 + $0x370] sm:$0xff]  ;;  %v130_v5 = vld [vmem:[%s1381_s1 + $0x378] sm:$0xff]  ;;  %v825_v6 = vpack.c.bf16 %v98_v2, %v97_v1  ;;  %v860_v10 = vpack.c.bf16 %v148_v9, %v147_v8  ;;  %v151_v15 = vld [vmem:[%s1381_s1 + $0x420] sm:$0xff] }
  0x2e   :  { %808 = vmatprep.subr.bf16.mxu0 %v807_v13  ;;  %v857_v7 = vpack.c.bf16 %v130_v5, %v129_v4  ;;  %v150_v13 = vld [vmem:[%s1381_s1 + $0x418] sm:$0xff]  ;;  %v152_v16 = vld [vmem:[%s1381_s1 + $0x428] sm:$0xff]  ;;  %v153_v19 = vld [vmem:[%s1381_s1 + $0x430] sm:$0xff] }
  0x2f   :  { %838 = vmatpush3.bf16.msra.mxu1 %v837_v12  ;;  %v149_v12 = vld [vmem:[%s1381_s1 + $0x410] sm:$0xff]  ;;  %v866_v18 = vpack.c.bf16 %v152_v16, %v151_v15  ;;  %v155_v22 = vld [vmem:[%s1381_s1 + $0x440] sm:$0xff]  ;;  %v156_v23 = vld [vmem:[%s1381_s1 + $0x448] sm:$0xff] }
  0x30   :  { %840 = vmatprep.subr.bf16.mxu1 %v839_v17  ;;  %v863_v14 = vpack.c.bf16 %v150_v13, %v149_v12  ;;  %v892_v17 = vmov 0.0   ;;  %v158_v26 = vld [vmem:[%s1381_s1 + $0x458] sm:$0xff]  ;;  %v160_v29 = vld [vmem:[%s1381_s1 + $0x468] sm:$0xff]  ;;  %v161_v31 = vld [vmem:[%s1381_s1 + $0x470] sm:$0xff] }
  0x31   :  { %810 = vmatpush3.bf16.msra.mxu0 %v809_v25  ;;  %v157_v25 = vld [vmem:[%s1381_s1 + $0x450] sm:$0xff]  ;;  %v18_v34 = vld [vmem:[%s1382_s0 + $0x20] sm:$0xf] }
  0x32   :  { %812 = vmatprep.subr.bf16.mxu0 %v811_v28  ;;  %v159_v28 = vld [vmem:[%s1381_s1 + $0x460] sm:$0xff] }
  0x33   :  { %842 = vmatpush3.bf16.msra.mxu1 %v841_v27  ;;  %v875_v27 = vpack.c.bf16 %v158_v26, %v157_v25  ;;  %v878_v30 = vpack.c.bf16 %v160_v29, %v159_v28  ;;  %v538_v36 = vld [vmem:[%s1383_s2] ss:$0 sm:$0xff] }
  0x34   :  { %844 = vmatprep.subr.bf16.mxu1 %v843_v32  ;;  %v162_v32 = vld [vmem:[%s1381_s1 + $0x478] sm:$0xff] }
  0x35   :  { %814 = vmatpush3.bf16.msra.mxu0 %v813_v38  ;;  %v881_v33 = vpack.c.bf16 %v162_v32, %v161_v31 }
  0x36   :  { %816 = vmatprep.subr.bf16.mxu0 %v815_v40 }
  0x37   :  { %846 = vmatpush3.bf16.msra.mxu1 %v845_v39 }
  0x38   :  { %848 = vmatprep.subr.bf16.mxu1 %v847_v44 }
  0x39   :  { %818 = vmatpush3.bf16.msra.mxu0 %v817_v50 }
  0x3a   :  { %820 = vmatprep.subr.bf16.mxu0 %v819_v52 }
  0x3b   :  { %850 = vmatpush3.bf16.msra.mxu1 %v849_v51 }
  0x3c   :  { %852 = vmatprep.subr.bf16.mxu1 %v851_v56 }
  0x3d   :  { %822 = vmatpush3.bf16.msra.mxu0 %v821_v62 }
  0x3e   :  { %824 = vmatprep.subr.bf16.mxu0 %v823_v0 }
  0x3f   :  { %854 = vmatpush3.bf16.msra.mxu1 %v853_v63 }
  0x40   :  { %856 = vmatprep.subr.bf16.mxu1 %v855_v3 }
  0x41   :  { %826 = vmatpush3.bf16.msra.mxu0 %v825_v6 }
  0x42   :  { %859 = vmatprep.subr.bf16.mxu0 %v890_v11 }
  0x43   :  { %858 = vmatpush3.bf16.msra.mxu1 %v857_v7 }
  0x44   :  { %387 = vmatmul.mubr.f32.vlgmr.msra.gmra.mrb[2].mxu0 %v1221_v20  ;;  %v154_v20 = vld [vmem:[%s1381_s1 + $0x438] sm:$0xff] }
  0x45   :  { %861 = vmatpush3.bf16.msra.mxu0 %v860_v10  ;;  %728 = vmatprep.mubr.msk.f32.mxu0 %vm891_vm0, %v892_v17  ;;  %v869_v21 = vpack.c.bf16 %v154_v20, %v153_v19 }
  0x46   :  { %457 = vmatmul.mubr.f32.vlgmr.msra.gmra.mrb[2].mxu1 %v1234_v24  ;;  %862 = vmatprep.subr.bf16.mxu0 %v890_v11  ;;  %v872_v24 = vpack.c.bf16 %v156_v23, %v155_v22 }
  0x49   :  { %864 = vmatpush3.bf16.msra.mxu0 %v863_v14 }
  0x4a   :  { %865 = vmatprep.subr.bf16.mxu0 %v890_v11 }
  0x4d   :  { %867 = vmatpush3.bf16.msra.mxu0 %v866_v18 }
  0x4e   :  { %868 = vmatprep.subr.bf16.mxu0 %v890_v11 }
  0x51   :  { %870 = vmatpush3.bf16.msra.mxu0 %v869_v21 }
  0x52   :  { %871 = vmatprep.subr.bf16.mxu0 %v890_v11 }
  0x55   :  { %873 = vmatpush3.bf16.msra.mxu0 %v872_v24 }
  0x56   :  { %874 = vmatprep.subr.bf16.mxu0 %v890_v11 }
  0x59   :  { %876 = vmatpush3.bf16.msra.mxu0 %v875_v27 }
  0x5a   :  { %877 = vmatprep.subr.bf16.mxu0 %v890_v11 }
  0x5d   :  { %879 = vmatpush3.bf16.msra.mxu0 %v878_v30 }
  0x5e   :  { %880 = vmatprep.subr.bf16.mxu0 %v890_v11 }
  0x61   :  { %882 = vmatpush3.bf16.msra.mxu0 %v881_v33 }
  0x64   :  { %729 = vmatmul.mubr.f32.vlgmr.msra.gmra.mrb[4].mxu0 %v18_v34 }
  0xf7   :  { %v571_v35 = vpop.f32.mrb[0].mxu0 }
  0xf8   :  { %v572_v37 = vpop.f32.mrb[1].mxu0 }
  0xf9   :  { %v606_v38 = vpop.f32.mrb[0].mxu1  ;;  %v573_v39 = vadd.f32 %v572_v37, %v571_v35 }
  0xfa   :  { %v607_v40 = vpop.f32.mrb[1].mxu1 }
  0xfb   :  { %v608_v41 = vadd.f32 %v607_v40, %v606_v38  ;;  %v249_v42 = vadd.f32 %v573_v39, %v538_v36 }
  0xfd   :  { %v319_v43 = vadd.f32 %v608_v41, %v249_v42 }
 0x117   :  { %v641_v44 = vpop.f32.mrb[2].mxu0 }
 0x118   :  { %v642_v45 = vpop.f32.mrb[3].mxu0 }
 0x119   :  { %v676_v46 = vpop.f32.mrb[2].mxu1  ;;  %v643_v47 = vadd.f32 %v642_v45, %v641_v44 }
 0x11a   :  { %v677_v48 = vpop.f32.mrb[3].mxu1 }
 0x11b   :  { %v678_v49 = vadd.f32 %v677_v48, %v676_v46  ;;  %v389_v50 = vadd.f32 %v643_v47, %v319_v43 }
 0x11d   :  { %v459_v51 = vadd.f32 %v678_v49, %v389_v50 }
 0x137   :  { %v528_v52 = vpop.f32.mrb[4].mxu0 }
 0x138   :  { %v529_v53 = vadd.f32 %v528_v52, %v459_v51  ;;  %v730_v54 = vpop.f32.mrb[5].mxu0 }
 0x13a   :  { %533 = vst.msk [vmem:[%s1384_s3] sm:$0xf] %vm532_vm1, %v529_v53 }

// kernel: cnn_autoencoder_forward.13
= control target key start
LH: loop header
LB: loop body
LE: loop exit
PB: predicated region body
PF: predicated region fallthrough
CT: control target
= control target key end

     0   :  { %vm26_vm0 = vcmask 146432   ;;  %vm33_vm1 = vcmask 1041408   ;;  %s190_s1 = inlined_call_operand.vmem [shape: f32[18,128], index: 1, kind: input, shape index: {}]   ;;  %s191_s0 = inlined_call_operand.vmem [shape: f32[16,18], index: 0, kind: input, shape index: {}]   ;;  %s192_s2 = inlined_call_operand.vmem [shape: f32[1,128], index: 2, kind: input, shape index: {}]   ;;  %s193_s3 = inlined_call_operand.vmem [shape: f32[16,128], index: 3, kind: output, shape index: {}]  }
   0x1   :  { %v16_v0 = vld [vmem:[%s190_s1] sm:$0xff]  ;;  %v17_v1 = vld [vmem:[%s190_s1 + $0x8] sm:$0xff]  ;;  %v18_v4 = vld [vmem:[%s190_s1 + $0x10] sm:$0x3] }
   0x2   :  { %v138_v2 = vpack.c.bf16 %v17_v1, %v16_v0  ;;  %v14_v3 = vld [vmem:[%s191_s0] sm:$0xff]  ;;  %v15_v5 = vld [vmem:[%s191_s0 + $0x8] sm:$0xff] }
   0x3   :  { %135 = vmatprep.mubr.msk.f32.mxu0 %vm26_vm0, %v14_v3  ;;  %v120_v6 = vld [vmem:[%s192_s2] ss:$0 sm:$0xff] }
   0x4   :  { %139 = vmatprep.subr.bf16.mxu0 %v138_v2 }
   0x5   :  { %141 = vmatpush3.bf16.msra.mxu0 %v138_v2 }
   0x6   :  { %133 = vmatprep.subr.msk.mxu0 %vm33_vm1, %v18_v4 }
   0x9   :  { %134 = vmatpush3.msk.msra.mxu0 %vm33_vm1, %v18_v4 }
   0xa   :  { %136 = vmatmul.mubr.msk.f32.vlgmr.msra.gmra.mrb[0].mxu0 %vm26_vm0, %v15_v5 }
  0xdd   :  { %v137_v7 = vpop.f32.mrb[0].mxu0 }
  0xde   :  { %v109_v8 = vadd.f32 %v137_v7, %v120_v6  ;;  %v103_v9 = vpop.f32.mrb[1].mxu0 }
  0xdf   :  { %v104_v10 = vadd.f32 %v120_v6, %v103_v9 }
  0xe0   :  { %142 = vtanh.f32 %v109_v8 }
  0xe1   :  { %144 = vtanh.f32 %v104_v10 }
  0xea   :  { %v143_v11 = vpop.eup %142 }
  0xeb   :  { %v145_v12 = vpop.eup %144  ;;  %115 = vst [vmem:[%s193_s3 + $0x8] sm:$0xff] %v143_v11 }
  0xec   :  { %114 = vst [vmem:[%s193_s3] sm:$0xff] %v145_v12 }

// kernel: cnn_autoencoder_forward.14
= control target key start
LH: loop header
LB: loop body
LE: loop exit
PB: predicated region body
PF: predicated region fallthrough
CT: control target
= control target key end

     0   :  { %vm840_vm0 = vcmask 523264   ;;  %s2189_s1 = inlined_call_operand.vmem [shape: f32[1152,64], index: 1, kind: input, shape index: {}]   ;;  %s2190_s0 = inlined_call_operand.vmem [shape: f32[80,1152], index: 0, kind: input, shape index: {}]   ;;  %s2191_s2 = inlined_call_operand.vmem [shape: f32[1,64], index: 2, kind: input, shape index: {}]   ;;  %s2192_s3 = inlined_call_operand.vmem [shape: f32[80,64], index: 3, kind: output, shape index: {}]  }
   0x1   :  { %v120_v0 = vld [vmem:[%s2189_s1 + $0x80] sm:$0xff]  ;;  %v121_v1 = vld [vmem:[%s2189_s1 + $0x88] sm:$0xff]  ;;  %v122_v11 = vld [vmem:[%s2189_s1 + $0x90] sm:$0xff] }
   0x2   :  { %v152_v2 = vld [vmem:[%s2189_s1 + $0x180] sm:$0xff]  ;;  %v1177_v3 = vpack.c.bf16 %v121_v1, %v120_v0  ;;  %v153_v4 = vld [vmem:[%s2189_s1 + $0x188] sm:$0xff]  ;;  %v123_v13 = vld [vmem:[%s2189_s1 + $0x98] sm:$0xff] }
   0x3   :  { %v104_v5 = vld [vmem:[%s2189_s1] sm:$0xff]  ;;  %v105_v6 = vld [vmem:[%s2189_s1 + $0x8] sm:$0xff]  ;;  %v1209_v7 = vpack.c.bf16 %v153_v4, %v152_v2  ;;  %v154_v14 = vld [vmem:[%s2189_s1 + $0x190] sm:$0xff]  ;;  %v1181_v16 = vpack.c.bf16 %v123_v13, %v122_v11 }
   0x4   :  { %v1179_v8 = vpack.c.bf16 %v105_v6, %v104_v5  ;;  %v136_v9 = vld [vmem:[%s2189_s1 + $0x100] sm:$0xff]  ;;  %v137_v10 = vld [vmem:[%s2189_s1 + $0x108] sm:$0xff]  ;;  %1178 = vmatprep.subr.bf16.mxu0 %v1177_v3  ;;  %v155_v15 = vld [vmem:[%s2189_s1 + $0x198] sm:$0xff] }
   0x5   :  { %v1211_v12 = vpack.c.bf16 %v137_v10, %v136_v9  ;;  %1210 = vmatprep.subr.bf16.mxu1 %v1209_v7  ;;  %v1213_v17 = vpack.c.bf16 %v155_v15, %v154_v14  ;;  %v106_v18 = vld [vmem:[%s2189_s1 + $0x10] sm:$0xff]  ;;  %v107_v19 = vld [vmem:[%s2189_s1 + $0x18] sm:$0xff]  ;;  %v124_v23 = vld [vmem:[%s2189_s1 + $0xa0] sm:$0xff] }
   0x6   :  { %1180 = vmatpush3.bf16.msra.mxu0 %v1179_v8  ;;  %v138_v20 = vld [vmem:[%s2189_s1 + $0x110] sm:$0xff]  ;;  %v1183_v21 = vpack.c.bf16 %v107_v19, %v106_v18  ;;  %v139_v22 = vld [vmem:[%s2189_s1 + $0x118] sm:$0xff]  ;;  %v125_v24 = vld [vmem:[%s2189_s1 + $0xa8] sm:$0xff] }
   0x7   :  { %1212 = vmatpush3.bf16.msra.mxu1 %v1211_v12  ;;  %1182 = vmatprep.subr.bf16.mxu0 %v1181_v16  ;;  %v1215_v25 = vpack.c.bf16 %v139_v22, %v138_v20  ;;  %v1185_v26 = vpack.c.bf16 %v125_v24, %v124_v23  ;;  %v156_v27 = vld [vmem:[%s2189_s1 + $0x1a0] sm:$0xff]  ;;  %v157_v28 = vld [vmem:[%s2189_s1 + $0x1a8] sm:$0xff]  ;;  %v126_v35 = vld [vmem:[%s2189_s1 + $0xb0] sm:$0xff] }
   0x8   :  { %1214 = vmatprep.subr.bf16.mxu1 %v1213_v17  ;;  %v108_v29 = vld [vmem:[%s2189_s1 + $0x20] sm:$0xff]  ;;  %v1217_v30 = vpack.c.bf16 %v157_v28, %v156_v27  ;;  %v109_v31 = vld [vmem:[%s2189_s1 + $0x28] sm:$0xff]  ;;  %v127_v36 = vld [vmem:[%s2189_s1 + $0xb8] sm:$0xff] }
   0x9   :  { %v140_v32 = vld [vmem:[%s2189_s1 + $0x120] sm:$0xff]  ;;  %v141_v33 = vld [vmem:[%s2189_s1 + $0x128] sm:$0xff]  ;;  %v1187_v34 = vpack.c.bf16 %v109_v31, %v108_v29  ;;  %v158_v37 = vld [vmem:[%s2189_s1 + $0x1b0] sm:$0xff]  ;;  %v1189_v39 = vpack.c.bf16 %v127_v36, %v126_v35 }
   0xa   :  { %1184 = vmatpush3.bf16.msra.mxu0 %v1183_v21  ;;  %v1219_v38 = vpack.c.bf16 %v141_v33, %v140_v32  ;;  %v159_v40 = vld [vmem:[%s2189_s1 + $0x1b8] sm:$0xff]  ;;  %v110_v41 = vld [vmem:[%s2189_s1 + $0x30] sm:$0xff]  ;;  %v128_v46 = vld [vmem:[%s2189_s1 + $0xc0] sm:$0xff] }
   0xb   :  { %1216 = vmatpush3.bf16.msra.mxu1 %v1215_v25  ;;  %1186 = vmatprep.subr.bf16.mxu0 %v1185_v26  ;;  %v111_v42 = vld [vmem:[%s2189_s1 + $0x38] sm:$0xff]  ;;  %v1221_v43 = vpack.c.bf16 %v159_v40, %v158_v37  ;;  %v142_v44 = vld [vmem:[%s2189_s1 + $0x130] sm:$0xff]  ;;  %v129_v47 = vld [vmem:[%s2189_s1 + $0xc8] sm:$0xff] }
   0xc   :  { %1218 = vmatprep.subr.bf16.mxu1 %v1217_v30  ;;  %v143_v45 = vld [vmem:[%s2189_s1 + $0x138] sm:$0xff]  ;;  %v160_v48 = vld [vmem:[%s2189_s1 + $0x1c0] sm:$0xff]  ;;  %v161_v49 = vld [vmem:[%s2189_s1 + $0x1c8] sm:$0xff]  ;;  %v1191_v50 = vpack.c.bf16 %v111_v42, %v110_v41  ;;  %v1193_v52 = vpack.c.bf16 %v129_v47, %v128_v46 }
   0xd   :  { %v1223_v51 = vpack.c.bf16 %v143_v45, %v142_v44  ;;  %v112_v53 = vld [vmem:[%s2189_s1 + $0x40] sm:$0xff]  ;;  %v113_v54 = vld [vmem:[%s2189_s1 + $0x48] sm:$0xff]  ;;  %v1225_v56 = vpack.c.bf16 %v161_v49, %v160_v48  ;;  %v130_v58 = vld [vmem:[%s2189_s1 + $0xd0] sm:$0xff] }
   0xe   :  { %1188 = vmatpush3.bf16.msra.mxu0 %v1187_v34  ;;  %v144_v55 = vld [vmem:[%s2189_s1 + $0x140] sm:$0xff]  ;;  %v145_v57 = vld [vmem:[%s2189_s1 + $0x148] sm:$0xff]  ;;  %v131_v59 = vld [vmem:[%s2189_s1 + $0xd8] sm:$0xff]  ;;  %v1195_v62 = vpack.c.bf16 %v113_v54, %v112_v53 }
   0xf   :  { %1220 = vmatpush3.bf16.msra.mxu1 %v1219_v38  ;;  %1190 = vmatprep.subr.bf16.mxu0 %v1189_v39  ;;  %v162_v60 = vld [vmem:[%s2189_s1 + $0x1d0] sm:$0xff]  ;;  %v163_v61 = vld [vmem:[%s2189_s1 + $0x1d8] sm:$0xff]  ;;  %v1227_v63 = vpack.c.bf16 %v145_v57, %v144_v55  ;;  %v1197_v0 = vpack.c.bf16 %v131_v59, %v130_v58  ;;  %v132_v6 = vld [vmem:[%s2189_s1 + $0xe0] sm:$0xff] }
  0x10   :  { %1222 = vmatprep.subr.bf16.mxu1 %v1221_v43  ;;  %v114_v1 = vld [vmem:[%s2189_s1 + $0x50] sm:$0xff]  ;;  %v115_v2 = vld [vmem:[%s2189_s1 + $0x58] sm:$0xff]  ;;  %v1229_v4 = vpack.c.bf16 %v163_v61, %v162_v60  ;;  %v133_v7 = vld [vmem:[%s2189_s1 + $0xe8] sm:$0xff] }
  0x11   :  { %v146_v3 = vld [vmem:[%s2189_s1 + $0x150] sm:$0xff]  ;;  %v147_v5 = vld [vmem:[%s2189_s1 + $0x158] sm:$0xff]  ;;  %v164_v8 = vld [vmem:[%s2189_s1 + $0x1e0] sm:$0xff]  ;;  %v1199_v10 = vpack.c.bf16 %v115_v2, %v114_v1  ;;  %v1201_v14 = vpack.c.bf16 %v133_v7, %v132_v6 }
  0x12   :  { %1192 = vmatpush3.bf16.msra.mxu0 %v1191_v50  ;;  %v165_v9 = vld [vmem:[%s2189_s1 + $0x1e8] sm:$0xff]  ;;  %v116_v11 = vld [vmem:[%s2189_s1 + $0x60] sm:$0xff]  ;;  %v1231_v13 = vpack.c.bf16 %v147_v5, %v146_v3  ;;  %v17_v17 = vld [vmem:[%s2190_s0 + $0x18] sm:$0xff] }
  0x13   :  { %1224 = vmatpush3.bf16.msra.mxu1 %v1223_v51  ;;  %1194 = vmatprep.subr.bf16.mxu0 %v1193_v52  ;;  %v117_v12 = vld [vmem:[%s2189_s1 + $0x68] sm:$0xff]  ;;  %v148_v15 = vld [vmem:[%s2189_s1 + $0x160] sm:$0xff]  ;;  %v1233_v18 = vpack.c.bf16 %v165_v9, %v164_v8  ;;  %v134_v20 = vld [vmem:[%s2189_s1 + $0xf0] sm:$0xff] }
  0x14   :  { %1226 = vmatprep.subr.bf16.mxu1 %v1225_v56  ;;  %v15_v16 = vld [vmem:[%s2190_s0 + $0x8] sm:$0xff]  ;;  %v135_v21 = vld [vmem:[%s2189_s1 + $0xf8] sm:$0xff]  ;;  %v166_v22 = vld [vmem:[%s2189_s1 + $0x1f0] sm:$0xff]  ;;  %434 = vmatprep.mubr.f32.mxu1 %v17_v17  ;;  %v1203_v24 = vpack.c.bf16 %v117_v12, %v116_v11 }
  0x15   :  { %v149_v19 = vld [vmem:[%s2189_s1 + $0x168] sm:$0xff]  ;;  %319 = vmatprep.mubr.f32.mxu0 %v15_v16  ;;  %v167_v23 = vld [vmem:[%s2189_s1 + $0x1f8] sm:$0xff]  ;;  %v1205_v26 = vpack.c.bf16 %v135_v21, %v134_v20  ;;  %v118_v27 = vld [vmem:[%s2189_s1 + $0x70] sm:$0xff] }
  0x16   :  { %1196 = vmatpush3.bf16.msra.mxu0 %v1195_v62  ;;  %v1235_v25 = vpack.c.bf16 %v149_v19, %v148_v15  ;;  %v119_v28 = vld [vmem:[%s2189_s1 + $0x78] sm:$0xff]  ;;  %v150_v29 = vld [vmem:[%s2189_s1 + $0x170] sm:$0xff]  ;;  %v1237_v30 = vpack.c.bf16 %v167_v23, %v166_v22  ;;  %v184_v32 = vld [vmem:[%s2189_s1 + $0x280] sm:$0xff] }
  0x17   :  { %1228 = vmatpush3.bf16.msra.mxu1 %v1227_v63  ;;  %1198 = vmatprep.subr.bf16.mxu0 %v1197_v0  ;;  %v151_v31 = vld [vmem:[%s2189_s1 + $0x178] sm:$0xff]  ;;  %v185_v33 = vld [vmem:[%s2189_s1 + $0x288] sm:$0xff]  ;;  %v216_v34 = vld [vmem:[%s2189_s1 + $0x380] sm:$0xff]  ;;  %v1207_v36 = vpack.c.bf16 %v119_v28, %v118_v27 }
  0x18   :  { %1230 = vmatprep.subr.bf16.mxu1 %v1229_v4  ;;  %v217_v35 = vld [vmem:[%s2189_s1 + $0x388] sm:$0xff]  ;;  %v1239_v37 = vpack.c.bf16 %v151_v31, %v150_v29  ;;  %v1241_v38 = vpack.c.bf16 %v185_v33, %v184_v32  ;;  %v168_v39 = vld [vmem:[%s2189_s1 + $0x200] sm:$0xff]  ;;  %v186_v42 = vld [vmem:[%s2189_s1 + $0x290] sm:$0xff] }
  0x19   :  { %v169_v40 = vld [vmem:[%s2189_s1 + $0x208] sm:$0xff]  ;;  %v1273_v41 = vpack.c.bf16 %v217_v35, %v216_v34  ;;  %v187_v43 = vld [vmem:[%s2189_s1 + $0x298] sm:$0xff]  ;;  %v200_v44 = vld [vmem:[%s2189_s1 + $0x300] sm:$0xff] }
  0x1a   :  { %1200 = vmatpush3.bf16.msra.mxu0 %v1199_v10  ;;  %v201_v45 = vld [vmem:[%s2189_s1 + $0x308] sm:$0xff]  ;;  %v14_v46 = vld [vmem:[%s2190_s0] sm:$0xff]  ;;  %v1243_v47 = vpack.c.bf16 %v169_v40, %v168_v39  ;;  %v218_v48 = vld [vmem:[%s2189_s1 + $0x390] sm:$0xff]  ;;  %v1245_v55 = vpack.c.bf16 %v187_v43, %v186_v42 }
  0x1b   :  { %1232 = vmatpush3.bf16.msra.mxu1 %v1231_v13  ;;  %1202 = vmatprep.subr.bf16.mxu0 %v1201_v14  ;;  %v219_v49 = vld [vmem:[%s2189_s1 + $0x398] sm:$0xff]  ;;  %v16_v50 = vld [vmem:[%s2190_s0 + $0x10] sm:$0xff]  ;;  %v26_v54 = vld [vmem:[%s2190_s0 + $0x60] sm:$0xff]  ;;  %v1275_v56 = vpack.c.bf16 %v201_v45, %v200_v44 }
  0x1c   :  { %1234 = vmatprep.subr.bf16.mxu1 %v1233_v18  ;;  %v170_v51 = vld [vmem:[%s2189_s1 + $0x210] sm:$0xff]  ;;  %v171_v52 = vld [vmem:[%s2189_s1 + $0x218] sm:$0xff]  ;;  %v188_v57 = vld [vmem:[%s2189_s1 + $0x2a0] sm:$0xff]  ;;  %v1277_v58 = vpack.c.bf16 %v219_v49, %v218_v48 }
  0x1d   :  { %v24_v53 = vld [vmem:[%s2190_s0 + $0x50] sm:$0xff]  ;;  %v189_v59 = vld [vmem:[%s2189_s1 + $0x2a8] sm:$0xff]  ;;  %v203_v61 = vld [vmem:[%s2189_s1 + $0x318] sm:$0xff]  ;;  %v1247_v63 = vpack.c.bf16 %v171_v52, %v170_v51 }
  0x1e   :  { %1204 = vmatpush3.bf16.msra.mxu0 %v1203_v24  ;;  %v202_v60 = vld [vmem:[%s2189_s1 + $0x310] sm:$0xff]  ;;  %v23_v62 = vld [vmem:[%s2190_s0 + $0x48] sm:$0xff]  ;;  %v220_v0 = vld [vmem:[%s2189_s1 + $0x3a0] sm:$0xff]  ;;  %v1249_v5 = vpack.c.bf16 %v189_v59, %v188_v57 }
  0x1f   :  { %1236 = vmatpush3.bf16.msra.mxu1 %v1235_v25  ;;  %1206 = vmatprep.subr.bf16.mxu0 %v1205_v26  ;;  %v221_v1 = vld [vmem:[%s2189_s1 + $0x3a8] sm:$0xff]  ;;  %v25_v2 = vld [vmem:[%s2190_s0 + $0x58] sm:$0xff]  ;;  %v1279_v6 = vpack.c.bf16 %v203_v61, %v202_v60  ;;  %v172_v7 = vld [vmem:[%s2189_s1 + $0x220] sm:$0xff] }
  0x20   :  { %1238 = vmatprep.subr.bf16.mxu1 %v1237_v30  ;;  %v33_v3 = vld [vmem:[%s2190_s0 + $0x98] sm:$0xff]  ;;  %v35_v4 = vld [vmem:[%s2190_s0 + $0xa8] sm:$0xff]  ;;  %v190_v9 = vld [vmem:[%s2189_s1 + $0x2b0] sm:$0xff]  ;;  %v1281_v10 = vpack.c.bf16 %v221_v1, %v220_v0 }
  0x21   :  { %v173_v8 = vld [vmem:[%s2189_s1 + $0x228] sm:$0xff]  ;;  %v191_v11 = vld [vmem:[%s2189_s1 + $0x2b8] sm:$0xff]  ;;  %v204_v12 = vld [vmem:[%s2189_s1 + $0x320] sm:$0xff] }
  0x22   :  { %1208 = vmatpush3.bf16.msra.mxu0 %v1207_v36  ;;  %v205_v13 = vld [vmem:[%s2189_s1 + $0x328] sm:$0xff]  ;;  %v32_v14 = vld [vmem:[%s2190_s0 + $0x90] sm:$0xff]  ;;  %v223_v16 = vld [vmem:[%s2189_s1 + $0x3b8] sm:$0xff]  ;;  %v1251_v20 = vpack.c.bf16 %v173_v8, %v172_v7  ;;  %v1253_v21 = vpack.c.bf16 %v191_v11, %v190_v9 }
  0x23   :  { %1240 = vmatpush3.bf16.msra.mxu1 %v1239_v37  ;;  %1242 = vmatprep.subr.bf16.mxu0 %v1241_v38  ;;  %v222_v15 = vld [vmem:[%s2189_s1 + $0x3b0] sm:$0xff]  ;;  %v34_v17 = vld [vmem:[%s2190_s0 + $0xa0] sm:$0xff]  ;;  %v1283_v22 = vpack.c.bf16 %v205_v13, %v204_v12  ;;  %v175_v24 = vld [vmem:[%s2189_s1 + $0x238] sm:$0xff] }
  0x24   :  { %1274 = vmatprep.subr.bf16.mxu1 %v1273_v41  ;;  %v42_v18 = vld [vmem:[%s2190_s0 + $0xe0] sm:$0xff]  ;;  %v44_v19 = vld [vmem:[%s2190_s0 + $0xf0] sm:$0xff]  ;;  %v1285_v26 = vpack.c.bf16 %v223_v16, %v222_v15  ;;  %v193_v27 = vld [vmem:[%s2189_s1 + $0x2c8] sm:$0xff] }
  0x25   :  { %320 = vmatmul.mubr.f32.vlgmr.msra.gmra.mrb[0].mxu0 %v14_v46  ;;  %v174_v23 = vld [vmem:[%s2189_s1 + $0x230] sm:$0xff]  ;;  %v192_v25 = vld [vmem:[%s2189_s1 + $0x2c0] sm:$0xff]  ;;  %v207_v29 = vld [vmem:[%s2189_s1 + $0x338] sm:$0xff] }
  0x26   :  { %435 = vmatmul.mubr.f32.vlgmr.msra.gmra.mrb[0].mxu1 %v16_v50  ;;  %1244 = vmatpush3.bf16.msra.mxu0 %v1243_v47  ;;  %v206_v28 = vld [vmem:[%s2189_s1 + $0x330] sm:$0xff]  ;;  %v41_v30 = vld [vmem:[%s2190_s0 + $0xd8] sm:$0xff]  ;;  %v224_v31 = vld [vmem:[%s2189_s1 + $0x3c0] sm:$0xff]  ;;  %v1255_v36 = vpack.c.bf16 %v175_v24, %v174_v23  ;;  %v1257_v37 = vpack.c.bf16 %v193_v27, %v192_v25 }
  0x27   :  { %324 = vmatprep.mubr.f32.mxu0 %v24_v53  ;;  %439 = vmatprep.mubr.f32.mxu1 %v26_v54  ;;  %v225_v32 = vld [vmem:[%s2189_s1 + $0x3c8] sm:$0xff]  ;;  %v53_v35 = vld [vmem:[%s2190_s0 + $0x138] sm:$0xff]  ;;  %v1287_v38 = vpack.c.bf16 %v207_v29, %v206_v28  ;;  %v176_v39 = vld [vmem:[%s2189_s1 + $0x240] sm:$0xff] }
  0x28   :  { %1246 = vmatprep.subr.bf16.mxu0 %v1245_v55  ;;  %1276 = vmatpush3.bf16.msra.mxu1 %v1275_v56  ;;  %v43_v33 = vld [vmem:[%s2190_s0 + $0xe8] sm:$0xff]  ;;  %v194_v41 = vld [vmem:[%s2189_s1 + $0x2d0] sm:$0xff]  ;;  %v1289_v42 = vpack.c.bf16 %v225_v32, %v224_v31  ;;  %v195_v43 = vld [vmem:[%s2189_s1 + $0x2d8] sm:$0xff] }
  0x29   :  { %325 = vmatmul.mubr.f32.gmra.mrb[2].mxu0 %v23_v62  ;;  %1278 = vmatprep.subr.bf16.mxu1 %v1277_v58  ;;  %v51_v34 = vld [vmem:[%s2190_s0 + $0x128] sm:$0xff]  ;;  %v208_v44 = vld [vmem:[%s2189_s1 + $0x340] sm:$0xff]  ;;  %v226_v47 = vld [vmem:[%s2189_s1 + $0x3d0] sm:$0xff]  ;;  %v1261_v53 = vpack.c.bf16 %v195_v43, %v194_v41 }
  0x2a   :  { %440 = vmatmul.mubr.f32.gmra.mrb[2].mxu1 %v25_v2  ;;  %1248 = vmatpush3.bf16.msra.mxu0 %v1247_v63  ;;  %v177_v40 = vld [vmem:[%s2189_s1 + $0x248] sm:$0xff]  ;;  %v50_v46 = vld [vmem:[%s2190_s0 + $0x120] sm:$0xff]  ;;  %v227_v48 = vld [vmem:[%s2189_s1 + $0x3d8] sm:$0xff] }
  0x2b   :  { %329 = vmatprep.mubr.f32.mxu0 %v33_v3  ;;  %444 = vmatprep.mubr.f32.mxu1 %v35_v4  ;;  %v209_v45 = vld [vmem:[%s2189_s1 + $0x348] sm:$0xff]  ;;  %v52_v49 = vld [vmem:[%s2190_s0 + $0x130] sm:$0xff]  ;;  %v62_v51 = vld [vmem:[%s2190_s0 + $0x180] sm:$0xff]  ;;  %v1259_v52 = vpack.c.bf16 %v177_v40, %v176_v39  ;;  %v1293_v58 = vpack.c.bf16 %v227_v48, %v226_v47 }
  0x2c   :  { %1250 = vmatprep.subr.bf16.mxu0 %v1249_v5  ;;  %1280 = vmatpush3.bf16.msra.mxu1 %v1279_v6  ;;  %v60_v50 = vld [vmem:[%s2190_s0 + $0x170] sm:$0xff]  ;;  %v1291_v54 = vpack.c.bf16 %v209_v45, %v208_v44  ;;  %v179_v56 = vld [vmem:[%s2189_s1 + $0x258] sm:$0xff]  ;;  %v196_v60 = vld [vmem:[%s2189_s1 + $0x2e0] sm:$0xff] }
  0x2d   :  { %330 = vmatmul.mubr.f32.gmra.mrb[4].mxu0 %v32_v14  ;;  %1282 = vmatprep.subr.bf16.mxu1 %v1281_v10  ;;  %v178_v55 = vld [vmem:[%s2189_s1 + $0x250] sm:$0xff]  ;;  %v211_v59 = vld [vmem:[%s2189_s1 + $0x358] sm:$0xff]  ;;  %v197_v61 = vld [vmem:[%s2189_s1 + $0x2e8] sm:$0xff] }
  0x2e   :  { %445 = vmatmul.mubr.f32.gmra.mrb[4].mxu1 %v34_v17  ;;  %334 = vmatprep.mubr.f32.mxu0 %v42_v18  ;;  %v210_v57 = vld [vmem:[%s2189_s1 + $0x350] sm:$0xff]  ;;  %v59_v62 = vld [vmem:[%s2190_s0 + $0x168] sm:$0xff]  ;;  %v228_v63 = vld [vmem:[%s2189_s1 + $0x3e0] sm:$0xff]  ;;  %v1263_v4 = vpack.c.bf16 %v179_v56, %v178_v55  ;;  %v1265_v6 = vpack.c.bf16 %v197_v61, %v196_v60 }
  0x2f   :  { %449 = vmatprep.mubr.f32.mxu1 %v44_v19  ;;  %1252 = vmatpush3.bf16.msra.mxu0 %v1251_v20  ;;  %v229_v0 = vld [vmem:[%s2189_s1 + $0x3e8] sm:$0xff]  ;;  %v61_v1 = vld [vmem:[%s2190_s0 + $0x178] sm:$0xff]  ;;  %v1295_v5 = vpack.c.bf16 %v211_v59, %v210_v57  ;;  %v180_v7 = vld [vmem:[%s2189_s1 + $0x260] sm:$0xff] }
  0x30   :  { %1254 = vmatprep.subr.bf16.mxu0 %v1253_v21  ;;  %1284 = vmatpush3.bf16.msra.mxu1 %v1283_v22  ;;  %v69_v2 = vld [vmem:[%s2190_s0 + $0x1b8] sm:$0xff]  ;;  %v71_v3 = vld [vmem:[%s2190_s0 + $0x1c8] sm:$0xff]  ;;  %v212_v9 = vld [vmem:[%s2189_s1 + $0x360] sm:$0xff]  ;;  %v1297_v10 = vpack.c.bf16 %v229_v0, %v228_v63 }
  0x31   :  { %335 = vmatmul.mubr.f32.gmra.mrb[6].mxu0 %v41_v30  ;;  %1286 = vmatprep.subr.bf16.mxu1 %v1285_v26  ;;  %v181_v8 = vld [vmem:[%s2189_s1 + $0x268] sm:$0xff]  ;;  %v198_v12 = vld [vmem:[%s2189_s1 + $0x2f0] sm:$0xff]  ;;  %v199_v13 = vld [vmem:[%s2189_s1 + $0x2f8] sm:$0xff] }
  0x32   :  { %450 = vmatmul.mubr.f32.gmra.mrb[6].mxu1 %v43_v33  ;;  %339 = vmatprep.mubr.f32.mxu0 %v51_v34  ;;  %v213_v11 = vld [vmem:[%s2189_s1 + $0x368] sm:$0xff]  ;;  %v68_v14 = vld [vmem:[%s2190_s0 + $0x1b0] sm:$0xff]  ;;  %v231_v16 = vld [vmem:[%s2189_s1 + $0x3f8] sm:$0xff]  ;;  %v1267_v20 = vpack.c.bf16 %v181_v8, %v180_v7  ;;  %v1269_v22 = vpack.c.bf16 %v199_v13, %v198_v12 }
  0x33   :  { %454 = vmatprep.mubr.f32.mxu1 %v53_v35  ;;  %1256 = vmatpush3.bf16.msra.mxu0 %v1255_v36  ;;  %v230_v15 = vld [vmem:[%s2189_s1 + $0x3f0] sm:$0xff]  ;;  %v70_v17 = vld [vmem:[%s2190_s0 + $0x1c0] sm:$0xff]  ;;  %v1299_v21 = vpack.c.bf16 %v213_v11, %v212_v9  ;;  %v183_v24 = vld [vmem:[%s2189_s1 + $0x278] sm:$0xff] }
  0x34   :  { %1258 = vmatprep.subr.bf16.mxu0 %v1257_v37  ;;  %1288 = vmatpush3.bf16.msra.mxu1 %v1287_v38  ;;  %v78_v18 = vld [vmem:[%s2190_s0 + $0x200] sm:$0xff]  ;;  %v80_v19 = vld [vmem:[%s2190_s0 + $0x210] sm:$0xff]  ;;  %v1301_v26 = vpack.c.bf16 %v231_v16, %v230_v15  ;;  %v215_v27 = vld [vmem:[%s2189_s1 + $0x378] sm:$0xff] }
  0x35   :  { %340 = vmatmul.mubr.f32.gmra.mrb[8].mxu0 %v50_v46  ;;  %1290 = vmatprep.subr.bf16.mxu1 %v1289_v42  ;;  %v182_v23 = vld [vmem:[%s2189_s1 + $0x270] sm:$0xff]  ;;  %v232_v28 = vld [vmem:[%s2189_s1 + $0x400] sm:$0xff]  ;;  %v233_v29 = vld [vmem:[%s2189_s1 + $0x408] sm:$0xff] }
  0x36   :  { %455 = vmatmul.mubr.f32.gmra.mrb[8].mxu1 %v52_v49  ;;  %344 = vmatprep.mubr.f32.mxu0 %v60_v50  ;;  %v214_v25 = vld [vmem:[%s2189_s1 + $0x370] sm:$0xff]  ;;  %v77_v30 = vld [vmem:[%s2190_s0 + $0x1f8] sm:$0xff]  ;;  %v79_v31 = vld [vmem:[%s2190_s0 + $0x208] sm:$0xff]  ;;  %v1271_v33 = vpack.c.bf16 %v183_v24, %v182_v23  ;;  %v1305_v36 = vpack.c.bf16 %v233_v29, %v232_v28 }
  0x37   :  { %459 = vmatprep.mubr.f32.mxu1 %v62_v51  ;;  %1260 = vmatpush3.bf16.msra.mxu0 %v1259_v52  ;;  %v87_v32 = vld [vmem:[%s2190_s0 + $0x248] sm:$0xff]  ;;  %v89_v34 = vld [vmem:[%s2190_s0 + $0x258] sm:$0xff]  ;;  %v1303_v35 = vpack.c.bf16 %v215_v27, %v214_v25  ;;  %v86_v37 = vld [vmem:[%s2190_s0 + $0x240] sm:$0xff] }
  0x38   :  { %1262 = vmatprep.subr.bf16.mxu0 %v1261_v53  ;;  %1292 = vmatpush3.bf16.msra.mxu1 %v1291_v54  ;;  %v88_v38 = vld [vmem:[%s2190_s0 + $0x250] sm:$0xff]  ;;  %v98_v40 = vld [vmem:[%s2190_s0 + $0x2a0] sm:$0xff]  ;;  %v95_v41 = vld [vmem:[%s2190_s0 + $0x288] sm:$0xff] }
  0x39   :  { %345 = vmatmul.mubr.f32.gmra.mrb[10].mxu0 %v59_v62  ;;  %1294 = vmatprep.subr.bf16.mxu1 %v1293_v58  ;;  %v96_v39 = vld [vmem:[%s2190_s0 + $0x290] sm:$0xff]  ;;  %v97_v42 = vld [vmem:[%s2190_s0 + $0x298] sm:$0xff]  ;;  %v19_v43 = vld [vmem:[%s2190_s0 + $0x28] sm:$0xff] }
  0x3a   :  { %460 = vmatmul.mubr.f32.gmra.mrb[10].mxu1 %v61_v1  ;;  %349 = vmatprep.mubr.f32.mxu0 %v69_v2  ;;  %v21_v44 = vld [vmem:[%s2190_s0 + $0x38] sm:$0xff]  ;;  %v234_v45 = vld [vmem:[%s2189_s1 + $0x410] sm:$0xff]  ;;  %v18_v47 = vld [vmem:[%s2190_s0 + $0x20] sm:$0xff] }
  0x3b   :  { %464 = vmatprep.mubr.f32.mxu1 %v71_v3  ;;  %1264 = vmatpush3.bf16.msra.mxu0 %v1263_v4  ;;  %v235_v46 = vld [vmem:[%s2189_s1 + $0x418] sm:$0xff]  ;;  %v20_v48 = vld [vmem:[%s2190_s0 + $0x30] sm:$0xff]  ;;  %v30_v50 = vld [vmem:[%s2190_s0 + $0x80] sm:$0xff] }
  0x3c   :  { %1296 = vmatpush3.bf16.msra.mxu1 %v1295_v5  ;;  %1266 = vmatprep.subr.bf16.mxu0 %v1265_v6  ;;  %v28_v49 = vld [vmem:[%s2190_s0 + $0x70] sm:$0xff]  ;;  %v1309_v51 = vpack.c.bf16 %v235_v46, %v234_v45  ;;  %v236_v52 = vld [vmem:[%s2189_s1 + $0x420] sm:$0xff]  ;;  %v237_v53 = vld [vmem:[%s2189_s1 + $0x428] sm:$0xff] }
  0x3d   :  { %350 = vmatmul.mubr.f32.gmra.mrb[12].mxu0 %v68_v14  ;;  %1298 = vmatprep.subr.bf16.mxu1 %v1297_v10  ;;  %v27_v54 = vld [vmem:[%s2190_s0 + $0x68] sm:$0xff]  ;;  %v29_v55 = vld [vmem:[%s2190_s0 + $0x78] sm:$0xff]  ;;  %v1313_v58 = vpack.c.bf16 %v237_v53, %v236_v52  ;;  %v238_v59 = vld [vmem:[%s2189_s1 + $0x430] sm:$0xff] }
  0x3e   :  { %465 = vmatmul.mubr.f32.gmra.mrb[12].mxu1 %v70_v17  ;;  %354 = vmatprep.mubr.f32.mxu0 %v78_v18  ;;  %v37_v56 = vld [vmem:[%s2190_s0 + $0xb8] sm:$0xff]  ;;  %v39_v57 = vld [vmem:[%s2190_s0 + $0xc8] sm:$0xff]  ;;  %v36_v61 = vld [vmem:[%s2190_s0 + $0xb0] sm:$0xff] }
  0x3f   :  { %469 = vmatprep.mubr.f32.mxu1 %v80_v19  ;;  %1268 = vmatpush3.bf16.msra.mxu0 %v1267_v20  ;;  %v239_v60 = vld [vmem:[%s2189_s1 + $0x438] sm:$0xff]  ;;  %v38_v62 = vld [vmem:[%s2190_s0 + $0xc0] sm:$0xff]  ;;  %v48_v0 = vld [vmem:[%s2190_s0 + $0x110] sm:$0xff] }
  0x40   :  { %1300 = vmatpush3.bf16.msra.mxu1 %v1299_v21  ;;  %1270 = vmatprep.subr.bf16.mxu0 %v1269_v22  ;;  %v46_v63 = vld [vmem:[%s2190_s0 + $0x100] sm:$0xff]  ;;  %v1317_v1 = vpack.c.bf16 %v239_v60, %v238_v59  ;;  %v241_v3 = vld [vmem:[%s2189_s1 + $0x448] sm:$0xff]  ;;  %v45_v4 = vld [vmem:[%s2190_s0 + $0xf8] sm:$0xff] }
  0x41   :  { %355 = vmatmul.mubr.f32.gmra.mrb[14].mxu0 %v77_v30  ;;  %1302 = vmatprep.subr.bf16.mxu1 %v1301_v26  ;;  %v240_v2 = vld [vmem:[%s2189_s1 + $0x440] sm:$0xff]  ;;  %v47_v5 = vld [vmem:[%s2190_s0 + $0x108] sm:$0xff]  ;;  %v57_v7 = vld [vmem:[%s2190_s0 + $0x158] sm:$0xff] }
  0x42   :  { %470 = vmatmul.mubr.f32.gmra.mrb[14].mxu1 %v79_v31  ;;  %359 = vmatprep.mubr.f32.mxu0 %v87_v32  ;;  %v55_v6 = vld [vmem:[%s2190_s0 + $0x148] sm:$0xff]  ;;  %v1321_v8 = vpack.c.bf16 %v241_v3, %v240_v2  ;;  %v242_v9 = vld [vmem:[%s2189_s1 + $0x450] sm:$0xff]  ;;  %v243_v10 = vld [vmem:[%s2189_s1 + $0x458] sm:$0xff] }
  0x43   :  { %474 = vmatprep.mubr.f32.mxu1 %v89_v34  ;;  %1272 = vmatpush3.bf16.msra.mxu0 %v1271_v33  ;;  %v54_v11 = vld [vmem:[%s2190_s0 + $0x140] sm:$0xff]  ;;  %v56_v12 = vld [vmem:[%s2190_s0 + $0x150] sm:$0xff]  ;;  %v1325_v15 = vpack.c.bf16 %v243_v10, %v242_v9  ;;  %v245_v17 = vld [vmem:[%s2189_s1 + $0x468] sm:$0xff] }
  0x44   :  { %1304 = vmatpush3.bf16.msra.mxu1 %v1303_v35  ;;  %1306 = vmatprep.subr.bf16.mxu0 %v1305_v36  ;;  %v64_v13 = vld [vmem:[%s2190_s0 + $0x190] sm:$0xff]  ;;  %v66_v14 = vld [vmem:[%s2190_s0 + $0x1a0] sm:$0xff]  ;;  %v63_v18 = vld [vmem:[%s2190_s0 + $0x188] sm:$0xff] }
  0x45   :  { %360 = vmatmul.mubr.f32.gmra.mrb[16].mxu0 %v86_v37  ;;  %1337 = vmatprep.subr.bf16.mxu1 %v1305_v36  ;;  %v244_v16 = vld [vmem:[%s2189_s1 + $0x460] sm:$0xff]  ;;  %v65_v19 = vld [vmem:[%s2190_s0 + $0x198] sm:$0xff]  ;;  %v75_v21 = vld [vmem:[%s2190_s0 + $0x1e8] sm:$0xff] }
  0x46   :  { %475 = vmatmul.mubr.f32.gmra.mrb[16].mxu1 %v88_v38  ;;  %364 = vmatprep.mubr.f32.mxu0 %v96_v39  ;;  %v73_v20 = vld [vmem:[%s2190_s0 + $0x1d8] sm:$0xff]  ;;  %v1329_v22 = vpack.c.bf16 %v245_v17, %v244_v16  ;;  %v246_v23 = vld [vmem:[%s2189_s1 + $0x470] sm:$0xff]  ;;  %v74_v26 = vld [vmem:[%s2190_s0 + $0x1e0] sm:$0xff] }
  0x47   :  { %479 = vmatprep.mubr.f32.mxu1 %v98_v40  ;;  %v247_v24 = vld [vmem:[%s2189_s1 + $0x478] sm:$0xff]  ;;  %v72_v25 = vld [vmem:[%s2190_s0 + $0x1d0] sm:$0xff]  ;;  %v82_v27 = vld [vmem:[%s2190_s0 + $0x220] sm:$0xff] }
  0x48   :  { %v84_v28 = vld [vmem:[%s2190_s0 + $0x230] sm:$0xff]  ;;  %v1333_v29 = vpack.c.bf16 %v247_v24, %v246_v23  ;;  %v81_v30 = vld [vmem:[%s2190_s0 + $0x218] sm:$0xff]  ;;  %v83_v31 = vld [vmem:[%s2190_s0 + $0x228] sm:$0xff] }
  0x49   :  { %365 = vmatmul.mubr.f32.gmra.mrb[18].mxu0 %v95_v41  ;;  %v91_v32 = vld [vmem:[%s2190_s0 + $0x268] sm:$0xff]  ;;  %v93_v33 = vld [vmem:[%s2190_s0 + $0x278] sm:$0xff]  ;;  %v90_v34 = vld [vmem:[%s2190_s0 + $0x260] sm:$0xff] }
  0x4a   :  { %480 = vmatmul.mubr.f32.gmra.mrb[18].mxu1 %v97_v42  ;;  %549 = vmatprep.mubr.f32.mxu0 %v19_v43  ;;  %v92_v35 = vld [vmem:[%s2190_s0 + $0x270] sm:$0xff]  ;;  %v102_v37 = vld [vmem:[%s2190_s0 + $0x2c0] sm:$0xff]  ;;  %v99_v38 = vld [vmem:[%s2190_s0 + $0x2a8] sm:$0xff] }
  0x4b   :  { %664 = vmatprep.mubr.f32.mxu1 %v21_v44  ;;  %v101_v39 = vld [vmem:[%s2190_s0 + $0x2b8] sm:$0xff]  ;;  %v22_v40 = vld [vmem:[%s2190_s0 + $0x40] sm:$0xff]  ;;  %v76_v41 = vld [vmem:[%s2190_s0 + $0x1f0] sm:$0xff] }
  0x4c   :  { %v31_v42 = vld [vmem:[%s2190_s0 + $0x88] sm:$0xff]  ;;  %v85_v43 = vld [vmem:[%s2190_s0 + $0x238] sm:$0xff]  ;;  %v40_v44 = vld [vmem:[%s2190_s0 + $0xd0] sm:$0xff] }
  0x4d   :  { %550 = vmatmul.mubr.f32.vlgmr.msra.gmra.mrb[20].mxu0 %v18_v47  ;;  %v94_v45 = vld [vmem:[%s2190_s0 + $0x280] sm:$0xff]  ;;  %v49_v46 = vld [vmem:[%s2190_s0 + $0x118] sm:$0xff]  ;;  %v103_v47 = vld [vmem:[%s2190_s0 + $0x2c8] sm:$0xff] }
  0x4e   :  { %665 = vmatmul.mubr.f32.vlgmr.msra.gmra.mrb[20].mxu1 %v20_v48  ;;  %1308 = vmatpush3.bf16.msra.mxu0 %v1305_v36  ;;  %v58_v48 = vld [vmem:[%s2190_s0 + $0x160] sm:$0xff] }
  0x4f   :  { %554 = vmatprep.mubr.f32.mxu0 %v28_v49  ;;  %669 = vmatprep.mubr.f32.mxu1 %v30_v50  ;;  %v67_v49 = vld [vmem:[%s2190_s0 + $0x1a8] sm:$0xff] }
  0x50   :  { %1345 = vmatpush3.bf16.msra.mxu1 %v1305_v36  ;;  %1310 = vmatprep.subr.bf16.mxu0 %v1309_v51  ;;  %v100_v36 = vld [vmem:[%s2190_s0 + $0x2b0] sm:$0xff] }
  0x51   :  { %555 = vmatmul.mubr.f32.gmra.mrb[22].mxu0 %v27_v54  ;;  %1338 = vmatprep.subr.bf16.mxu1 %v1309_v51 }
  0x52   :  { %670 = vmatmul.mubr.f32.gmra.mrb[22].mxu1 %v29_v55  ;;  %1312 = vmatpush3.bf16.msra.mxu0 %v1309_v51 }
  0x53   :  { %559 = vmatprep.mubr.f32.mxu0 %v37_v56  ;;  %674 = vmatprep.mubr.f32.mxu1 %v39_v57 }
  0x54   :  { %1346 = vmatpush3.bf16.msra.mxu1 %v1309_v51  ;;  %1314 = vmatprep.subr.bf16.mxu0 %v1313_v58  ;;  %v2098_v51 = vld [vmem:[%s2191_s2] ss:$0 sm:$0xff] }
  0x55   :  { %560 = vmatmul.mubr.f32.gmra.mrb[24].mxu0 %v36_v61  ;;  %1339 = vmatprep.subr.bf16.mxu1 %v1313_v58 }
  0x56   :  { %675 = vmatmul.mubr.f32.gmra.mrb[24].mxu1 %v38_v62  ;;  %564 = vmatprep.mubr.f32.mxu0 %v46_v63 }
  0x57   :  { %679 = vmatprep.mubr.f32.mxu1 %v48_v0  ;;  %1316 = vmatpush3.bf16.msra.mxu0 %v1313_v58 }
  0x58   :  { %1347 = vmatpush3.bf16.msra.mxu1 %v1313_v58  ;;  %1318 = vmatprep.subr.bf16.mxu0 %v1317_v1 }
  0x59   :  { %565 = vmatmul.mubr.f32.gmra.mrb[26].mxu0 %v45_v4  ;;  %1340 = vmatprep.subr.bf16.mxu1 %v1317_v1 }
  0x5a   :  { %680 = vmatmul.mubr.f32.gmra.mrb[26].mxu1 %v47_v5  ;;  %569 = vmatprep.mubr.f32.mxu0 %v55_v6 }
  0x5b   :  { %684 = vmatprep.mubr.f32.mxu1 %v57_v7  ;;  %1320 = vmatpush3.bf16.msra.mxu0 %v1317_v1 }
  0x5c   :  { %1348 = vmatpush3.bf16.msra.mxu1 %v1317_v1  ;;  %1322 = vmatprep.subr.bf16.mxu0 %v1321_v8 }
  0x5d   :  { %570 = vmatmul.mubr.f32.gmra.mrb[28].mxu0 %v54_v11  ;;  %1341 = vmatprep.subr.bf16.mxu1 %v1321_v8 }
  0x5e   :  { %685 = vmatmul.mubr.f32.gmra.mrb[28].mxu1 %v56_v12  ;;  %574 = vmatprep.mubr.f32.mxu0 %v64_v13 }
  0x5f   :  { %689 = vmatprep.mubr.f32.mxu1 %v66_v14  ;;  %1324 = vmatpush3.bf16.msra.mxu0 %v1321_v8 }
  0x60   :  { %1349 = vmatpush3.bf16.msra.mxu1 %v1321_v8  ;;  %1326 = vmatprep.subr.bf16.mxu0 %v1325_v15 }
  0x61   :  { %575 = vmatmul.mubr.f32.gmra.mrb[30].mxu0 %v63_v18  ;;  %1342 = vmatprep.subr.bf16.mxu1 %v1325_v15 }
  0x62   :  { %690 = vmatmul.mubr.f32.gmra.mrb[30].mxu1 %v65_v19  ;;  %579 = vmatprep.mubr.f32.mxu0 %v73_v20 }
  0x63   :  { %694 = vmatprep.mubr.f32.mxu1 %v75_v21  ;;  %1328 = vmatpush3.bf16.msra.mxu0 %v1325_v15 }
  0x64   :  { %1350 = vmatpush3.bf16.msra.mxu1 %v1325_v15  ;;  %1330 = vmatprep.subr.bf16.mxu0 %v1329_v22 }
  0x65   :  { %580 = vmatmul.mubr.f32.gmra.mrb[32].mxu0 %v72_v25  ;;  %1343 = vmatprep.subr.bf16.mxu1 %v1329_v22 }
  0x66   :  { %695 = vmatmul.mubr.f32.gmra.mrb[32].mxu1 %v74_v26  ;;  %584 = vmatprep.mubr.f32.mxu0 %v82_v27 }
  0x67   :  { %699 = vmatprep.mubr.f32.mxu1 %v84_v28  ;;  %1332 = vmatpush3.bf16.msra.mxu0 %v1329_v22 }
  0x68   :  { %1351 = vmatpush3.bf16.msra.mxu1 %v1329_v22  ;;  %1334 = vmatprep.subr.bf16.mxu0 %v1333_v29 }
  0x69   :  { %585 = vmatmul.mubr.f32.gmra.mrb[34].mxu0 %v81_v30  ;;  %1344 = vmatprep.subr.bf16.mxu1 %v1333_v29 }
  0x6a   :  { %700 = vmatmul.mubr.f32.gmra.mrb[34].mxu1 %v83_v31  ;;  %589 = vmatprep.mubr.f32.mxu0 %v91_v32 }
  0x6b   :  { %704 = vmatprep.mubr.f32.mxu1 %v93_v33  ;;  %1336 = vmatpush3.bf16.msra.mxu0 %v1333_v29 }
  0x6c   :  { %1352 = vmatpush3.bf16.msra.mxu1 %v1333_v29 }
  0x6d   :  { %590 = vmatmul.mubr.f32.gmra.mrb[36].mxu0 %v90_v34 }
  0x6e   :  { %705 = vmatmul.mubr.f32.gmra.mrb[36].mxu1 %v92_v35  ;;  %594 = vmatprep.mubr.f32.mxu0 %v100_v36 }
  0x6f   :  { %709 = vmatprep.mubr.f32.mxu1 %v102_v37 }
  0x71   :  { %595 = vmatmul.mubr.f32.gmra.mrb[38].mxu0 %v99_v38 }
  0x72   :  { %710 = vmatmul.mubr.f32.gmra.mrb[38].mxu1 %v101_v39  ;;  %1162 = vmatprep.mubr.f32.mxu0 %v22_v40 }
  0x73   :  { %1171 = vmatprep.mubr.f32.mxu1 %v76_v41 }
  0x75   :  { %1163 = vmatmul.mubr.f32.vlgmr.msra.gmra.mrb[40].mxu0 %v31_v42 }
  0x76   :  { %1172 = vmatmul.mubr.f32.vlgmr.msra.gmra.mrb[40].mxu1 %v85_v43  ;;  %1165 = vmatprep.mubr.f32.mxu0 %v40_v44 }
  0x77   :  { %1174 = vmatprep.mubr.f32.mxu1 %v94_v45 }
  0x79   :  { %1166 = vmatmul.mubr.f32.gmra.mrb[42].mxu0 %v49_v46 }
  0x7a   :  { %1175 = vmatmul.mubr.f32.gmra.mrb[42].mxu1 %v103_v47  ;;  %1168 = vmatprep.mubr.f32.mxu0 %v58_v48 }
  0x7d   :  { %1169 = vmatmul.mubr.f32.gmra.mrb[44].mxu0 %v67_v49 }
  0xf8   :  { %v888_v50 = vpop.f32.mrb[0].mxu0 }
  0xf9   :  { %v889_v52 = vpop.f32.mrb[1].mxu0  ;;  %v950_v53 = vpop.f32.mrb[0].mxu1 }
  0xfa   :  { %v890_v54 = vadd.f32 %v889_v52, %v888_v50  ;;  %v951_v55 = vpop.f32.mrb[1].mxu1 }
  0xfb   :  { %v952_v56 = vadd.f32 %v951_v55, %v950_v53 }
  0xfc   :  { %v322_v57 = vadd.f32 %v890_v54, %v2098_v51  ;;  %v891_v58 = vpop.f32.mrb[2].mxu0 }
  0xfd   :  { %v892_v59 = vpop.f32.mrb[3].mxu0  ;;  %v953_v60 = vpop.f32.mrb[2].mxu1 }
  0xfe   :  { %v2101_v61 = vadd.f32 %v952_v56, %v322_v57  ;;  %v893_v62 = vadd.f32 %v892_v59, %v891_v58  ;;  %v954_v63 = vpop.f32.mrb[3].mxu1 }
  0xff   :  { %v955_v0 = vadd.f32 %v954_v63, %v953_v60 }
 0x100   :  { %v327_v1 = vadd.f32 %v893_v62, %v2098_v51  ;;  %v894_v2 = vpop.f32.mrb[4].mxu0 }
 0x101   :  { %v895_v3 = vpop.f32.mrb[5].mxu0  ;;  %v956_v4 = vpop.f32.mrb[4].mxu1 }
 0x102   :  { %v2104_v5 = vadd.f32 %v955_v0, %v327_v1  ;;  %v896_v6 = vadd.f32 %v895_v3, %v894_v2  ;;  %v957_v7 = vpop.f32.mrb[5].mxu1 }
 0x103   :  { %v958_v8 = vadd.f32 %v957_v7, %v956_v4 }
 0x104   :  { %v332_v9 = vadd.f32 %v896_v6, %v2098_v51  ;;  %v897_v10 = vpop.f32.mrb[6].mxu0 }
 0x105   :  { %v898_v11 = vpop.f32.mrb[7].mxu0  ;;  %v959_v12 = vpop.f32.mrb[6].mxu1 }
 0x106   :  { %v2107_v13 = vadd.f32 %v958_v8, %v332_v9  ;;  %v899_v14 = vadd.f32 %v898_v11, %v897_v10  ;;  %v960_v15 = vpop.f32.mrb[7].mxu1 }
 0x107   :  { %v961_v16 = vadd.f32 %v960_v15, %v959_v12 }
 0x108   :  { %v337_v17 = vadd.f32 %v899_v14, %v2098_v51  ;;  %v900_v18 = vpop.f32.mrb[8].mxu0 }
 0x109   :  { %v901_v19 = vpop.f32.mrb[9].mxu0  ;;  %v962_v20 = vpop.f32.mrb[8].mxu1 }
 0x10a   :  { %v2110_v21 = vadd.f32 %v961_v16, %v337_v17  ;;  %v902_v22 = vadd.f32 %v901_v19, %v900_v18  ;;  %v963_v23 = vpop.f32.mrb[9].mxu1 }
 0x10b   :  { %v964_v24 = vadd.f32 %v963_v23, %v962_v20 }
 0x10c   :  { %v342_v25 = vadd.f32 %v902_v22, %v2098_v51  ;;  %v903_v26 = vpop.f32.mrb[10].mxu0 }
 0x10d   :  { %v904_v27 = vpop.f32.mrb[11].mxu0  ;;  %v965_v28 = vpop.f32.mrb[10].mxu1 }
 0x10e   :  { %v2113_v29 = vadd.f32 %v964_v24, %v342_v25  ;;  %v905_v30 = vadd.f32 %v904_v27, %v903_v26  ;;  %v966_v31 = vpop.f32.mrb[11].mxu1 }
 0x10f   :  { %v967_v32 = vadd.f32 %v966_v31, %v965_v28 }
 0x110   :  { %v347_v33 = vadd.f32 %v905_v30, %v2098_v51  ;;  %v906_v34 = vpop.f32.mrb[12].mxu0 }
 0x111   :  { %v907_v35 = vpop.f32.mrb[13].mxu0  ;;  %v968_v36 = vpop.f32.mrb[12].mxu1 }
 0x112   :  { %v2116_v37 = vadd.f32 %v967_v32, %v347_v33  ;;  %v908_v38 = vadd.f32 %v907_v35, %v906_v34  ;;  %v969_v39 = vpop.f32.mrb[13].mxu1 }
 0x113   :  { %v970_v40 = vadd.f32 %v969_v39, %v968_v36 }
 0x114   :  { %v352_v41 = vadd.f32 %v908_v38, %v2098_v51  ;;  %v909_v42 = vpop.f32.mrb[14].mxu0 }
 0x115   :  { %v910_v43 = vpop.f32.mrb[15].mxu0  ;;  %v971_v44 = vpop.f32.mrb[14].mxu1 }
 0x116   :  { %v2119_v45 = vadd.f32 %v970_v40, %v352_v41  ;;  %v911_v46 = vadd.f32 %v910_v43, %v909_v42  ;;  %v972_v47 = vpop.f32.mrb[15].mxu1 }
 0x117   :  { %v973_v48 = vadd.f32 %v972_v47, %v971_v44 }
 0x118   :  { %v357_v49 = vadd.f32 %v911_v46, %v2098_v51  ;;  %v912_v50 = vpop.f32.mrb[16].mxu0 }
 0x119   :  { %v913_v52 = vpop.f32.mrb[17].mxu0  ;;  %v974_v53 = vpop.f32.mrb[16].mxu1 }
 0x11a   :  { %v2122_v54 = vadd.f32 %v973_v48, %v357_v49  ;;  %v914_v55 = vadd.f32 %v913_v52, %v912_v50  ;;  %v975_v56 = vpop.f32.mrb[17].mxu1 }
 0x11b   :  { %v976_v57 = vadd.f32 %v975_v56, %v974_v53 }
 0x11c   :  { %v362_v58 = vadd.f32 %v914_v55, %v2098_v51  ;;  %v915_v59 = vpop.f32.mrb[18].mxu0 }
 0x11d   :  { %v916_v60 = vpop.f32.mrb[19].mxu0  ;;  %v977_v62 = vpop.f32.mrb[18].mxu1 }
 0x11e   :  { %v2125_v63 = vadd.f32 %v976_v57, %v362_v58  ;;  %v917_v0 = vadd.f32 %v916_v60, %v915_v59  ;;  %v978_v1 = vpop.f32.mrb[19].mxu1 }
 0x11f   :  { %v979_v2 = vadd.f32 %v978_v1, %v977_v62 }
 0x120   :  { %v367_v3 = vadd.f32 %v917_v0, %v2098_v51  ;;  %v1012_v4 = vpop.f32.mrb[20].mxu0 }
 0x121   :  { %v1013_v6 = vpop.f32.mrb[21].mxu0  ;;  %v1074_v7 = vpop.f32.mrb[20].mxu1 }
 0x122   :  { %v2128_v8 = vadd.f32 %v979_v2, %v367_v3  ;;  %v1014_v9 = vadd.f32 %v1013_v6, %v1012_v4  ;;  %v1075_v10 = vpop.f32.mrb[21].mxu1 }
 0x123   :  { %v1076_v11 = vadd.f32 %v1075_v10, %v1074_v7 }
 0x124   :  { %v552_v12 = vadd.f32 %v1014_v9, %v2101_v61  ;;  %v1015_v14 = vpop.f32.mrb[22].mxu0 }
 0x125   :  { %v1016_v15 = vpop.f32.mrb[23].mxu0  ;;  %v1077_v16 = vpop.f32.mrb[22].mxu1 }
 0x126   :  { %v1017_v17 = vadd.f32 %v1016_v15, %v1015_v14  ;;  %v1078_v18 = vpop.f32.mrb[23].mxu1  ;;  %v2131_v19 = vadd.f32 %v1076_v11, %v552_v12 }
 0x127   :  { %v1079_v20 = vadd.f32 %v1078_v18, %v1077_v16 }
 0x128   :  { %v557_v51 = vadd.f32 %v1017_v17, %v2104_v5  ;;  %v1018_v22 = vpop.f32.mrb[24].mxu0 }
 0x129   :  { %v1019_v23 = vpop.f32.mrb[25].mxu0  ;;  %v1080_v24 = vpop.f32.mrb[24].mxu1 }
 0x12a   :  { %v1020_v25 = vadd.f32 %v1019_v23, %v1018_v22  ;;  %v1081_v26 = vpop.f32.mrb[25].mxu1  ;;  %v672_v27 = vadd.f32 %v1079_v20, %v557_v51 }
 0x12b   :  { %v1082_v28 = vadd.f32 %v1081_v26, %v1080_v24 }
 0x12c   :  { %v562_v30 = vadd.f32 %v1020_v25, %v2107_v13  ;;  %v1021_v61 = vpop.f32.mrb[26].mxu0 }
 0x12d   :  { %v1022_v31 = vpop.f32.mrb[27].mxu0  ;;  %v1083_v32 = vpop.f32.mrb[26].mxu1 }
 0x12e   :  { %v1023_v33 = vadd.f32 %v1022_v31, %v1021_v61  ;;  %v1084_v34 = vpop.f32.mrb[27].mxu1  ;;  %v2135_v35 = vadd.f32 %v1082_v28, %v562_v30 }
 0x12f   :  { %v1085_v36 = vadd.f32 %v1084_v34, %v1083_v32 }
 0x130   :  { %v567_v38 = vadd.f32 %v1023_v33, %v2110_v21  ;;  %v1024_v5 = vpop.f32.mrb[28].mxu0 }
 0x131   :  { %v1025_v39 = vpop.f32.mrb[29].mxu0  ;;  %v1086_v40 = vpop.f32.mrb[28].mxu1 }
 0x132   :  { %v1026_v41 = vadd.f32 %v1025_v39, %v1024_v5  ;;  %v1087_v42 = vpop.f32.mrb[29].mxu1  ;;  %v682_v43 = vadd.f32 %v1085_v36, %v567_v38 }
 0x133   :  { %v1088_v44 = vadd.f32 %v1087_v42, %v1086_v40 }
 0x134   :  { %v572_v46 = vadd.f32 %v1026_v41, %v2113_v29  ;;  %v1027_v13 = vpop.f32.mrb[30].mxu0 }
 0x135   :  { %v1028_v47 = vpop.f32.mrb[31].mxu0  ;;  %v1089_v48 = vpop.f32.mrb[30].mxu1 }
 0x136   :  { %v1029_v49 = vadd.f32 %v1028_v47, %v1027_v13  ;;  %v1090_v50 = vpop.f32.mrb[31].mxu1  ;;  %v2139_v52 = vadd.f32 %v1088_v44, %v572_v46 }
 0x137   :  { %v1091_v53 = vadd.f32 %v1090_v50, %v1089_v48 }
 0x138   :  { %v577_v55 = vadd.f32 %v1029_v49, %v2116_v37  ;;  %v1030_v21 = vpop.f32.mrb[32].mxu0 }
 0x139   :  { %v1031_v56 = vpop.f32.mrb[33].mxu0  ;;  %v1092_v57 = vpop.f32.mrb[32].mxu1 }
 0x13a   :  { %v1032_v58 = vadd.f32 %v1031_v56, %v1030_v21  ;;  %v1093_v59 = vpop.f32.mrb[33].mxu1  ;;  %v692_v60 = vadd.f32 %v1091_v53, %v577_v55 }
 0x13b   :  { %v1094_v62 = vadd.f32 %v1093_v59, %v1092_v57 }
 0x13c   :  { %v582_v0 = vadd.f32 %v1032_v58, %v2119_v45  ;;  %v1033_v29 = vpop.f32.mrb[34].mxu0 }
 0x13d   :  { %v1034_v1 = vpop.f32.mrb[35].mxu0  ;;  %v1095_v2 = vpop.f32.mrb[34].mxu1 }
 0x13e   :  { %v1035_v3 = vadd.f32 %v1034_v1, %v1033_v29  ;;  %v1096_v4 = vpop.f32.mrb[35].mxu1  ;;  %v697_v6 = vadd.f32 %v1094_v62, %v582_v0 }
 0x13f   :  { %v1097_v7 = vadd.f32 %v1096_v4, %v1095_v2 }
 0x140   :  { %v587_v9 = vadd.f32 %v1035_v3, %v2122_v54  ;;  %v1036_v10 = vpop.f32.mrb[36].mxu0 }
 0x141   :  { %v1037_v37 = vpop.f32.mrb[37].mxu0  ;;  %v1098_v11 = vpop.f32.mrb[36].mxu1 }
 0x142   :  { %v1038_v12 = vadd.f32 %v1037_v37, %v1036_v10  ;;  %v1099_v14 = vpop.f32.mrb[37].mxu1  ;;  %v702_v15 = vadd.f32 %v1097_v7, %v587_v9 }
 0x143   :  { %v1100_v16 = vadd.f32 %v1099_v14, %v1098_v11 }
 0x144   :  { %v592_v17 = vadd.f32 %v1038_v12, %v2125_v63  ;;  %v1039_v18 = vpop.f32.mrb[38].mxu0 }
 0x145   :  { %v1040_v45 = vpop.f32.mrb[39].mxu0  ;;  %v1101_v20 = vpop.f32.mrb[38].mxu1 }
 0x146   :  { %v1041_v51 = vadd.f32 %v1040_v45, %v1039_v18  ;;  %v1102_v22 = vpop.f32.mrb[39].mxu1  ;;  %v707_v23 = vadd.f32 %v1100_v16, %v592_v17 }
 0x147   :  { %v1103_v24 = vadd.f32 %v1102_v22, %v1101_v20 }
 0x148   :  { %v597_v25 = vadd.f32 %v1041_v51, %v2128_v8  ;;  %v1164_v26 = vpop.f32.mrb[40].mxu0 }
 0x149   :  { %v787_v54 = vadd.f32 %v1164_v26, %v672_v27  ;;  %v1173_v28 = vpop.f32.mrb[40].mxu1  ;;  %v781_v30 = vpop.f32.mrb[41].mxu0 }
 0x14a   :  { %v817_v61 = vadd.f32 %v1173_v28, %v702_v15  ;;  %v782_v31 = vadd.f32 %v781_v30, %v2131_v19  ;;  %v811_v32 = vpop.f32.mrb[41].mxu1  ;;  %v712_v33 = vadd.f32 %v1103_v24, %v597_v25 }
 0x14b   :  { %1353 = vtanh.f32 %v787_v54  ;;  %v812_v63 = vadd.f32 %v811_v32, %v697_v6 }
 0x14c   :  { %1355 = vtanh.f32 %v817_v61  ;;  %v1167_v34 = vpop.f32.mrb[42].mxu0 }
 0x14d   :  { %1357 = vtanh.f32 %v782_v31  ;;  %v797_v36 = vadd.f32 %v1167_v34, %v682_v43  ;;  %v1176_v38 = vpop.f32.mrb[42].mxu1  ;;  %v791_v5 = vpop.f32.mrb[43].mxu0 }
 0x14e   :  { %1359 = vtanh.f32 %v812_v63  ;;  %v827_v39 = vadd.f32 %v1176_v38, %v712_v33  ;;  %v792_v8 = vadd.f32 %v791_v5, %v2135_v35  ;;  %v821_v27 = vpop.f32.mrb[43].mxu1 }
 0x14f   :  { %1361 = vtanh.f32 %v797_v36  ;;  %v822_v40 = vadd.f32 %v821_v27, %v707_v23 }
 0x150   :  { %1363 = vtanh.f32 %v827_v39  ;;  %v1170_v41 = vpop.f32.mrb[44].mxu0 }
 0x151   :  { %1365 = vtanh.f32 %v792_v8  ;;  %v807_v19 = vadd.f32 %v1170_v41, %v692_v60  ;;  %v801_v42 = vpop.f32.mrb[45].mxu0 }
 0x152   :  { %1367 = vtanh.f32 %v822_v40  ;;  %v802_v44 = vadd.f32 %v801_v42, %v2139_v52 }
 0x153   :  { %1369 = vtanh.f32 %v807_v19 }
 0x154   :  { %1371 = vtanh.f32 %v802_v44 }
 0x155   :  { %v1354_v43 = vpop.eup %1353 }
 0x156   :  { %v1356_v46 = vpop.eup %1355  ;;  %842 = vst.msk [vmem:[%s2192_s3 + $0x8] sm:$0xff] %vm840_vm0, %v1354_v43 }
 0x157   :  { %v1358_v35 = vpop.eup %1357  ;;  %848 = vst.msk [vmem:[%s2192_s3 + $0x38] sm:$0xff] %vm840_vm0, %v1356_v46 }
 0x158   :  { %v1360_v13 = vpop.eup %1359  ;;  %841 = vst.msk [vmem:[%s2192_s3] sm:$0xff] %vm840_vm0, %v1358_v35 }
 0x159   :  { %v1362_v47 = vpop.eup %1361  ;;  %847 = vst.msk [vmem:[%s2192_s3 + $0x30] sm:$0xff] %vm840_vm0, %v1360_v13 }
 0x15a   :  { %v1364_v48 = vpop.eup %1363  ;;  %844 = vst.msk [vmem:[%s2192_s3 + $0x18] sm:$0xff] %vm840_vm0, %v1362_v47 }
 0x15b   :  { %v1366_v49 = vpop.eup %1365  ;;  %850 = vst.msk [vmem:[%s2192_s3 + $0x48] sm:$0xff] %vm840_vm0, %v1364_v48 }
 0x15c   :  { %v1368_v50 = vpop.eup %1367  ;;  %843 = vst.msk [vmem:[%s2192_s3 + $0x10] sm:$0xff] %vm840_vm0, %v1366_v49 }
 0x15d   :  { %v1370_v52 = vpop.eup %1369  ;;  %849 = vst.msk [vmem:[%s2192_s3 + $0x40] sm:$0xff] %vm840_vm0, %v1368_v50 }
 0x15e   :  { %v1372_v53 = vpop.eup %1371  ;;  %846 = vst.msk [vmem:[%s2192_s3 + $0x28] sm:$0xff] %vm840_vm0, %v1370_v52 }
 0x15f   :  { %845 = vst.msk [vmem:[%s2192_s3 + $0x20] sm:$0xff] %vm840_vm0, %v1372_v53 }

// kernel: cnn_autoencoder_forward.15
= control target key start
LH: loop header
LB: loop body
LE: loop exit
PB: predicated region body
PF: predicated region fallthrough
CT: control target
= control target key end

     0   :  { %s1381_s12 = smov 0   ;;  %s1973_s0 = inlined_call_operand.vmem [shape: f32[320,576], index: 0, kind: input, shape index: {}]   ;;  %s1974_s1 = inlined_call_operand.vmem [shape: f32[576,32], index: 1, kind: input, shape index: {}]   ;;  %s1975_s2 = inlined_call_operand.vmem [shape: f32[1,32], index: 2, kind: input, shape index: {}]   ;;  %s1976_s3 = inlined_call_operand.vmem [shape: f32[320,32], index: 3, kind: output, shape index: {}]  }
   0x1 LB: > { %s1009_s13 = sadd.s32 4294967295, %s1358_s12   ;;  %p1013_p0 = scmp.ge.s32.totalorder %s1358_s12, 1  ;;  %s1358_s12 = sphi %s1381_s12, %s13_s12  }
   0x2   : > { %p139_p1 = scmp.lt.s32.totalorder %s1358_s12, 3 }
   0x4   : > { %p140_p2 = pnand %p1013_p0, %p139_p1 }
   0x5   : > { %v277_v0 = vld [vmem:[%s1974_s1] sm:$0xff] (!%p140_p2)  ;;  %v278_v1 = vld [vmem:[%s1974_s1 + $0x8] sm:$0xff] (!%p140_p2)  ;;  %v1360_v3 = vmov (!%p140_p2), 0.0|0.0   ;;  %v279_v6 = vld [vmem:[%s1974_s1 + $0x10] sm:$0xff] (!%p140_p2)  ;;  %s164_s30 = smul.u32 (!%p140_p2), 20, %s1009_s13  ;;  %vm356_vm0 = vcmask (!%p140_p2), 523264  }
   0x6   : > { %143 = sbr.rel (%p140_p2) target bundleno = 396 (0x18c), region = 32  ;;  %v309_v2 = vld [vmem:[%s1974_s1 + $0x100] sm:$0xff] (!%p140_p2)  ;;  %1113 = vmatprep.subr.bf16.mxu0 (!%p140_p2), %v1360_v3  ;;  %1225 = vmatprep.subr.bf16.mxu1 (!%p140_p2), %v1360_v3  ;;  %v1114_v4 = vpack.c.bf16 (!%p140_p2), %v278_v1, %v277_v0  ;;  %v310_v5 = vld [vmem:[%s1974_s1 + $0x108] sm:$0xff] (!%p140_p2)  ;;  %v280_v7 = vld [vmem:[%s1974_s1 + $0x18] sm:$0xff] (!%p140_p2)  ;;  %vm932_vm1 = vcmask (!%p140_p2), 261120  }
   0x7   : > { %v1409_v8 = vpack.c.bf16 (!%p140_p2), %v310_v5, %v309_v2  ;;  %v311_v9 = vld [vmem:[%s1974_s1 + $0x110] sm:$0xff] (!%p140_p2)  ;;  %v312_v10 = vld [vmem:[%s1974_s1 + $0x118] sm:$0xff] (!%p140_p2)  ;;  %v1117_v11 = vpack.c.bf16 (!%p140_p2), %v280_v7, %v279_v6  ;;  %v281_v13 = vld [vmem:[%s1974_s1 + $0x20] sm:$0xff] (!%p140_p2)  ;;  %p165_p3 = scmp.lt.s32.totalorder (!%p140_p2), %s164_s30, 39 }
   0x8   : > { %1115 = vmatpush1.bf16.msra.mxu0 (!%p140_p2), %v1114_v4  ;;  %v1419_v12 = vpack.c.bf16 (!%p140_p2), %v312_v10, %v311_v9  ;;  %v282_v14 = vld [vmem:[%s1974_s1 + $0x28] sm:$0xff] (!%p140_p2)  ;;  %v313_v15 = vld [vmem:[%s1974_s1 + $0x120] sm:$0xff] (!%p140_p2)  ;;  %v283_v19 = vld [vmem:[%s1974_s1 + $0x30] sm:$0xff] (!%p140_p2) }
   0x9   : > { %1241 = vmatpush1.bf16.msra.mxu1 (!%p140_p2), %v1409_v8  ;;  %1116 = vmatprep.subr.bf16.mxu0 (!%p140_p2), %v1360_v3  ;;  %v314_v16 = vld [vmem:[%s1974_s1 + $0x128] sm:$0xff] (!%p140_p2)  ;;  %v1120_v17 = vpack.c.bf16 (!%p140_p2), %v282_v14, %v281_v13  ;;  %v284_v20 = vld [vmem:[%s1974_s1 + $0x38] sm:$0xff] (!%p140_p2)  ;;  %v315_v21 = vld [vmem:[%s1974_s1 + $0x130] sm:$0xff] (!%p140_p2) }
   0xa   : > { %1226 = vmatprep.subr.bf16.mxu1 (!%p140_p2), %v1360_v3  ;;  %v1436_v18 = vpack.c.bf16 (!%p140_p2), %v314_v16, %v313_v15  ;;  %v316_v22 = vld [vmem:[%s1974_s1 + $0x138] sm:$0xff] (!%p140_p2)  ;;  %v1123_v23 = vpack.c.bf16 (!%p140_p2), %v284_v20, %v283_v19  ;;  %v285_v25 = vld [vmem:[%s1974_s1 + $0x40] sm:$0xff] (!%p140_p2)  ;;  %v286_v26 = vld [vmem:[%s1974_s1 + $0x48] sm:$0xff] (!%p140_p2) }
   0xb   : > { %v1455_v24 = vpack.c.bf16 (!%p140_p2), %v316_v22, %v315_v21  ;;  %v317_v27 = vld [vmem:[%s1974_s1 + $0x140] sm:$0xff] (!%p140_p2)  ;;  %v318_v28 = vld [vmem:[%s1974_s1 + $0x148] sm:$0xff] (!%p140_p2)  ;;  %v1126_v29 = vpack.c.bf16 (!%p140_p2), %v286_v26, %v285_v25  ;;  %v287_v31 = vld [vmem:[%s1974_s1 + $0x50] sm:$0xff] (!%p140_p2) }
   0xc   : > { %1118 = vmatpush1.bf16.msra.mxu0 (!%p140_p2), %v1117_v11  ;;  %v1473_v30 = vpack.c.bf16 (!%p140_p2), %v318_v28, %v317_v27  ;;  %v288_v32 = vld [vmem:[%s1974_s1 + $0x58] sm:$0xff] (!%p140_p2)  ;;  %v319_v33 = vld [vmem:[%s1974_s1 + $0x150] sm:$0xff] (!%p140_p2)  ;;  %v289_v37 = vld [vmem:[%s1974_s1 + $0x60] sm:$0xff] (!%p140_p2) }
   0xd   : > { %1242 = vmatpush1.bf16.msra.mxu1 %v1419_v12  ;;  %1119 = vmatprep.subr.bf16.mxu0 %v1360_v3  ;;  %s1978_s30 = smov (!%p165_p3, %s164_s30), 39  ;;  %v320_v34 = vld [vmem:[%s1974_s1 + $0x158] sm:$0xff]  ;;  %v1129_v35 = vpack.c.bf16 %v288_v32, %v287_v31  ;;  %v290_v38 = vld [vmem:[%s1974_s1 + $0x68] sm:$0xff]  ;;  %v321_v39 = vld [vmem:[%s1974_s1 + $0x160] sm:$0xff] }
   0xe   : > { %1227 = vmatprep.subr.bf16.mxu1 %v1360_v3  ;;  %s1302_s29 = smul.u32 40, %s1978_s30  ;;  %v1495_v36 = vpack.c.bf16 %v320_v34, %v319_v33  ;;  %v322_v40 = vld [vmem:[%s1974_s1 + $0x168] sm:$0xff]  ;;  %v1132_v43 = vpack.c.bf16 %v290_v38, %v289_v37  ;;  %v291_v45 = vld [vmem:[%s1974_s1 + $0x70] sm:$0xff]  ;;  %v292_v46 = vld [vmem:[%s1974_s1 + $0x78] sm:$0xff] }
   0xf   : > { %v1514_v44 = vpack.c.bf16 %v322_v40, %v321_v39  ;;  %v323_v47 = vld [vmem:[%s1974_s1 + $0x170] sm:$0xff]  ;;  %v324_v48 = vld [vmem:[%s1974_s1 + $0x178] sm:$0xff]  ;;  %v1135_v49 = vpack.c.bf16 %v292_v46, %v291_v45  ;;  %v293_v51 = vld [vmem:[%s1974_s1 + $0x80] sm:$0xff] }
  0x10   : > { %1121 = vmatpush1.bf16.msra.mxu0 %v1120_v17  ;;  %s1491_s15 = scalar_lea.vmem %s1973_s0, %s1302_s29  ;;  %v1531_v50 = vpack.c.bf16 %v324_v48, %v323_v47  ;;  %v294_v52 = vld [vmem:[%s1974_s1 + $0x88] sm:$0xff]  ;;  %v325_v53 = vld [vmem:[%s1974_s1 + $0x180] sm:$0xff]  ;;  %v295_v57 = vld [vmem:[%s1974_s1 + $0x90] sm:$0xff] }
  0x11   : > { %1243 = vmatpush1.bf16.msra.mxu1 %v1436_v18  ;;  %1122 = vmatprep.subr.bf16.mxu0 %v1360_v3  ;;  %v178_v41 = vld [vmem:[%s1491_s15 + $0x8] sm:$0xff]  ;;  %v205_v42 = vld [vmem:[%s1491_s15 + $0xe0] sm:$0xff]  ;;  %v1138_v55 = vpack.c.bf16 %v294_v52, %v293_v51  ;;  %v296_v58 = vld [vmem:[%s1974_s1 + $0x98] sm:$0xff] }
  0x12   : > { %1228 = vmatprep.subr.bf16.mxu1 %v1360_v3  ;;  %481 = vmatprep.mubr.f32.mxu0 %v178_v41  ;;  %v326_v54 = vld [vmem:[%s1974_s1 + $0x188] sm:$0xff]  ;;  %v327_v59 = vld [vmem:[%s1974_s1 + $0x190] sm:$0xff]  ;;  %v328_v60 = vld [vmem:[%s1974_s1 + $0x198] sm:$0xff]  ;;  %v1141_v61 = vpack.c.bf16 %v296_v58, %v295_v57 }
  0x13   : > { %671 = vmatprep.mubr.f32.mxu1 %v205_v42  ;;  %v1548_v56 = vpack.c.bf16 %v326_v54, %v325_v53  ;;  %v1565_v62 = vpack.c.bf16 %v328_v60, %v327_v59  ;;  %v297_v63 = vld [vmem:[%s1974_s1 + $0xa0] sm:$0xff]  ;;  %v298_v0 = vld [vmem:[%s1974_s1 + $0xa8] sm:$0xff]  ;;  %v299_v6 = vld [vmem:[%s1974_s1 + $0xb0] sm:$0xff] }
  0x14   : > { %1124 = vmatpush1.bf16.msra.mxu0 %v1123_v23  ;;  %v329_v1 = vld [vmem:[%s1974_s1 + $0x1a0] sm:$0xff]  ;;  %v330_v2 = vld [vmem:[%s1974_s1 + $0x1a8] sm:$0xff]  ;;  %v1144_v4 = vpack.c.bf16 %v298_v0, %v297_v63  ;;  %v300_v7 = vld [vmem:[%s1974_s1 + $0xb8] sm:$0xff] }
  0x15   : > { %1244 = vmatpush1.bf16.msra.mxu1 %v1455_v24  ;;  %1125 = vmatprep.subr.bf16.mxu0 %v1360_v3  ;;  %v1582_v5 = vpack.c.bf16 %v330_v2, %v329_v1  ;;  %v331_v9 = vld [vmem:[%s1974_s1 + $0x1b0] sm:$0xff]  ;;  %v332_v10 = vld [vmem:[%s1974_s1 + $0x1b8] sm:$0xff]  ;;  %v1147_v11 = vpack.c.bf16 %v300_v7, %v299_v6  ;;  %v301_v14 = vld [vmem:[%s1974_s1 + $0xc0] sm:$0xff] }
  0x16   : > { %1229 = vmatprep.subr.bf16.mxu1 %v1360_v3  ;;  %v1599_v13 = vpack.c.bf16 %v332_v10, %v331_v9  ;;  %v302_v15 = vld [vmem:[%s1974_s1 + $0xc8] sm:$0xff]  ;;  %v333_v16 = vld [vmem:[%s1974_s1 + $0x1c0] sm:$0xff]  ;;  %v303_v21 = vld [vmem:[%s1974_s1 + $0xd0] sm:$0xff] }
  0x17   : > { %v334_v17 = vld [vmem:[%s1974_s1 + $0x1c8] sm:$0xff]  ;;  %v1150_v19 = vpack.c.bf16 %v302_v15, %v301_v14  ;;  %v304_v22 = vld [vmem:[%s1974_s1 + $0xd8] sm:$0xff]  ;;  %v335_v23 = vld [vmem:[%s1974_s1 + $0x1d0] sm:$0xff] }
  0x18   : > { %1127 = vmatpush1.bf16.msra.mxu0 %v1126_v29  ;;  %v1616_v20 = vpack.c.bf16 %v334_v17, %v333_v16  ;;  %v336_v25 = vld [vmem:[%s1974_s1 + $0x1d8] sm:$0xff]  ;;  %v1153_v26 = vpack.c.bf16 %v304_v22, %v303_v21  ;;  %v305_v28 = vld [vmem:[%s1974_s1 + $0xe0] sm:$0xff]  ;;  %v306_v29 = vld [vmem:[%s1974_s1 + $0xe8] sm:$0xff] }
  0x19   : > { %1245 = vmatpush1.bf16.msra.mxu1 %v1473_v30  ;;  %1128 = vmatprep.subr.bf16.mxu0 %v1360_v3  ;;  %v1633_v27 = vpack.c.bf16 %v336_v25, %v335_v23  ;;  %v337_v31 = vld [vmem:[%s1974_s1 + $0x1e0] sm:$0xff]  ;;  %v338_v32 = vld [vmem:[%s1974_s1 + $0x1e8] sm:$0xff]  ;;  %v1156_v33 = vpack.c.bf16 %v306_v29, %v305_v28  ;;  %v308_v37 = vld [vmem:[%s1974_s1 + $0xf8] sm:$0xff] }
  0x1a   : > { %1230 = vmatprep.subr.bf16.mxu1 %v1360_v3  ;;  %v1650_v34 = vpack.c.bf16 %v338_v32, %v337_v31  ;;  %v339_v38 = vld [vmem:[%s1974_s1 + $0x1f0] sm:$0xff]  ;;  %v340_v39 = vld [vmem:[%s1974_s1 + $0x1f8] sm:$0xff]  ;;  %v341_v40 = vld [vmem:[%s1974_s1 + $0x200] sm:$0xff] }
  0x1b   : > { %v342_v41 = vld [vmem:[%s1974_s1 + $0x208] sm:$0xff]  ;;  %v177_v46 = vld [vmem:[%s1491_s15] sm:$0xff]  ;;  %v343_v47 = vld [vmem:[%s1974_s1 + $0x210] sm:$0xff] }
  0x1c   : > { %1130 = vmatpush1.bf16.msra.mxu0 %v1129_v35  ;;  %v307_v35 = vld [vmem:[%s1974_s1 + $0xf0] sm:$0xff]  ;;  %v1209_v45 = vpack.c.bf16 %v342_v41, %v341_v40  ;;  %v344_v48 = vld [vmem:[%s1974_s1 + $0x218] sm:$0xff]  ;;  %v210_v52 = vld [vmem:[%s1491_s15 + $0x108] sm:$0xff] }
  0x1d   : > { %1246 = vmatpush1.bf16.msra.mxu1 %v1495_v36  ;;  %1131 = vmatprep.subr.bf16.mxu0 %v1360_v3  ;;  %v1159_v42 = vpack.c.bf16 %v308_v37, %v307_v35  ;;  %v183_v51 = vld [vmem:[%s1491_s15 + $0x30] sm:$0xff]  ;;  %v1213_v53 = vpack.c.bf16 %v344_v48, %v343_v47  ;;  %v182_v54 = vld [vmem:[%s1491_s15 + $0x28] sm:$0xff]  ;;  %v209_v58 = vld [vmem:[%s1491_s15 + $0x100] sm:$0xff] }
  0x1e   : > { %1231 = vmatprep.subr.bf16.mxu1 %v1360_v3  ;;  %v346_v57 = vld [vmem:[%s1974_s1 + $0x228] sm:$0xff]  ;;  %v215_v59 = vld [vmem:[%s1491_s15 + $0x130] sm:$0xff]  ;;  %v348_v0 = vld [vmem:[%s1974_s1 + $0x238] sm:$0xff] }
  0x1f   : > { %v347_v63 = vld [vmem:[%s1974_s1 + $0x230] sm:$0xff]  ;;  %v214_v1 = vld [vmem:[%s1491_s15 + $0x128] sm:$0xff]  ;;  %v193_v2 = vld [vmem:[%s1491_s15 + $0x80] sm:$0xff] }
  0x20   : > { %1133 = vmatpush1.bf16.msra.mxu0 %v1132_v43  ;;  %v1673_v43 = vpack.c.bf16 %v340_v39, %v339_v38  ;;  %v192_v6 = vld [vmem:[%s1491_s15 + $0x78] sm:$0xff]  ;;  %v219_v7 = vld [vmem:[%s1491_s15 + $0x150] sm:$0xff]  ;;  %v198_v9 = vld [vmem:[%s1491_s15 + $0xa8] sm:$0xff] }
  0x21   : > { %1247 = vmatpush1.bf16.msra.mxu1 %v1514_v44  ;;  %1134 = vmatprep.subr.bf16.mxu0 %v1360_v3  ;;  %v225_v10 = vld [vmem:[%s1491_s15 + $0x180] sm:$0xff]  ;;  %v203_v14 = vld [vmem:[%s1491_s15 + $0xd0] sm:$0xff]  ;;  %v230_v15 = vld [vmem:[%s1491_s15 + $0x1a8] sm:$0xff] }
  0x22   : > { %1232 = vmatprep.subr.bf16.mxu1 %v1360_v3  ;;  %v202_v16 = vld [vmem:[%s1491_s15 + $0xc8] sm:$0xff]  ;;  %v229_v17 = vld [vmem:[%s1491_s15 + $0x1a0] sm:$0xff]  ;;  %v207_v21 = vld [vmem:[%s1491_s15 + $0xf0] sm:$0xff] }
  0x23   : > { %v234_v22 = vld [vmem:[%s1491_s15 + $0x1c8] sm:$0xff]  ;;  %v213_v23 = vld [vmem:[%s1491_s15 + $0x120] sm:$0xff]  ;;  %v240_v25 = vld [vmem:[%s1491_s15 + $0x1f8] sm:$0xff] }
  0x24   : > { %1136 = vmatpush1.bf16.msra.mxu0 %v1135_v49  ;;  %v204_v49 = vld [vmem:[%s1491_s15 + $0xd8] sm:$0xff]  ;;  %v218_v28 = vld [vmem:[%s1491_s15 + $0x148] sm:$0xff]  ;;  %v245_v29 = vld [vmem:[%s1491_s15 + $0x220] sm:$0xff] }
  0x25   : > { %1248 = vmatpush1.bf16.msra.mxu1 %v1531_v50  ;;  %1137 = vmatprep.subr.bf16.mxu0 %v1360_v3  ;;  %v244_v31 = vld [vmem:[%s1491_s15 + $0x218] sm:$0xff]  ;;  %v223_v32 = vld [vmem:[%s1491_s15 + $0x170] sm:$0xff]  ;;  %v249_v35 = vld [vmem:[%s1491_s15 + $0x240] sm:$0xff] }
  0x26   : > { %1233 = vmatprep.subr.bf16.mxu1 %v1360_v3  ;;  %v228_v37 = vld [vmem:[%s1491_s15 + $0x198] sm:$0xff]  ;;  %v255_v38 = vld [vmem:[%s1491_s15 + $0x270] sm:$0xff]  ;;  %v254_v39 = vld [vmem:[%s1491_s15 + $0x268] sm:$0xff] }
  0x27   : > { %v233_v40 = vld [vmem:[%s1491_s15 + $0x1c0] sm:$0xff]  ;;  %v260_v41 = vld [vmem:[%s1491_s15 + $0x298] sm:$0xff]  ;;  %v243_v48 = vld [vmem:[%s1491_s15 + $0x210] sm:$0xff] }
  0x28   : > { %1139 = vmatpush1.bf16.msra.mxu0 %v1138_v55  ;;  %v345_v55 = vld [vmem:[%s1974_s1 + $0x220] sm:$0xff]  ;;  %v264_v47 = vld [vmem:[%s1491_s15 + $0x2b8] sm:$0xff] }
  0x29   : > { %1249 = vmatpush1.bf16.msra.mxu1 %v1548_v56  ;;  %1140 = vmatprep.subr.bf16.mxu0 %v1360_v3  ;;  %v1217_v60 = vpack.c.bf16 %v346_v57, %v345_v55  ;;  %v253_v55 = vld [vmem:[%s1491_s15 + $0x260] sm:$0xff] }
  0x2a   : > { %1234 = vmatprep.subr.bf16.mxu1 %v1360_v3  ;;  %v181_v57 = vld [vmem:[%s1491_s15 + $0x20] sm:$0xff] }
  0x2c   : > { %1142 = vmatpush1.bf16.msra.mxu0 %v1141_v61  ;;  %v187_v61 = vld [vmem:[%s1491_s15 + $0x50] sm:$0xff] }
  0x2d   : > { %1250 = vmatpush1.bf16.msra.mxu1 %v1565_v62  ;;  %1143 = vmatprep.subr.bf16.mxu0 %v1360_v3 }
  0x2e   : > { %1235 = vmatprep.subr.bf16.mxu1 %v1360_v3 }
  0x30   : > { %1145 = vmatpush1.bf16.msra.mxu0 %v1144_v4  ;;  %v1221_v4 = vpack.c.bf16 %v348_v0, %v347_v63  ;;  %v206_v63 = vld [vmem:[%s1491_s15 + $0xe8] sm:$0xff]  ;;  %v268_v0 = vld [vmem:[%s1491_s15 + $0x2d8] sm:$0xff] }
  0x31   : > { %1251 = vmatpush1.bf16.msra.mxu1 %v1582_v5  ;;  %1146 = vmatprep.subr.bf16.mxu0 %v1360_v3 }
  0x32   : > { %1236 = vmatprep.subr.bf16.mxu1 %v1360_v3 }
  0x34   : > { %1148 = vmatpush1.bf16.msra.mxu0 %v1147_v11  ;;  %v197_v11 = vld [vmem:[%s1491_s15 + $0xa0] sm:$0xff] }
  0x35   : > { %1252 = vmatpush1.bf16.msra.mxu1 %v1599_v13  ;;  %1149 = vmatprep.subr.bf16.mxu0 %v1360_v3 }
  0x36   : > { %1237 = vmatprep.subr.bf16.mxu1 %v1360_v3 }
  0x38   : > { %1151 = vmatpush1.bf16.msra.mxu0 %v1150_v19  ;;  %v208_v19 = vld [vmem:[%s1491_s15 + $0xf8] sm:$0xff] }
  0x39   : > { %1253 = vmatpush1.bf16.msra.mxu1 %v1616_v20  ;;  %1152 = vmatprep.subr.bf16.mxu0 %v1360_v3 }
  0x3a   : > { %1238 = vmatprep.subr.bf16.mxu1 %v1360_v3 }
  0x3c   : > { %1154 = vmatpush1.bf16.msra.mxu0 %v1153_v26  ;;  %v239_v26 = vld [vmem:[%s1491_s15 + $0x1f0] sm:$0xff] }
  0x3d   : > { %1254 = vmatpush1.bf16.msra.mxu1 %v1633_v27  ;;  %1155 = vmatprep.subr.bf16.mxu0 %v1360_v3 }
  0x3e   : > { %1239 = vmatprep.subr.bf16.mxu1 %v1360_v3 }
  0x40   : > { %1157 = vmatpush1.bf16.msra.mxu0 %v1156_v33  ;;  %v250_v33 = vld [vmem:[%s1491_s15 + $0x248] sm:$0xff] }
  0x41   : > { %1255 = vmatpush1.bf16.msra.mxu1 %v1650_v34  ;;  %1158 = vmatprep.subr.bf16.mxu0 %v1360_v3 }
  0x42   : > { %1240 = vmatprep.subr.bf16.mxu1 %v1360_v3 }
  0x44   : > { %1160 = vmatpush1.bf16.msra.mxu0 %v1159_v42  ;;  %v259_v42 = vld [vmem:[%s1491_s15 + $0x290] sm:$0xff] }
  0x45   : > { %1256 = vmatpush1.bf16.msra.mxu1 %v1673_v43  ;;  %1161 = vmatprep.subr.bf16.mxu0 %v1360_v3 }
  0x46   : > { %1210 = vmatprep.subr.bf16.mxu1 %v1209_v45 }
  0x47   : > { %482 = vmatmul.mubr.f32.vlgmr.msra.gmra.mrb[0].mxu0 %v177_v46  ;;  %v265_v46 = vld [vmem:[%s1491_s15 + $0x2c0] sm:$0xff] }
  0x48   : > { %672 = vmatmul.mubr.f32.vlgmr.msra.gmra.mrb[0].mxu1 %v204_v49  ;;  %1163 = vmatpush1.bf16.msra.mxu0 %v1409_v8  ;;  %v188_v8 = vld [vmem:[%s1491_s15 + $0x58] sm:$0xff]  ;;  %v270_v49 = vld [vmem:[%s1491_s15 + $0x2e8] sm:$0xff] }
  0x49   : > { %1212 = vmatpush3.bf16.msra.mxu1 %v1209_v45  ;;  %486 = vmatprep.mubr.f32.mxu0 %v183_v51  ;;  %v238_v45 = vld [vmem:[%s1491_s15 + $0x1e8] sm:$0xff]  ;;  %v269_v51 = vld [vmem:[%s1491_s15 + $0x2e0] sm:$0xff] }
  0x4a   : > { %676 = vmatprep.mubr.f32.mxu1 %v210_v52  ;;  %1164 = vmatprep.subr.bf16.mxu0 %v1360_v3  ;;  %v248_v52 = vld [vmem:[%s1491_s15 + $0x238] sm:$0xff] }
  0x4b   : > { %487 = vmatmul.mubr.f32.gmra.mrb[2].mxu0 %v182_v54  ;;  %1214 = vmatprep.subr.bf16.mxu1 %v1213_v53  ;;  %v274_v54 = vld [vmem:[%s1491_s15 + $0x308] sm:$0xff] }
  0x4c   : > { %677 = vmatmul.mubr.f32.gmra.mrb[2].mxu1 %v209_v58  ;;  %1166 = vmatpush1.bf16.msra.mxu0 %v1419_v12  ;;  %v220_v12 = vld [vmem:[%s1491_s15 + $0x158] sm:$0xff]  ;;  %v186_v58 = vld [vmem:[%s1491_s15 + $0x48] sm:$0xff] }
  0x4d   : > { %491 = vmatprep.mubr.f32.mxu0 %v188_v8  ;;  %681 = vmatprep.mubr.f32.mxu1 %v215_v59  ;;  %v258_v8 = vld [vmem:[%s1491_s15 + $0x288] sm:$0xff]  ;;  %v257_v59 = vld [vmem:[%s1491_s15 + $0x280] sm:$0xff] }
  0x4e   : > { %1167 = vmatprep.subr.bf16.mxu0 %v1360_v3  ;;  %1216 = vmatpush3.bf16.msra.mxu1 %v1213_v53  ;;  %v275_v53 = vld [vmem:[%s1491_s15 + $0x310] sm:$0xff] }
  0x4f   : > { %492 = vmatmul.mubr.f32.gmra.mrb[4].mxu0 %v187_v61  ;;  %1218 = vmatprep.subr.bf16.mxu1 %v1217_v60  ;;  %v263_v61 = vld [vmem:[%s1491_s15 + $0x2b0] sm:$0xff] }
  0x50   : > { %682 = vmatmul.mubr.f32.gmra.mrb[4].mxu1 %v214_v1  ;;  %496 = vmatprep.mubr.f32.mxu0 %v193_v2  ;;  %v211_v1 = vld [vmem:[%s1491_s15 + $0x110] sm:$0xff]  ;;  %v216_v2 = vld [vmem:[%s1491_s15 + $0x138] sm:$0xff] }
  0x51   : > { %1169 = vmatpush1.bf16.msra.mxu0 %v1436_v18  ;;  %686 = vmatprep.mubr.f32.mxu1 %v220_v12  ;;  %v224_v18 = vld [vmem:[%s1491_s15 + $0x178] sm:$0xff]  ;;  %v273_v12 = vld [vmem:[%s1491_s15 + $0x300] sm:$0xff] }
  0x52   : > { %1170 = vmatprep.subr.bf16.mxu0 %v1360_v3  ;;  %1220 = vmatpush3.bf16.msra.mxu1 %v1217_v60  ;;  %v196_v60 = vld [vmem:[%s1491_s15 + $0x98] sm:$0xff] }
  0x53   : > { %497 = vmatmul.mubr.f32.gmra.mrb[6].mxu0 %v192_v6  ;;  %1222 = vmatprep.subr.bf16.mxu1 %v1221_v4  ;;  %v272_v6 = vld [vmem:[%s1491_s15 + $0x2f8] sm:$0xff] }
  0x54   : > { %687 = vmatmul.mubr.f32.gmra.mrb[6].mxu1 %v219_v7  ;;  %501 = vmatprep.mubr.f32.mxu0 %v198_v9  ;;  %v226_v7 = vld [vmem:[%s1491_s15 + $0x188] sm:$0xff]  ;;  %v180_v9 = vld [vmem:[%s1491_s15 + $0x18] sm:$0xff] }
  0x55   : > { %691 = vmatprep.mubr.f32.mxu1 %v225_v10  ;;  %1172 = vmatpush1.bf16.msra.mxu0 %v1455_v24  ;;  %v235_v24 = vld [vmem:[%s1491_s15 + $0x1d0] sm:$0xff] }
  0x56   : > { %1173 = vmatprep.subr.bf16.mxu0 %v1360_v3  ;;  %1224 = vmatpush3.bf16.msra.mxu1 %v1221_v4  ;;  %v221_v4 = vld [vmem:[%s1491_s15 + $0x160] sm:$0xff]  ;;  %v231_v10 = vld [vmem:[%s1491_s15 + $0x1b0] sm:$0xff] }
  0x57   : > { %502 = vmatmul.mubr.f32.gmra.mrb[8].mxu0 %v197_v11  ;;  %v179_v11 = vld [vmem:[%s1491_s15 + $0x10] sm:$0xff] }
  0x58   : > { %692 = vmatmul.mubr.f32.gmra.mrb[8].mxu1 %v224_v18  ;;  %506 = vmatprep.mubr.f32.mxu0 %v203_v14  ;;  %v236_v18 = vld [vmem:[%s1491_s15 + $0x1d8] sm:$0xff]  ;;  %v185_v14 = vld [vmem:[%s1491_s15 + $0x40] sm:$0xff] }
  0x59   : > { %696 = vmatprep.mubr.f32.mxu1 %v230_v15  ;;  %1175 = vmatpush1.bf16.msra.mxu0 %v1473_v30  ;;  %v212_v30 = vld [vmem:[%s1491_s15 + $0x118] sm:$0xff]  ;;  %v241_v15 = vld [vmem:[%s1491_s15 + $0x200] sm:$0xff] }
  0x5a   : > { %1176 = vmatprep.subr.bf16.mxu0 %v1360_v3 }
  0x5b   : > { %507 = vmatmul.mubr.f32.gmra.mrb[10].mxu0 %v202_v16  ;;  %v184_v16 = vld [vmem:[%s1491_s15 + $0x38] sm:$0xff] }
  0x5c   : > { %697 = vmatmul.mubr.f32.gmra.mrb[10].mxu1 %v229_v17  ;;  %511 = vmatprep.mubr.f32.mxu0 %v208_v19  ;;  %v246_v17 = vld [vmem:[%s1491_s15 + $0x228] sm:$0xff] }
  0x5d   : > { %701 = vmatprep.mubr.f32.mxu1 %v235_v24  ;;  %1178 = vmatpush1.bf16.msra.mxu0 %v1495_v36  ;;  %v217_v36 = vld [vmem:[%s1491_s15 + $0x140] sm:$0xff]  ;;  %v190_v19 = vld [vmem:[%s1491_s15 + $0x68] sm:$0xff]  ;;  %v251_v24 = vld [vmem:[%s1491_s15 + $0x250] sm:$0xff] }
  0x5e   : > { %1179 = vmatprep.subr.bf16.mxu0 %v1360_v3 }
  0x5f   : > { %512 = vmatmul.mubr.f32.gmra.mrb[12].mxu0 %v207_v21  ;;  %v189_v21 = vld [vmem:[%s1491_s15 + $0x60] sm:$0xff] }
  0x60   : > { %702 = vmatmul.mubr.f32.gmra.mrb[12].mxu1 %v234_v22  ;;  %516 = vmatprep.mubr.f32.mxu0 %v213_v23  ;;  %v256_v22 = vld [vmem:[%s1491_s15 + $0x278] sm:$0xff]  ;;  %v195_v23 = vld [vmem:[%s1491_s15 + $0x90] sm:$0xff] }
  0x61   : > { %706 = vmatprep.mubr.f32.mxu1 %v240_v25  ;;  %1181 = vmatpush1.bf16.msra.mxu0 %v1514_v44  ;;  %v222_v44 = vld [vmem:[%s1491_s15 + $0x168] sm:$0xff]  ;;  %v261_v25 = vld [vmem:[%s1491_s15 + $0x2a0] sm:$0xff] }
  0x62   : > { %1182 = vmatprep.subr.bf16.mxu0 %v1360_v3 }
  0x63   : > { %517 = vmatmul.mubr.f32.gmra.mrb[14].mxu0 %v212_v30  ;;  %v194_v30 = vld [vmem:[%s1491_s15 + $0x88] sm:$0xff] }
  0x64   : > { %707 = vmatmul.mubr.f32.gmra.mrb[14].mxu1 %v239_v26  ;;  %521 = vmatprep.mubr.f32.mxu0 %v218_v28  ;;  %v266_v26 = vld [vmem:[%s1491_s15 + $0x2c8] sm:$0xff]  ;;  %v200_v28 = vld [vmem:[%s1491_s15 + $0xb8] sm:$0xff] }
  0x65   : > { %711 = vmatprep.mubr.f32.mxu1 %v245_v29  ;;  %1184 = vmatpush1.bf16.msra.mxu0 %v1531_v50  ;;  %v227_v50 = vld [vmem:[%s1491_s15 + $0x190] sm:$0xff] }
  0x66   : > { %1185 = vmatprep.subr.bf16.mxu0 %v1360_v3  ;;  %v271_v29 = vld [vmem:[%s1491_s15 + $0x2f0] sm:$0xff] }
  0x67   : > { %522 = vmatmul.mubr.f32.gmra.mrb[16].mxu0 %v217_v36  ;;  %v199_v36 = vld [vmem:[%s1491_s15 + $0xb0] sm:$0xff] }
  0x68   : > { %712 = vmatmul.mubr.f32.gmra.mrb[16].mxu1 %v244_v31  ;;  %526 = vmatprep.mubr.f32.mxu0 %v223_v32  ;;  %v276_v31 = vld [vmem:[%s1491_s15 + $0x318] sm:$0xff] }
  0x69   : > { %716 = vmatprep.mubr.f32.mxu1 %v250_v33  ;;  %1187 = vmatpush1.bf16.msra.mxu0 %v1548_v56  ;;  %v232_v56 = vld [vmem:[%s1491_s15 + $0x1b8] sm:$0xff] }
  0x6a   : > { %1188 = vmatprep.subr.bf16.mxu0 %v1360_v3 }
  0x6b   : > { %527 = vmatmul.mubr.f32.gmra.mrb[18].mxu0 %v222_v44 }
  0x6c   : > { %717 = vmatmul.mubr.f32.gmra.mrb[18].mxu1 %v249_v35  ;;  %531 = vmatprep.mubr.f32.mxu0 %v228_v37 }
  0x6d   : > { %721 = vmatprep.mubr.f32.mxu1 %v255_v38  ;;  %1190 = vmatpush1.bf16.msra.mxu0 %v1565_v62  ;;  %v237_v62 = vld [vmem:[%s1491_s15 + $0x1e0] sm:$0xff] }
  0x6e   : > { %1191 = vmatprep.subr.bf16.mxu0 %v1360_v3 }
  0x6f   : > { %532 = vmatmul.mubr.f32.gmra.mrb[20].mxu0 %v227_v50 }
  0x70   : > { %722 = vmatmul.mubr.f32.gmra.mrb[20].mxu1 %v254_v39  ;;  %536 = vmatprep.mubr.f32.mxu0 %v233_v40 }
  0x71   : > { %726 = vmatprep.mubr.f32.mxu1 %v260_v41  ;;  %1193 = vmatpush1.bf16.msra.mxu0 %v1582_v5  ;;  %v242_v5 = vld [vmem:[%s1491_s15 + $0x208] sm:$0xff] }
  0x72   : > { %1194 = vmatprep.subr.bf16.mxu0 %v1360_v3 }
  0x73   : > { %537 = vmatmul.mubr.f32.gmra.mrb[22].mxu0 %v232_v56  ;;  %v1848_v56 = vld [vmem:[%s1975_s2] ss:$0 sm:$0xff] }
  0x74   : > { %727 = vmatmul.mubr.f32.gmra.mrb[22].mxu1 %v259_v42  ;;  %541 = vmatprep.mubr.f32.mxu0 %v238_v45 }
  0x75   : > { %731 = vmatprep.mubr.f32.mxu1 %v265_v46  ;;  %1196 = vmatpush1.bf16.msra.mxu0 %v1599_v13  ;;  %v247_v13 = vld [vmem:[%s1491_s15 + $0x230] sm:$0xff] }
  0x76   : > { %1197 = vmatprep.subr.bf16.mxu0 %v1360_v3 }
  0x77   : > { %542 = vmatmul.mubr.f32.gmra.mrb[24].mxu0 %v237_v62 }
  0x78   : > { %732 = vmatmul.mubr.f32.gmra.mrb[24].mxu1 %v264_v47  ;;  %546 = vmatprep.mubr.f32.mxu0 %v243_v48 }
  0x79   : > { %736 = vmatprep.mubr.f32.mxu1 %v270_v49  ;;  %1199 = vmatpush1.bf16.msra.mxu0 %v1616_v20  ;;  %v252_v20 = vld [vmem:[%s1491_s15 + $0x258] sm:$0xff] }
  0x7a   : > { %1200 = vmatprep.subr.bf16.mxu0 %v1360_v3 }
  0x7b   : > { %547 = vmatmul.mubr.f32.gmra.mrb[26].mxu0 %v242_v5 }
  0x7c   : > { %737 = vmatmul.mubr.f32.gmra.mrb[26].mxu1 %v269_v51  ;;  %551 = vmatprep.mubr.f32.mxu0 %v248_v52 }
  0x7d   : > { %741 = vmatprep.mubr.f32.mxu1 %v275_v53  ;;  %1202 = vmatpush1.bf16.msra.mxu0 %v1633_v27  ;;  %v191_v27 = vld [vmem:[%s1491_s15 + $0x70] sm:$0xff] }
  0x7e   : > { %1203 = vmatprep.subr.bf16.mxu0 %v1360_v3 }
  0x7f   : > { %552 = vmatmul.mubr.f32.gmra.mrb[28].mxu0 %v247_v13 }
  0x80   : > { %742 = vmatmul.mubr.f32.gmra.mrb[28].mxu1 %v274_v54  ;;  %556 = vmatprep.mubr.f32.mxu0 %v253_v55 }
  0x81   : > { %1083 = vmatprep.mubr.msk.f32.mxu1 %vm356_vm0, %v181_v57  ;;  %1205 = vmatpush1.bf16.msra.mxu0 %v1650_v34  ;;  %v201_v34 = vld [vmem:[%s1491_s15 + $0xc0] sm:$0xff] }
  0x82   : > { %1206 = vmatprep.subr.bf16.mxu0 %v1360_v3  ;;  %v262_v3 = vld [vmem:[%s1491_s15 + $0x2a8] sm:$0xff] }
  0x83   : > { %557 = vmatmul.mubr.f32.gmra.mrb[30].mxu0 %v252_v20 }
  0x84   : > { %1084 = vmatmul.mubr.msk.f32.vlgmr.msra.gmra.mrb[30].mxu1 %vm356_vm0, %v186_v58  ;;  %561 = vmatprep.mubr.f32.mxu0 %v258_v8 }
  0x85   : > { %1086 = vmatprep.mubr.msk.f32.mxu1 %vm356_vm0, %v191_v27  ;;  %1208 = vmatpush1.bf16.msra.mxu0 %v1673_v43  ;;  %v267_v43 = vld [vmem:[%s1491_s15 + $0x2d0] sm:$0xff]  ;;  %s1015_s15 = sshll.u32 %s1978_s30, 3 }
  0x86   : > { %s1910_s20 = scalar_lea.vmem %s1976_s3, %s1015_s15 }
  0x87   : > { %562 = vmatmul.mubr.f32.gmra.mrb[32].mxu0 %v257_v59 }
  0x88   : > { %1087 = vmatmul.mubr.msk.f32.gmra.mrb[32].mxu1 %vm356_vm0, %v196_v60  ;;  %566 = vmatprep.mubr.f32.mxu0 %v263_v61 }
  0x89   : > { %1089 = vmatprep.mubr.msk.f32.mxu1 %vm356_vm0, %v201_v34 }
  0x8b   : > { %567 = vmatmul.mubr.f32.gmra.mrb[34].mxu0 %v262_v3 }
  0x8c   : > { %1090 = vmatmul.mubr.msk.f32.gmra.mrb[34].mxu1 %vm356_vm0, %v206_v63  ;;  %571 = vmatprep.mubr.f32.mxu0 %v268_v0 }
  0x8d   : > { %1092 = vmatprep.mubr.msk.f32.mxu1 %vm356_vm0, %v211_v1 }
  0x8f   : > { %572 = vmatmul.mubr.f32.gmra.mrb[36].mxu0 %v267_v43 }
  0x90   : > { %1093 = vmatmul.mubr.msk.f32.gmra.mrb[36].mxu1 %vm356_vm0, %v216_v2  ;;  %576 = vmatprep.mubr.f32.mxu0 %v273_v12 }
  0x91   : > { %1095 = vmatprep.mubr.msk.f32.mxu1 %vm356_vm0, %v221_v4 }
  0x93   : > { %577 = vmatmul.mubr.f32.gmra.mrb[38].mxu0 %v272_v6 }
  0x94   : > { %1096 = vmatmul.mubr.msk.f32.gmra.mrb[38].mxu1 %vm356_vm0, %v226_v7  ;;  %646 = vmatprep.mubr.f32.mxu0 %v180_v9 }
  0x95   : > { %1098 = vmatprep.mubr.msk.f32.mxu1 %vm356_vm0, %v231_v10 }
  0x97   : > { %647 = vmatmul.mubr.f32.vlgmr.msra.gmra.mrb[0].mxu0 %v179_v11 }
  0x98   : > { %1099 = vmatmul.mubr.msk.f32.gmra.mrb[40].mxu1 %vm356_vm0, %v236_v18  ;;  %651 = vmatprep.mubr.f32.mxu0 %v185_v14 }
  0x99   : > { %1101 = vmatprep.mubr.msk.f32.mxu1 %vm356_vm0, %v241_v15 }
  0x9b   : > { %652 = vmatmul.mubr.f32.gmra.mrb[2].mxu0 %v184_v16 }
  0x9c   : > { %1102 = vmatmul.mubr.msk.f32.gmra.mrb[42].mxu1 %vm356_vm0, %v246_v17  ;;  %656 = vmatprep.mubr.f32.mxu0 %v190_v19 }
  0x9d   : > { %1104 = vmatprep.mubr.msk.f32.mxu1 %vm356_vm0, %v251_v24 }
  0x9f   : > { %657 = vmatmul.mubr.f32.gmra.mrb[4].mxu0 %v189_v21 }
  0xa0   : > { %1105 = vmatmul.mubr.msk.f32.gmra.mrb[44].mxu1 %vm356_vm0, %v256_v22  ;;  %661 = vmatprep.mubr.f32.mxu0 %v195_v23 }
  0xa1   : > { %1107 = vmatprep.mubr.msk.f32.mxu1 %vm356_vm0, %v261_v25 }
  0xa3   : > { %662 = vmatmul.mubr.f32.gmra.mrb[6].mxu0 %v194_v30 }
  0xa4   : > { %1108 = vmatmul.mubr.msk.f32.gmra.mrb[46].mxu1 %vm356_vm0, %v266_v26  ;;  %666 = vmatprep.mubr.f32.mxu0 %v200_v28 }
  0xa5   : > { %1110 = vmatprep.mubr.msk.f32.mxu1 %vm356_vm0, %v271_v29 }
  0xa7   : > { %667 = vmatmul.mubr.f32.gmra.mrb[8].mxu0 %v199_v36 }
  0xa8   : > { %1111 = vmatmul.mubr.msk.f32.gmra.mrb[48].mxu1 %vm356_vm0, %v276_v31 }
 0x11b   : > { %v673_v32 = vpop.f32.mrb[0].mxu1 }
 0x11c   : > { %v675_v33 = vpop.f32.mrb[1].mxu1 }
 0x11f   : > { %v678_v44 = vpop.f32.mrb[2].mxu1 }
 0x120   : > { %v680_v35 = vpop.f32.mrb[3].mxu1 }
 0x123   : > { %v683_v37 = vpop.f32.mrb[4].mxu1 }
 0x124   : > { %v685_v38 = vpop.f32.mrb[5].mxu1 }
 0x127   : > { %v688_v50 = vpop.f32.mrb[6].mxu1 }
 0x128   : > { %v690_v39 = vpop.f32.mrb[7].mxu1 }
 0x12b   : > { %v693_v40 = vpop.f32.mrb[8].mxu1 }
 0x12c   : > { %v695_v41 = vpop.f32.mrb[9].mxu1 }
 0x12e   : > { %v508_v42 = vpop.f32.mrb[10].mxu0 }
 0x12f   : > { %v509_v45 = vadd.f32 %v1848_v56, %v508_v42  ;;  %v510_v46 = vpop.f32.mrb[11].mxu0  ;;  %v698_v62 = vpop.f32.mrb[10].mxu1 }
 0x130   : > { %v700_v47 = vpop.f32.mrb[11].mxu1 }
 0x131   : > { %v1851_v48 = vadd.f32 %v673_v32, %v509_v45 }
 0x132   : > { %v513_v49 = vpop.f32.mrb[12].mxu0 }
 0x133   : > { %v514_v5 = vadd.f32 %v1848_v56, %v513_v49  ;;  %v515_v51 = vpop.f32.mrb[13].mxu0  ;;  %v703_v52 = vpop.f32.mrb[12].mxu1 }
 0x134   : > { %v705_v53 = vpop.f32.mrb[13].mxu1 }
 0x135   : > { %v1854_v13 = vadd.f32 %v678_v44, %v514_v5 }
 0x136   : > { %v518_v54 = vpop.f32.mrb[14].mxu0 }
 0x137   : > { %v519_v55 = vadd.f32 %v1848_v56, %v518_v54  ;;  %v520_v57 = vpop.f32.mrb[15].mxu0  ;;  %v708_v20 = vpop.f32.mrb[14].mxu1 }
 0x138   : > { %v710_v58 = vpop.f32.mrb[15].mxu1 }
 0x139   : > { %v1857_v8 = vadd.f32 %v683_v37, %v519_v55 }
 0x13a   : > { %v523_v27 = vpop.f32.mrb[16].mxu0 }
 0x13b   : > { %v524_v59 = vadd.f32 %v1848_v56, %v523_v27  ;;  %v525_v60 = vpop.f32.mrb[17].mxu0  ;;  %v713_v61 = vpop.f32.mrb[16].mxu1 }
 0x13c   : > { %v715_v34 = vpop.f32.mrb[17].mxu1 }
 0x13d   : > { %v1860_v3 = vadd.f32 %v688_v50, %v524_v59 }
 0x13e   : > { %v528_v63 = vpop.f32.mrb[18].mxu0 }
 0x13f   : > { %v529_v0 = vadd.f32 %v1848_v56, %v528_v63  ;;  %v530_v1 = vpop.f32.mrb[19].mxu0  ;;  %v718_v43 = vpop.f32.mrb[18].mxu1 }
 0x140   : > { %v720_v2 = vpop.f32.mrb[19].mxu1 }
 0x141   : > { %v1863_v12 = vadd.f32 %v693_v40, %v529_v0 }
 0x142   : > { %v533_v4 = vpop.f32.mrb[20].mxu0 }
 0x143   : > { %v534_v6 = vadd.f32 %v1848_v56, %v533_v4  ;;  %v535_v7 = vpop.f32.mrb[21].mxu0  ;;  %v723_v9 = vpop.f32.mrb[20].mxu1 }
 0x144   : > { %v725_v10 = vpop.f32.mrb[21].mxu1 }
 0x145   : > { %v1866_v11 = vadd.f32 %v698_v62, %v534_v6 }
 0x146   : > { %v538_v18 = vpop.f32.mrb[22].mxu0 }
 0x147   : > { %v539_v14 = vadd.f32 %v1848_v56, %v538_v18  ;;  %v540_v15 = vpop.f32.mrb[23].mxu0  ;;  %v728_v16 = vpop.f32.mrb[22].mxu1 }
 0x148   : > { %v730_v17 = vpop.f32.mrb[23].mxu1 }
 0x149   : > { %v1869_v19 = vadd.f32 %v703_v52, %v539_v14 }
 0x14a   : > { %v543_v24 = vpop.f32.mrb[24].mxu0 }
 0x14b   : > { %v544_v21 = vadd.f32 %v1848_v56, %v543_v24  ;;  %v545_v22 = vpop.f32.mrb[25].mxu0  ;;  %v733_v23 = vpop.f32.mrb[24].mxu1 }
 0x14c   : > { %v735_v25 = vpop.f32.mrb[25].mxu1 }
 0x14d   : > { %v1872_v30 = vadd.f32 %v708_v20, %v544_v21 }
 0x14e   : > { %v548_v26 = vpop.f32.mrb[26].mxu0 }
 0x14f   : > { %v549_v28 = vadd.f32 %v1848_v56, %v548_v26  ;;  %v550_v29 = vpop.f32.mrb[27].mxu0  ;;  %v738_v36 = vpop.f32.mrb[26].mxu1 }
 0x150   : > { %v740_v31 = vpop.f32.mrb[27].mxu1 }
 0x151   : > { %v1875_v32 = vadd.f32 %v713_v61, %v549_v28 }
 0x152   : > { %v553_v33 = vpop.f32.mrb[28].mxu0 }
 0x153   : > { %v554_v44 = vadd.f32 %v1848_v56, %v553_v33  ;;  %v555_v35 = vpop.f32.mrb[29].mxu0  ;;  %v743_v37 = vpop.f32.mrb[28].mxu1 }
 0x154   : > { %v745_v38 = vpop.f32.mrb[29].mxu1 }
 0x155   : > { %v1878_v50 = vadd.f32 %v718_v43, %v554_v44 }
 0x156   : > { %v558_v39 = vpop.f32.mrb[30].mxu0 }
 0x157   : > { %v559_v40 = vadd.f32 %v1848_v56, %v558_v39  ;;  %v560_v41 = vpop.f32.mrb[31].mxu0  ;;  %v1085_v42 = vpop.f32.mrb[30].mxu1 }
 0x158   : > { %v813_v45 = vpop.f32.mrb[31].mxu1 }
 0x159   : > { %v1881_v46 = vadd.f32 %v723_v9, %v559_v40 }
 0x15a   : > { %v563_v62 = vpop.f32.mrb[32].mxu0 }
 0x15b   : > { %v564_v47 = vadd.f32 %v1848_v56, %v563_v62  ;;  %v565_v49 = vpop.f32.mrb[33].mxu0  ;;  %v1884_v5 = vpop.f32.mrb[32].mxu1 }
 0x15c   : > { %v1886_v51 = vpop.f32.mrb[33].mxu1 }
 0x15d   : > { %v1888_v52 = vadd.f32 %v728_v16, %v564_v47 }
 0x15e   : > { %v568_v53 = vpop.f32.mrb[34].mxu0 }
 0x15f   : > { %v569_v54 = vadd.f32 %v1848_v56, %v568_v53  ;;  %v1091_v55 = vpop.f32.mrb[34].mxu1  ;;  %v570_v57 = vpop.f32.mrb[35].mxu0 }
 0x160   : > { %v839_v20 = vadd.f32 %v1091_v55, %v1851_v48  ;;  %v1892_v58 = vpop.f32.mrb[35].mxu1 }
 0x161   : > { %v1894_v27 = vadd.f32 %v733_v23, %v569_v54 }
 0x162   : > { %1312 = vtanh.f32 %v839_v20  ;;  %v573_v59 = vpop.f32.mrb[36].mxu0 }
 0x163   : > { %v574_v60 = vadd.f32 %v1848_v56, %v573_v59  ;;  %v1094_v61 = vpop.f32.mrb[36].mxu1  ;;  %v575_v34 = vpop.f32.mrb[37].mxu0 }
 0x164   : > { %v849_v63 = vadd.f32 %v1094_v61, %v1857_v8  ;;  %v843_v0 = vpop.f32.mrb[37].mxu1 }
 0x165   : > { %v844_v1 = vadd.f32 %v843_v0, %v1854_v13  ;;  %v1899_v43 = vadd.f32 %v738_v36, %v574_v60 }
 0x166   : > { %1314 = vtanh.f32 %v849_v63  ;;  %v578_v2 = vpop.f32.mrb[38].mxu0 }
 0x167   : > { %1316 = vtanh.f32 %v844_v1  ;;  %v579_v48 = vadd.f32 %v1848_v56, %v578_v2  ;;  %v1097_v4 = vpop.f32.mrb[38].mxu1  ;;  %v580_v6 = vpop.f32.mrb[39].mxu0 }
 0x168   : > { %v859_v7 = vadd.f32 %v1097_v4, %v1863_v12  ;;  %v853_v9 = vpop.f32.mrb[39].mxu1 }
 0x169   : > { %v854_v10 = vadd.f32 %v853_v9, %v1860_v3  ;;  %v1905_v18 = vadd.f32 %v743_v37, %v579_v48 }
 0x16a   : > { %1318 = vtanh.f32 %v859_v7  ;;  %v648_v13 = vpop.f32.mrb[0].mxu0 }
 0x16b   : > { %1320 = vtanh.f32 %v854_v10  ;;  %v1257_v8 = vadd.f32 %v1848_v56, %v648_v13  ;;  %v1100_v14 = vpop.f32.mrb[40].mxu1  ;;  %v650_v15 = vpop.f32.mrb[1].mxu0 }
 0x16c   : > { %v1313_v12 = vpop.eup %1312  ;;  %v869_v16 = vadd.f32 %v1100_v14, %v1869_v19  ;;  %v863_v3 = vpop.f32.mrb[41].mxu1 }
 0x16d   : > { %938 = vst.msk [vmem:[%s1910_s20 + $0x28] sm:$0xff] %vm932_vm1, %v1313_v12  ;;  %v814_v17 = vadd.f32 %v1257_v8, %v813_v45  ;;  %v864_v24 = vadd.f32 %v863_v3, %v1866_v11 }
 0x16e   : > { %1322 = vtanh.f32 %v869_v16  ;;  %v653_v21 = vpop.f32.mrb[2].mxu0 }
 0x16f   : > { %1324 = vtanh.f32 %v814_v17  ;;  %v1258_v22 = vadd.f32 %v1848_v56, %v653_v21  ;;  %v1103_v23 = vpop.f32.mrb[42].mxu1  ;;  %v655_v25 = vpop.f32.mrb[3].mxu0 }
 0x170   : > { %v1315_v26 = vpop.eup %1314  ;;  %1326 = vtanh.f32 %v864_v24  ;;  %v879_v28 = vadd.f32 %v1103_v23, %v1875_v32  ;;  %v873_v19 = vpop.f32.mrb[43].mxu1 }
 0x171   : > { %v1317_v29 = vpop.eup %1316  ;;  %940 = vst.msk [vmem:[%s1910_s20 + $0x38] sm:$0xff] %vm932_vm1, %v1315_v26  ;;  %v819_v36 = vadd.f32 %v1258_v22, %v1085_v42  ;;  %v874_v31 = vadd.f32 %v873_v19, %v1872_v30 }
 0x172   : > { %939 = vst.msk [vmem:[%s1910_s20 + $0x30] sm:$0xff] %vm932_vm1, %v1317_v29  ;;  %1328 = vtanh.f32 %v879_v28  ;;  %v658_v11 = vpop.f32.mrb[4].mxu0 }
 0x173   : > { %1330 = vtanh.f32 %v819_v36  ;;  %v1259_v33 = vadd.f32 %v1848_v56, %v658_v11  ;;  %v1106_v44 = vpop.f32.mrb[44].mxu1  ;;  %v660_v35 = vpop.f32.mrb[5].mxu0 }
 0x174   : > { %v1319_v37 = vpop.eup %1318  ;;  %1332 = vtanh.f32 %v874_v31  ;;  %v889_v32 = vadd.f32 %v1106_v44, %v1881_v46  ;;  %v883_v38 = vpop.f32.mrb[45].mxu1 }
 0x175   : > { %v1321_v39 = vpop.eup %1320  ;;  %942 = vst.msk [vmem:[%s1910_s20 + $0x48] sm:$0xff] %vm932_vm1, %v1319_v37  ;;  %v824_v30 = vadd.f32 %v1259_v33, %v1886_v51  ;;  %v884_v40 = vadd.f32 %v883_v38, %v1878_v50 }
 0x176   : > { %941 = vst.msk [vmem:[%s1910_s20 + $0x40] sm:$0xff] %vm932_vm1, %v1321_v39  ;;  %1334 = vtanh.f32 %v889_v32  ;;  %v663_v41 = vpop.f32.mrb[6].mxu0 }
 0x177   : > { %1336 = vtanh.f32 %v824_v30  ;;  %v1260_v42 = vadd.f32 %v1848_v56, %v663_v41  ;;  %v1109_v45 = vpop.f32.mrb[46].mxu1  ;;  %v665_v46 = vpop.f32.mrb[7].mxu0 }
 0x178   : > { %v1323_v62 = vpop.eup %1322  ;;  %1338 = vtanh.f32 %v884_v40  ;;  %v899_v47 = vadd.f32 %v1109_v45, %v1894_v27  ;;  %v893_v49 = vpop.f32.mrb[47].mxu1 }
 0x179   : > { %v1325_v53 = vpop.eup %1324  ;;  %944 = vst.msk [vmem:[%s1910_s20 + $0x58] sm:$0xff] %vm932_vm1, %v1323_v62  ;;  %v829_v50 = vadd.f32 %v1260_v42, %v1884_v5  ;;  %v894_v51 = vadd.f32 %v893_v49, %v1888_v52 }
 0x17a   : > { %v1327_v54 = vpop.eup %1326  ;;  %933 = vst.msk [vmem:[%s1910_s20] sm:$0xff] %vm932_vm1, %v1325_v53  ;;  %1340 = vtanh.f32 %v899_v47  ;;  %v668_v55 = vpop.f32.mrb[8].mxu0 }
 0x17b   : > { %943 = vst.msk [vmem:[%s1910_s20 + $0x50] sm:$0xff] %vm932_vm1, %v1327_v54  ;;  %1342 = vtanh.f32 %v829_v50  ;;  %v1261_v57 = vadd.f32 %v1848_v56, %v668_v55  ;;  %v1112_v20 = vpop.f32.mrb[48].mxu1  ;;  %v670_v27 = vpop.f32.mrb[9].mxu0 }
 0x17c   : > { %v1329_v59 = vpop.eup %1328  ;;  %1344 = vtanh.f32 %v894_v51  ;;  %v909_v5 = vadd.f32 %v1112_v20, %v1905_v18  ;;  %v903_v52 = vpop.f32.mrb[49].mxu1 }
 0x17d   : > { %v1331_v60 = vpop.eup %1330  ;;  %946 = vst.msk [vmem:[%s1910_s20 + $0x68] sm:$0xff] %vm932_vm1, %v1329_v59  ;;  %v834_v61 = vadd.f32 %v1261_v57, %v1892_v58  ;;  %v904_v34 = vadd.f32 %v903_v52, %v1899_v43 }
 0x17e   : > { %v1333_v63 = vpop.eup %1332  ;;  %934 = vst.msk [vmem:[%s1910_s20 + $0x8] sm:$0xff] %vm932_vm1, %v1331_v60  ;;  %1346 = vtanh.f32 %v909_v5 }
 0x17f   : > { %945 = vst.msk [vmem:[%s1910_s20 + $0x60] sm:$0xff] %vm932_vm1, %v1333_v63  ;;  %1348 = vtanh.f32 %v834_v61 }
 0x180   : > { %v1335_v56 = vpop.eup %1334  ;;  %1350 = vtanh.f32 %v904_v34 }
 0x181   : > { %v1337_v0 = vpop.eup %1336  ;;  %948 = vst.msk [vmem:[%s1910_s20 + $0x78] sm:$0xff] %vm932_vm1, %v1335_v56 }
 0x182   : > { %v1339_v58 = vpop.eup %1338  ;;  %935 = vst.msk [vmem:[%s1910_s20 + $0x10] sm:$0xff] %vm932_vm1, %v1337_v0 }
 0x183   : > { %947 = vst.msk [vmem:[%s1910_s20 + $0x70] sm:$0xff] %vm932_vm1, %v1339_v58 }
 0x184   : > { %v1341_v1 = vpop.eup %1340 }
 0x185   : > { %v1343_v43 = vpop.eup %1342  ;;  %950 = vst.msk [vmem:[%s1910_s20 + $0x88] sm:$0xff] %vm932_vm1, %v1341_v1 }
 0x186   : > { %v1345_v2 = vpop.eup %1344  ;;  %936 = vst.msk [vmem:[%s1910_s20 + $0x18] sm:$0xff] %vm932_vm1, %v1343_v43 }
 0x187   : > { %949 = vst.msk [vmem:[%s1910_s20 + $0x80] sm:$0xff] %vm932_vm1, %v1345_v2 }
 0x188   : > { %v1347_v48 = vpop.eup %1346 }
 0x189   : > { %v1349_v4 = vpop.eup %1348  ;;  %952 = vst.msk [vmem:[%s1910_s20 + $0x98] sm:$0xff] %vm932_vm1, %v1347_v48 }
 0x18a   : > { %v1351_v6 = vpop.eup %1350  ;;  %937 = vst.msk [vmem:[%s1910_s20 + $0x20] sm:$0xff] %vm932_vm1, %v1349_v4 }
 0x18b   : > { %951 = vst.msk [vmem:[%s1910_s20 + $0x90] sm:$0xff] %vm932_vm1, %v1351_v6 }
 0x18c PF: > { %s13_s12 = sadd.s32 1, %s1358_s12  }
 0x18d   : > { %p10_p4 = scmp.ge.s32.totalorder %s13_s12, 4  }
 0x18f   :  { %12 = sbr.rel (!%p10_p4) target bundleno = 1 (0x1), region = 62 }

// kernel: cnn_autoencoder_forward.16
= control target key start
LH: loop header
LB: loop body
LE: loop exit
PB: predicated region body
PF: predicated region fallthrough
CT: control target
= control target key end

     0   :  { %s2438_s12 = smov 0   ;;  %s3347_s0 = inlined_call_operand.vmem [shape: f32[1280,288], index: 0, kind: input, shape index: {}]   ;;  %s3348_s1 = inlined_call_operand.vmem [shape: f32[288,16], index: 1, kind: input, shape index: {}]   ;;  %s3349_s2 = inlined_call_operand.vmem [shape: f32[1,16], index: 2, kind: input, shape index: {}]   ;;  %s3350_s3 = inlined_call_operand.vmem [shape: f32[1280,16], index: 3, kind: output, shape index: {}]  }
   0x1 LB: > { %s1848_s13 = sadd.s32 4294967295, %s2415_s12   ;;  %p1852_p0 = scmp.ge.s32.totalorder %s2415_s12, 1  ;;  %s2415_s12 = sphi %s2438_s12, %s13_s12  }
   0x2   : > { %p139_p1 = scmp.lt.s32.totalorder %s2415_s12, 3 }
   0x4   : > { %p140_p2 = pnand %p1852_p0, %p139_p1 }
   0x5   : > { %v417_v0 = vld [vmem:[%s3348_s1] sm:$0xff] (!%p140_p2)  ;;  %v418_v1 = vld [vmem:[%s3348_s1 + $0x8] sm:$0xff] (!%p140_p2)  ;;  %v419_v2 = vld [vmem:[%s3348_s1 + $0x10] sm:$0xff] (!%p140_p2)  ;;  %s164_s20 = smul.u32 (!%p140_p2), 80, %s1848_s13  ;;  %v2417_v3 = vmov (!%p140_p2), 0.0|0.0   ;;  %vm460_vm0 = vcmask (!%p140_p2), 261120  }
   0x6   : > { %143 = sbr.rel (%p140_p2) target bundleno = 536 (0x218), region = 32  ;;  %2150 = vmatprep.subr.bf16.mxu0 (!%p140_p2), %v2417_v3  ;;  %2206 = vmatprep.subr.bf16.mxu1 (!%p140_p2), %v2417_v3  ;;  %v2151_v4 = vpack.c.bf16 (!%p140_p2), %v418_v1, %v417_v0  ;;  %v420_v5 = vld [vmem:[%s3348_s1 + $0x18] sm:$0xff] (!%p140_p2)  ;;  %v421_v7 = vld [vmem:[%s3348_s1 + $0x20] sm:$0xff] (!%p140_p2)  ;;  %v422_v8 = vld [vmem:[%s3348_s1 + $0x28] sm:$0xff] (!%p140_p2)  ;;  %vm1711_vm1 = vcmask (!%p140_p2), 130048  }
   0x7   : > { %p165_p3 = scmp.lt.s32.totalorder (!%p140_p2), %s164_s20, 159  ;;  %v2154_v6 = vpack.c.bf16 (!%p140_p2), %v420_v5, %v419_v2  ;;  %v2157_v9 = vpack.c.bf16 (!%p140_p2), %v422_v8, %v421_v7  ;;  %v423_v10 = vld [vmem:[%s3348_s1 + $0x30] sm:$0xff] (!%p140_p2)  ;;  %v424_v11 = vld [vmem:[%s3348_s1 + $0x38] sm:$0xff] (!%p140_p2)  ;;  %v425_v15 = vld [vmem:[%s3348_s1 + $0x40] sm:$0xff] (!%p140_p2) }
   0x8   : > { %2152 = vmatpush1.bf16.msra.mxu0 (!%p140_p2), %v2151_v4  ;;  %2222 = vmatpush1.bf16.msra.mxu1 (!%p140_p2), %v2151_v4  ;;  %v2160_v13 = vpack.c.bf16 (!%p140_p2), %v424_v11, %v423_v10  ;;  %v426_v16 = vld [vmem:[%s3348_s1 + $0x48] sm:$0xff] (!%p140_p2)  ;;  %v427_v18 = vld [vmem:[%s3348_s1 + $0x50] sm:$0xff] (!%p140_p2)  ;;  %v428_v19 = vld [vmem:[%s3348_s1 + $0x58] sm:$0xff] (!%p140_p2) }
   0x9   : > { %2153 = vmatprep.subr.bf16.mxu0 (!%p140_p2), %v2417_v3  ;;  %2207 = vmatprep.subr.bf16.mxu1 (!%p140_p2), %v2417_v3  ;;  %v2163_v17 = vpack.c.bf16 (!%p140_p2), %v426_v16, %v425_v15  ;;  %v2166_v20 = vpack.c.bf16 (!%p140_p2), %v428_v19, %v427_v18  ;;  %v429_v21 = vld [vmem:[%s3348_s1 + $0x60] sm:$0xff] (!%p140_p2)  ;;  %v430_v22 = vld [vmem:[%s3348_s1 + $0x68] sm:$0xff] (!%p140_p2)  ;;  %v431_v24 = vld [vmem:[%s3348_s1 + $0x70] sm:$0xff] (!%p140_p2) }
   0xa   : > { %v2169_v23 = vpack.c.bf16 (!%p140_p2), %v430_v22, %v429_v21  ;;  %v432_v25 = vld [vmem:[%s3348_s1 + $0x78] sm:$0xff] (!%p140_p2)  ;;  %v433_v27 = vld [vmem:[%s3348_s1 + $0x80] sm:$0xff] (!%p140_p2)  ;;  %v434_v28 = vld [vmem:[%s3348_s1 + $0x88] sm:$0xff] (!%p140_p2) }
   0xb   : > { %v2172_v26 = vpack.c.bf16 (!%p140_p2), %v432_v25, %v431_v24  ;;  %v2175_v29 = vpack.c.bf16 (!%p140_p2), %v434_v28, %v433_v27  ;;  %v435_v30 = vld [vmem:[%s3348_s1 + $0x90] sm:$0xff] (!%p140_p2)  ;;  %v436_v31 = vld [vmem:[%s3348_s1 + $0x98] sm:$0xff] (!%p140_p2)  ;;  %v437_v33 = vld [vmem:[%s3348_s1 + $0xa0] sm:$0xff] (!%p140_p2) }
   0xc   : > { %2155 = vmatpush1.bf16.msra.mxu0 (!%p140_p2), %v2154_v6  ;;  %2223 = vmatpush1.bf16.msra.mxu1 (!%p140_p2), %v2154_v6  ;;  %v2178_v32 = vpack.c.bf16 (!%p140_p2), %v436_v31, %v435_v30  ;;  %v438_v34 = vld [vmem:[%s3348_s1 + $0xa8] sm:$0xff] (!%p140_p2)  ;;  %v439_v36 = vld [vmem:[%s3348_s1 + $0xb0] sm:$0xff] (!%p140_p2)  ;;  %v440_v37 = vld [vmem:[%s3348_s1 + $0xb8] sm:$0xff] (!%p140_p2) }
   0xd   : > { %s3352_s20 = smov (!%p165_p3, %s164_s20), 159  ;;  %2156 = vmatprep.subr.bf16.mxu0 %v2417_v3  ;;  %2208 = vmatprep.subr.bf16.mxu1 %v2417_v3  ;;  %v2181_v35 = vpack.c.bf16 %v438_v34, %v437_v33  ;;  %v2184_v38 = vpack.c.bf16 %v440_v37, %v439_v36  ;;  %v441_v39 = vld [vmem:[%s3348_s1 + $0xc0] sm:$0xff]  ;;  %v442_v40 = vld [vmem:[%s3348_s1 + $0xc8] sm:$0xff]  ;;  %v443_v42 = vld [vmem:[%s3348_s1 + $0xd0] sm:$0xff] }
   0xe   : > { %s2238_s27 = smul.u32 24, %s3352_s20  ;;  %v2187_v41 = vpack.c.bf16 %v442_v40, %v441_v39  ;;  %v444_v43 = vld [vmem:[%s3348_s1 + $0xd8] sm:$0xff]  ;;  %v445_v45 = vld [vmem:[%s3348_s1 + $0xe0] sm:$0xff]  ;;  %v446_v46 = vld [vmem:[%s3348_s1 + $0xe8] sm:$0xff]  ;;  %s1854_s18 = sshll.u32 %s3352_s20, 3 }
   0xf   : > { %v2190_v44 = vpack.c.bf16 %v444_v43, %v443_v42  ;;  %v2193_v47 = vpack.c.bf16 %v446_v46, %v445_v45  ;;  %v447_v48 = vld [vmem:[%s3348_s1 + $0xf0] sm:$0xff]  ;;  %v448_v49 = vld [vmem:[%s3348_s1 + $0xf8] sm:$0xff]  ;;  %v449_v50 = vld [vmem:[%s3348_s1 + $0x100] sm:$0xff]  ;;  %s3023_s22 = scalar_lea.vmem %s3350_s3, %s1854_s18 }
  0x10   : > { %s2482_s7 = scalar_lea.vmem %s3347_s0, %s2238_s27  ;;  %2158 = vmatpush1.bf16.msra.mxu0 %v2157_v9  ;;  %2224 = vmatpush1.bf16.msra.mxu1 %v2157_v9  ;;  %v450_v51 = vld [vmem:[%s3348_s1 + $0x108] sm:$0xff]  ;;  %v2196_v52 = vpack.c.bf16 %v448_v49, %v447_v48  ;;  %v451_v54 = vld [vmem:[%s3348_s1 + $0x110] sm:$0xff]  ;;  %v452_v55 = vld [vmem:[%s3348_s1 + $0x118] sm:$0xff] }
  0x11   : > { %v178_v12 = vld [vmem:[%s2482_s7 + $0x8] sm:$0xff]  ;;  %2159 = vmatprep.subr.bf16.mxu0 %v2417_v3  ;;  %2209 = vmatprep.subr.bf16.mxu1 %v2417_v3  ;;  %v2198_v53 = vpack.c.bf16 %v450_v51, %v449_v50  ;;  %v177_v56 = vld [vmem:[%s2482_s7] sm:$0xff]  ;;  %v2202_v59 = vpack.c.bf16 %v452_v55, %v451_v54  ;;  %v180_v61 = vld [vmem:[%s2482_s7 + $0x18] sm:$0xff] }
  0x12   : > { %v358_v14 = vld [vmem:[%s2482_s7 + $0x5a8] sm:$0xff]  ;;  %765 = vmatprep.mubr.f32.mxu0 %v178_v12  ;;  %v357_v57 = vld [vmem:[%s2482_s7 + $0x5a0] sm:$0xff]  ;;  %v360_v62 = vld [vmem:[%s2482_s7 + $0x5b8] sm:$0xff] }
  0x13   : > { %1065 = vmatprep.mubr.f32.mxu1 %v358_v14  ;;  %v181_v58 = vld [vmem:[%s2482_s7 + $0x20] sm:$0xff]  ;;  %v184_v63 = vld [vmem:[%s2482_s7 + $0x38] sm:$0xff]  ;;  %v183_v1 = vld [vmem:[%s2482_s7 + $0x30] sm:$0xff] }
  0x14   : > { %2161 = vmatpush1.bf16.msra.mxu0 %v2160_v13  ;;  %2225 = vmatpush1.bf16.msra.mxu1 %v2160_v13  ;;  %v361_v60 = vld [vmem:[%s2482_s7 + $0x5c0] sm:$0xff]  ;;  %v364_v0 = vld [vmem:[%s2482_s7 + $0x5d8] sm:$0xff]  ;;  %v363_v2 = vld [vmem:[%s2482_s7 + $0x5d0] sm:$0xff] }
  0x15   : > { %2162 = vmatprep.subr.bf16.mxu0 %v2417_v3  ;;  %2210 = vmatprep.subr.bf16.mxu1 %v2417_v3  ;;  %v367_v4 = vld [vmem:[%s2482_s7 + $0x5f0] sm:$0xff]  ;;  %v186_v5 = vld [vmem:[%s2482_s7 + $0x48] sm:$0xff]  ;;  %v189_v9 = vld [vmem:[%s2482_s7 + $0x60] sm:$0xff] }
  0x16   : > { %v366_v6 = vld [vmem:[%s2482_s7 + $0x5e8] sm:$0xff]  ;;  %v369_v10 = vld [vmem:[%s2482_s7 + $0x600] sm:$0xff]  ;;  %v192_v13 = vld [vmem:[%s2482_s7 + $0x78] sm:$0xff] }
  0x17   : > { %v190_v7 = vld [vmem:[%s2482_s7 + $0x68] sm:$0xff]  ;;  %v193_v11 = vld [vmem:[%s2482_s7 + $0x80] sm:$0xff]  ;;  %v372_v14 = vld [vmem:[%s2482_s7 + $0x618] sm:$0xff] }
  0x18   : > { %2164 = vmatpush1.bf16.msra.mxu0 %v2163_v17  ;;  %2226 = vmatpush1.bf16.msra.mxu1 %v2163_v17  ;;  %v370_v8 = vld [vmem:[%s2482_s7 + $0x608] sm:$0xff]  ;;  %v373_v12 = vld [vmem:[%s2482_s7 + $0x620] sm:$0xff]  ;;  %v196_v15 = vld [vmem:[%s2482_s7 + $0x98] sm:$0xff] }
  0x19   : > { %2165 = vmatprep.subr.bf16.mxu0 %v2417_v3  ;;  %2211 = vmatprep.subr.bf16.mxu1 %v2417_v3  ;;  %v376_v16 = vld [vmem:[%s2482_s7 + $0x638] sm:$0xff]  ;;  %v195_v17 = vld [vmem:[%s2482_s7 + $0x90] sm:$0xff]  ;;  %v198_v21 = vld [vmem:[%s2482_s7 + $0xa8] sm:$0xff] }
  0x1a   : > { %v375_v18 = vld [vmem:[%s2482_s7 + $0x630] sm:$0xff]  ;;  %v378_v22 = vld [vmem:[%s2482_s7 + $0x648] sm:$0xff]  ;;  %v201_v25 = vld [vmem:[%s2482_s7 + $0xc0] sm:$0xff] }
  0x1b   : > { %v199_v19 = vld [vmem:[%s2482_s7 + $0xb0] sm:$0xff]  ;;  %v382_v24 = vld [vmem:[%s2482_s7 + $0x668] sm:$0xff]  ;;  %v205_v27 = vld [vmem:[%s2482_s7 + $0xe0] sm:$0xff] }
  0x1c   : > { %2167 = vmatpush1.bf16.msra.mxu0 %v2166_v20  ;;  %2227 = vmatpush1.bf16.msra.mxu1 %v2166_v20  ;;  %v379_v20 = vld [vmem:[%s2482_s7 + $0x650] sm:$0xff]  ;;  %v385_v28 = vld [vmem:[%s2482_s7 + $0x680] sm:$0xff]  ;;  %v384_v30 = vld [vmem:[%s2482_s7 + $0x678] sm:$0xff] }
  0x1d   : > { %2168 = vmatprep.subr.bf16.mxu0 %v2417_v3  ;;  %2212 = vmatprep.subr.bf16.mxu1 %v2417_v3  ;;  %v208_v31 = vld [vmem:[%s2482_s7 + $0xf8] sm:$0xff]  ;;  %v207_v33 = vld [vmem:[%s2482_s7 + $0xf0] sm:$0xff]  ;;  %v210_v37 = vld [vmem:[%s2482_s7 + $0x108] sm:$0xff] }
  0x1e   : > { %v387_v34 = vld [vmem:[%s2482_s7 + $0x690] sm:$0xff]  ;;  %v214_v39 = vld [vmem:[%s2482_s7 + $0x128] sm:$0xff]  ;;  %v393_v42 = vld [vmem:[%s2482_s7 + $0x6c0] sm:$0xff] }
  0x1f   : > { %v391_v36 = vld [vmem:[%s2482_s7 + $0x6b0] sm:$0xff]  ;;  %v394_v40 = vld [vmem:[%s2482_s7 + $0x6c8] sm:$0xff]  ;;  %v217_v43 = vld [vmem:[%s2482_s7 + $0x140] sm:$0xff] }
  0x20   : > { %2170 = vmatpush1.bf16.msra.mxu0 %v2169_v23  ;;  %2228 = vmatpush1.bf16.msra.mxu1 %v2169_v23  ;;  %v202_v23 = vld [vmem:[%s2482_s7 + $0xc8] sm:$0xff]  ;;  %v216_v45 = vld [vmem:[%s2482_s7 + $0x138] sm:$0xff]  ;;  %v219_v49 = vld [vmem:[%s2482_s7 + $0x150] sm:$0xff] }
  0x21   : > { %2171 = vmatprep.subr.bf16.mxu0 %v2417_v3  ;;  %2213 = vmatprep.subr.bf16.mxu1 %v2417_v3  ;;  %v396_v46 = vld [vmem:[%s2482_s7 + $0x6d8] sm:$0xff]  ;;  %v399_v50 = vld [vmem:[%s2482_s7 + $0x6f0] sm:$0xff]  ;;  %v402_v54 = vld [vmem:[%s2482_s7 + $0x708] sm:$0xff] }
  0x22   : > { %v400_v48 = vld [vmem:[%s2482_s7 + $0x6f8] sm:$0xff]  ;;  %v223_v51 = vld [vmem:[%s2482_s7 + $0x170] sm:$0xff]  ;;  %v226_v55 = vld [vmem:[%s2482_s7 + $0x188] sm:$0xff] }
  0x24   : > { %2173 = vmatpush1.bf16.msra.mxu0 %v2172_v26  ;;  %2229 = vmatpush1.bf16.msra.mxu1 %v2172_v26  ;;  %v381_v26 = vld [vmem:[%s2482_s7 + $0x660] sm:$0xff] }
  0x25   : > { %2174 = vmatprep.subr.bf16.mxu0 %v2417_v3  ;;  %2214 = vmatprep.subr.bf16.mxu1 %v2417_v3 }
  0x28   : > { %2176 = vmatpush1.bf16.msra.mxu0 %v2175_v29  ;;  %2230 = vmatpush1.bf16.msra.mxu1 %v2175_v29  ;;  %v204_v29 = vld [vmem:[%s2482_s7 + $0xd8] sm:$0xff] }
  0x29   : > { %2177 = vmatprep.subr.bf16.mxu0 %v2417_v3  ;;  %2215 = vmatprep.subr.bf16.mxu1 %v2417_v3 }
  0x2c   : > { %2179 = vmatpush1.bf16.msra.mxu0 %v2178_v32  ;;  %2231 = vmatpush1.bf16.msra.mxu1 %v2178_v32  ;;  %v388_v32 = vld [vmem:[%s2482_s7 + $0x698] sm:$0xff] }
  0x2d   : > { %2180 = vmatprep.subr.bf16.mxu0 %v2417_v3  ;;  %2216 = vmatprep.subr.bf16.mxu1 %v2417_v3 }
  0x30   : > { %2182 = vmatpush1.bf16.msra.mxu0 %v2181_v35  ;;  %2232 = vmatpush1.bf16.msra.mxu1 %v2181_v35  ;;  %v211_v35 = vld [vmem:[%s2482_s7 + $0x110] sm:$0xff] }
  0x31   : > { %2183 = vmatprep.subr.bf16.mxu0 %v2417_v3  ;;  %2217 = vmatprep.subr.bf16.mxu1 %v2417_v3 }
  0x34   : > { %2185 = vmatpush1.bf16.msra.mxu0 %v2184_v38  ;;  %2233 = vmatpush1.bf16.msra.mxu1 %v2184_v38  ;;  %v390_v38 = vld [vmem:[%s2482_s7 + $0x6a8] sm:$0xff] }
  0x35   : > { %2186 = vmatprep.subr.bf16.mxu0 %v2417_v3  ;;  %2218 = vmatprep.subr.bf16.mxu1 %v2417_v3 }
  0x38   : > { %2188 = vmatpush1.bf16.msra.mxu0 %v2187_v41  ;;  %2234 = vmatpush1.bf16.msra.mxu1 %v2187_v41  ;;  %v213_v41 = vld [vmem:[%s2482_s7 + $0x120] sm:$0xff] }
  0x39   : > { %2189 = vmatprep.subr.bf16.mxu0 %v2417_v3  ;;  %2219 = vmatprep.subr.bf16.mxu1 %v2417_v3 }
  0x3c   : > { %2191 = vmatpush1.bf16.msra.mxu0 %v2190_v44  ;;  %2235 = vmatpush1.bf16.msra.mxu1 %v2190_v44  ;;  %v397_v44 = vld [vmem:[%s2482_s7 + $0x6e0] sm:$0xff] }
  0x3d   : > { %2192 = vmatprep.subr.bf16.mxu0 %v2417_v3  ;;  %2220 = vmatprep.subr.bf16.mxu1 %v2417_v3 }
  0x40   : > { %2194 = vmatpush1.bf16.msra.mxu0 %v2193_v47  ;;  %2236 = vmatpush1.bf16.msra.mxu1 %v2193_v47  ;;  %v220_v47 = vld [vmem:[%s2482_s7 + $0x158] sm:$0xff] }
  0x41   : > { %2195 = vmatprep.subr.bf16.mxu0 %v2417_v3  ;;  %2221 = vmatprep.subr.bf16.mxu1 %v2417_v3  ;;  %v187_v3 = vld [vmem:[%s2482_s7 + $0x50] sm:$0xff] }
  0x44   : > { %2197 = vmatpush1.bf16.msra.mxu0 %v2196_v52  ;;  %2237 = vmatpush1.bf16.msra.mxu1 %v2196_v52  ;;  %v403_v52 = vld [vmem:[%s2482_s7 + $0x710] sm:$0xff] }
  0x45   : > { %2199 = vmatprep.subr.bf16.mxu1 %v2198_v53 }
  0x47   : > { %766 = vmatmul.mubr.f32.vlgmr.msra.gmra.mrb[0].mxu0 %v177_v56  ;;  %1066 = vmatmul.mubr.f32.vlgmr.msra.gmra.mrb[0].mxu1 %v357_v57  ;;  %v406_v56 = vld [vmem:[%s2482_s7 + $0x728] sm:$0xff]  ;;  %v225_v57 = vld [vmem:[%s2482_s7 + $0x180] sm:$0xff] }
  0x48   : > { %2201 = vmatpush3.bf16.msra.mxu1 %v2198_v53  ;;  %770 = vmatprep.mubr.f32.mxu0 %v181_v58  ;;  %v222_v53 = vld [vmem:[%s2482_s7 + $0x168] sm:$0xff]  ;;  %v405_v58 = vld [vmem:[%s2482_s7 + $0x720] sm:$0xff] }
  0x49   : > { %1070 = vmatprep.mubr.f32.mxu1 %v361_v60  ;;  %2203 = vmatprep.subr.bf16.mxu1 %v2202_v59  ;;  %v409_v60 = vld [vmem:[%s2482_s7 + $0x740] sm:$0xff] }
  0x4b   : > { %771 = vmatmul.mubr.f32.gmra.mrb[2].mxu0 %v180_v61  ;;  %1071 = vmatmul.mubr.f32.gmra.mrb[2].mxu1 %v360_v62  ;;  %v228_v61 = vld [vmem:[%s2482_s7 + $0x198] sm:$0xff] }
  0x4c   : > { %775 = vmatprep.mubr.f32.mxu0 %v184_v63  ;;  %1075 = vmatprep.mubr.f32.mxu1 %v364_v0  ;;  %v408_v62 = vld [vmem:[%s2482_s7 + $0x738] sm:$0xff] }
  0x4d   : > { %2205 = vmatpush3.bf16.msra.mxu1 %v2202_v59  ;;  %v229_v59 = vld [vmem:[%s2482_s7 + $0x1a0] sm:$0xff]  ;;  %v232_v63 = vld [vmem:[%s2482_s7 + $0x1b8] sm:$0xff] }
  0x4e   : > { %v412_v0 = vld [vmem:[%s2482_s7 + $0x758] sm:$0xff] }
  0x4f   : > { %776 = vmatmul.mubr.f32.gmra.mrb[4].mxu0 %v183_v1  ;;  %1076 = vmatmul.mubr.f32.gmra.mrb[4].mxu1 %v363_v2  ;;  %v231_v1 = vld [vmem:[%s2482_s7 + $0x1b0] sm:$0xff] }
  0x50   : > { %780 = vmatprep.mubr.f32.mxu0 %v187_v3  ;;  %1080 = vmatprep.mubr.f32.mxu1 %v367_v4  ;;  %v411_v2 = vld [vmem:[%s2482_s7 + $0x750] sm:$0xff] }
  0x51   : > { %v235_v3 = vld [vmem:[%s2482_s7 + $0x1d0] sm:$0xff] }
  0x52   : > { %v415_v4 = vld [vmem:[%s2482_s7 + $0x770] sm:$0xff] }
  0x53   : > { %781 = vmatmul.mubr.f32.gmra.mrb[6].mxu0 %v186_v5  ;;  %1081 = vmatmul.mubr.f32.gmra.mrb[6].mxu1 %v366_v6  ;;  %v234_v5 = vld [vmem:[%s2482_s7 + $0x1c8] sm:$0xff] }
  0x54   : > { %785 = vmatprep.mubr.f32.mxu0 %v190_v7  ;;  %1085 = vmatprep.mubr.f32.mxu1 %v370_v8  ;;  %v414_v6 = vld [vmem:[%s2482_s7 + $0x768] sm:$0xff]  ;;  %v179_v8 = vld [vmem:[%s2482_s7 + $0x10] sm:$0xff] }
  0x55   : > { %v238_v7 = vld [vmem:[%s2482_s7 + $0x1e8] sm:$0xff] }
  0x57   : > { %786 = vmatmul.mubr.f32.gmra.mrb[8].mxu0 %v189_v9  ;;  %1086 = vmatmul.mubr.f32.gmra.mrb[8].mxu1 %v369_v10  ;;  %v237_v9 = vld [vmem:[%s2482_s7 + $0x1e0] sm:$0xff]  ;;  %v182_v10 = vld [vmem:[%s2482_s7 + $0x28] sm:$0xff] }
  0x58   : > { %790 = vmatprep.mubr.f32.mxu0 %v193_v11  ;;  %1090 = vmatprep.mubr.f32.mxu1 %v373_v12  ;;  %v241_v11 = vld [vmem:[%s2482_s7 + $0x200] sm:$0xff] }
  0x59   : > { %v185_v12 = vld [vmem:[%s2482_s7 + $0x40] sm:$0xff] }
  0x5b   : > { %791 = vmatmul.mubr.f32.gmra.mrb[10].mxu0 %v192_v13  ;;  %1091 = vmatmul.mubr.f32.gmra.mrb[10].mxu1 %v372_v14  ;;  %v240_v13 = vld [vmem:[%s2482_s7 + $0x1f8] sm:$0xff] }
  0x5c   : > { %795 = vmatprep.mubr.f32.mxu0 %v196_v15  ;;  %1095 = vmatprep.mubr.f32.mxu1 %v376_v16  ;;  %v188_v14 = vld [vmem:[%s2482_s7 + $0x58] sm:$0xff]  ;;  %v191_v16 = vld [vmem:[%s2482_s7 + $0x70] sm:$0xff] }
  0x5d   : > { %v244_v15 = vld [vmem:[%s2482_s7 + $0x218] sm:$0xff] }
  0x5f   : > { %796 = vmatmul.mubr.f32.gmra.mrb[12].mxu0 %v195_v17  ;;  %1096 = vmatmul.mubr.f32.gmra.mrb[12].mxu1 %v375_v18  ;;  %v243_v17 = vld [vmem:[%s2482_s7 + $0x210] sm:$0xff]  ;;  %v194_v18 = vld [vmem:[%s2482_s7 + $0x88] sm:$0xff] }
  0x60   : > { %800 = vmatprep.mubr.f32.mxu0 %v199_v19  ;;  %1100 = vmatprep.mubr.f32.mxu1 %v379_v20  ;;  %v247_v19 = vld [vmem:[%s2482_s7 + $0x230] sm:$0xff]  ;;  %v197_v20 = vld [vmem:[%s2482_s7 + $0xa0] sm:$0xff] }
  0x63   : > { %801 = vmatmul.mubr.f32.gmra.mrb[14].mxu0 %v198_v21  ;;  %1101 = vmatmul.mubr.f32.gmra.mrb[14].mxu1 %v378_v22  ;;  %v246_v21 = vld [vmem:[%s2482_s7 + $0x228] sm:$0xff]  ;;  %v200_v22 = vld [vmem:[%s2482_s7 + $0xb8] sm:$0xff] }
  0x64   : > { %805 = vmatprep.mubr.f32.mxu0 %v202_v23  ;;  %1105 = vmatprep.mubr.f32.mxu1 %v382_v24  ;;  %v250_v23 = vld [vmem:[%s2482_s7 + $0x248] sm:$0xff]  ;;  %v203_v24 = vld [vmem:[%s2482_s7 + $0xd0] sm:$0xff] }
  0x67   : > { %806 = vmatmul.mubr.f32.gmra.mrb[16].mxu0 %v201_v25  ;;  %1106 = vmatmul.mubr.f32.gmra.mrb[16].mxu1 %v381_v26  ;;  %v249_v25 = vld [vmem:[%s2482_s7 + $0x240] sm:$0xff]  ;;  %v206_v26 = vld [vmem:[%s2482_s7 + $0xe8] sm:$0xff] }
  0x68   : > { %810 = vmatprep.mubr.f32.mxu0 %v205_v27  ;;  %1110 = vmatprep.mubr.f32.mxu1 %v385_v28  ;;  %v253_v27 = vld [vmem:[%s2482_s7 + $0x260] sm:$0xff] }
  0x69   : > { %v209_v28 = vld [vmem:[%s2482_s7 + $0x100] sm:$0xff] }
  0x6b   : > { %811 = vmatmul.mubr.f32.gmra.mrb[18].mxu0 %v204_v29  ;;  %1111 = vmatmul.mubr.f32.gmra.mrb[18].mxu1 %v384_v30  ;;  %v252_v29 = vld [vmem:[%s2482_s7 + $0x258] sm:$0xff] }
  0x6c   : > { %815 = vmatprep.mubr.f32.mxu0 %v208_v31  ;;  %1115 = vmatprep.mubr.f32.mxu1 %v388_v32  ;;  %v212_v30 = vld [vmem:[%s2482_s7 + $0x118] sm:$0xff]  ;;  %v215_v32 = vld [vmem:[%s2482_s7 + $0x130] sm:$0xff] }
  0x6d   : > { %v256_v31 = vld [vmem:[%s2482_s7 + $0x278] sm:$0xff] }
  0x6f   : > { %816 = vmatmul.mubr.f32.gmra.mrb[20].mxu0 %v207_v33  ;;  %1116 = vmatmul.mubr.f32.gmra.mrb[20].mxu1 %v387_v34  ;;  %v255_v33 = vld [vmem:[%s2482_s7 + $0x270] sm:$0xff]  ;;  %v218_v34 = vld [vmem:[%s2482_s7 + $0x148] sm:$0xff] }
  0x70   : > { %820 = vmatprep.mubr.f32.mxu0 %v211_v35  ;;  %1120 = vmatprep.mubr.f32.mxu1 %v391_v36  ;;  %v259_v35 = vld [vmem:[%s2482_s7 + $0x290] sm:$0xff]  ;;  %v221_v36 = vld [vmem:[%s2482_s7 + $0x160] sm:$0xff] }
  0x73   : > { %821 = vmatmul.mubr.f32.gmra.mrb[22].mxu0 %v210_v37  ;;  %1121 = vmatmul.mubr.f32.gmra.mrb[22].mxu1 %v390_v38  ;;  %v258_v37 = vld [vmem:[%s2482_s7 + $0x288] sm:$0xff]  ;;  %v224_v38 = vld [vmem:[%s2482_s7 + $0x178] sm:$0xff] }
  0x74   : > { %825 = vmatprep.mubr.f32.mxu0 %v214_v39  ;;  %1125 = vmatprep.mubr.f32.mxu1 %v394_v40  ;;  %v262_v39 = vld [vmem:[%s2482_s7 + $0x2a8] sm:$0xff]  ;;  %v227_v40 = vld [vmem:[%s2482_s7 + $0x190] sm:$0xff] }
  0x77   : > { %826 = vmatmul.mubr.f32.gmra.mrb[24].mxu0 %v213_v41  ;;  %1126 = vmatmul.mubr.f32.gmra.mrb[24].mxu1 %v393_v42  ;;  %v261_v41 = vld [vmem:[%s2482_s7 + $0x2a0] sm:$0xff]  ;;  %v230_v42 = vld [vmem:[%s2482_s7 + $0x1a8] sm:$0xff] }
  0x78   : > { %830 = vmatprep.mubr.f32.mxu0 %v217_v43  ;;  %1130 = vmatprep.mubr.f32.mxu1 %v397_v44  ;;  %v265_v43 = vld [vmem:[%s2482_s7 + $0x2c0] sm:$0xff] }
  0x79   : > { %v233_v44 = vld [vmem:[%s2482_s7 + $0x1c0] sm:$0xff] }
  0x7b   : > { %831 = vmatmul.mubr.f32.gmra.mrb[26].mxu0 %v216_v45  ;;  %1131 = vmatmul.mubr.f32.gmra.mrb[26].mxu1 %v396_v46  ;;  %v264_v45 = vld [vmem:[%s2482_s7 + $0x2b8] sm:$0xff] }
  0x7c   : > { %835 = vmatprep.mubr.f32.mxu0 %v220_v47  ;;  %1135 = vmatprep.mubr.f32.mxu1 %v400_v48  ;;  %v236_v46 = vld [vmem:[%s2482_s7 + $0x1d8] sm:$0xff]  ;;  %v239_v48 = vld [vmem:[%s2482_s7 + $0x1f0] sm:$0xff] }
  0x7d   : > { %v268_v47 = vld [vmem:[%s2482_s7 + $0x2d8] sm:$0xff] }
  0x7f   : > { %836 = vmatmul.mubr.f32.gmra.mrb[28].mxu0 %v219_v49  ;;  %1136 = vmatmul.mubr.f32.gmra.mrb[28].mxu1 %v399_v50  ;;  %v267_v49 = vld [vmem:[%s2482_s7 + $0x2d0] sm:$0xff]  ;;  %v242_v50 = vld [vmem:[%s2482_s7 + $0x208] sm:$0xff] }
  0x80   : > { %840 = vmatprep.mubr.f32.mxu0 %v223_v51  ;;  %1140 = vmatprep.mubr.f32.mxu1 %v403_v52  ;;  %v271_v51 = vld [vmem:[%s2482_s7 + $0x2f0] sm:$0xff]  ;;  %v245_v52 = vld [vmem:[%s2482_s7 + $0x220] sm:$0xff] }
  0x83   : > { %841 = vmatmul.mubr.f32.gmra.mrb[30].mxu0 %v222_v53  ;;  %1141 = vmatmul.mubr.f32.gmra.mrb[30].mxu1 %v402_v54  ;;  %v270_v53 = vld [vmem:[%s2482_s7 + $0x2e8] sm:$0xff]  ;;  %v248_v54 = vld [vmem:[%s2482_s7 + $0x238] sm:$0xff] }
  0x84   : > { %845 = vmatprep.mubr.f32.mxu0 %v226_v55  ;;  %1145 = vmatprep.mubr.f32.mxu1 %v406_v56  ;;  %v274_v55 = vld [vmem:[%s2482_s7 + $0x308] sm:$0xff]  ;;  %v251_v56 = vld [vmem:[%s2482_s7 + $0x250] sm:$0xff] }
  0x87   : > { %846 = vmatmul.mubr.f32.gmra.mrb[32].mxu0 %v225_v57  ;;  %1146 = vmatmul.mubr.f32.gmra.mrb[32].mxu1 %v405_v58  ;;  %v273_v57 = vld [vmem:[%s2482_s7 + $0x300] sm:$0xff]  ;;  %v254_v58 = vld [vmem:[%s2482_s7 + $0x268] sm:$0xff] }
  0x88   : > { %850 = vmatprep.mubr.f32.mxu0 %v229_v59  ;;  %1150 = vmatprep.mubr.f32.mxu1 %v409_v60  ;;  %v277_v59 = vld [vmem:[%s2482_s7 + $0x320] sm:$0xff] }
  0x89   : > { %v257_v60 = vld [vmem:[%s2482_s7 + $0x280] sm:$0xff] }
  0x8b   : > { %851 = vmatmul.mubr.f32.gmra.mrb[34].mxu0 %v228_v61  ;;  %1151 = vmatmul.mubr.f32.gmra.mrb[34].mxu1 %v408_v62  ;;  %v276_v61 = vld [vmem:[%s2482_s7 + $0x318] sm:$0xff] }
  0x8c   : > { %855 = vmatprep.mubr.f32.mxu0 %v232_v63  ;;  %1155 = vmatprep.mubr.f32.mxu1 %v412_v0  ;;  %v260_v62 = vld [vmem:[%s2482_s7 + $0x298] sm:$0xff]  ;;  %v263_v0 = vld [vmem:[%s2482_s7 + $0x2b0] sm:$0xff] }
  0x8d   : > { %v280_v63 = vld [vmem:[%s2482_s7 + $0x338] sm:$0xff] }
  0x8f   : > { %856 = vmatmul.mubr.f32.gmra.mrb[36].mxu0 %v231_v1  ;;  %1156 = vmatmul.mubr.f32.gmra.mrb[36].mxu1 %v411_v2  ;;  %v279_v1 = vld [vmem:[%s2482_s7 + $0x330] sm:$0xff]  ;;  %v266_v2 = vld [vmem:[%s2482_s7 + $0x2c8] sm:$0xff] }
  0x90   : > { %860 = vmatprep.mubr.f32.mxu0 %v235_v3  ;;  %1160 = vmatprep.mubr.f32.mxu1 %v415_v4  ;;  %v283_v3 = vld [vmem:[%s2482_s7 + $0x350] sm:$0xff]  ;;  %v269_v4 = vld [vmem:[%s2482_s7 + $0x2e0] sm:$0xff] }
  0x93   : > { %861 = vmatmul.mubr.f32.gmra.mrb[38].mxu0 %v234_v5  ;;  %1161 = vmatmul.mubr.f32.gmra.mrb[38].mxu1 %v414_v6  ;;  %v282_v5 = vld [vmem:[%s2482_s7 + $0x348] sm:$0xff]  ;;  %v272_v6 = vld [vmem:[%s2482_s7 + $0x2f8] sm:$0xff] }
  0x94   : > { %865 = vmatprep.mubr.f32.mxu0 %v238_v7  ;;  %2030 = vmatprep.mubr.msk.f32.mxu1 %vm460_vm0, %v179_v8  ;;  %v286_v7 = vld [vmem:[%s2482_s7 + $0x368] sm:$0xff]  ;;  %v275_v8 = vld [vmem:[%s2482_s7 + $0x310] sm:$0xff] }
  0x97   : > { %866 = vmatmul.mubr.f32.gmra.mrb[40].mxu0 %v237_v9  ;;  %2031 = vmatmul.mubr.msk.f32.vlgmr.msra.gmra.mrb[40].mxu1 %vm460_vm0, %v182_v10  ;;  %v285_v9 = vld [vmem:[%s2482_s7 + $0x360] sm:$0xff]  ;;  %v278_v10 = vld [vmem:[%s2482_s7 + $0x328] sm:$0xff] }
  0x98   : > { %870 = vmatprep.mubr.f32.mxu0 %v241_v11  ;;  %2033 = vmatprep.mubr.msk.f32.mxu1 %vm460_vm0, %v185_v12  ;;  %v289_v11 = vld [vmem:[%s2482_s7 + $0x380] sm:$0xff] }
  0x99   : > { %v281_v12 = vld [vmem:[%s2482_s7 + $0x340] sm:$0xff] }
  0x9b   : > { %871 = vmatmul.mubr.f32.gmra.mrb[42].mxu0 %v240_v13  ;;  %2034 = vmatmul.mubr.msk.f32.gmra.mrb[42].mxu1 %vm460_vm0, %v188_v14  ;;  %v288_v13 = vld [vmem:[%s2482_s7 + $0x378] sm:$0xff] }
  0x9c   : > { %875 = vmatprep.mubr.f32.mxu0 %v244_v15  ;;  %2036 = vmatprep.mubr.msk.f32.mxu1 %vm460_vm0, %v191_v16  ;;  %v284_v14 = vld [vmem:[%s2482_s7 + $0x358] sm:$0xff]  ;;  %v287_v16 = vld [vmem:[%s2482_s7 + $0x370] sm:$0xff] }
  0x9d   : > { %v292_v15 = vld [vmem:[%s2482_s7 + $0x398] sm:$0xff] }
  0x9f   : > { %876 = vmatmul.mubr.f32.gmra.mrb[44].mxu0 %v243_v17  ;;  %2037 = vmatmul.mubr.msk.f32.gmra.mrb[44].mxu1 %vm460_vm0, %v194_v18  ;;  %v291_v17 = vld [vmem:[%s2482_s7 + $0x390] sm:$0xff]  ;;  %v290_v18 = vld [vmem:[%s2482_s7 + $0x388] sm:$0xff] }
  0xa0   : > { %880 = vmatprep.mubr.f32.mxu0 %v247_v19  ;;  %2039 = vmatprep.mubr.msk.f32.mxu1 %vm460_vm0, %v197_v20  ;;  %v295_v19 = vld [vmem:[%s2482_s7 + $0x3b0] sm:$0xff]  ;;  %v293_v20 = vld [vmem:[%s2482_s7 + $0x3a0] sm:$0xff] }
  0xa3   : > { %881 = vmatmul.mubr.f32.gmra.mrb[46].mxu0 %v246_v21  ;;  %2040 = vmatmul.mubr.msk.f32.gmra.mrb[46].mxu1 %vm460_vm0, %v200_v22  ;;  %v294_v21 = vld [vmem:[%s2482_s7 + $0x3a8] sm:$0xff]  ;;  %v296_v22 = vld [vmem:[%s2482_s7 + $0x3b8] sm:$0xff] }
  0xa4   : > { %885 = vmatprep.mubr.f32.mxu0 %v250_v23  ;;  %2042 = vmatprep.mubr.msk.f32.mxu1 %vm460_vm0, %v203_v24  ;;  %v298_v23 = vld [vmem:[%s2482_s7 + $0x3c8] sm:$0xff]  ;;  %v299_v24 = vld [vmem:[%s2482_s7 + $0x3d0] sm:$0xff] }
  0xa7   : > { %886 = vmatmul.mubr.f32.gmra.mrb[48].mxu0 %v249_v25  ;;  %2043 = vmatmul.mubr.msk.f32.gmra.mrb[48].mxu1 %vm460_vm0, %v206_v26  ;;  %v297_v25 = vld [vmem:[%s2482_s7 + $0x3c0] sm:$0xff]  ;;  %v302_v26 = vld [vmem:[%s2482_s7 + $0x3e8] sm:$0xff] }
  0xa8   : > { %890 = vmatprep.mubr.f32.mxu0 %v253_v27  ;;  %2045 = vmatprep.mubr.msk.f32.mxu1 %vm460_vm0, %v209_v28  ;;  %v301_v27 = vld [vmem:[%s2482_s7 + $0x3e0] sm:$0xff] }
  0xa9   : > { %v305_v28 = vld [vmem:[%s2482_s7 + $0x400] sm:$0xff] }
  0xab   : > { %891 = vmatmul.mubr.f32.gmra.mrb[50].mxu0 %v252_v29  ;;  %2046 = vmatmul.mubr.msk.f32.gmra.mrb[50].mxu1 %vm460_vm0, %v212_v30  ;;  %v300_v29 = vld [vmem:[%s2482_s7 + $0x3d8] sm:$0xff] }
  0xac   : > { %895 = vmatprep.mubr.f32.mxu0 %v256_v31  ;;  %2048 = vmatprep.mubr.msk.f32.mxu1 %vm460_vm0, %v215_v32  ;;  %v308_v30 = vld [vmem:[%s2482_s7 + $0x418] sm:$0xff]  ;;  %v311_v32 = vld [vmem:[%s2482_s7 + $0x430] sm:$0xff] }
  0xad   : > { %v304_v31 = vld [vmem:[%s2482_s7 + $0x3f8] sm:$0xff] }
  0xaf   : > { %896 = vmatmul.mubr.f32.gmra.mrb[52].mxu0 %v255_v33  ;;  %2049 = vmatmul.mubr.msk.f32.gmra.mrb[52].mxu1 %vm460_vm0, %v218_v34  ;;  %v303_v33 = vld [vmem:[%s2482_s7 + $0x3f0] sm:$0xff]  ;;  %v314_v34 = vld [vmem:[%s2482_s7 + $0x448] sm:$0xff] }
  0xb0   : > { %900 = vmatprep.mubr.f32.mxu0 %v259_v35  ;;  %2051 = vmatprep.mubr.msk.f32.mxu1 %vm460_vm0, %v221_v36  ;;  %v307_v35 = vld [vmem:[%s2482_s7 + $0x410] sm:$0xff]  ;;  %v317_v36 = vld [vmem:[%s2482_s7 + $0x460] sm:$0xff] }
  0xb3   : > { %901 = vmatmul.mubr.f32.gmra.mrb[54].mxu0 %v258_v37  ;;  %2052 = vmatmul.mubr.msk.f32.gmra.mrb[54].mxu1 %vm460_vm0, %v224_v38  ;;  %v306_v37 = vld [vmem:[%s2482_s7 + $0x408] sm:$0xff]  ;;  %v320_v38 = vld [vmem:[%s2482_s7 + $0x478] sm:$0xff] }
  0xb4   : > { %905 = vmatprep.mubr.f32.mxu0 %v262_v39  ;;  %2054 = vmatprep.mubr.msk.f32.mxu1 %vm460_vm0, %v227_v40  ;;  %v310_v39 = vld [vmem:[%s2482_s7 + $0x428] sm:$0xff]  ;;  %v323_v40 = vld [vmem:[%s2482_s7 + $0x490] sm:$0xff] }
  0xb7   : > { %906 = vmatmul.mubr.f32.gmra.mrb[56].mxu0 %v261_v41  ;;  %2055 = vmatmul.mubr.msk.f32.gmra.mrb[56].mxu1 %vm460_vm0, %v230_v42  ;;  %v309_v41 = vld [vmem:[%s2482_s7 + $0x420] sm:$0xff]  ;;  %v326_v42 = vld [vmem:[%s2482_s7 + $0x4a8] sm:$0xff] }
  0xb8   : > { %910 = vmatprep.mubr.f32.mxu0 %v265_v43  ;;  %2057 = vmatprep.mubr.msk.f32.mxu1 %vm460_vm0, %v233_v44  ;;  %v313_v43 = vld [vmem:[%s2482_s7 + $0x440] sm:$0xff] }
  0xb9   : > { %v329_v44 = vld [vmem:[%s2482_s7 + $0x4c0] sm:$0xff] }
  0xbb   : > { %911 = vmatmul.mubr.f32.gmra.mrb[58].mxu0 %v264_v45  ;;  %2058 = vmatmul.mubr.msk.f32.gmra.mrb[58].mxu1 %vm460_vm0, %v236_v46  ;;  %v312_v45 = vld [vmem:[%s2482_s7 + $0x438] sm:$0xff] }
  0xbc   : > { %915 = vmatprep.mubr.f32.mxu0 %v268_v47  ;;  %2060 = vmatprep.mubr.msk.f32.mxu1 %vm460_vm0, %v239_v48  ;;  %v332_v46 = vld [vmem:[%s2482_s7 + $0x4d8] sm:$0xff]  ;;  %v335_v48 = vld [vmem:[%s2482_s7 + $0x4f0] sm:$0xff] }
  0xbd   : > { %v316_v47 = vld [vmem:[%s2482_s7 + $0x458] sm:$0xff] }
  0xbf   : > { %916 = vmatmul.mubr.f32.gmra.mrb[60].mxu0 %v267_v49  ;;  %2061 = vmatmul.mubr.msk.f32.gmra.mrb[60].mxu1 %vm460_vm0, %v242_v50  ;;  %v315_v49 = vld [vmem:[%s2482_s7 + $0x450] sm:$0xff]  ;;  %v338_v50 = vld [vmem:[%s2482_s7 + $0x508] sm:$0xff] }
  0xc0   : > { %920 = vmatprep.mubr.f32.mxu0 %v271_v51  ;;  %2063 = vmatprep.mubr.msk.f32.mxu1 %vm460_vm0, %v245_v52  ;;  %v319_v51 = vld [vmem:[%s2482_s7 + $0x470] sm:$0xff]  ;;  %v341_v52 = vld [vmem:[%s2482_s7 + $0x520] sm:$0xff] }
  0xc3   : > { %921 = vmatmul.mubr.f32.gmra.mrb[62].mxu0 %v270_v53  ;;  %2064 = vmatmul.mubr.msk.f32.gmra.mrb[62].mxu1 %vm460_vm0, %v248_v54  ;;  %v318_v53 = vld [vmem:[%s2482_s7 + $0x468] sm:$0xff]  ;;  %v344_v54 = vld [vmem:[%s2482_s7 + $0x538] sm:$0xff] }
  0xc4   : > { %925 = vmatprep.mubr.f32.mxu0 %v274_v55  ;;  %2066 = vmatprep.mubr.msk.f32.mxu1 %vm460_vm0, %v251_v56  ;;  %v322_v55 = vld [vmem:[%s2482_s7 + $0x488] sm:$0xff]  ;;  %v347_v56 = vld [vmem:[%s2482_s7 + $0x550] sm:$0xff] }
  0xc7   : > { %926 = vmatmul.mubr.f32.gmra.mrb[64].mxu0 %v273_v57  ;;  %2067 = vmatmul.mubr.msk.f32.gmra.mrb[64].mxu1 %vm460_vm0, %v254_v58  ;;  %v321_v57 = vld [vmem:[%s2482_s7 + $0x480] sm:$0xff]  ;;  %v350_v58 = vld [vmem:[%s2482_s7 + $0x568] sm:$0xff] }
  0xc8   : > { %930 = vmatprep.mubr.f32.mxu0 %v277_v59  ;;  %2069 = vmatprep.mubr.msk.f32.mxu1 %vm460_vm0, %v257_v60  ;;  %v325_v59 = vld [vmem:[%s2482_s7 + $0x4a0] sm:$0xff] }
  0xc9   : > { %v353_v60 = vld [vmem:[%s2482_s7 + $0x580] sm:$0xff] }
  0xcb   : > { %931 = vmatmul.mubr.f32.gmra.mrb[66].mxu0 %v276_v61  ;;  %2070 = vmatmul.mubr.msk.f32.gmra.mrb[66].mxu1 %vm460_vm0, %v260_v62  ;;  %v324_v61 = vld [vmem:[%s2482_s7 + $0x498] sm:$0xff] }
  0xcc   : > { %935 = vmatprep.mubr.f32.mxu0 %v280_v63  ;;  %2072 = vmatprep.mubr.msk.f32.mxu1 %vm460_vm0, %v263_v0  ;;  %v356_v62 = vld [vmem:[%s2482_s7 + $0x598] sm:$0xff]  ;;  %v359_v0 = vld [vmem:[%s2482_s7 + $0x5b0] sm:$0xff] }
  0xcd   : > { %v328_v63 = vld [vmem:[%s2482_s7 + $0x4b8] sm:$0xff] }
  0xcf   : > { %936 = vmatmul.mubr.f32.gmra.mrb[68].mxu0 %v279_v1  ;;  %2073 = vmatmul.mubr.msk.f32.gmra.mrb[68].mxu1 %vm460_vm0, %v266_v2  ;;  %v327_v1 = vld [vmem:[%s2482_s7 + $0x4b0] sm:$0xff]  ;;  %v362_v2 = vld [vmem:[%s2482_s7 + $0x5c8] sm:$0xff] }
  0xd0   : > { %940 = vmatprep.mubr.f32.mxu0 %v283_v3  ;;  %2075 = vmatprep.mubr.msk.f32.mxu1 %vm460_vm0, %v269_v4  ;;  %v331_v3 = vld [vmem:[%s2482_s7 + $0x4d0] sm:$0xff]  ;;  %v365_v4 = vld [vmem:[%s2482_s7 + $0x5e0] sm:$0xff] }
  0xd3   : > { %941 = vmatmul.mubr.f32.gmra.mrb[70].mxu0 %v282_v5  ;;  %2076 = vmatmul.mubr.msk.f32.gmra.mrb[70].mxu1 %vm460_vm0, %v272_v6  ;;  %v330_v5 = vld [vmem:[%s2482_s7 + $0x4c8] sm:$0xff]  ;;  %v368_v6 = vld [vmem:[%s2482_s7 + $0x5f8] sm:$0xff] }
  0xd4   : > { %945 = vmatprep.mubr.f32.mxu0 %v286_v7  ;;  %2078 = vmatprep.mubr.msk.f32.mxu1 %vm460_vm0, %v275_v8  ;;  %v334_v7 = vld [vmem:[%s2482_s7 + $0x4e8] sm:$0xff]  ;;  %v371_v8 = vld [vmem:[%s2482_s7 + $0x610] sm:$0xff] }
  0xd7   : > { %946 = vmatmul.mubr.f32.gmra.mrb[72].mxu0 %v285_v9  ;;  %2079 = vmatmul.mubr.msk.f32.gmra.mrb[72].mxu1 %vm460_vm0, %v278_v10  ;;  %v333_v9 = vld [vmem:[%s2482_s7 + $0x4e0] sm:$0xff]  ;;  %v374_v10 = vld [vmem:[%s2482_s7 + $0x628] sm:$0xff] }
  0xd8   : > { %950 = vmatprep.mubr.f32.mxu0 %v289_v11  ;;  %2081 = vmatprep.mubr.msk.f32.mxu1 %vm460_vm0, %v281_v12  ;;  %v337_v11 = vld [vmem:[%s2482_s7 + $0x500] sm:$0xff] }
  0xd9   : > { %v377_v12 = vld [vmem:[%s2482_s7 + $0x640] sm:$0xff] }
  0xdb   : > { %951 = vmatmul.mubr.f32.gmra.mrb[74].mxu0 %v288_v13  ;;  %2082 = vmatmul.mubr.msk.f32.gmra.mrb[74].mxu1 %vm460_vm0, %v284_v14  ;;  %v336_v13 = vld [vmem:[%s2482_s7 + $0x4f8] sm:$0xff] }
  0xdc   : > { %955 = vmatprep.mubr.f32.mxu0 %v292_v15  ;;  %2084 = vmatprep.mubr.msk.f32.mxu1 %vm460_vm0, %v287_v16  ;;  %v380_v14 = vld [vmem:[%s2482_s7 + $0x658] sm:$0xff]  ;;  %v383_v16 = vld [vmem:[%s2482_s7 + $0x670] sm:$0xff] }
  0xdd   : > { %v340_v15 = vld [vmem:[%s2482_s7 + $0x518] sm:$0xff] }
  0xdf   : > { %956 = vmatmul.mubr.f32.gmra.mrb[76].mxu0 %v291_v17  ;;  %2085 = vmatmul.mubr.msk.f32.gmra.mrb[76].mxu1 %vm460_vm0, %v290_v18 }
  0xe0   : > { %960 = vmatprep.mubr.f32.mxu0 %v295_v19  ;;  %2087 = vmatprep.mubr.msk.f32.mxu1 %vm460_vm0, %v293_v20 }
  0xe3   : > { %961 = vmatmul.mubr.f32.gmra.mrb[78].mxu0 %v294_v21  ;;  %2088 = vmatmul.mubr.msk.f32.gmra.mrb[78].mxu1 %vm460_vm0, %v296_v22  ;;  %v339_v21 = vld [vmem:[%s2482_s7 + $0x510] sm:$0xff]  ;;  %v386_v22 = vld [vmem:[%s2482_s7 + $0x688] sm:$0xff] }
  0xe4   : > { %965 = vmatprep.mubr.f32.mxu0 %v298_v23  ;;  %2090 = vmatprep.mubr.msk.f32.mxu1 %vm460_vm0, %v299_v24  ;;  %v343_v23 = vld [vmem:[%s2482_s7 + $0x530] sm:$0xff]  ;;  %v389_v24 = vld [vmem:[%s2482_s7 + $0x6a0] sm:$0xff] }
  0xe7   : > { %966 = vmatmul.mubr.f32.gmra.mrb[80].mxu0 %v297_v25  ;;  %2091 = vmatmul.mubr.msk.f32.gmra.mrb[80].mxu1 %vm460_vm0, %v302_v26 }
  0xe8   : > { %970 = vmatprep.mubr.f32.mxu0 %v301_v27  ;;  %2093 = vmatprep.mubr.msk.f32.mxu1 %vm460_vm0, %v305_v28 }
  0xeb   : > { %971 = vmatmul.mubr.f32.gmra.mrb[82].mxu0 %v300_v29  ;;  %2094 = vmatmul.mubr.msk.f32.gmra.mrb[82].mxu1 %vm460_vm0, %v308_v30  ;;  %v342_v29 = vld [vmem:[%s2482_s7 + $0x528] sm:$0xff]  ;;  %v392_v30 = vld [vmem:[%s2482_s7 + $0x6b8] sm:$0xff] }
  0xec   : > { %975 = vmatprep.mubr.f32.mxu0 %v304_v31  ;;  %2096 = vmatprep.mubr.msk.f32.mxu1 %vm460_vm0, %v311_v32  ;;  %v346_v31 = vld [vmem:[%s2482_s7 + $0x548] sm:$0xff]  ;;  %v395_v32 = vld [vmem:[%s2482_s7 + $0x6d0] sm:$0xff] }
  0xef   : > { %976 = vmatmul.mubr.f32.gmra.mrb[84].mxu0 %v303_v33  ;;  %2097 = vmatmul.mubr.msk.f32.gmra.mrb[84].mxu1 %vm460_vm0, %v314_v34 }
  0xf0   : > { %980 = vmatprep.mubr.f32.mxu0 %v307_v35  ;;  %2099 = vmatprep.mubr.msk.f32.mxu1 %vm460_vm0, %v317_v36 }
  0xf3   : > { %981 = vmatmul.mubr.f32.gmra.mrb[86].mxu0 %v306_v37  ;;  %2100 = vmatmul.mubr.msk.f32.gmra.mrb[86].mxu1 %vm460_vm0, %v320_v38  ;;  %v345_v37 = vld [vmem:[%s2482_s7 + $0x540] sm:$0xff]  ;;  %v398_v38 = vld [vmem:[%s2482_s7 + $0x6e8] sm:$0xff] }
  0xf4   : > { %985 = vmatprep.mubr.f32.mxu0 %v310_v39  ;;  %2102 = vmatprep.mubr.msk.f32.mxu1 %vm460_vm0, %v323_v40  ;;  %v349_v39 = vld [vmem:[%s2482_s7 + $0x560] sm:$0xff] }
  0xf5   : > { %v401_v40 = vld [vmem:[%s2482_s7 + $0x700] sm:$0xff] }
  0xf7   : > { %986 = vmatmul.mubr.f32.gmra.mrb[88].mxu0 %v309_v41  ;;  %2103 = vmatmul.mubr.msk.f32.gmra.mrb[88].mxu1 %vm460_vm0, %v326_v42 }
  0xf8   : > { %990 = vmatprep.mubr.f32.mxu0 %v313_v43  ;;  %2105 = vmatprep.mubr.msk.f32.mxu1 %vm460_vm0, %v329_v44 }
  0xfb   : > { %991 = vmatmul.mubr.f32.gmra.mrb[90].mxu0 %v312_v45  ;;  %2106 = vmatmul.mubr.msk.f32.gmra.mrb[90].mxu1 %vm460_vm0, %v332_v46  ;;  %v348_v45 = vld [vmem:[%s2482_s7 + $0x558] sm:$0xff] }
  0xfc   : > { %995 = vmatprep.mubr.f32.mxu0 %v316_v47  ;;  %2108 = vmatprep.mubr.msk.f32.mxu1 %vm460_vm0, %v335_v48  ;;  %v404_v46 = vld [vmem:[%s2482_s7 + $0x718] sm:$0xff]  ;;  %v407_v48 = vld [vmem:[%s2482_s7 + $0x730] sm:$0xff] }
  0xfd   : > { %v352_v47 = vld [vmem:[%s2482_s7 + $0x578] sm:$0xff] }
  0xff   : > { %996 = vmatmul.mubr.f32.gmra.mrb[92].mxu0 %v315_v49  ;;  %2109 = vmatmul.mubr.msk.f32.gmra.mrb[92].mxu1 %vm460_vm0, %v338_v50 }
 0x100   : > { %1000 = vmatprep.mubr.f32.mxu0 %v319_v51  ;;  %2111 = vmatprep.mubr.msk.f32.mxu1 %vm460_vm0, %v341_v52 }
 0x103   : > { %1001 = vmatmul.mubr.f32.gmra.mrb[94].mxu0 %v318_v53  ;;  %2112 = vmatmul.mubr.msk.f32.gmra.mrb[94].mxu1 %vm460_vm0, %v344_v54  ;;  %v351_v53 = vld [vmem:[%s2482_s7 + $0x570] sm:$0xff]  ;;  %v410_v54 = vld [vmem:[%s2482_s7 + $0x748] sm:$0xff] }
 0x104   : > { %1005 = vmatprep.mubr.f32.mxu0 %v322_v55  ;;  %2114 = vmatprep.mubr.msk.f32.mxu1 %vm460_vm0, %v347_v56  ;;  %v355_v55 = vld [vmem:[%s2482_s7 + $0x590] sm:$0xff]  ;;  %v413_v56 = vld [vmem:[%s2482_s7 + $0x760] sm:$0xff] }
 0x107   : > { %1006 = vmatmul.mubr.f32.gmra.mrb[96].mxu0 %v321_v57  ;;  %2115 = vmatmul.mubr.msk.f32.gmra.mrb[96].mxu1 %vm460_vm0, %v350_v58 }
 0x108   : > { %1010 = vmatprep.mubr.f32.mxu0 %v325_v59  ;;  %2117 = vmatprep.mubr.msk.f32.mxu1 %vm460_vm0, %v353_v60 }
 0x10b   : > { %1011 = vmatmul.mubr.f32.gmra.mrb[98].mxu0 %v324_v61  ;;  %2118 = vmatmul.mubr.msk.f32.gmra.mrb[98].mxu1 %vm460_vm0, %v356_v62  ;;  %v354_v61 = vld [vmem:[%s2482_s7 + $0x588] sm:$0xff]  ;;  %v416_v62 = vld [vmem:[%s2482_s7 + $0x778] sm:$0xff] }
 0x10c   : > { %1015 = vmatprep.mubr.f32.mxu0 %v328_v63  ;;  %2120 = vmatprep.mubr.msk.f32.mxu1 %vm460_vm0, %v359_v0 }
 0x10f   : > { %1016 = vmatmul.mubr.f32.gmra.mrb[100].mxu0 %v327_v1  ;;  %2121 = vmatmul.mubr.msk.f32.gmra.mrb[100].mxu1 %vm460_vm0, %v362_v2 }
 0x110   : > { %1020 = vmatprep.mubr.f32.mxu0 %v331_v3  ;;  %2123 = vmatprep.mubr.msk.f32.mxu1 %vm460_vm0, %v365_v4 }
 0x113   : > { %1021 = vmatmul.mubr.f32.gmra.mrb[102].mxu0 %v330_v5  ;;  %2124 = vmatmul.mubr.msk.f32.gmra.mrb[102].mxu1 %vm460_vm0, %v368_v6 }
 0x114   : > { %1025 = vmatprep.mubr.f32.mxu0 %v334_v7  ;;  %2126 = vmatprep.mubr.msk.f32.mxu1 %vm460_vm0, %v371_v8 }
 0x117   : > { %1026 = vmatmul.mubr.f32.gmra.mrb[104].mxu0 %v333_v9  ;;  %2127 = vmatmul.mubr.msk.f32.gmra.mrb[104].mxu1 %vm460_vm0, %v374_v10 }
 0x118   : > { %1030 = vmatprep.mubr.f32.mxu0 %v337_v11  ;;  %2129 = vmatprep.mubr.msk.f32.mxu1 %vm460_vm0, %v377_v12 }
 0x11a   : > { %v2879_v17 = vpop.f32.mrb[0].mxu0  ;;  %v2881_v18 = vpop.f32.mrb[0].mxu1 }
 0x11b   : > { %v769_v19 = vpop.f32.mrb[1].mxu0  ;;  %1031 = vmatmul.mubr.f32.gmra.mrb[106].mxu0 %v336_v13  ;;  %v1069_v20 = vpop.f32.mrb[1].mxu1  ;;  %2130 = vmatmul.mubr.msk.f32.gmra.mrb[106].mxu1 %vm460_vm0, %v380_v14 }
 0x11c   : > { %1035 = vmatprep.mubr.f32.mxu0 %v340_v15  ;;  %2132 = vmatprep.mubr.msk.f32.mxu1 %vm460_vm0, %v383_v16 }
 0x11e   : > { %v2889_v25 = vpop.f32.mrb[2].mxu0  ;;  %v2891_v26 = vpop.f32.mrb[2].mxu1 }
 0x11f   : > { %v774_v27 = vpop.f32.mrb[3].mxu0  ;;  %1036 = vmatmul.mubr.f32.gmra.mrb[108].mxu0 %v339_v21  ;;  %v1074_v28 = vpop.f32.mrb[3].mxu1  ;;  %2133 = vmatmul.mubr.msk.f32.gmra.mrb[108].mxu1 %vm460_vm0, %v386_v22 }
 0x120   : > { %1040 = vmatprep.mubr.f32.mxu0 %v343_v23  ;;  %2135 = vmatprep.mubr.msk.f32.mxu1 %vm460_vm0, %v389_v24 }
 0x122   : > { %v2899_v33 = vpop.f32.mrb[4].mxu0  ;;  %v2901_v34 = vpop.f32.mrb[4].mxu1 }
 0x123   : > { %v779_v35 = vpop.f32.mrb[5].mxu0  ;;  %1041 = vmatmul.mubr.f32.gmra.mrb[110].mxu0 %v342_v29  ;;  %v1079_v36 = vpop.f32.mrb[5].mxu1  ;;  %2136 = vmatmul.mubr.msk.f32.gmra.mrb[110].mxu1 %vm460_vm0, %v392_v30 }
 0x124   : > { %1045 = vmatprep.mubr.f32.mxu0 %v346_v31  ;;  %2138 = vmatprep.mubr.msk.f32.mxu1 %vm460_vm0, %v395_v32 }
 0x126   : > { %v2909_v41 = vpop.f32.mrb[6].mxu0  ;;  %v2911_v42 = vpop.f32.mrb[6].mxu1 }
 0x127   : > { %v784_v43 = vpop.f32.mrb[7].mxu0  ;;  %1046 = vmatmul.mubr.f32.gmra.mrb[112].mxu0 %v345_v37  ;;  %v1084_v44 = vpop.f32.mrb[7].mxu1  ;;  %2139 = vmatmul.mubr.msk.f32.gmra.mrb[112].mxu1 %vm460_vm0, %v398_v38 }
 0x128   : > { %1050 = vmatprep.mubr.f32.mxu0 %v349_v39  ;;  %2141 = vmatprep.mubr.msk.f32.mxu1 %vm460_vm0, %v401_v40 }
 0x12a   : > { %v2919_v49 = vpop.f32.mrb[8].mxu0  ;;  %v2921_v50 = vpop.f32.mrb[8].mxu1 }
 0x12b   : > { %v789_v51 = vpop.f32.mrb[9].mxu0  ;;  %1051 = vmatmul.mubr.f32.gmra.mrb[114].mxu0 %v348_v45  ;;  %v1089_v52 = vpop.f32.mrb[9].mxu1  ;;  %2142 = vmatmul.mubr.msk.f32.gmra.mrb[114].mxu1 %vm460_vm0, %v404_v46 }
 0x12c   : > { %1055 = vmatprep.mubr.f32.mxu0 %v352_v47  ;;  %2144 = vmatprep.mubr.msk.f32.mxu1 %vm460_vm0, %v407_v48 }
 0x12e   : > { %v2929_v57 = vpop.f32.mrb[10].mxu0  ;;  %v2931_v58 = vpop.f32.mrb[10].mxu1 }
 0x12f   : > { %v794_v59 = vpop.f32.mrb[11].mxu0  ;;  %1056 = vmatmul.mubr.f32.gmra.mrb[116].mxu0 %v351_v53  ;;  %v1094_v60 = vpop.f32.mrb[11].mxu1  ;;  %2145 = vmatmul.mubr.msk.f32.gmra.mrb[116].mxu1 %vm460_vm0, %v410_v54 }
 0x130   : > { %1060 = vmatprep.mubr.f32.mxu0 %v355_v55  ;;  %2147 = vmatprep.mubr.msk.f32.mxu1 %vm460_vm0, %v413_v56 }
 0x132   : > { %v2937_v63 = vpop.f32.mrb[12].mxu0  ;;  %v2939_v0 = vpop.f32.mrb[12].mxu1 }
 0x133   : > { %v799_v1 = vpop.f32.mrb[13].mxu0  ;;  %1061 = vmatmul.mubr.f32.gmra.mrb[118].mxu0 %v354_v61  ;;  %v1099_v2 = vpop.f32.mrb[13].mxu1  ;;  %2148 = vmatmul.mubr.msk.f32.gmra.mrb[118].mxu1 %vm460_vm0, %v416_v62 }
 0x136   : > { %v2942_v3 = vpop.f32.mrb[14].mxu0  ;;  %v2944_v4 = vpop.f32.mrb[14].mxu1 }
 0x137   : > { %v804_v5 = vpop.f32.mrb[15].mxu0  ;;  %v1104_v6 = vpop.f32.mrb[15].mxu1 }
 0x138   : > { %v2997_v5 = vld [vmem:[%s3349_s2] ss:$0 sm:$0xff] }
 0x13a   : > { %v2946_v7 = vpop.f32.mrb[16].mxu0  ;;  %v2948_v8 = vpop.f32.mrb[16].mxu1 }
 0x13b   : > { %v809_v9 = vpop.f32.mrb[17].mxu0  ;;  %v1109_v10 = vpop.f32.mrb[17].mxu1 }
 0x13c   : > { %v773_v10 = vadd.f32 %v2997_v5, %v2889_v25 }
 0x13e   : > { %v2950_v11 = vpop.f32.mrb[18].mxu0  ;;  %v2952_v12 = vpop.f32.mrb[18].mxu1 }
 0x13f   : > { %v814_v13 = vpop.f32.mrb[19].mxu0  ;;  %v1114_v14 = vpop.f32.mrb[19].mxu1 }
 0x140   : > { %v768_v13 = vadd.f32 %v2997_v5, %v2879_v17 }
 0x142   : > { %v2954_v15 = vpop.f32.mrb[20].mxu0  ;;  %v2956_v16 = vpop.f32.mrb[20].mxu1 }
 0x143   : > { %v819_v19 = vpop.f32.mrb[21].mxu0  ;;  %v1119_v20 = vpop.f32.mrb[21].mxu1 }
 0x146   : > { %v2958_v21 = vpop.f32.mrb[22].mxu0  ;;  %v2960_v22 = vpop.f32.mrb[22].mxu1 }
 0x147   : > { %v824_v23 = vpop.f32.mrb[23].mxu0  ;;  %v1124_v24 = vpop.f32.mrb[23].mxu1 }
 0x14a   : > { %v2962_v27 = vpop.f32.mrb[24].mxu0  ;;  %v2964_v28 = vpop.f32.mrb[24].mxu1 }
 0x14b   : > { %v829_v29 = vpop.f32.mrb[25].mxu0  ;;  %v1129_v30 = vpop.f32.mrb[25].mxu1 }
 0x14c   : > { %v783_v30 = vadd.f32 %v2997_v5, %v2909_v41 }
 0x14e   : > { %v2966_v31 = vpop.f32.mrb[26].mxu0  ;;  %v2968_v32 = vpop.f32.mrb[26].mxu1 }
 0x14f   : > { %v834_v35 = vpop.f32.mrb[27].mxu0  ;;  %v1134_v36 = vpop.f32.mrb[27].mxu1 }
 0x150   : > { %v778_v35 = vadd.f32 %v2997_v5, %v2899_v33 }
 0x152   : > { %v2970_v37 = vpop.f32.mrb[28].mxu0  ;;  %v2972_v38 = vpop.f32.mrb[28].mxu1 }
 0x153   : > { %v839_v39 = vpop.f32.mrb[29].mxu0  ;;  %v1139_v40 = vpop.f32.mrb[29].mxu1 }
 0x156   : > { %v2974_v43 = vpop.f32.mrb[30].mxu0  ;;  %v2976_v44 = vpop.f32.mrb[30].mxu1 }
 0x157   : > { %v844_v45 = vpop.f32.mrb[31].mxu0  ;;  %v1144_v46 = vpop.f32.mrb[31].mxu1 }
 0x158   : > { %v793_v46 = vadd.f32 %v2997_v5, %v2929_v57 }
 0x15a   : > { %v2978_v47 = vpop.f32.mrb[32].mxu0  ;;  %v2980_v48 = vpop.f32.mrb[32].mxu1 }
 0x15b   : > { %v849_v51 = vpop.f32.mrb[33].mxu0  ;;  %v1149_v52 = vpop.f32.mrb[33].mxu1 }
 0x15c   : > { %v788_v51 = vadd.f32 %v2997_v5, %v2919_v49  ;;  %v798_v49 = vadd.f32 %v2997_v5, %v2937_v63  ;;  %v808_v63 = vadd.f32 %v2997_v5, %v2946_v7  ;;  %v818_v7 = vadd.f32 %v2997_v5, %v2954_v15 }
 0x15d   : > { %v828_v15 = vadd.f32 %v2997_v5, %v2962_v27  ;;  %v838_v27 = vadd.f32 %v2997_v5, %v2970_v37  ;;  %v848_v37 = vadd.f32 %v2997_v5, %v2978_v47 }
 0x15e   : > { %v2982_v53 = vpop.f32.mrb[34].mxu0  ;;  %v2984_v54 = vpop.f32.mrb[34].mxu1 }
 0x15f   : > { %v854_v55 = vpop.f32.mrb[35].mxu0  ;;  %v1154_v56 = vpop.f32.mrb[35].mxu1 }
 0x162   : > { %v2986_v59 = vpop.f32.mrb[36].mxu0  ;;  %v2988_v60 = vpop.f32.mrb[36].mxu1 }
 0x163   : > { %v859_v61 = vpop.f32.mrb[37].mxu0  ;;  %v1159_v62 = vpop.f32.mrb[37].mxu1  ;;  %v858_v47 = vadd.f32 %v2997_v5, %v2986_v59 }
 0x164   : > { %v803_v62 = vadd.f32 %v2997_v5, %v2942_v3 }
 0x166   : > { %v2990_v1 = vpop.f32.mrb[38].mxu0  ;;  %v2992_v2 = vpop.f32.mrb[38].mxu1 }
 0x167   : > { %v864_v6 = vpop.f32.mrb[39].mxu0  ;;  %v1164_v9 = vpop.f32.mrb[39].mxu1 }
 0x16a   : > { %v3003_v14 = vpop.f32.mrb[40].mxu0  ;;  %v2032_v19 = vpop.f32.mrb[40].mxu1 }
 0x16b   : > { %v1238_v20 = vadd.f32 %v2032_v19, %v773_v10  ;;  %v869_v23 = vpop.f32.mrb[41].mxu0  ;;  %v1232_v24 = vpop.f32.mrb[41].mxu1  ;;  %v868_v59 = vadd.f32 %v2997_v5, %v3003_v14 }
 0x16c   : > { %v1233_v29 = vadd.f32 %v1232_v24, %v768_v13  ;;  %v813_v23 = vadd.f32 %v2997_v5, %v2950_v11  ;;  %v823_v11 = vadd.f32 %v2997_v5, %v2958_v21  ;;  %v833_v21 = vadd.f32 %v2997_v5, %v2966_v31 }
 0x16d   : > { %2248 = vtanh.f32 %v1238_v20  ;;  %v843_v31 = vadd.f32 %v2997_v5, %v2974_v43  ;;  %v853_v43 = vadd.f32 %v2997_v5, %v2982_v53  ;;  %v863_v53 = vadd.f32 %v2997_v5, %v2990_v1 }
 0x16e   : > { %2250 = vtanh.f32 %v1233_v29  ;;  %v3009_v25 = vpop.f32.mrb[42].mxu0  ;;  %v2035_v36 = vpop.f32.mrb[42].mxu1 }
 0x16f   : > { %v1248_v17 = vadd.f32 %v2035_v36, %v783_v30  ;;  %v874_v39 = vpop.f32.mrb[43].mxu0  ;;  %v1242_v40 = vpop.f32.mrb[43].mxu1  ;;  %v873_v1 = vadd.f32 %v2997_v5, %v3009_v25 }
 0x170   : > { %v1243_v45 = vadd.f32 %v1242_v40, %v778_v35 }
 0x171   : > { %2252 = vtanh.f32 %v1248_v17 }
 0x172   : > { %2254 = vtanh.f32 %v1243_v45  ;;  %v3016_v41 = vpop.f32.mrb[44].mxu0  ;;  %v2038_v33 = vpop.f32.mrb[44].mxu1 }
 0x173   : > { %v1258_v52 = vadd.f32 %v2038_v33, %v793_v46  ;;  %v879_v55 = vpop.f32.mrb[45].mxu0  ;;  %v1252_v56 = vpop.f32.mrb[45].mxu1  ;;  %v878_v14 = vadd.f32 %v2997_v5, %v3016_v41 }
 0x174   : > { %v1253_v61 = vadd.f32 %v1252_v56, %v788_v51 }
 0x175   : > { %2256 = vtanh.f32 %v1258_v52 }
 0x176   : > { %2258 = vtanh.f32 %v1253_v61  ;;  %v3027_v57 = vpop.f32.mrb[46].mxu0  ;;  %v2041_v6 = vpop.f32.mrb[46].mxu1 }
 0x177   : > { %v2249_v9 = vpop.eup %2248  ;;  %v1268_v10 = vadd.f32 %v2041_v6, %v803_v62  ;;  %v884_v13 = vpop.f32.mrb[47].mxu0  ;;  %v883_v25 = vadd.f32 %v2997_v5, %v3027_v57 }
 0x178   : > { %v1262_v3 = vpop.f32.mrb[47].mxu1  ;;  %v2251_v19 = vpop.eup %2250  ;;  %1713 = vst.msk [vmem:[%s3023_s22 + $0x8] sm:$0xff] %vm1711_vm1, %v2249_v9 }
 0x179   : > { %v1263_v20 = vadd.f32 %v1262_v3, %v798_v49  ;;  %1712 = vst.msk [vmem:[%s3023_s22] sm:$0xff] %vm1711_vm1, %v2251_v19  ;;  %2260 = vtanh.f32 %v1268_v10 }
 0x17a   : > { %v3037_v24 = vpop.f32.mrb[48].mxu0  ;;  %v2044_v29 = vpop.f32.mrb[48].mxu1 }
 0x17b   : > { %2262 = vtanh.f32 %v1263_v20  ;;  %v2253_v30 = vpop.eup %2252  ;;  %v1278_v35 = vadd.f32 %v2044_v29, %v813_v23  ;;  %v889_v36 = vpop.f32.mrb[49].mxu0  ;;  %v888_v41 = vadd.f32 %v2997_v5, %v3037_v24 }
 0x17c   : > { %v1272_v17 = vpop.f32.mrb[49].mxu1  ;;  %v2255_v39 = vpop.eup %2254  ;;  %1715 = vst.msk [vmem:[%s3023_s22 + $0x18] sm:$0xff] %vm1711_vm1, %v2253_v30 }
 0x17d   : > { %v1273_v40 = vadd.f32 %v1272_v17, %v808_v63  ;;  %1714 = vst.msk [vmem:[%s3023_s22 + $0x10] sm:$0xff] %vm1711_vm1, %v2255_v39  ;;  %2264 = vtanh.f32 %v1278_v35 }
 0x17e   : > { %v3047_v45 = vpop.f32.mrb[50].mxu0  ;;  %v2047_v46 = vpop.f32.mrb[50].mxu1 }
 0x17f   : > { %2266 = vtanh.f32 %v1273_v40  ;;  %v2257_v51 = vpop.eup %2256  ;;  %v1288_v33 = vadd.f32 %v2047_v46, %v823_v11  ;;  %v894_v52 = vpop.f32.mrb[51].mxu0  ;;  %v893_v57 = vadd.f32 %v2997_v5, %v3047_v45 }
 0x180   : > { %v1282_v55 = vpop.f32.mrb[51].mxu1  ;;  %v2259_v56 = vpop.eup %2258  ;;  %1717 = vst.msk [vmem:[%s3023_s22 + $0x28] sm:$0xff] %vm1711_vm1, %v2257_v51 }
 0x181   : > { %v1283_v61 = vadd.f32 %v1282_v55, %v818_v7  ;;  %1716 = vst.msk [vmem:[%s3023_s22 + $0x20] sm:$0xff] %vm1711_vm1, %v2259_v56  ;;  %2268 = vtanh.f32 %v1288_v33 }
 0x182   : > { %v3057_v62 = vpop.f32.mrb[52].mxu0  ;;  %v2050_v49 = vpop.f32.mrb[52].mxu1 }
 0x183   : > { %2270 = vtanh.f32 %v1283_v61  ;;  %v2261_v6 = vpop.eup %2260  ;;  %v1298_v9 = vadd.f32 %v2050_v49, %v833_v21  ;;  %v899_v10 = vpop.f32.mrb[53].mxu0  ;;  %v898_v24 = vadd.f32 %v2997_v5, %v3057_v62 }
 0x184   : > { %v1292_v13 = vpop.f32.mrb[53].mxu1  ;;  %1719 = vst.msk [vmem:[%s3023_s22 + $0x38] sm:$0xff] %vm1711_vm1, %v2261_v6 }
 0x185   : > { %v2263_v3 = vpop.eup %2262  ;;  %v1293_v19 = vadd.f32 %v1292_v13, %v828_v15  ;;  %2272 = vtanh.f32 %v1298_v9 }
 0x186   : > { %1718 = vst.msk [vmem:[%s3023_s22 + $0x30] sm:$0xff] %vm1711_vm1, %v2263_v3  ;;  %v3067_v20 = vpop.f32.mrb[54].mxu0  ;;  %v2053_v23 = vpop.f32.mrb[54].mxu1 }
 0x187   : > { %2274 = vtanh.f32 %v1293_v19  ;;  %v2265_v63 = vpop.eup %2264  ;;  %v1308_v29 = vadd.f32 %v2053_v23, %v843_v31  ;;  %v904_v30 = vpop.f32.mrb[55].mxu0  ;;  %v903_v45 = vadd.f32 %v2997_v5, %v3067_v20 }
 0x188   : > { %v1302_v35 = vpop.f32.mrb[55].mxu1  ;;  %1721 = vst.msk [vmem:[%s3023_s22 + $0x48] sm:$0xff] %vm1711_vm1, %v2265_v63 }
 0x189   : > { %v2267_v36 = vpop.eup %2266  ;;  %v1303_v17 = vadd.f32 %v1302_v35, %v838_v27  ;;  %2276 = vtanh.f32 %v1308_v29 }
 0x18a   : > { %1720 = vst.msk [vmem:[%s3023_s22 + $0x40] sm:$0xff] %vm1711_vm1, %v2267_v36  ;;  %v3077_v39 = vpop.f32.mrb[56].mxu0  ;;  %v2056_v40 = vpop.f32.mrb[56].mxu1 }
 0x18b   : > { %2278 = vtanh.f32 %v1303_v17  ;;  %v2269_v11 = vpop.eup %2268  ;;  %v1318_v7 = vadd.f32 %v2056_v40, %v853_v43  ;;  %v909_v46 = vpop.f32.mrb[57].mxu0  ;;  %v908_v62 = vadd.f32 %v2997_v5, %v3077_v39 }
 0x18c   : > { %v1312_v51 = vpop.f32.mrb[57].mxu1  ;;  %1723 = vst.msk [vmem:[%s3023_s22 + $0x58] sm:$0xff] %vm1711_vm1, %v2269_v11 }
 0x18d   : > { %v2271_v33 = vpop.eup %2270  ;;  %v1313_v52 = vadd.f32 %v1312_v51, %v848_v37  ;;  %2280 = vtanh.f32 %v1318_v7 }
 0x18e   : > { %1722 = vst.msk [vmem:[%s3023_s22 + $0x50] sm:$0xff] %vm1711_vm1, %v2271_v33  ;;  %v3087_v55 = vpop.f32.mrb[58].mxu0  ;;  %v2059_v56 = vpop.f32.mrb[58].mxu1 }
 0x18f   : > { %2282 = vtanh.f32 %v1313_v52  ;;  %v2273_v61 = vpop.eup %2272  ;;  %v1328_v21 = vadd.f32 %v2059_v56, %v863_v53  ;;  %v914_v15 = vpop.f32.mrb[59].mxu0  ;;  %v913_v20 = vadd.f32 %v2997_v5, %v3087_v55 }
 0x190   : > { %v1322_v49 = vpop.f32.mrb[59].mxu1  ;;  %1725 = vst.msk [vmem:[%s3023_s22 + $0x68] sm:$0xff] %vm1711_vm1, %v2273_v61 }
 0x191   : > { %v2275_v6 = vpop.eup %2274  ;;  %v1323_v9 = vadd.f32 %v1322_v49, %v858_v47  ;;  %2284 = vtanh.f32 %v1328_v21 }
 0x192   : > { %1724 = vst.msk [vmem:[%s3023_s22 + $0x60] sm:$0xff] %vm1711_vm1, %v2275_v6  ;;  %v3097_v10 = vpop.f32.mrb[60].mxu0  ;;  %v2062_v13 = vpop.f32.mrb[60].mxu1 }
 0x193   : > { %2286 = vtanh.f32 %v1323_v9  ;;  %v2277_v3 = vpop.eup %2276  ;;  %v1338_v19 = vadd.f32 %v2062_v13, %v873_v1  ;;  %v919_v31 = vpop.f32.mrb[61].mxu0  ;;  %v918_v39 = vadd.f32 %v2997_v5, %v3097_v10 }
 0x194   : > { %v1332_v27 = vpop.f32.mrb[61].mxu1  ;;  %1727 = vst.msk [vmem:[%s3023_s22 + $0x78] sm:$0xff] %vm1711_vm1, %v2277_v3 }
 0x195   : > { %v2279_v23 = vpop.eup %2278  ;;  %v1333_v63 = vadd.f32 %v1332_v27, %v868_v59  ;;  %2288 = vtanh.f32 %v1338_v19 }
 0x196   : > { %1726 = vst.msk [vmem:[%s3023_s22 + $0x70] sm:$0xff] %vm1711_vm1, %v2279_v23  ;;  %v922_v29 = vpop.f32.mrb[62].mxu0  ;;  %v2065_v30 = vpop.f32.mrb[62].mxu1 }
 0x197   : > { %2290 = vtanh.f32 %v1333_v63  ;;  %v2281_v35 = vpop.eup %2280  ;;  %v1348_v36 = vadd.f32 %v2065_v30, %v883_v25  ;;  %v924_v17 = vpop.f32.mrb[63].mxu0  ;;  %v923_v55 = vadd.f32 %v2997_v5, %v922_v29 }
 0x198   : > { %v1342_v43 = vpop.f32.mrb[63].mxu1  ;;  %1729 = vst.msk [vmem:[%s3023_s22 + $0x88] sm:$0xff] %vm1711_vm1, %v2281_v35 }
 0x199   : > { %v2283_v37 = vpop.eup %2282  ;;  %v1343_v40 = vadd.f32 %v1342_v43, %v878_v14  ;;  %2292 = vtanh.f32 %v1348_v36 }
 0x19a   : > { %1728 = vst.msk [vmem:[%s3023_s22 + $0x80] sm:$0xff] %vm1711_vm1, %v2283_v37  ;;  %v927_v11 = vpop.f32.mrb[64].mxu0  ;;  %v2068_v7 = vpop.f32.mrb[64].mxu1 }
 0x19b   : > { %2294 = vtanh.f32 %v1343_v40  ;;  %v2285_v46 = vpop.eup %2284  ;;  %v1358_v51 = vadd.f32 %v2068_v7, %v893_v57  ;;  %v929_v33 = vpop.f32.mrb[65].mxu0  ;;  %v928_v10 = vadd.f32 %v2997_v5, %v927_v11 }
 0x19c   : > { %v1352_v52 = vpop.f32.mrb[65].mxu1  ;;  %1731 = vst.msk [vmem:[%s3023_s22 + $0x98] sm:$0xff] %vm1711_vm1, %v2285_v46 }
 0x19d   : > { %v2287_v53 = vpop.eup %2286  ;;  %v1353_v47 = vadd.f32 %v1352_v52, %v888_v41  ;;  %2296 = vtanh.f32 %v1358_v51 }
 0x19e   : > { %1730 = vst.msk [vmem:[%s3023_s22 + $0x90] sm:$0xff] %vm1711_vm1, %v2287_v53  ;;  %v932_v56 = vpop.f32.mrb[66].mxu0  ;;  %v2071_v61 = vpop.f32.mrb[66].mxu1 }
 0x19f   : > { %2298 = vtanh.f32 %v1353_v47  ;;  %v2289_v21 = vpop.eup %2288  ;;  %v1368_v15 = vadd.f32 %v2071_v61, %v903_v45  ;;  %v934_v49 = vpop.f32.mrb[67].mxu0  ;;  %v933_v29 = vadd.f32 %v2997_v5, %v932_v56 }
 0x1a0   : > { %v1362_v6 = vpop.f32.mrb[67].mxu1  ;;  %1733 = vst.msk [vmem:[%s3023_s22 + $0xa8] sm:$0xff] %vm1711_vm1, %v2289_v21 }
 0x1a1   : > { %v2291_v9 = vpop.eup %2290  ;;  %v1363_v1 = vadd.f32 %v1362_v6, %v898_v24  ;;  %2300 = vtanh.f32 %v1368_v15 }
 0x1a2   : > { %1732 = vst.msk [vmem:[%s3023_s22 + $0xa0] sm:$0xff] %vm1711_vm1, %v2291_v9  ;;  %v937_v59 = vpop.f32.mrb[68].mxu0  ;;  %v2074_v13 = vpop.f32.mrb[68].mxu1 }
 0x1a3   : > { %2302 = vtanh.f32 %v1363_v1  ;;  %v2293_v3 = vpop.eup %2292  ;;  %v1378_v19 = vadd.f32 %v2074_v13, %v913_v20  ;;  %v939_v31 = vpop.f32.mrb[69].mxu0  ;;  %v938_v11 = vadd.f32 %v2997_v5, %v937_v59 }
 0x1a4   : > { %v1372_v27 = vpop.f32.mrb[69].mxu1  ;;  %1735 = vst.msk [vmem:[%s3023_s22 + $0xb8] sm:$0xff] %vm1711_vm1, %v2293_v3 }
 0x1a5   : > { %v2295_v23 = vpop.eup %2294  ;;  %v1373_v63 = vadd.f32 %v1372_v27, %v908_v62  ;;  %2304 = vtanh.f32 %v1378_v19 }
 0x1a6   : > { %1734 = vst.msk [vmem:[%s3023_s22 + $0xb0] sm:$0xff] %vm1711_vm1, %v2295_v23  ;;  %v942_v25 = vpop.f32.mrb[70].mxu0  ;;  %v2077_v14 = vpop.f32.mrb[70].mxu1 }
 0x1a7   : > { %2306 = vtanh.f32 %v1373_v63  ;;  %v2297_v30 = vpop.eup %2296  ;;  %v1388_v35 = vadd.f32 %v2077_v14, %v923_v55  ;;  %v944_v36 = vpop.f32.mrb[71].mxu0  ;;  %v943_v53 = vadd.f32 %v2997_v5, %v942_v25 }
 0x1a8   : > { %v1382_v17 = vpop.f32.mrb[71].mxu1  ;;  %1737 = vst.msk [vmem:[%s3023_s22 + $0xc8] sm:$0xff] %vm1711_vm1, %v2297_v30 }
 0x1a9   : > { %v2299_v43 = vpop.eup %2298  ;;  %v1383_v37 = vadd.f32 %v1382_v17, %v918_v39  ;;  %2308 = vtanh.f32 %v1388_v35 }
 0x1aa   : > { %1736 = vst.msk [vmem:[%s3023_s22 + $0xc0] sm:$0xff] %vm1711_vm1, %v2299_v43  ;;  %v947_v40 = vpop.f32.mrb[72].mxu0  ;;  %v2080_v57 = vpop.f32.mrb[72].mxu1 }
 0x1ab   : > { %2310 = vtanh.f32 %v1383_v37  ;;  %v2301_v41 = vpop.eup %2300  ;;  %v1398_v7 = vadd.f32 %v2080_v57, %v933_v29  ;;  %v949_v46 = vpop.f32.mrb[73].mxu0  ;;  %v948_v9 = vadd.f32 %v2997_v5, %v947_v40 }
 0x1ac   : > { %v1392_v51 = vpop.f32.mrb[73].mxu1  ;;  %1739 = vst.msk [vmem:[%s3023_s22 + $0xd8] sm:$0xff] %vm1711_vm1, %v2301_v41 }
 0x1ad   : > { %v2303_v33 = vpop.eup %2302  ;;  %v1393_v52 = vadd.f32 %v1392_v51, %v928_v10  ;;  %2312 = vtanh.f32 %v1398_v7 }
 0x1ae   : > { %1738 = vst.msk [vmem:[%s3023_s22 + $0xd0] sm:$0xff] %vm1711_vm1, %v2303_v33  ;;  %v952_v47 = vpop.f32.mrb[74].mxu0  ;;  %v2083_v45 = vpop.f32.mrb[74].mxu1 }
 0x1af   : > { %2314 = vtanh.f32 %v1393_v52  ;;  %v2305_v24 = vpop.eup %2304  ;;  %v1408_v56 = vadd.f32 %v2083_v45, %v943_v53  ;;  %v954_v61 = vpop.f32.mrb[75].mxu0  ;;  %v953_v6 = vadd.f32 %v2997_v5, %v952_v47 }
 0x1b0   : > { %v1402_v21 = vpop.f32.mrb[75].mxu1  ;;  %1741 = vst.msk [vmem:[%s3023_s22 + $0xe8] sm:$0xff] %vm1711_vm1, %v2305_v24 }
 0x1b1   : > { %v2307_v15 = vpop.eup %2306  ;;  %v1403_v49 = vadd.f32 %v1402_v21, %v938_v11  ;;  %2316 = vtanh.f32 %v1408_v56 }
 0x1b2   : > { %1740 = vst.msk [vmem:[%s3023_s22 + $0xe0] sm:$0xff] %vm1711_vm1, %v2307_v15  ;;  %v957_v1 = vpop.f32.mrb[76].mxu0  ;;  %v2086_v20 = vpop.f32.mrb[76].mxu1 }
 0x1b3   : > { %2318 = vtanh.f32 %v1403_v49  ;;  %v2309_v62 = vpop.eup %2308  ;;  %v1418_v59 = vadd.f32 %v2086_v20, %v953_v6  ;;  %v959_v13 = vpop.f32.mrb[77].mxu0  ;;  %v958_v27 = vadd.f32 %v2997_v5, %v957_v1 }
 0x1b4   : > { %v1412_v3 = vpop.f32.mrb[77].mxu1  ;;  %1743 = vst.msk [vmem:[%s3023_s22 + $0xf8] sm:$0xff] %vm1711_vm1, %v2309_v62 }
 0x1b5   : > { %v2311_v19 = vpop.eup %2310  ;;  %v1413_v31 = vadd.f32 %v1412_v3, %v948_v9  ;;  %2320 = vtanh.f32 %v1418_v59 }
 0x1b6   : > { %1742 = vst.msk [vmem:[%s3023_s22 + $0xf0] sm:$0xff] %vm1711_vm1, %v2311_v19  ;;  %v962_v23 = vpop.f32.mrb[78].mxu0  ;;  %v2089_v63 = vpop.f32.mrb[78].mxu1 }
 0x1b7   : > { %2322 = vtanh.f32 %v1413_v31  ;;  %v2313_v55 = vpop.eup %2312  ;;  %v963_v39 = vadd.f32 %v2997_v5, %v962_v23  ;;  %v964_v25 = vpop.f32.mrb[79].mxu0 }
 0x1b8   : > { %v1422_v14 = vpop.f32.mrb[79].mxu1  ;;  %1745 = vst.msk [vmem:[%s3023_s22 + $0x108] sm:$0xff] %vm1711_vm1, %v2313_v55 }
 0x1b9   : > { %v2315_v30 = vpop.eup %2314  ;;  %v1423_v35 = vadd.f32 %v1422_v14, %v958_v27  ;;  %v1428_v36 = vadd.f32 %v2089_v63, %v963_v39 }
 0x1ba   : > { %1744 = vst.msk [vmem:[%s3023_s22 + $0x100] sm:$0xff] %vm1711_vm1, %v2315_v30  ;;  %v967_v17 = vpop.f32.mrb[80].mxu0  ;;  %v2092_v43 = vpop.f32.mrb[80].mxu1 }
 0x1bb   : > { %2324 = vtanh.f32 %v1423_v35  ;;  %v2317_v37 = vpop.eup %2316  ;;  %v968_v29 = vadd.f32 %v2997_v5, %v967_v17  ;;  %v969_v10 = vpop.f32.mrb[81].mxu0 }
 0x1bc   : > { %2326 = vtanh.f32 %v1428_v36  ;;  %v1432_v40 = vpop.f32.mrb[81].mxu1  ;;  %1747 = vst.msk [vmem:[%s3023_s22 + $0x118] sm:$0xff] %vm1711_vm1, %v2317_v37 }
 0x1bd   : > { %v2319_v57 = vpop.eup %2318  ;;  %v1433_v41 = vadd.f32 %v1432_v40, %v968_v29 }
 0x1be   : > { %1746 = vst.msk [vmem:[%s3023_s22 + $0x110] sm:$0xff] %vm1711_vm1, %v2319_v57  ;;  %v972_v7 = vpop.f32.mrb[82].mxu0  ;;  %v2095_v46 = vpop.f32.mrb[82].mxu1 }
 0x1bf   : > { %v2321_v51 = vpop.eup %2320  ;;  %2328 = vtanh.f32 %v1433_v41  ;;  %v973_v33 = vadd.f32 %v2997_v5, %v972_v7  ;;  %v974_v52 = vpop.f32.mrb[83].mxu0 }
 0x1c0   : > { %v1442_v53 = vpop.f32.mrb[83].mxu1  ;;  %1749 = vst.msk [vmem:[%s3023_s22 + $0x128] sm:$0xff] %vm1711_vm1, %v2321_v51 }
 0x1c1   : > { %v2323_v11 = vpop.eup %2322  ;;  %v1438_v47 = vadd.f32 %v2092_v43, %v973_v33 }
 0x1c2   : > { %1748 = vst.msk [vmem:[%s3023_s22 + $0x120] sm:$0xff] %vm1711_vm1, %v2323_v11  ;;  %v977_v45 = vpop.f32.mrb[84].mxu0  ;;  %v2098_v24 = vpop.f32.mrb[84].mxu1 }
 0x1c3   : > { %2330 = vtanh.f32 %v1438_v47  ;;  %v978_v56 = vadd.f32 %v2997_v5, %v977_v45  ;;  %v979_v61 = vpop.f32.mrb[85].mxu0  ;;  %v1452_v21 = vpop.f32.mrb[85].mxu1 }
 0x1c5   : > { %v2325_v15 = vpop.eup %2324  ;;  %v1443_v6 = vadd.f32 %v1442_v53, %v978_v56 }
 0x1c6   : > { %v2327_v49 = vpop.eup %2326  ;;  %1750 = vst.msk [vmem:[%s3023_s22 + $0x130] sm:$0xff] %vm1711_vm1, %v2325_v15  ;;  %v982_v9 = vpop.f32.mrb[86].mxu0 }
 0x1c7   : > { %1751 = vst.msk [vmem:[%s3023_s22 + $0x138] sm:$0xff] %vm1711_vm1, %v2327_v49  ;;  %v2101_v1 = vpop.f32.mrb[86].mxu1  ;;  %2332 = vtanh.f32 %v1443_v6  ;;  %v983_v20 = vadd.f32 %v2997_v5, %v982_v9  ;;  %v984_v62 = vpop.f32.mrb[87].mxu0 }
 0x1c8   : > { %v1462_v59 = vpop.f32.mrb[87].mxu1 }
 0x1c9   : > { %v2329_v13 = vpop.eup %2328  ;;  %v1448_v3 = vadd.f32 %v2095_v46, %v983_v20 }
 0x1ca   : > { %1752 = vst.msk [vmem:[%s3023_s22 + $0x140] sm:$0xff] %vm1711_vm1, %v2329_v13  ;;  %v987_v19 = vpop.f32.mrb[88].mxu0  ;;  %v2104_v31 = vpop.f32.mrb[88].mxu1  ;;  %v1073_v13 = vadd.f32 %v2997_v5, %v2891_v26  ;;  %v1083_v26 = vadd.f32 %v2997_v5, %v2911_v42  ;;  %v1093_v42 = vadd.f32 %v2997_v5, %v2931_v58 }
 0x1cb   : > { %2334 = vtanh.f32 %v1448_v3  ;;  %v988_v27 = vadd.f32 %v2997_v5, %v987_v19  ;;  %v989_v23 = vpop.f32.mrb[89].mxu0  ;;  %v1472_v63 = vpop.f32.mrb[89].mxu1  ;;  %v1068_v19 = vadd.f32 %v2997_v5, %v2881_v18  ;;  %v1078_v18 = vadd.f32 %v2997_v5, %v2901_v34 }
 0x1cc   : > { %v1088_v34 = vadd.f32 %v2997_v5, %v2921_v50 }
 0x1cd   : > { %v2331_v55 = vpop.eup %2330  ;;  %v1453_v39 = vadd.f32 %v1452_v21, %v988_v27 }
 0x1ce   : > { %1753 = vst.msk [vmem:[%s3023_s22 + $0x148] sm:$0xff] %vm1711_vm1, %v2331_v55  ;;  %v992_v25 = vpop.f32.mrb[90].mxu0  ;;  %v3187_v14 = vpop.f32.mrb[90].mxu1 }
 0x1cf   : > { %2336 = vtanh.f32 %v1453_v39  ;;  %v993_v30 = vadd.f32 %v2997_v5, %v992_v25  ;;  %v994_v35 = vpop.f32.mrb[91].mxu0  ;;  %v1482_v36 = vpop.f32.mrb[91].mxu1 }
 0x1d1   : > { %v2333_v17 = vpop.eup %2332  ;;  %v1458_v43 = vadd.f32 %v2098_v24, %v993_v30 }
 0x1d2   : > { %1754 = vst.msk [vmem:[%s3023_s22 + $0x150] sm:$0xff] %vm1711_vm1, %v2333_v17  ;;  %v997_v37 = vpop.f32.mrb[92].mxu0  ;;  %v3192_v29 = vpop.f32.mrb[92].mxu1 }
 0x1d3   : > { %2338 = vtanh.f32 %v1458_v43  ;;  %v998_v10 = vadd.f32 %v2997_v5, %v997_v37  ;;  %v999_v40 = vpop.f32.mrb[93].mxu0  ;;  %v3195_v57 = vpop.f32.mrb[93].mxu1 }
 0x1d5   : > { %v2335_v41 = vpop.eup %2334  ;;  %v1463_v7 = vadd.f32 %v1462_v59, %v998_v10 }
 0x1d6   : > { %1755 = vst.msk [vmem:[%s3023_s22 + $0x158] sm:$0xff] %vm1711_vm1, %v2335_v41  ;;  %v1002_v46 = vpop.f32.mrb[94].mxu0  ;;  %v3199_v51 = vpop.f32.mrb[94].mxu1 }
 0x1d7   : > { %2340 = vtanh.f32 %v1463_v7  ;;  %v1003_v33 = vadd.f32 %v2997_v5, %v1002_v46  ;;  %v1004_v52 = vpop.f32.mrb[95].mxu0  ;;  %v3202_v53 = vpop.f32.mrb[95].mxu1 }
 0x1d9   : > { %v2337_v11 = vpop.eup %2336  ;;  %v1468_v47 = vadd.f32 %v2101_v1, %v1003_v33 }
 0x1da   : > { %1756 = vst.msk [vmem:[%s3023_s22 + $0x160] sm:$0xff] %vm1711_vm1, %v2337_v11  ;;  %v1007_v45 = vpop.f32.mrb[96].mxu0  ;;  %v3206_v24 = vpop.f32.mrb[96].mxu1 }
 0x1db   : > { %2342 = vtanh.f32 %v1468_v47  ;;  %v1008_v56 = vadd.f32 %v2997_v5, %v1007_v45  ;;  %v1009_v61 = vpop.f32.mrb[97].mxu0  ;;  %v3209_v21 = vpop.f32.mrb[97].mxu1 }
 0x1dd   : > { %v2339_v15 = vpop.eup %2338  ;;  %v1473_v49 = vadd.f32 %v1472_v63, %v1008_v56 }
 0x1de   : > { %1757 = vst.msk [vmem:[%s3023_s22 + $0x168] sm:$0xff] %vm1711_vm1, %v2339_v15  ;;  %v1012_v6 = vpop.f32.mrb[98].mxu0  ;;  %v3213_v9 = vpop.f32.mrb[98].mxu1  ;;  %v1098_v15 = vadd.f32 %v2997_v5, %v2939_v0  ;;  %v1113_v0 = vadd.f32 %v2997_v5, %v2952_v12 }
 0x1df   : > { %2344 = vtanh.f32 %v1473_v49  ;;  %v1013_v1 = vadd.f32 %v2997_v5, %v1012_v6  ;;  %v1014_v20 = vpop.f32.mrb[99].mxu0  ;;  %v3216_v62 = vpop.f32.mrb[99].mxu1 }
 0x1e1   : > { %v2341_v59 = vpop.eup %2340  ;;  %v1478_v3 = vadd.f32 %v2104_v31, %v1013_v1 }
 0x1e2   : > { %1758 = vst.msk [vmem:[%s3023_s22 + $0x170] sm:$0xff] %vm1711_vm1, %v2341_v59  ;;  %v1017_v27 = vpop.f32.mrb[100].mxu0  ;;  %v2122_v23 = vpop.f32.mrb[100].mxu1 }
 0x1e3   : > { %2346 = vtanh.f32 %v1478_v3  ;;  %v1018_v63 = vadd.f32 %v2997_v5, %v1017_v27  ;;  %v1538_v55 = vadd.f32 %v2122_v23, %v1073_v13  ;;  %v1019_v39 = vpop.f32.mrb[101].mxu0  ;;  %v1532_v25 = vpop.f32.mrb[101].mxu1  ;;  %v1108_v23 = vadd.f32 %v2997_v5, %v2948_v8 }
 0x1e4   : > { %v1533_v30 = vadd.f32 %v1532_v25, %v1068_v19  ;;  %v1123_v8 = vadd.f32 %v2997_v5, %v2960_v22 }
 0x1e5   : > { %v2343_v35 = vpop.eup %2342  ;;  %v1483_v31 = vadd.f32 %v1482_v36, %v1018_v63  ;;  %2348 = vtanh.f32 %v1538_v55 }
 0x1e6   : > { %1759 = vst.msk [vmem:[%s3023_s22 + $0x178] sm:$0xff] %vm1711_vm1, %v2343_v35  ;;  %2350 = vtanh.f32 %v1533_v30  ;;  %v1022_v17 = vpop.f32.mrb[102].mxu0  ;;  %v2125_v43 = vpop.f32.mrb[102].mxu1 }
 0x1e7   : > { %2352 = vtanh.f32 %v1483_v31  ;;  %v1023_v37 = vadd.f32 %v2997_v5, %v1022_v17  ;;  %v1548_v10 = vadd.f32 %v2125_v43, %v1083_v26  ;;  %v1024_v40 = vpop.f32.mrb[103].mxu0  ;;  %v1542_v41 = vpop.f32.mrb[103].mxu1  ;;  %v1118_v17 = vadd.f32 %v2997_v5, %v2956_v16 }
 0x1e8   : > { %v1543_v7 = vadd.f32 %v1542_v41, %v1078_v18  ;;  %v1133_v16 = vadd.f32 %v2997_v5, %v2968_v32 }
 0x1e9   : > { %v2345_v46 = vpop.eup %2344  ;;  %v1488_v36 = vadd.f32 %v3187_v14, %v1023_v37  ;;  %2354 = vtanh.f32 %v1548_v10  ;;  %v1103_v14 = vadd.f32 %v2997_v5, %v2944_v4 }
 0x1ea   : > { %1760 = vst.msk [vmem:[%s3023_s22 + $0x180] sm:$0xff] %vm1711_vm1, %v2345_v46  ;;  %2356 = vtanh.f32 %v1543_v7  ;;  %v1027_v33 = vpop.f32.mrb[104].mxu0  ;;  %v2128_v52 = vpop.f32.mrb[104].mxu1 }
 0x1eb   : > { %2358 = vtanh.f32 %v1488_v36  ;;  %v1028_v11 = vadd.f32 %v2997_v5, %v1027_v33  ;;  %v1558_v47 = vadd.f32 %v2128_v52, %v1093_v42  ;;  %v1029_v45 = vpop.f32.mrb[105].mxu0  ;;  %v1552_v56 = vpop.f32.mrb[105].mxu1 }
 0x1ec   : > { %v1553_v61 = vadd.f32 %v1552_v56, %v1088_v34  ;;  %v1128_v34 = vadd.f32 %v2997_v5, %v2964_v28  ;;  %v1143_v28 = vadd.f32 %v2997_v5, %v2976_v44 }
 0x1ed   : > { %v2347_v58 = vpop.eup %2346  ;;  %v1493_v50 = vadd.f32 %v3195_v57, %v1028_v11  ;;  %2360 = vtanh.f32 %v1558_v47 }
 0x1ee   : > { %1761 = vst.msk [vmem:[%s3023_s22 + $0x188] sm:$0xff] %vm1711_vm1, %v2347_v58  ;;  %2362 = vtanh.f32 %v1553_v61  ;;  %v1032_v49 = vpop.f32.mrb[106].mxu0  ;;  %v2131_v6 = vpop.f32.mrb[106].mxu1 }
 0x1ef   : > { %v2349_v1 = vpop.eup %2348  ;;  %2364 = vtanh.f32 %v1493_v50  ;;  %v1033_v20 = vadd.f32 %v2997_v5, %v1032_v49  ;;  %v1568_v59 = vadd.f32 %v2131_v6, %v1103_v14  ;;  %v1034_v13 = vpop.f32.mrb[107].mxu0  ;;  %v1138_v50 = vadd.f32 %v2997_v5, %v2972_v38 }
 0x1f0   : > { %v1562_v4 = vpop.f32.mrb[107].mxu1  ;;  %v2351_v3 = vpop.eup %2350  ;;  %1773 = vst.msk [vmem:[%s3023_s22 + $0x1e8] sm:$0xff] %vm1711_vm1, %v2349_v1  ;;  %v1153_v38 = vadd.f32 %v2997_v5, %v2984_v54  ;;  %v2408_v54 = vld [vmem:[%s3349_s2] ss:$0 sm:$0xff] }
 0x1f1   : > { %v1563_v57 = vadd.f32 %v1562_v4, %v1098_v15  ;;  %v2353_v19 = vpop.eup %2352  ;;  %1772 = vst.msk [vmem:[%s3023_s22 + $0x1e0] sm:$0xff] %vm1711_vm1, %v2351_v3  ;;  %v1498_v27 = vadd.f32 %v3192_v29, %v1033_v20  ;;  %2366 = vtanh.f32 %v1568_v59 }
 0x1f2   : > { %1762 = vst.msk [vmem:[%s3023_s22 + $0x190] sm:$0xff] %vm1711_vm1, %v2353_v19  ;;  %v1037_v63 = vpop.f32.mrb[108].mxu0  ;;  %v2134_v55 = vpop.f32.mrb[108].mxu1 }
 0x1f3   : > { %2368 = vtanh.f32 %v1563_v57  ;;  %v2355_v39 = vpop.eup %2354  ;;  %v1038_v12 = vadd.f32 %v2997_v5, %v1037_v63  ;;  %v1578_v25 = vadd.f32 %v2134_v55, %v1113_v0  ;;  %v1039_v30 = vpop.f32.mrb[109].mxu0  ;;  %v1148_v57 = vadd.f32 %v2997_v5, %v2980_v48 }
 0x1f4   : > { %2370 = vtanh.f32 %v1498_v27  ;;  %v1572_v35 = vpop.f32.mrb[109].mxu1  ;;  %v2357_v26 = vpop.eup %2356  ;;  %1775 = vst.msk [vmem:[%s3023_s22 + $0x1f8] sm:$0xff] %vm1711_vm1, %v2355_v39  ;;  %v1158_v30 = vadd.f32 %v2408_v54, %v2988_v60 }
 0x1f5   : > { %v1573_v29 = vadd.f32 %v1572_v35, %v1108_v23  ;;  %v2359_v31 = vpop.eup %2358  ;;  %1774 = vst.msk [vmem:[%s3023_s22 + $0x1f0] sm:$0xff] %vm1711_vm1, %v2357_v26  ;;  %v1503_v18 = vadd.f32 %v3202_v53, %v1038_v12  ;;  %2372 = vtanh.f32 %v1578_v25  ;;  %v1163_v12 = vadd.f32 %v2408_v54, %v2992_v2 }
 0x1f6   : > { %1763 = vst.msk [vmem:[%s3023_s22 + $0x198] sm:$0xff] %vm1711_vm1, %v2359_v31  ;;  %v1042_v43 = vpop.f32.mrb[110].mxu0  ;;  %v2137_v37 = vpop.f32.mrb[110].mxu1 }
 0x1f7   : > { %2374 = vtanh.f32 %v1573_v29  ;;  %v2361_v10 = vpop.eup %2360  ;;  %v1043_v22 = vadd.f32 %v2997_v5, %v1042_v43  ;;  %v1588_v40 = vadd.f32 %v2137_v37, %v1123_v8  ;;  %v1044_v41 = vpop.f32.mrb[111].mxu0 }
 0x1f8   : > { %2376 = vtanh.f32 %v1503_v18  ;;  %v1582_v7 = vpop.f32.mrb[111].mxu1  ;;  %v2363_v46 = vpop.eup %2362  ;;  %1777 = vst.msk [vmem:[%s3023_s22 + $0x208] sm:$0xff] %vm1711_vm1, %v2361_v10 }
 0x1f9   : > { %v1583_v53 = vadd.f32 %v1582_v7, %v1118_v17  ;;  %v2365_v42 = vpop.eup %2364  ;;  %1776 = vst.msk [vmem:[%s3023_s22 + $0x200] sm:$0xff] %vm1711_vm1, %v2363_v46  ;;  %v1508_v36 = vadd.f32 %v3199_v51, %v1043_v22  ;;  %2378 = vtanh.f32 %v1588_v40 }
 0x1fa   : > { %1764 = vst.msk [vmem:[%s3023_s22 + $0x1a0] sm:$0xff] %vm1711_vm1, %v2365_v42  ;;  %v1047_v33 = vpop.f32.mrb[112].mxu0  ;;  %v2140_v52 = vpop.f32.mrb[112].mxu1 }
 0x1fb   : > { %2380 = vtanh.f32 %v1583_v53  ;;  %v2367_v11 = vpop.eup %2366  ;;  %v1048_v32 = vadd.f32 %v2997_v5, %v1047_v33  ;;  %v1598_v47 = vadd.f32 %v2140_v52, %v1133_v16  ;;  %v1049_v45 = vpop.f32.mrb[113].mxu0 }
 0x1fc   : > { %2382 = vtanh.f32 %v1508_v36  ;;  %v1592_v56 = vpop.f32.mrb[113].mxu1  ;;  %1779 = vst.msk [vmem:[%s3023_s22 + $0x218] sm:$0xff] %vm1711_vm1, %v2367_v11 }
 0x1fd   : > { %v2369_v61 = vpop.eup %2368  ;;  %v1593_v51 = vadd.f32 %v1592_v56, %v1128_v34  ;;  %v1513_v14 = vadd.f32 %v3209_v21, %v1048_v32  ;;  %2384 = vtanh.f32 %v1598_v47 }
 0x1fe   : > { %v2371_v58 = vpop.eup %2370  ;;  %1778 = vst.msk [vmem:[%s3023_s22 + $0x210] sm:$0xff] %vm1711_vm1, %v2369_v61  ;;  %v1052_v15 = vpop.f32.mrb[114].mxu0 }
 0x1ff   : > { %1765 = vst.msk [vmem:[%s3023_s22 + $0x1a8] sm:$0xff] %vm1711_vm1, %v2371_v58  ;;  %2386 = vtanh.f32 %v1593_v51  ;;  %v2143_v49 = vpop.f32.mrb[114].mxu1  ;;  %v2373_v6 = vpop.eup %2372  ;;  %v1053_v44 = vadd.f32 %v2997_v5, %v1052_v15 }
 0x200   : > { %2388 = vtanh.f32 %v1513_v14  ;;  %v1608_v1 = vadd.f32 %v2143_v49, %v1143_v28  ;;  %v1054_v20 = vpop.f32.mrb[115].mxu0  ;;  %v1602_v59 = vpop.f32.mrb[115].mxu1  ;;  %1781 = vst.msk [vmem:[%s3023_s22 + $0x228] sm:$0xff] %vm1711_vm1, %v2373_v6 }
 0x201   : > { %v2375_v13 = vpop.eup %2374  ;;  %v1603_v21 = vadd.f32 %v1602_v59, %v1138_v50  ;;  %v1518_v3 = vadd.f32 %v3206_v24, %v1053_v44 }
 0x202   : > { %v2377_v4 = vpop.eup %2376  ;;  %1780 = vst.msk [vmem:[%s3023_s22 + $0x220] sm:$0xff] %vm1711_vm1, %v2375_v13  ;;  %2390 = vtanh.f32 %v1608_v1  ;;  %v1057_v19 = vpop.f32.mrb[116].mxu0 }
 0x203   : > { %1766 = vst.msk [vmem:[%s3023_s22 + $0x1b0] sm:$0xff] %vm1711_vm1, %v2377_v4  ;;  %2392 = vtanh.f32 %v1603_v21  ;;  %v2146_v0 = vpop.f32.mrb[116].mxu1  ;;  %v2379_v27 = vpop.eup %2378  ;;  %v1058_v23 = vadd.f32 %v2408_v54, %v1057_v19 }
 0x204   : > { %2394 = vtanh.f32 %v1518_v3  ;;  %v1618_v63 = vadd.f32 %v2146_v0, %v1153_v38  ;;  %v1059_v24 = vpop.f32.mrb[117].mxu0  ;;  %v1612_v55 = vpop.f32.mrb[117].mxu1  ;;  %1783 = vst.msk [vmem:[%s3023_s22 + $0x238] sm:$0xff] %vm1711_vm1, %v2379_v27 }
 0x205   : > { %v2381_v39 = vpop.eup %2380  ;;  %v1613_v48 = vadd.f32 %v1612_v55, %v1148_v57  ;;  %v1523_v25 = vadd.f32 %v3216_v62, %v1058_v23 }
 0x206   : > { %v2383_v5 = vpop.eup %2382  ;;  %1782 = vst.msk [vmem:[%s3023_s22 + $0x230] sm:$0xff] %vm1711_vm1, %v2381_v39  ;;  %2396 = vtanh.f32 %v1618_v63  ;;  %v1062_v35 = vpop.f32.mrb[118].mxu0 }
 0x207   : > { %1767 = vst.msk [vmem:[%s3023_s22 + $0x1b8] sm:$0xff] %vm1711_vm1, %v2383_v5  ;;  %2398 = vtanh.f32 %v1613_v48  ;;  %v2149_v26 = vpop.f32.mrb[118].mxu1  ;;  %v2385_v29 = vpop.eup %2384  ;;  %v1063_v31 = vadd.f32 %v2408_v54, %v1062_v35 }
 0x208   : > { %2400 = vtanh.f32 %v1523_v25  ;;  %v1628_v2 = vadd.f32 %v2149_v26, %v1163_v12  ;;  %v1064_v8 = vpop.f32.mrb[119].mxu0  ;;  %v1622_v18 = vpop.f32.mrb[119].mxu1  ;;  %1785 = vst.msk [vmem:[%s3023_s22 + $0x248] sm:$0xff] %vm1711_vm1, %v2385_v29 }
 0x209   : > { %v2387_v62 = vpop.eup %2386  ;;  %v1623_v17 = vadd.f32 %v1622_v18, %v1158_v30  ;;  %v1528_v43 = vadd.f32 %v3213_v9, %v1063_v31 }
 0x20a   : > { %v2389_v60 = vpop.eup %2388  ;;  %1784 = vst.msk [vmem:[%s3023_s22 + $0x240] sm:$0xff] %vm1711_vm1, %v2387_v62  ;;  %2402 = vtanh.f32 %v1628_v2 }
 0x20b   : > { %1768 = vst.msk [vmem:[%s3023_s22 + $0x1c0] sm:$0xff] %vm1711_vm1, %v2389_v60  ;;  %2404 = vtanh.f32 %v1623_v17 }
 0x20c   : > { %v2391_v37 = vpop.eup %2390  ;;  %2406 = vtanh.f32 %v1528_v43 }
 0x20d   : > { %v2393_v10 = vpop.eup %2392  ;;  %1787 = vst.msk [vmem:[%s3023_s22 + $0x258] sm:$0xff] %vm1711_vm1, %v2391_v37 }
 0x20e   : > { %v2395_v22 = vpop.eup %2394  ;;  %1786 = vst.msk [vmem:[%s3023_s22 + $0x250] sm:$0xff] %vm1711_vm1, %v2393_v10 }
 0x20f   : > { %1769 = vst.msk [vmem:[%s3023_s22 + $0x1c8] sm:$0xff] %vm1711_vm1, %v2395_v22 }
 0x210   : > { %v2397_v40 = vpop.eup %2396 }
 0x211   : > { %v2399_v9 = vpop.eup %2398  ;;  %1789 = vst.msk [vmem:[%s3023_s22 + $0x268] sm:$0xff] %vm1711_vm1, %v2397_v40 }
 0x212   : > { %v2401_v41 = vpop.eup %2400  ;;  %1788 = vst.msk [vmem:[%s3023_s22 + $0x260] sm:$0xff] %vm1711_vm1, %v2399_v9 }
 0x213   : > { %1770 = vst.msk [vmem:[%s3023_s22 + $0x1d0] sm:$0xff] %vm1711_vm1, %v2401_v41 }
 0x214   : > { %v2403_v7 = vpop.eup %2402 }
 0x215   : > { %v2405_v46 = vpop.eup %2404  ;;  %1791 = vst.msk [vmem:[%s3023_s22 + $0x278] sm:$0xff] %vm1711_vm1, %v2403_v7 }
 0x216   : > { %v2407_v53 = vpop.eup %2406  ;;  %1790 = vst.msk [vmem:[%s3023_s22 + $0x270] sm:$0xff] %vm1711_vm1, %v2405_v46 }
 0x217   : > { %1771 = vst.msk [vmem:[%s3023_s22 + $0x1d8] sm:$0xff] %vm1711_vm1, %v2407_v53 }
 0x218 PF: > { %s13_s12 = sadd.s32 1, %s2415_s12  }
 0x219   : > { %p10_p4 = scmp.ge.s32.totalorder %s13_s12, 4  }
 0x21b   :  { %12 = sbr.rel (!%p10_p4) target bundleno = 1 (0x1), region = 62 }

// kernel: cnn_autoencoder_forward.17
= control target key start
LH: loop header
LB: loop body
LE: loop exit
PB: predicated region body
PF: predicated region fallthrough
CT: control target
= control target key end

     0   :  { %s1620_s12 = smov 0   ;;  %s2202_s0 = inlined_call_operand.vmem [shape: f32[1280,144], index: 0, kind: input, shape index: {}]   ;;  %s2203_s1 = inlined_call_operand.vmem [shape: f32[144,2], index: 1, kind: input, shape index: {}]   ;;  %s2204_s2 = inlined_call_operand.vmem [shape: f32[1,2], index: 2, kind: input, shape index: {}]   ;;  %s2205_s3 = inlined_call_operand.vmem [shape: f32[1280,2], index: 3, kind: output, shape index: {}]  }
   0x1 LB: > { %s1285_s13 = sadd.s32 4294967295, %s1597_s12   ;;  %p1289_p0 = scmp.ge.s32.totalorder %s1597_s12, 1  ;;  %s1597_s12 = sphi %s1620_s12, %s13_s12  }
   0x2   : > { %p139_p1 = scmp.lt.s32.totalorder %s1597_s12, 3 }
   0x4   : > { %p140_p2 = pnand %p1289_p0, %p139_p1 }
   0x5   : > { %v337_v0 = vld [vmem:[%s2203_s1] sm:$0xff] (!%p140_p2)  ;;  %v338_v1 = vld [vmem:[%s2203_s1 + $0x8] sm:$0xff] (!%p140_p2)  ;;  %v339_v2 = vld [vmem:[%s2203_s1 + $0x10] sm:$0xff] (!%p140_p2)  ;;  %s164_s20 = smul.u32 (!%p140_p2), 80, %s1285_s13  ;;  %v1599_v3 = vmov (!%p140_p2), 0.0|0.0   ;;  %vm362_vm0 = vcmask (!%p140_p2), 130048  }
   0x6   : > { %143 = sbr.rel (%p140_p2) target bundleno = 426 (0x1aa), region = 32  ;;  %1377 = vmatprep.subr.bf16.mxu0 (!%p140_p2), %v1599_v3  ;;  %1404 = vmatprep.subr.bf16.mxu1 (!%p140_p2), %v1599_v3  ;;  %v1378_v4 = vpack.c.bf16 (!%p140_p2), %v338_v1, %v337_v0  ;;  %v340_v5 = vld [vmem:[%s2203_s1 + $0x18] sm:$0xff] (!%p140_p2)  ;;  %v341_v7 = vld [vmem:[%s2203_s1 + $0x20] sm:$0xff] (!%p140_p2)  ;;  %v342_v8 = vld [vmem:[%s2203_s1 + $0x28] sm:$0xff] (!%p140_p2)  ;;  %vm1148_vm1 = vcmask (!%p140_p2), 15360  }
   0x7   : > { %p165_p3 = scmp.lt.s32.totalorder (!%p140_p2), %s164_s20, 159  ;;  %v1381_v6 = vpack.c.bf16 (!%p140_p2), %v340_v5, %v339_v2  ;;  %v1384_v9 = vpack.c.bf16 (!%p140_p2), %v342_v8, %v341_v7  ;;  %v343_v10 = vld [vmem:[%s2203_s1 + $0x30] sm:$0xff] (!%p140_p2)  ;;  %v344_v11 = vld [vmem:[%s2203_s1 + $0x38] sm:$0xff] (!%p140_p2)  ;;  %v345_v15 = vld [vmem:[%s2203_s1 + $0x40] sm:$0xff] (!%p140_p2) }
   0x8   : > { %1379 = vmatpush1.bf16.msra.mxu0 (!%p140_p2), %v1378_v4  ;;  %1413 = vmatpush1.bf16.msra.mxu1 (!%p140_p2), %v1378_v4  ;;  %v1387_v14 = vpack.c.bf16 (!%p140_p2), %v344_v11, %v343_v10  ;;  %v346_v16 = vld [vmem:[%s2203_s1 + $0x48] sm:$0xff] (!%p140_p2)  ;;  %v347_v18 = vld [vmem:[%s2203_s1 + $0x50] sm:$0xff] (!%p140_p2)  ;;  %v348_v19 = vld [vmem:[%s2203_s1 + $0x58] sm:$0xff] (!%p140_p2) }
   0x9   : > { %1380 = vmatprep.subr.bf16.mxu0 (!%p140_p2), %v1599_v3  ;;  %1405 = vmatprep.subr.bf16.mxu1 (!%p140_p2), %v1599_v3  ;;  %v1390_v17 = vpack.c.bf16 (!%p140_p2), %v346_v16, %v345_v15  ;;  %v1393_v20 = vpack.c.bf16 (!%p140_p2), %v348_v19, %v347_v18  ;;  %v349_v21 = vld [vmem:[%s2203_s1 + $0x60] sm:$0xff] (!%p140_p2)  ;;  %v350_v22 = vld [vmem:[%s2203_s1 + $0x68] sm:$0xff] (!%p140_p2)  ;;  %v351_v24 = vld [vmem:[%s2203_s1 + $0x70] sm:$0xff] (!%p140_p2) }
   0xa   : > { %v1396_v23 = vpack.c.bf16 (!%p140_p2), %v350_v22, %v349_v21  ;;  %v352_v25 = vld [vmem:[%s2203_s1 + $0x78] sm:$0xff] (!%p140_p2)  ;;  %v353_v27 = vld [vmem:[%s2203_s1 + $0x80] sm:$0xff] (!%p140_p2)  ;;  %v354_v28 = vld [vmem:[%s2203_s1 + $0x88] sm:$0xff] (!%p140_p2) }
   0xb   : > { %v1399_v26 = vpack.c.bf16 (!%p140_p2), %v352_v25, %v351_v24  ;;  %v1402_v29 = vpack.c.bf16 (!%p140_p2), %v354_v28, %v353_v27 }
   0xc   : > { %1382 = vmatpush1.bf16.msra.mxu0 (!%p140_p2), %v1381_v6  ;;  %1414 = vmatpush1.bf16.msra.mxu1 (!%p140_p2), %v1381_v6 }
   0xd   : > { %s2207_s20 = smov (!%p165_p3, %s164_s20), 159  ;;  %1383 = vmatprep.subr.bf16.mxu0 %v1599_v3  ;;  %1406 = vmatprep.subr.bf16.mxu1 %v1599_v3 }
   0xe   : > { %s1376_s27 = sshll.u32 %s2207_s20, 4 }
   0xf   : > { %s1659_s5 = scalar_lea.vmem %s2202_s0, %s1376_s27 }
  0x10   : > { %v178_v12 = vld [vmem:[%s1659_s5 + $0x8] sm:$0xff]  ;;  %1385 = vmatpush1.bf16.msra.mxu0 %v1384_v9  ;;  %1415 = vmatpush1.bf16.msra.mxu1 %v1384_v9  ;;  %v177_v30 = vld [vmem:[%s1659_s5] sm:$0xff]  ;;  %v180_v32 = vld [vmem:[%s1659_s5 + $0x18] sm:$0xff] }
  0x11   : > { %v258_v13 = vld [vmem:[%s1659_s5 + $0x288] sm:$0xff]  ;;  %1294 = vmatprep.mubr.msk.f32.mxu0 %vm362_vm0, %v178_v12  ;;  %1386 = vmatprep.subr.bf16.mxu0 %v1599_v3  ;;  %v257_v31 = vld [vmem:[%s1659_s5 + $0x280] sm:$0xff]  ;;  %v260_v33 = vld [vmem:[%s1659_s5 + $0x298] sm:$0xff] }
  0x12   : > { %1334 = vmatprep.mubr.msk.f32.mxu1 %vm362_vm0, %v258_v13  ;;  %1407 = vmatprep.subr.bf16.mxu1 %v1599_v3  ;;  %v179_v34 = vld [vmem:[%s1659_s5 + $0x10] sm:$0xff]  ;;  %v182_v36 = vld [vmem:[%s1659_s5 + $0x28] sm:$0xff]  ;;  %v181_v38 = vld [vmem:[%s1659_s5 + $0x20] sm:$0xff] }
  0x13   : > { %v259_v35 = vld [vmem:[%s1659_s5 + $0x290] sm:$0xff]  ;;  %v262_v37 = vld [vmem:[%s1659_s5 + $0x2a8] sm:$0xff]  ;;  %v261_v39 = vld [vmem:[%s1659_s5 + $0x2a0] sm:$0xff] }
  0x14   : > { %1388 = vmatpush1.bf16.msra.mxu0 %v1387_v14  ;;  %1416 = vmatpush1.bf16.msra.mxu1 %v1387_v14  ;;  %v184_v40 = vld [vmem:[%s1659_s5 + $0x38] sm:$0xff]  ;;  %v183_v42 = vld [vmem:[%s1659_s5 + $0x30] sm:$0xff]  ;;  %v186_v44 = vld [vmem:[%s1659_s5 + $0x48] sm:$0xff] }
  0x15   : > { %1389 = vmatprep.subr.bf16.mxu0 %v1599_v3  ;;  %1408 = vmatprep.subr.bf16.mxu1 %v1599_v3  ;;  %v264_v41 = vld [vmem:[%s1659_s5 + $0x2b8] sm:$0xff]  ;;  %v263_v43 = vld [vmem:[%s1659_s5 + $0x2b0] sm:$0xff]  ;;  %v266_v45 = vld [vmem:[%s1659_s5 + $0x2c8] sm:$0xff] }
  0x16   : > { %v185_v46 = vld [vmem:[%s1659_s5 + $0x40] sm:$0xff]  ;;  %v188_v48 = vld [vmem:[%s1659_s5 + $0x58] sm:$0xff]  ;;  %v187_v50 = vld [vmem:[%s1659_s5 + $0x50] sm:$0xff] }
  0x17   : > { %v265_v47 = vld [vmem:[%s1659_s5 + $0x2c0] sm:$0xff]  ;;  %v268_v49 = vld [vmem:[%s1659_s5 + $0x2d8] sm:$0xff]  ;;  %v267_v51 = vld [vmem:[%s1659_s5 + $0x2d0] sm:$0xff] }
  0x18   : > { %1391 = vmatpush1.bf16.msra.mxu0 %v1390_v17  ;;  %1417 = vmatpush1.bf16.msra.mxu1 %v1390_v17  ;;  %v190_v52 = vld [vmem:[%s1659_s5 + $0x68] sm:$0xff]  ;;  %v189_v54 = vld [vmem:[%s1659_s5 + $0x60] sm:$0xff]  ;;  %v192_v56 = vld [vmem:[%s1659_s5 + $0x78] sm:$0xff] }
  0x19   : > { %1392 = vmatprep.subr.bf16.mxu0 %v1599_v3  ;;  %1409 = vmatprep.subr.bf16.mxu1 %v1599_v3  ;;  %v270_v53 = vld [vmem:[%s1659_s5 + $0x2e8] sm:$0xff]  ;;  %v269_v55 = vld [vmem:[%s1659_s5 + $0x2e0] sm:$0xff]  ;;  %v272_v57 = vld [vmem:[%s1659_s5 + $0x2f8] sm:$0xff] }
  0x1a   : > { %v191_v58 = vld [vmem:[%s1659_s5 + $0x70] sm:$0xff]  ;;  %v194_v60 = vld [vmem:[%s1659_s5 + $0x88] sm:$0xff]  ;;  %v193_v62 = vld [vmem:[%s1659_s5 + $0x80] sm:$0xff] }
  0x1b   : > { %v271_v59 = vld [vmem:[%s1659_s5 + $0x2f0] sm:$0xff]  ;;  %v274_v61 = vld [vmem:[%s1659_s5 + $0x308] sm:$0xff]  ;;  %v273_v63 = vld [vmem:[%s1659_s5 + $0x300] sm:$0xff] }
  0x1c   : > { %1394 = vmatpush1.bf16.msra.mxu0 %v1393_v20  ;;  %1418 = vmatpush1.bf16.msra.mxu1 %v1393_v20  ;;  %v196_v0 = vld [vmem:[%s1659_s5 + $0x98] sm:$0xff]  ;;  %v195_v2 = vld [vmem:[%s1659_s5 + $0x90] sm:$0xff]  ;;  %v198_v4 = vld [vmem:[%s1659_s5 + $0xa8] sm:$0xff] }
  0x1d   : > { %1395 = vmatprep.subr.bf16.mxu0 %v1599_v3  ;;  %1410 = vmatprep.subr.bf16.mxu1 %v1599_v3  ;;  %v276_v1 = vld [vmem:[%s1659_s5 + $0x318] sm:$0xff]  ;;  %v278_v5 = vld [vmem:[%s1659_s5 + $0x328] sm:$0xff]  ;;  %v197_v6 = vld [vmem:[%s1659_s5 + $0xa0] sm:$0xff] }
  0x1e   : > { %v277_v7 = vld [vmem:[%s1659_s5 + $0x320] sm:$0xff]  ;;  %v200_v8 = vld [vmem:[%s1659_s5 + $0xb8] sm:$0xff]  ;;  %v199_v10 = vld [vmem:[%s1659_s5 + $0xb0] sm:$0xff] }
  0x1f   : > { %v280_v9 = vld [vmem:[%s1659_s5 + $0x338] sm:$0xff]  ;;  %v279_v11 = vld [vmem:[%s1659_s5 + $0x330] sm:$0xff]  ;;  %v202_v12 = vld [vmem:[%s1659_s5 + $0xc8] sm:$0xff] }
  0x20   : > { %1397 = vmatpush1.bf16.msra.mxu0 %v1396_v23  ;;  %1419 = vmatpush1.bf16.msra.mxu1 %v1396_v23  ;;  %v282_v13 = vld [vmem:[%s1659_s5 + $0x348] sm:$0xff]  ;;  %v201_v14 = vld [vmem:[%s1659_s5 + $0xc0] sm:$0xff]  ;;  %v204_v16 = vld [vmem:[%s1659_s5 + $0xd8] sm:$0xff] }
  0x21   : > { %1398 = vmatprep.subr.bf16.mxu0 %v1599_v3  ;;  %1411 = vmatprep.subr.bf16.mxu1 %v1599_v3  ;;  %v281_v15 = vld [vmem:[%s1659_s5 + $0x340] sm:$0xff]  ;;  %v284_v17 = vld [vmem:[%s1659_s5 + $0x358] sm:$0xff]  ;;  %v203_v18 = vld [vmem:[%s1659_s5 + $0xd0] sm:$0xff] }
  0x22   : > { %v283_v19 = vld [vmem:[%s1659_s5 + $0x350] sm:$0xff]  ;;  %v206_v20 = vld [vmem:[%s1659_s5 + $0xe8] sm:$0xff]  ;;  %v205_v22 = vld [vmem:[%s1659_s5 + $0xe0] sm:$0xff] }
  0x23   : > { %v286_v21 = vld [vmem:[%s1659_s5 + $0x368] sm:$0xff]  ;;  %v285_v23 = vld [vmem:[%s1659_s5 + $0x360] sm:$0xff]  ;;  %v208_v24 = vld [vmem:[%s1659_s5 + $0xf8] sm:$0xff] }
  0x24   : > { %1400 = vmatpush1.bf16.msra.mxu0 %v1399_v26  ;;  %1420 = vmatpush1.bf16.msra.mxu1 %v1399_v26  ;;  %v288_v25 = vld [vmem:[%s1659_s5 + $0x378] sm:$0xff]  ;;  %v207_v26 = vld [vmem:[%s1659_s5 + $0xf0] sm:$0xff]  ;;  %v210_v28 = vld [vmem:[%s1659_s5 + $0x108] sm:$0xff] }
  0x25   : > { %1401 = vmatprep.subr.bf16.mxu0 %v1599_v3  ;;  %1412 = vmatprep.subr.bf16.mxu1 %v1599_v3  ;;  %v275_v3 = vld [vmem:[%s1659_s5 + $0x310] sm:$0xff] }
  0x26   : > { %v287_v27 = vld [vmem:[%s1659_s5 + $0x370] sm:$0xff] }
  0x28   : > { %1403 = vmatpush1.bf16.msra.mxu0 %v1402_v29  ;;  %1421 = vmatpush1.bf16.msra.mxu1 %v1402_v29  ;;  %v290_v29 = vld [vmem:[%s1659_s5 + $0x388] sm:$0xff] }
  0x2b   : > { %668 = vmatmul.mubr.f32.vlgmr.msra.gmra.mrb[0].mxu0 %v177_v30  ;;  %868 = vmatmul.mubr.f32.vlgmr.msra.gmra.mrb[0].mxu1 %v257_v31  ;;  %v209_v30 = vld [vmem:[%s1659_s5 + $0x100] sm:$0xff] }
  0x2c   : > { %1295 = vmatprep.mubr.msk.f32.mxu0 %vm362_vm0, %v180_v32  ;;  %1335 = vmatprep.mubr.msk.f32.mxu1 %vm362_vm0, %v260_v33  ;;  %v289_v31 = vld [vmem:[%s1659_s5 + $0x380] sm:$0xff]  ;;  %v212_v32 = vld [vmem:[%s1659_s5 + $0x118] sm:$0xff] }
  0x2d   : > { %v292_v33 = vld [vmem:[%s1659_s5 + $0x398] sm:$0xff] }
  0x2f   : > { %673 = vmatmul.mubr.f32.gmra.mrb[2].mxu0 %v179_v34  ;;  %873 = vmatmul.mubr.f32.gmra.mrb[2].mxu1 %v259_v35  ;;  %v211_v34 = vld [vmem:[%s1659_s5 + $0x110] sm:$0xff] }
  0x30   : > { %1296 = vmatprep.mubr.msk.f32.mxu0 %vm362_vm0, %v182_v36  ;;  %1336 = vmatprep.mubr.msk.f32.mxu1 %vm362_vm0, %v262_v37  ;;  %v291_v35 = vld [vmem:[%s1659_s5 + $0x390] sm:$0xff]  ;;  %v214_v36 = vld [vmem:[%s1659_s5 + $0x128] sm:$0xff] }
  0x31   : > { %v294_v37 = vld [vmem:[%s1659_s5 + $0x3a8] sm:$0xff] }
  0x33   : > { %678 = vmatmul.mubr.f32.gmra.mrb[4].mxu0 %v181_v38  ;;  %878 = vmatmul.mubr.f32.gmra.mrb[4].mxu1 %v261_v39  ;;  %v213_v38 = vld [vmem:[%s1659_s5 + $0x120] sm:$0xff] }
  0x34   : > { %1297 = vmatprep.mubr.msk.f32.mxu0 %vm362_vm0, %v184_v40  ;;  %1337 = vmatprep.mubr.msk.f32.mxu1 %vm362_vm0, %v264_v41  ;;  %v293_v39 = vld [vmem:[%s1659_s5 + $0x3a0] sm:$0xff]  ;;  %v216_v40 = vld [vmem:[%s1659_s5 + $0x138] sm:$0xff] }
  0x35   : > { %v296_v41 = vld [vmem:[%s1659_s5 + $0x3b8] sm:$0xff] }
  0x37   : > { %683 = vmatmul.mubr.f32.gmra.mrb[6].mxu0 %v183_v42  ;;  %883 = vmatmul.mubr.f32.gmra.mrb[6].mxu1 %v263_v43  ;;  %v215_v42 = vld [vmem:[%s1659_s5 + $0x130] sm:$0xff] }
  0x38   : > { %1298 = vmatprep.mubr.msk.f32.mxu0 %vm362_vm0, %v186_v44  ;;  %1338 = vmatprep.mubr.msk.f32.mxu1 %vm362_vm0, %v266_v45  ;;  %v295_v43 = vld [vmem:[%s1659_s5 + $0x3b0] sm:$0xff]  ;;  %v218_v44 = vld [vmem:[%s1659_s5 + $0x148] sm:$0xff] }
  0x39   : > { %v298_v45 = vld [vmem:[%s1659_s5 + $0x3c8] sm:$0xff] }
  0x3b   : > { %688 = vmatmul.mubr.f32.gmra.mrb[8].mxu0 %v185_v46  ;;  %888 = vmatmul.mubr.f32.gmra.mrb[8].mxu1 %v265_v47  ;;  %v217_v46 = vld [vmem:[%s1659_s5 + $0x140] sm:$0xff] }
  0x3c   : > { %1299 = vmatprep.mubr.msk.f32.mxu0 %vm362_vm0, %v188_v48  ;;  %1339 = vmatprep.mubr.msk.f32.mxu1 %vm362_vm0, %v268_v49  ;;  %v297_v47 = vld [vmem:[%s1659_s5 + $0x3c0] sm:$0xff]  ;;  %v220_v48 = vld [vmem:[%s1659_s5 + $0x158] sm:$0xff] }
  0x3d   : > { %v300_v49 = vld [vmem:[%s1659_s5 + $0x3d8] sm:$0xff] }
  0x3f   : > { %693 = vmatmul.mubr.f32.gmra.mrb[10].mxu0 %v187_v50  ;;  %893 = vmatmul.mubr.f32.gmra.mrb[10].mxu1 %v267_v51  ;;  %v219_v50 = vld [vmem:[%s1659_s5 + $0x150] sm:$0xff] }
  0x40   : > { %1300 = vmatprep.mubr.msk.f32.mxu0 %vm362_vm0, %v190_v52  ;;  %1340 = vmatprep.mubr.msk.f32.mxu1 %vm362_vm0, %v270_v53  ;;  %v299_v51 = vld [vmem:[%s1659_s5 + $0x3d0] sm:$0xff]  ;;  %v222_v52 = vld [vmem:[%s1659_s5 + $0x168] sm:$0xff] }
  0x41   : > { %v302_v53 = vld [vmem:[%s1659_s5 + $0x3e8] sm:$0xff] }
  0x43   : > { %698 = vmatmul.mubr.f32.gmra.mrb[12].mxu0 %v189_v54  ;;  %898 = vmatmul.mubr.f32.gmra.mrb[12].mxu1 %v269_v55  ;;  %v221_v54 = vld [vmem:[%s1659_s5 + $0x160] sm:$0xff] }
  0x44   : > { %1301 = vmatprep.mubr.msk.f32.mxu0 %vm362_vm0, %v192_v56  ;;  %1341 = vmatprep.mubr.msk.f32.mxu1 %vm362_vm0, %v272_v57  ;;  %v301_v55 = vld [vmem:[%s1659_s5 + $0x3e0] sm:$0xff]  ;;  %v224_v56 = vld [vmem:[%s1659_s5 + $0x178] sm:$0xff] }
  0x45   : > { %v304_v57 = vld [vmem:[%s1659_s5 + $0x3f8] sm:$0xff] }
  0x47   : > { %703 = vmatmul.mubr.f32.gmra.mrb[14].mxu0 %v191_v58  ;;  %903 = vmatmul.mubr.f32.gmra.mrb[14].mxu1 %v271_v59  ;;  %v223_v58 = vld [vmem:[%s1659_s5 + $0x170] sm:$0xff] }
  0x48   : > { %1302 = vmatprep.mubr.msk.f32.mxu0 %vm362_vm0, %v194_v60  ;;  %1342 = vmatprep.mubr.msk.f32.mxu1 %vm362_vm0, %v274_v61  ;;  %v303_v59 = vld [vmem:[%s1659_s5 + $0x3f0] sm:$0xff]  ;;  %v226_v60 = vld [vmem:[%s1659_s5 + $0x188] sm:$0xff] }
  0x49   : > { %v306_v61 = vld [vmem:[%s1659_s5 + $0x408] sm:$0xff] }
  0x4b   : > { %708 = vmatmul.mubr.f32.gmra.mrb[16].mxu0 %v193_v62  ;;  %908 = vmatmul.mubr.f32.gmra.mrb[16].mxu1 %v273_v63  ;;  %v225_v62 = vld [vmem:[%s1659_s5 + $0x180] sm:$0xff] }
  0x4c   : > { %1303 = vmatprep.mubr.msk.f32.mxu0 %vm362_vm0, %v196_v0  ;;  %1343 = vmatprep.mubr.msk.f32.mxu1 %vm362_vm0, %v276_v1  ;;  %v305_v63 = vld [vmem:[%s1659_s5 + $0x400] sm:$0xff]  ;;  %v228_v0 = vld [vmem:[%s1659_s5 + $0x198] sm:$0xff] }
  0x4d   : > { %v308_v1 = vld [vmem:[%s1659_s5 + $0x418] sm:$0xff] }
  0x4f   : > { %713 = vmatmul.mubr.f32.gmra.mrb[18].mxu0 %v195_v2  ;;  %913 = vmatmul.mubr.f32.gmra.mrb[18].mxu1 %v275_v3  ;;  %v227_v2 = vld [vmem:[%s1659_s5 + $0x190] sm:$0xff] }
  0x50   : > { %1304 = vmatprep.mubr.msk.f32.mxu0 %vm362_vm0, %v198_v4  ;;  %1344 = vmatprep.mubr.msk.f32.mxu1 %vm362_vm0, %v278_v5  ;;  %v307_v3 = vld [vmem:[%s1659_s5 + $0x410] sm:$0xff]  ;;  %v230_v4 = vld [vmem:[%s1659_s5 + $0x1a8] sm:$0xff] }
  0x51   : > { %v310_v5 = vld [vmem:[%s1659_s5 + $0x428] sm:$0xff] }
  0x53   : > { %718 = vmatmul.mubr.f32.gmra.mrb[20].mxu0 %v197_v6  ;;  %918 = vmatmul.mubr.f32.gmra.mrb[20].mxu1 %v277_v7  ;;  %v229_v6 = vld [vmem:[%s1659_s5 + $0x1a0] sm:$0xff] }
  0x54   : > { %1305 = vmatprep.mubr.msk.f32.mxu0 %vm362_vm0, %v200_v8  ;;  %1345 = vmatprep.mubr.msk.f32.mxu1 %vm362_vm0, %v280_v9  ;;  %v309_v7 = vld [vmem:[%s1659_s5 + $0x420] sm:$0xff]  ;;  %v232_v8 = vld [vmem:[%s1659_s5 + $0x1b8] sm:$0xff] }
  0x55   : > { %v312_v9 = vld [vmem:[%s1659_s5 + $0x438] sm:$0xff] }
  0x57   : > { %723 = vmatmul.mubr.f32.gmra.mrb[22].mxu0 %v199_v10  ;;  %923 = vmatmul.mubr.f32.gmra.mrb[22].mxu1 %v279_v11  ;;  %v231_v10 = vld [vmem:[%s1659_s5 + $0x1b0] sm:$0xff] }
  0x58   : > { %1306 = vmatprep.mubr.msk.f32.mxu0 %vm362_vm0, %v202_v12  ;;  %1346 = vmatprep.mubr.msk.f32.mxu1 %vm362_vm0, %v282_v13  ;;  %v311_v11 = vld [vmem:[%s1659_s5 + $0x430] sm:$0xff]  ;;  %v234_v12 = vld [vmem:[%s1659_s5 + $0x1c8] sm:$0xff] }
  0x59   : > { %v314_v13 = vld [vmem:[%s1659_s5 + $0x448] sm:$0xff] }
  0x5b   : > { %728 = vmatmul.mubr.f32.gmra.mrb[24].mxu0 %v201_v14  ;;  %928 = vmatmul.mubr.f32.gmra.mrb[24].mxu1 %v281_v15  ;;  %v233_v14 = vld [vmem:[%s1659_s5 + $0x1c0] sm:$0xff] }
  0x5c   : > { %1307 = vmatprep.mubr.msk.f32.mxu0 %vm362_vm0, %v204_v16  ;;  %1347 = vmatprep.mubr.msk.f32.mxu1 %vm362_vm0, %v284_v17  ;;  %v313_v15 = vld [vmem:[%s1659_s5 + $0x440] sm:$0xff]  ;;  %v236_v16 = vld [vmem:[%s1659_s5 + $0x1d8] sm:$0xff] }
  0x5d   : > { %v316_v17 = vld [vmem:[%s1659_s5 + $0x458] sm:$0xff] }
  0x5f   : > { %733 = vmatmul.mubr.f32.gmra.mrb[26].mxu0 %v203_v18  ;;  %933 = vmatmul.mubr.f32.gmra.mrb[26].mxu1 %v283_v19  ;;  %v235_v18 = vld [vmem:[%s1659_s5 + $0x1d0] sm:$0xff] }
  0x60   : > { %1308 = vmatprep.mubr.msk.f32.mxu0 %vm362_vm0, %v206_v20  ;;  %1348 = vmatprep.mubr.msk.f32.mxu1 %vm362_vm0, %v286_v21  ;;  %v315_v19 = vld [vmem:[%s1659_s5 + $0x450] sm:$0xff]  ;;  %v238_v20 = vld [vmem:[%s1659_s5 + $0x1e8] sm:$0xff] }
  0x61   : > { %v318_v21 = vld [vmem:[%s1659_s5 + $0x468] sm:$0xff] }
  0x63   : > { %738 = vmatmul.mubr.f32.gmra.mrb[28].mxu0 %v205_v22  ;;  %938 = vmatmul.mubr.f32.gmra.mrb[28].mxu1 %v285_v23  ;;  %v237_v22 = vld [vmem:[%s1659_s5 + $0x1e0] sm:$0xff] }
  0x64   : > { %1309 = vmatprep.mubr.msk.f32.mxu0 %vm362_vm0, %v208_v24  ;;  %1349 = vmatprep.mubr.msk.f32.mxu1 %vm362_vm0, %v288_v25  ;;  %v317_v23 = vld [vmem:[%s1659_s5 + $0x460] sm:$0xff]  ;;  %v240_v24 = vld [vmem:[%s1659_s5 + $0x1f8] sm:$0xff] }
  0x65   : > { %v320_v25 = vld [vmem:[%s1659_s5 + $0x478] sm:$0xff] }
  0x67   : > { %743 = vmatmul.mubr.f32.gmra.mrb[30].mxu0 %v207_v26  ;;  %943 = vmatmul.mubr.f32.gmra.mrb[30].mxu1 %v287_v27  ;;  %v239_v26 = vld [vmem:[%s1659_s5 + $0x1f0] sm:$0xff] }
  0x68   : > { %1310 = vmatprep.mubr.msk.f32.mxu0 %vm362_vm0, %v210_v28  ;;  %1350 = vmatprep.mubr.msk.f32.mxu1 %vm362_vm0, %v290_v29  ;;  %v319_v27 = vld [vmem:[%s1659_s5 + $0x470] sm:$0xff]  ;;  %v242_v28 = vld [vmem:[%s1659_s5 + $0x208] sm:$0xff] }
  0x69   : > { %v322_v29 = vld [vmem:[%s1659_s5 + $0x488] sm:$0xff] }
  0x6b   : > { %748 = vmatmul.mubr.f32.gmra.mrb[32].mxu0 %v209_v30  ;;  %948 = vmatmul.mubr.f32.gmra.mrb[32].mxu1 %v289_v31  ;;  %v241_v30 = vld [vmem:[%s1659_s5 + $0x200] sm:$0xff] }
  0x6c   : > { %1311 = vmatprep.mubr.msk.f32.mxu0 %vm362_vm0, %v212_v32  ;;  %1351 = vmatprep.mubr.msk.f32.mxu1 %vm362_vm0, %v292_v33  ;;  %v321_v31 = vld [vmem:[%s1659_s5 + $0x480] sm:$0xff]  ;;  %v244_v32 = vld [vmem:[%s1659_s5 + $0x218] sm:$0xff] }
  0x6d   : > { %v324_v33 = vld [vmem:[%s1659_s5 + $0x498] sm:$0xff] }
  0x6f   : > { %753 = vmatmul.mubr.f32.gmra.mrb[34].mxu0 %v211_v34  ;;  %953 = vmatmul.mubr.f32.gmra.mrb[34].mxu1 %v291_v35  ;;  %v243_v34 = vld [vmem:[%s1659_s5 + $0x210] sm:$0xff] }
  0x70   : > { %1312 = vmatprep.mubr.msk.f32.mxu0 %vm362_vm0, %v214_v36  ;;  %1352 = vmatprep.mubr.msk.f32.mxu1 %vm362_vm0, %v294_v37  ;;  %v323_v35 = vld [vmem:[%s1659_s5 + $0x490] sm:$0xff]  ;;  %v246_v36 = vld [vmem:[%s1659_s5 + $0x228] sm:$0xff] }
  0x71   : > { %v326_v37 = vld [vmem:[%s1659_s5 + $0x4a8] sm:$0xff] }
  0x73   : > { %758 = vmatmul.mubr.f32.gmra.mrb[36].mxu0 %v213_v38  ;;  %958 = vmatmul.mubr.f32.gmra.mrb[36].mxu1 %v293_v39  ;;  %v245_v38 = vld [vmem:[%s1659_s5 + $0x220] sm:$0xff] }
  0x74   : > { %1313 = vmatprep.mubr.msk.f32.mxu0 %vm362_vm0, %v216_v40  ;;  %1353 = vmatprep.mubr.msk.f32.mxu1 %vm362_vm0, %v296_v41  ;;  %v325_v39 = vld [vmem:[%s1659_s5 + $0x4a0] sm:$0xff]  ;;  %v248_v40 = vld [vmem:[%s1659_s5 + $0x238] sm:$0xff] }
  0x75   : > { %v328_v41 = vld [vmem:[%s1659_s5 + $0x4b8] sm:$0xff] }
  0x77   : > { %763 = vmatmul.mubr.f32.gmra.mrb[38].mxu0 %v215_v42  ;;  %963 = vmatmul.mubr.f32.gmra.mrb[38].mxu1 %v295_v43  ;;  %v247_v42 = vld [vmem:[%s1659_s5 + $0x230] sm:$0xff] }
  0x78   : > { %1314 = vmatprep.mubr.msk.f32.mxu0 %vm362_vm0, %v218_v44  ;;  %1354 = vmatprep.mubr.msk.f32.mxu1 %vm362_vm0, %v298_v45  ;;  %v327_v43 = vld [vmem:[%s1659_s5 + $0x4b0] sm:$0xff]  ;;  %v250_v44 = vld [vmem:[%s1659_s5 + $0x248] sm:$0xff] }
  0x79   : > { %v330_v45 = vld [vmem:[%s1659_s5 + $0x4c8] sm:$0xff] }
  0x7b   : > { %768 = vmatmul.mubr.f32.gmra.mrb[40].mxu0 %v217_v46  ;;  %968 = vmatmul.mubr.f32.gmra.mrb[40].mxu1 %v297_v47  ;;  %v249_v46 = vld [vmem:[%s1659_s5 + $0x240] sm:$0xff] }
  0x7c   : > { %1315 = vmatprep.mubr.msk.f32.mxu0 %vm362_vm0, %v220_v48  ;;  %1355 = vmatprep.mubr.msk.f32.mxu1 %vm362_vm0, %v300_v49  ;;  %v329_v47 = vld [vmem:[%s1659_s5 + $0x4c0] sm:$0xff]  ;;  %v252_v48 = vld [vmem:[%s1659_s5 + $0x258] sm:$0xff] }
  0x7d   : > { %v332_v49 = vld [vmem:[%s1659_s5 + $0x4d8] sm:$0xff] }
  0x7f   : > { %773 = vmatmul.mubr.f32.gmra.mrb[42].mxu0 %v219_v50  ;;  %973 = vmatmul.mubr.f32.gmra.mrb[42].mxu1 %v299_v51  ;;  %v251_v50 = vld [vmem:[%s1659_s5 + $0x250] sm:$0xff] }
  0x80   : > { %1316 = vmatprep.mubr.msk.f32.mxu0 %vm362_vm0, %v222_v52  ;;  %1356 = vmatprep.mubr.msk.f32.mxu1 %vm362_vm0, %v302_v53  ;;  %v331_v51 = vld [vmem:[%s1659_s5 + $0x4d0] sm:$0xff]  ;;  %v254_v52 = vld [vmem:[%s1659_s5 + $0x268] sm:$0xff] }
  0x81   : > { %v334_v53 = vld [vmem:[%s1659_s5 + $0x4e8] sm:$0xff] }
  0x83   : > { %778 = vmatmul.mubr.f32.gmra.mrb[44].mxu0 %v221_v54  ;;  %978 = vmatmul.mubr.f32.gmra.mrb[44].mxu1 %v301_v55  ;;  %v253_v54 = vld [vmem:[%s1659_s5 + $0x260] sm:$0xff] }
  0x84   : > { %1317 = vmatprep.mubr.msk.f32.mxu0 %vm362_vm0, %v224_v56  ;;  %1357 = vmatprep.mubr.msk.f32.mxu1 %vm362_vm0, %v304_v57  ;;  %v333_v55 = vld [vmem:[%s1659_s5 + $0x4e0] sm:$0xff]  ;;  %v256_v56 = vld [vmem:[%s1659_s5 + $0x278] sm:$0xff] }
  0x85   : > { %v336_v57 = vld [vmem:[%s1659_s5 + $0x4f8] sm:$0xff] }
  0x87   : > { %783 = vmatmul.mubr.f32.gmra.mrb[46].mxu0 %v223_v58  ;;  %983 = vmatmul.mubr.f32.gmra.mrb[46].mxu1 %v303_v59  ;;  %v255_v58 = vld [vmem:[%s1659_s5 + $0x270] sm:$0xff] }
  0x88   : > { %1318 = vmatprep.mubr.msk.f32.mxu0 %vm362_vm0, %v226_v60  ;;  %1358 = vmatprep.mubr.msk.f32.mxu1 %vm362_vm0, %v306_v61  ;;  %v335_v59 = vld [vmem:[%s1659_s5 + $0x4f0] sm:$0xff]  ;;  %v1951_v60 = vld [vmem:[%s2204_s2] ss:$0 sm:$0xff]  ;;  %s1292_s5 = sshll.u32 %s2207_s20, 3 }
  0x89   : > { %s1963_s8 = scalar_lea.vmem %s2205_s3, %s1292_s5 }
  0x8b   : > { %788 = vmatmul.mubr.f32.gmra.mrb[48].mxu0 %v225_v62  ;;  %988 = vmatmul.mubr.f32.gmra.mrb[48].mxu1 %v305_v63 }
  0x8c   : > { %1319 = vmatprep.mubr.msk.f32.mxu0 %vm362_vm0, %v228_v0  ;;  %1359 = vmatprep.mubr.msk.f32.mxu1 %vm362_vm0, %v308_v1 }
  0x8f   : > { %793 = vmatmul.mubr.f32.gmra.mrb[50].mxu0 %v227_v2  ;;  %993 = vmatmul.mubr.f32.gmra.mrb[50].mxu1 %v307_v3 }
  0x90   : > { %1320 = vmatprep.mubr.msk.f32.mxu0 %vm362_vm0, %v230_v4  ;;  %1360 = vmatprep.mubr.msk.f32.mxu1 %vm362_vm0, %v310_v5 }
  0x93   : > { %798 = vmatmul.mubr.f32.gmra.mrb[52].mxu0 %v229_v6  ;;  %998 = vmatmul.mubr.f32.gmra.mrb[52].mxu1 %v309_v7 }
  0x94   : > { %1321 = vmatprep.mubr.msk.f32.mxu0 %vm362_vm0, %v232_v8  ;;  %1361 = vmatprep.mubr.msk.f32.mxu1 %vm362_vm0, %v312_v9 }
  0x97   : > { %803 = vmatmul.mubr.f32.gmra.mrb[54].mxu0 %v231_v10  ;;  %1003 = vmatmul.mubr.f32.gmra.mrb[54].mxu1 %v311_v11 }
  0x98   : > { %1322 = vmatprep.mubr.msk.f32.mxu0 %vm362_vm0, %v234_v12  ;;  %1362 = vmatprep.mubr.msk.f32.mxu1 %vm362_vm0, %v314_v13 }
  0x9b   : > { %808 = vmatmul.mubr.f32.gmra.mrb[56].mxu0 %v233_v14  ;;  %1008 = vmatmul.mubr.f32.gmra.mrb[56].mxu1 %v313_v15 }
  0x9c   : > { %1323 = vmatprep.mubr.msk.f32.mxu0 %vm362_vm0, %v236_v16  ;;  %1363 = vmatprep.mubr.msk.f32.mxu1 %vm362_vm0, %v316_v17 }
  0x9f   : > { %813 = vmatmul.mubr.f32.gmra.mrb[58].mxu0 %v235_v18  ;;  %1013 = vmatmul.mubr.f32.gmra.mrb[58].mxu1 %v315_v19 }
  0xa0   : > { %1324 = vmatprep.mubr.msk.f32.mxu0 %vm362_vm0, %v238_v20  ;;  %1364 = vmatprep.mubr.msk.f32.mxu1 %vm362_vm0, %v318_v21 }
  0xa3   : > { %818 = vmatmul.mubr.f32.gmra.mrb[60].mxu0 %v237_v22  ;;  %1018 = vmatmul.mubr.f32.gmra.mrb[60].mxu1 %v317_v23 }
  0xa4   : > { %1325 = vmatprep.mubr.msk.f32.mxu0 %vm362_vm0, %v240_v24  ;;  %1365 = vmatprep.mubr.msk.f32.mxu1 %vm362_vm0, %v320_v25 }
  0xa7   : > { %823 = vmatmul.mubr.f32.gmra.mrb[62].mxu0 %v239_v26  ;;  %1023 = vmatmul.mubr.f32.gmra.mrb[62].mxu1 %v319_v27 }
  0xa8   : > { %1326 = vmatprep.mubr.msk.f32.mxu0 %vm362_vm0, %v242_v28  ;;  %1366 = vmatprep.mubr.msk.f32.mxu1 %vm362_vm0, %v322_v29 }
  0xab   : > { %828 = vmatmul.mubr.f32.gmra.mrb[64].mxu0 %v241_v30  ;;  %1028 = vmatmul.mubr.f32.gmra.mrb[64].mxu1 %v321_v31 }
  0xac   : > { %1327 = vmatprep.mubr.msk.f32.mxu0 %vm362_vm0, %v244_v32  ;;  %1367 = vmatprep.mubr.msk.f32.mxu1 %vm362_vm0, %v324_v33 }
  0xaf   : > { %833 = vmatmul.mubr.f32.gmra.mrb[66].mxu0 %v243_v34  ;;  %1033 = vmatmul.mubr.f32.gmra.mrb[66].mxu1 %v323_v35 }
  0xb0   : > { %1328 = vmatprep.mubr.msk.f32.mxu0 %vm362_vm0, %v246_v36  ;;  %1368 = vmatprep.mubr.msk.f32.mxu1 %vm362_vm0, %v326_v37 }
  0xb3   : > { %838 = vmatmul.mubr.f32.gmra.mrb[68].mxu0 %v245_v38  ;;  %1038 = vmatmul.mubr.f32.gmra.mrb[68].mxu1 %v325_v39 }
  0xb4   : > { %1329 = vmatprep.mubr.msk.f32.mxu0 %vm362_vm0, %v248_v40  ;;  %1369 = vmatprep.mubr.msk.f32.mxu1 %vm362_vm0, %v328_v41 }
  0xb7   : > { %843 = vmatmul.mubr.f32.gmra.mrb[70].mxu0 %v247_v42  ;;  %1043 = vmatmul.mubr.f32.gmra.mrb[70].mxu1 %v327_v43 }
  0xb8   : > { %1330 = vmatprep.mubr.msk.f32.mxu0 %vm362_vm0, %v250_v44  ;;  %1370 = vmatprep.mubr.msk.f32.mxu1 %vm362_vm0, %v330_v45 }
  0xbb   : > { %848 = vmatmul.mubr.f32.gmra.mrb[72].mxu0 %v249_v46  ;;  %1048 = vmatmul.mubr.f32.gmra.mrb[72].mxu1 %v329_v47 }
  0xbc   : > { %1331 = vmatprep.mubr.msk.f32.mxu0 %vm362_vm0, %v252_v48  ;;  %1371 = vmatprep.mubr.msk.f32.mxu1 %vm362_vm0, %v332_v49 }
  0xbf   : > { %853 = vmatmul.mubr.f32.gmra.mrb[74].mxu0 %v251_v50  ;;  %1053 = vmatmul.mubr.f32.gmra.mrb[74].mxu1 %v331_v51 }
  0xc0   : > { %1332 = vmatprep.mubr.msk.f32.mxu0 %vm362_vm0, %v254_v52  ;;  %1372 = vmatprep.mubr.msk.f32.mxu1 %vm362_vm0, %v334_v53 }
  0xc3   : > { %858 = vmatmul.mubr.f32.gmra.mrb[76].mxu0 %v253_v54  ;;  %1058 = vmatmul.mubr.f32.gmra.mrb[76].mxu1 %v333_v55 }
  0xc4   : > { %1333 = vmatprep.mubr.msk.f32.mxu0 %vm362_vm0, %v256_v56  ;;  %1373 = vmatprep.mubr.msk.f32.mxu1 %vm362_vm0, %v336_v57 }
  0xc7   : > { %863 = vmatmul.mubr.f32.gmra.mrb[78].mxu0 %v255_v58  ;;  %1063 = vmatmul.mubr.f32.gmra.mrb[78].mxu1 %v335_v59 }
  0xfe   : > { %v669_v61 = vpop.f32.mrb[0].mxu0  ;;  %v869_v62 = vpop.f32.mrb[0].mxu1 }
  0xff   : > { %v670_v63 = vadd.f32 %v1951_v60, %v669_v61  ;;  %v870_v0 = vadd.f32 %v1951_v60, %v869_v62  ;;  %v671_v1 = vpop.f32.mrb[1].mxu0  ;;  %v871_v2 = vpop.f32.mrb[1].mxu1 }
 0x101   : > { %1431 = vtanh.f32 %v670_v63 }
 0x102   : > { %1433 = vtanh.f32 %v870_v0  ;;  %v674_v3 = vpop.f32.mrb[2].mxu0  ;;  %v874_v4 = vpop.f32.mrb[2].mxu1 }
 0x103   : > { %v675_v5 = vadd.f32 %v1951_v60, %v674_v3  ;;  %v875_v6 = vadd.f32 %v1951_v60, %v874_v4  ;;  %v676_v7 = vpop.f32.mrb[3].mxu0  ;;  %v876_v8 = vpop.f32.mrb[3].mxu1 }
 0x105   : > { %1435 = vtanh.f32 %v675_v5 }
 0x106   : > { %1437 = vtanh.f32 %v875_v6  ;;  %v679_v9 = vpop.f32.mrb[4].mxu0  ;;  %v879_v10 = vpop.f32.mrb[4].mxu1 }
 0x107   : > { %v680_v11 = vadd.f32 %v1951_v60, %v679_v9  ;;  %v880_v12 = vadd.f32 %v1951_v60, %v879_v10  ;;  %v681_v13 = vpop.f32.mrb[5].mxu0  ;;  %v881_v14 = vpop.f32.mrb[5].mxu1 }
 0x109   : > { %1439 = vtanh.f32 %v680_v11 }
 0x10a   : > { %1441 = vtanh.f32 %v880_v12  ;;  %v684_v15 = vpop.f32.mrb[6].mxu0  ;;  %v884_v16 = vpop.f32.mrb[6].mxu1 }
 0x10b   : > { %v1432_v17 = vpop.eup %1431  ;;  %v685_v18 = vadd.f32 %v1951_v60, %v684_v15  ;;  %v885_v19 = vadd.f32 %v1951_v60, %v884_v16  ;;  %v686_v20 = vpop.f32.mrb[7].mxu0 }
 0x10c   : > { %v886_v21 = vpop.f32.mrb[7].mxu1  ;;  %v1434_v22 = vpop.eup %1433  ;;  %1149 = vst.msk [vmem:[%s1963_s8] sm:$0xff] %vm1148_vm1, %v1432_v17 }
 0x10d   : > { %1189 = vst.msk [vmem:[%s1963_s8 + $0x140] sm:$0xff] %vm1148_vm1, %v1434_v22  ;;  %1443 = vtanh.f32 %v685_v18 }
 0x10e   : > { %1445 = vtanh.f32 %v885_v19  ;;  %v689_v23 = vpop.f32.mrb[8].mxu0  ;;  %v889_v24 = vpop.f32.mrb[8].mxu1 }
 0x10f   : > { %v1436_v25 = vpop.eup %1435  ;;  %v690_v26 = vadd.f32 %v1951_v60, %v689_v23  ;;  %v890_v27 = vadd.f32 %v1951_v60, %v889_v24  ;;  %v691_v28 = vpop.f32.mrb[9].mxu0 }
 0x110   : > { %v891_v29 = vpop.f32.mrb[9].mxu1  ;;  %v1438_v30 = vpop.eup %1437  ;;  %1150 = vst.msk [vmem:[%s1963_s8 + $0x8] sm:$0xff] %vm1148_vm1, %v1436_v25 }
 0x111   : > { %1190 = vst.msk [vmem:[%s1963_s8 + $0x148] sm:$0xff] %vm1148_vm1, %v1438_v30  ;;  %1447 = vtanh.f32 %v690_v26 }
 0x112   : > { %1449 = vtanh.f32 %v890_v27  ;;  %v694_v31 = vpop.f32.mrb[10].mxu0  ;;  %v894_v32 = vpop.f32.mrb[10].mxu1 }
 0x113   : > { %v1440_v33 = vpop.eup %1439  ;;  %v695_v34 = vadd.f32 %v1951_v60, %v694_v31  ;;  %v895_v35 = vadd.f32 %v1951_v60, %v894_v32  ;;  %v696_v36 = vpop.f32.mrb[11].mxu0 }
 0x114   : > { %v896_v37 = vpop.f32.mrb[11].mxu1  ;;  %v1442_v38 = vpop.eup %1441  ;;  %1151 = vst.msk [vmem:[%s1963_s8 + $0x10] sm:$0xff] %vm1148_vm1, %v1440_v33 }
 0x115   : > { %1191 = vst.msk [vmem:[%s1963_s8 + $0x150] sm:$0xff] %vm1148_vm1, %v1442_v38  ;;  %1451 = vtanh.f32 %v695_v34 }
 0x116   : > { %1453 = vtanh.f32 %v895_v35  ;;  %v699_v39 = vpop.f32.mrb[12].mxu0  ;;  %v899_v40 = vpop.f32.mrb[12].mxu1 }
 0x117   : > { %v1444_v41 = vpop.eup %1443  ;;  %v700_v42 = vadd.f32 %v1951_v60, %v699_v39  ;;  %v900_v43 = vadd.f32 %v1951_v60, %v899_v40  ;;  %v701_v44 = vpop.f32.mrb[13].mxu0 }
 0x118   : > { %v901_v45 = vpop.f32.mrb[13].mxu1  ;;  %v1446_v46 = vpop.eup %1445  ;;  %1152 = vst.msk [vmem:[%s1963_s8 + $0x18] sm:$0xff] %vm1148_vm1, %v1444_v41 }
 0x119   : > { %1192 = vst.msk [vmem:[%s1963_s8 + $0x158] sm:$0xff] %vm1148_vm1, %v1446_v46  ;;  %1455 = vtanh.f32 %v700_v42 }
 0x11a   : > { %1457 = vtanh.f32 %v900_v43  ;;  %v704_v47 = vpop.f32.mrb[14].mxu0  ;;  %v904_v48 = vpop.f32.mrb[14].mxu1 }
 0x11b   : > { %v1448_v49 = vpop.eup %1447  ;;  %v705_v50 = vadd.f32 %v1951_v60, %v704_v47  ;;  %v905_v51 = vadd.f32 %v1951_v60, %v904_v48  ;;  %v706_v52 = vpop.f32.mrb[15].mxu0 }
 0x11c   : > { %v906_v53 = vpop.f32.mrb[15].mxu1  ;;  %v1450_v54 = vpop.eup %1449  ;;  %1153 = vst.msk [vmem:[%s1963_s8 + $0x20] sm:$0xff] %vm1148_vm1, %v1448_v49 }
 0x11d   : > { %1193 = vst.msk [vmem:[%s1963_s8 + $0x160] sm:$0xff] %vm1148_vm1, %v1450_v54  ;;  %1459 = vtanh.f32 %v705_v50 }
 0x11e   : > { %1461 = vtanh.f32 %v905_v51  ;;  %v709_v55 = vpop.f32.mrb[16].mxu0  ;;  %v909_v56 = vpop.f32.mrb[16].mxu1 }
 0x11f   : > { %v1452_v57 = vpop.eup %1451  ;;  %v710_v58 = vadd.f32 %v1951_v60, %v709_v55  ;;  %v910_v59 = vadd.f32 %v1951_v60, %v909_v56  ;;  %v711_v61 = vpop.f32.mrb[17].mxu0 }
 0x120   : > { %v911_v62 = vpop.f32.mrb[17].mxu1  ;;  %v1454_v63 = vpop.eup %1453  ;;  %1154 = vst.msk [vmem:[%s1963_s8 + $0x28] sm:$0xff] %vm1148_vm1, %v1452_v57 }
 0x121   : > { %1194 = vst.msk [vmem:[%s1963_s8 + $0x168] sm:$0xff] %vm1148_vm1, %v1454_v63  ;;  %1463 = vtanh.f32 %v710_v58 }
 0x122   : > { %1465 = vtanh.f32 %v910_v59  ;;  %v714_v0 = vpop.f32.mrb[18].mxu0  ;;  %v914_v1 = vpop.f32.mrb[18].mxu1 }
 0x123   : > { %v1456_v2 = vpop.eup %1455  ;;  %v715_v3 = vadd.f32 %v1951_v60, %v714_v0  ;;  %v915_v4 = vadd.f32 %v1951_v60, %v914_v1  ;;  %v716_v5 = vpop.f32.mrb[19].mxu0 }
 0x124   : > { %v916_v6 = vpop.f32.mrb[19].mxu1  ;;  %v1458_v7 = vpop.eup %1457  ;;  %1155 = vst.msk [vmem:[%s1963_s8 + $0x30] sm:$0xff] %vm1148_vm1, %v1456_v2 }
 0x125   : > { %1195 = vst.msk [vmem:[%s1963_s8 + $0x170] sm:$0xff] %vm1148_vm1, %v1458_v7  ;;  %1467 = vtanh.f32 %v715_v3 }
 0x126   : > { %1469 = vtanh.f32 %v915_v4  ;;  %v719_v8 = vpop.f32.mrb[20].mxu0  ;;  %v919_v9 = vpop.f32.mrb[20].mxu1 }
 0x127   : > { %v1460_v10 = vpop.eup %1459  ;;  %v720_v11 = vadd.f32 %v1951_v60, %v719_v8  ;;  %v920_v12 = vadd.f32 %v1951_v60, %v919_v9  ;;  %v721_v13 = vpop.f32.mrb[21].mxu0 }
 0x128   : > { %v921_v14 = vpop.f32.mrb[21].mxu1  ;;  %v1462_v15 = vpop.eup %1461  ;;  %1156 = vst.msk [vmem:[%s1963_s8 + $0x38] sm:$0xff] %vm1148_vm1, %v1460_v10 }
 0x129   : > { %1196 = vst.msk [vmem:[%s1963_s8 + $0x178] sm:$0xff] %vm1148_vm1, %v1462_v15  ;;  %1471 = vtanh.f32 %v720_v11 }
 0x12a   : > { %1473 = vtanh.f32 %v920_v12  ;;  %v724_v16 = vpop.f32.mrb[22].mxu0  ;;  %v924_v17 = vpop.f32.mrb[22].mxu1 }
 0x12b   : > { %v1464_v18 = vpop.eup %1463  ;;  %v725_v19 = vadd.f32 %v1951_v60, %v724_v16  ;;  %v925_v20 = vadd.f32 %v1951_v60, %v924_v17  ;;  %v726_v21 = vpop.f32.mrb[23].mxu0 }
 0x12c   : > { %v926_v22 = vpop.f32.mrb[23].mxu1  ;;  %v1466_v23 = vpop.eup %1465  ;;  %1157 = vst.msk [vmem:[%s1963_s8 + $0x40] sm:$0xff] %vm1148_vm1, %v1464_v18 }
 0x12d   : > { %1197 = vst.msk [vmem:[%s1963_s8 + $0x180] sm:$0xff] %vm1148_vm1, %v1466_v23  ;;  %1475 = vtanh.f32 %v725_v19 }
 0x12e   : > { %1477 = vtanh.f32 %v925_v20  ;;  %v729_v24 = vpop.f32.mrb[24].mxu0  ;;  %v929_v25 = vpop.f32.mrb[24].mxu1 }
 0x12f   : > { %v1468_v26 = vpop.eup %1467  ;;  %v730_v27 = vadd.f32 %v1951_v60, %v729_v24  ;;  %v930_v28 = vadd.f32 %v1951_v60, %v929_v25  ;;  %v731_v29 = vpop.f32.mrb[25].mxu0 }
 0x130   : > { %v931_v30 = vpop.f32.mrb[25].mxu1  ;;  %v1470_v31 = vpop.eup %1469  ;;  %1158 = vst.msk [vmem:[%s1963_s8 + $0x48] sm:$0xff] %vm1148_vm1, %v1468_v26 }
 0x131   : > { %1198 = vst.msk [vmem:[%s1963_s8 + $0x188] sm:$0xff] %vm1148_vm1, %v1470_v31  ;;  %1479 = vtanh.f32 %v730_v27 }
 0x132   : > { %1481 = vtanh.f32 %v930_v28  ;;  %v734_v32 = vpop.f32.mrb[26].mxu0  ;;  %v934_v33 = vpop.f32.mrb[26].mxu1 }
 0x133   : > { %v1472_v34 = vpop.eup %1471  ;;  %v735_v35 = vadd.f32 %v1951_v60, %v734_v32  ;;  %v935_v36 = vadd.f32 %v1951_v60, %v934_v33  ;;  %v736_v37 = vpop.f32.mrb[27].mxu0 }
 0x134   : > { %v936_v38 = vpop.f32.mrb[27].mxu1  ;;  %v1474_v39 = vpop.eup %1473  ;;  %1159 = vst.msk [vmem:[%s1963_s8 + $0x50] sm:$0xff] %vm1148_vm1, %v1472_v34 }
 0x135   : > { %1199 = vst.msk [vmem:[%s1963_s8 + $0x190] sm:$0xff] %vm1148_vm1, %v1474_v39  ;;  %1483 = vtanh.f32 %v735_v35 }
 0x136   : > { %1485 = vtanh.f32 %v935_v36  ;;  %v739_v40 = vpop.f32.mrb[28].mxu0  ;;  %v939_v41 = vpop.f32.mrb[28].mxu1 }
 0x137   : > { %v1476_v42 = vpop.eup %1475  ;;  %v740_v43 = vadd.f32 %v1951_v60, %v739_v40  ;;  %v940_v44 = vadd.f32 %v1951_v60, %v939_v41  ;;  %v741_v45 = vpop.f32.mrb[29].mxu0 }
 0x138   : > { %v941_v46 = vpop.f32.mrb[29].mxu1  ;;  %v1478_v47 = vpop.eup %1477  ;;  %1160 = vst.msk [vmem:[%s1963_s8 + $0x58] sm:$0xff] %vm1148_vm1, %v1476_v42 }
 0x139   : > { %1200 = vst.msk [vmem:[%s1963_s8 + $0x198] sm:$0xff] %vm1148_vm1, %v1478_v47  ;;  %1487 = vtanh.f32 %v740_v43 }
 0x13a   : > { %1489 = vtanh.f32 %v940_v44  ;;  %v744_v48 = vpop.f32.mrb[30].mxu0  ;;  %v944_v49 = vpop.f32.mrb[30].mxu1 }
 0x13b   : > { %v1480_v50 = vpop.eup %1479  ;;  %v745_v51 = vadd.f32 %v1951_v60, %v744_v48  ;;  %v945_v52 = vadd.f32 %v1951_v60, %v944_v49  ;;  %v746_v53 = vpop.f32.mrb[31].mxu0 }
 0x13c   : > { %v946_v54 = vpop.f32.mrb[31].mxu1  ;;  %v1482_v55 = vpop.eup %1481  ;;  %1161 = vst.msk [vmem:[%s1963_s8 + $0x60] sm:$0xff] %vm1148_vm1, %v1480_v50 }
 0x13d   : > { %1201 = vst.msk [vmem:[%s1963_s8 + $0x1a0] sm:$0xff] %vm1148_vm1, %v1482_v55  ;;  %1491 = vtanh.f32 %v745_v51 }
 0x13e   : > { %1493 = vtanh.f32 %v945_v52  ;;  %v749_v56 = vpop.f32.mrb[32].mxu0  ;;  %v949_v57 = vpop.f32.mrb[32].mxu1 }
 0x13f   : > { %v1484_v58 = vpop.eup %1483  ;;  %v750_v59 = vadd.f32 %v1951_v60, %v749_v56  ;;  %v950_v61 = vadd.f32 %v1951_v60, %v949_v57  ;;  %v751_v62 = vpop.f32.mrb[33].mxu0 }
 0x140   : > { %v951_v63 = vpop.f32.mrb[33].mxu1  ;;  %v1486_v0 = vpop.eup %1485  ;;  %1162 = vst.msk [vmem:[%s1963_s8 + $0x68] sm:$0xff] %vm1148_vm1, %v1484_v58 }
 0x141   : > { %1202 = vst.msk [vmem:[%s1963_s8 + $0x1a8] sm:$0xff] %vm1148_vm1, %v1486_v0  ;;  %1495 = vtanh.f32 %v750_v59 }
 0x142   : > { %1497 = vtanh.f32 %v950_v61  ;;  %v754_v1 = vpop.f32.mrb[34].mxu0  ;;  %v954_v2 = vpop.f32.mrb[34].mxu1 }
 0x143   : > { %v1488_v3 = vpop.eup %1487  ;;  %v755_v4 = vadd.f32 %v1951_v60, %v754_v1  ;;  %v955_v5 = vadd.f32 %v1951_v60, %v954_v2  ;;  %v756_v6 = vpop.f32.mrb[35].mxu0 }
 0x144   : > { %v956_v7 = vpop.f32.mrb[35].mxu1  ;;  %v1490_v8 = vpop.eup %1489  ;;  %1163 = vst.msk [vmem:[%s1963_s8 + $0x70] sm:$0xff] %vm1148_vm1, %v1488_v3 }
 0x145   : > { %1203 = vst.msk [vmem:[%s1963_s8 + $0x1b0] sm:$0xff] %vm1148_vm1, %v1490_v8  ;;  %1499 = vtanh.f32 %v755_v4 }
 0x146   : > { %1501 = vtanh.f32 %v955_v5  ;;  %v759_v9 = vpop.f32.mrb[36].mxu0  ;;  %v959_v10 = vpop.f32.mrb[36].mxu1 }
 0x147   : > { %v1492_v11 = vpop.eup %1491  ;;  %v760_v12 = vadd.f32 %v1951_v60, %v759_v9  ;;  %v960_v13 = vadd.f32 %v1951_v60, %v959_v10  ;;  %v761_v14 = vpop.f32.mrb[37].mxu0 }
 0x148   : > { %v961_v15 = vpop.f32.mrb[37].mxu1  ;;  %v1494_v16 = vpop.eup %1493  ;;  %1164 = vst.msk [vmem:[%s1963_s8 + $0x78] sm:$0xff] %vm1148_vm1, %v1492_v11 }
 0x149   : > { %1204 = vst.msk [vmem:[%s1963_s8 + $0x1b8] sm:$0xff] %vm1148_vm1, %v1494_v16  ;;  %1503 = vtanh.f32 %v760_v12 }
 0x14a   : > { %1505 = vtanh.f32 %v960_v13  ;;  %v764_v17 = vpop.f32.mrb[38].mxu0  ;;  %v964_v18 = vpop.f32.mrb[38].mxu1 }
 0x14b   : > { %v1496_v19 = vpop.eup %1495  ;;  %v765_v20 = vadd.f32 %v1951_v60, %v764_v17  ;;  %v965_v21 = vadd.f32 %v1951_v60, %v964_v18  ;;  %v766_v22 = vpop.f32.mrb[39].mxu0 }
 0x14c   : > { %v966_v23 = vpop.f32.mrb[39].mxu1  ;;  %v1498_v24 = vpop.eup %1497  ;;  %1165 = vst.msk [vmem:[%s1963_s8 + $0x80] sm:$0xff] %vm1148_vm1, %v1496_v19 }
 0x14d   : > { %1205 = vst.msk [vmem:[%s1963_s8 + $0x1c0] sm:$0xff] %vm1148_vm1, %v1498_v24  ;;  %1507 = vtanh.f32 %v765_v20 }
 0x14e   : > { %1509 = vtanh.f32 %v965_v21  ;;  %v769_v25 = vpop.f32.mrb[40].mxu0  ;;  %v969_v26 = vpop.f32.mrb[40].mxu1 }
 0x14f   : > { %v1500_v27 = vpop.eup %1499  ;;  %v770_v28 = vadd.f32 %v1951_v60, %v769_v25  ;;  %v970_v29 = vadd.f32 %v1951_v60, %v969_v26  ;;  %v771_v30 = vpop.f32.mrb[41].mxu0 }
 0x150   : > { %v971_v31 = vpop.f32.mrb[41].mxu1  ;;  %v1502_v32 = vpop.eup %1501  ;;  %1166 = vst.msk [vmem:[%s1963_s8 + $0x88] sm:$0xff] %vm1148_vm1, %v1500_v27 }
 0x151   : > { %1206 = vst.msk [vmem:[%s1963_s8 + $0x1c8] sm:$0xff] %vm1148_vm1, %v1502_v32  ;;  %1511 = vtanh.f32 %v770_v28 }
 0x152   : > { %1513 = vtanh.f32 %v970_v29  ;;  %v774_v33 = vpop.f32.mrb[42].mxu0  ;;  %v974_v34 = vpop.f32.mrb[42].mxu1 }
 0x153   : > { %v1504_v35 = vpop.eup %1503  ;;  %v775_v36 = vadd.f32 %v1951_v60, %v774_v33  ;;  %v975_v37 = vadd.f32 %v1951_v60, %v974_v34  ;;  %v776_v38 = vpop.f32.mrb[43].mxu0 }
 0x154   : > { %v976_v39 = vpop.f32.mrb[43].mxu1  ;;  %v1506_v40 = vpop.eup %1505  ;;  %1167 = vst.msk [vmem:[%s1963_s8 + $0x90] sm:$0xff] %vm1148_vm1, %v1504_v35 }
 0x155   : > { %1207 = vst.msk [vmem:[%s1963_s8 + $0x1d0] sm:$0xff] %vm1148_vm1, %v1506_v40  ;;  %1515 = vtanh.f32 %v775_v36 }
 0x156   : > { %1517 = vtanh.f32 %v975_v37  ;;  %v779_v41 = vpop.f32.mrb[44].mxu0  ;;  %v979_v42 = vpop.f32.mrb[44].mxu1 }
 0x157   : > { %v1508_v43 = vpop.eup %1507  ;;  %v780_v44 = vadd.f32 %v1951_v60, %v779_v41  ;;  %v980_v45 = vadd.f32 %v1951_v60, %v979_v42  ;;  %v781_v46 = vpop.f32.mrb[45].mxu0 }
 0x158   : > { %v981_v47 = vpop.f32.mrb[45].mxu1  ;;  %v1510_v48 = vpop.eup %1509  ;;  %1168 = vst.msk [vmem:[%s1963_s8 + $0x98] sm:$0xff] %vm1148_vm1, %v1508_v43 }
 0x159   : > { %1208 = vst.msk [vmem:[%s1963_s8 + $0x1d8] sm:$0xff] %vm1148_vm1, %v1510_v48  ;;  %1519 = vtanh.f32 %v780_v44 }
 0x15a   : > { %1521 = vtanh.f32 %v980_v45  ;;  %v784_v49 = vpop.f32.mrb[46].mxu0  ;;  %v984_v50 = vpop.f32.mrb[46].mxu1 }
 0x15b   : > { %v1512_v51 = vpop.eup %1511  ;;  %v785_v52 = vadd.f32 %v1951_v60, %v784_v49  ;;  %v985_v53 = vadd.f32 %v1951_v60, %v984_v50  ;;  %v786_v54 = vpop.f32.mrb[47].mxu0 }
 0x15c   : > { %v986_v55 = vpop.f32.mrb[47].mxu1  ;;  %v1514_v56 = vpop.eup %1513  ;;  %1169 = vst.msk [vmem:[%s1963_s8 + $0xa0] sm:$0xff] %vm1148_vm1, %v1512_v51 }
 0x15d   : > { %1209 = vst.msk [vmem:[%s1963_s8 + $0x1e0] sm:$0xff] %vm1148_vm1, %v1514_v56  ;;  %1523 = vtanh.f32 %v785_v52 }
 0x15e   : > { %1525 = vtanh.f32 %v985_v53  ;;  %v789_v57 = vpop.f32.mrb[48].mxu0  ;;  %v989_v58 = vpop.f32.mrb[48].mxu1 }
 0x15f   : > { %v1516_v59 = vpop.eup %1515  ;;  %v790_v61 = vadd.f32 %v1951_v60, %v789_v57  ;;  %v990_v62 = vadd.f32 %v1951_v60, %v989_v58  ;;  %v791_v63 = vpop.f32.mrb[49].mxu0 }
 0x160   : > { %v991_v0 = vpop.f32.mrb[49].mxu1  ;;  %v1518_v1 = vpop.eup %1517  ;;  %1170 = vst.msk [vmem:[%s1963_s8 + $0xa8] sm:$0xff] %vm1148_vm1, %v1516_v59 }
 0x161   : > { %1210 = vst.msk [vmem:[%s1963_s8 + $0x1e8] sm:$0xff] %vm1148_vm1, %v1518_v1  ;;  %1527 = vtanh.f32 %v790_v61 }
 0x162   : > { %1529 = vtanh.f32 %v990_v62  ;;  %v794_v2 = vpop.f32.mrb[50].mxu0  ;;  %v994_v3 = vpop.f32.mrb[50].mxu1 }
 0x163   : > { %v1520_v4 = vpop.eup %1519  ;;  %v795_v5 = vadd.f32 %v1951_v60, %v794_v2  ;;  %v995_v6 = vadd.f32 %v1951_v60, %v994_v3  ;;  %v796_v7 = vpop.f32.mrb[51].mxu0 }
 0x164   : > { %v996_v8 = vpop.f32.mrb[51].mxu1  ;;  %v1522_v9 = vpop.eup %1521  ;;  %1171 = vst.msk [vmem:[%s1963_s8 + $0xb0] sm:$0xff] %vm1148_vm1, %v1520_v4 }
 0x165   : > { %1211 = vst.msk [vmem:[%s1963_s8 + $0x1f0] sm:$0xff] %vm1148_vm1, %v1522_v9  ;;  %1531 = vtanh.f32 %v795_v5 }
 0x166   : > { %1533 = vtanh.f32 %v995_v6  ;;  %v799_v10 = vpop.f32.mrb[52].mxu0  ;;  %v999_v11 = vpop.f32.mrb[52].mxu1 }
 0x167   : > { %v1524_v12 = vpop.eup %1523  ;;  %v800_v13 = vadd.f32 %v1951_v60, %v799_v10  ;;  %v1000_v14 = vadd.f32 %v1951_v60, %v999_v11  ;;  %v801_v15 = vpop.f32.mrb[53].mxu0 }
 0x168   : > { %v1001_v16 = vpop.f32.mrb[53].mxu1  ;;  %v1526_v17 = vpop.eup %1525  ;;  %1172 = vst.msk [vmem:[%s1963_s8 + $0xb8] sm:$0xff] %vm1148_vm1, %v1524_v12 }
 0x169   : > { %1212 = vst.msk [vmem:[%s1963_s8 + $0x1f8] sm:$0xff] %vm1148_vm1, %v1526_v17  ;;  %1535 = vtanh.f32 %v800_v13 }
 0x16a   : > { %1537 = vtanh.f32 %v1000_v14  ;;  %v804_v18 = vpop.f32.mrb[54].mxu0  ;;  %v1004_v19 = vpop.f32.mrb[54].mxu1 }
 0x16b   : > { %v1528_v20 = vpop.eup %1527  ;;  %v805_v21 = vadd.f32 %v1951_v60, %v804_v18  ;;  %v1005_v22 = vadd.f32 %v1951_v60, %v1004_v19  ;;  %v806_v23 = vpop.f32.mrb[55].mxu0 }
 0x16c   : > { %v1006_v24 = vpop.f32.mrb[55].mxu1  ;;  %v1530_v25 = vpop.eup %1529  ;;  %1173 = vst.msk [vmem:[%s1963_s8 + $0xc0] sm:$0xff] %vm1148_vm1, %v1528_v20 }
 0x16d   : > { %1213 = vst.msk [vmem:[%s1963_s8 + $0x200] sm:$0xff] %vm1148_vm1, %v1530_v25  ;;  %1539 = vtanh.f32 %v805_v21 }
 0x16e   : > { %1541 = vtanh.f32 %v1005_v22  ;;  %v809_v26 = vpop.f32.mrb[56].mxu0  ;;  %v1009_v27 = vpop.f32.mrb[56].mxu1 }
 0x16f   : > { %v1532_v28 = vpop.eup %1531  ;;  %v810_v29 = vadd.f32 %v1951_v60, %v809_v26  ;;  %v1010_v30 = vadd.f32 %v1951_v60, %v1009_v27  ;;  %v811_v31 = vpop.f32.mrb[57].mxu0 }
 0x170   : > { %v1011_v32 = vpop.f32.mrb[57].mxu1  ;;  %v1534_v33 = vpop.eup %1533  ;;  %1174 = vst.msk [vmem:[%s1963_s8 + $0xc8] sm:$0xff] %vm1148_vm1, %v1532_v28 }
 0x171   : > { %1214 = vst.msk [vmem:[%s1963_s8 + $0x208] sm:$0xff] %vm1148_vm1, %v1534_v33  ;;  %1543 = vtanh.f32 %v810_v29 }
 0x172   : > { %1545 = vtanh.f32 %v1010_v30  ;;  %v814_v34 = vpop.f32.mrb[58].mxu0  ;;  %v1014_v35 = vpop.f32.mrb[58].mxu1 }
 0x173   : > { %v1536_v36 = vpop.eup %1535  ;;  %v815_v37 = vadd.f32 %v1951_v60, %v814_v34  ;;  %v1015_v38 = vadd.f32 %v1951_v60, %v1014_v35  ;;  %v816_v39 = vpop.f32.mrb[59].mxu0 }
 0x174   : > { %v1016_v40 = vpop.f32.mrb[59].mxu1  ;;  %v1538_v41 = vpop.eup %1537  ;;  %1175 = vst.msk [vmem:[%s1963_s8 + $0xd0] sm:$0xff] %vm1148_vm1, %v1536_v36 }
 0x175   : > { %1215 = vst.msk [vmem:[%s1963_s8 + $0x210] sm:$0xff] %vm1148_vm1, %v1538_v41  ;;  %1547 = vtanh.f32 %v815_v37 }
 0x176   : > { %1549 = vtanh.f32 %v1015_v38  ;;  %v819_v42 = vpop.f32.mrb[60].mxu0  ;;  %v1019_v43 = vpop.f32.mrb[60].mxu1 }
 0x177   : > { %v1540_v44 = vpop.eup %1539  ;;  %v820_v45 = vadd.f32 %v1951_v60, %v819_v42  ;;  %v1020_v46 = vadd.f32 %v1951_v60, %v1019_v43  ;;  %v821_v47 = vpop.f32.mrb[61].mxu0 }
 0x178   : > { %v1021_v48 = vpop.f32.mrb[61].mxu1  ;;  %v1542_v49 = vpop.eup %1541  ;;  %1176 = vst.msk [vmem:[%s1963_s8 + $0xd8] sm:$0xff] %vm1148_vm1, %v1540_v44 }
 0x179   : > { %1216 = vst.msk [vmem:[%s1963_s8 + $0x218] sm:$0xff] %vm1148_vm1, %v1542_v49  ;;  %1551 = vtanh.f32 %v820_v45 }
 0x17a   : > { %1553 = vtanh.f32 %v1020_v46  ;;  %v824_v50 = vpop.f32.mrb[62].mxu0  ;;  %v1024_v51 = vpop.f32.mrb[62].mxu1 }
 0x17b   : > { %v1544_v52 = vpop.eup %1543  ;;  %v825_v53 = vadd.f32 %v1951_v60, %v824_v50  ;;  %v1025_v54 = vadd.f32 %v1951_v60, %v1024_v51  ;;  %v826_v55 = vpop.f32.mrb[63].mxu0 }
 0x17c   : > { %v1026_v56 = vpop.f32.mrb[63].mxu1  ;;  %v1546_v57 = vpop.eup %1545  ;;  %1177 = vst.msk [vmem:[%s1963_s8 + $0xe0] sm:$0xff] %vm1148_vm1, %v1544_v52 }
 0x17d   : > { %1217 = vst.msk [vmem:[%s1963_s8 + $0x220] sm:$0xff] %vm1148_vm1, %v1546_v57  ;;  %1555 = vtanh.f32 %v825_v53 }
 0x17e   : > { %1557 = vtanh.f32 %v1025_v54  ;;  %v829_v58 = vpop.f32.mrb[64].mxu0  ;;  %v1029_v59 = vpop.f32.mrb[64].mxu1 }
 0x17f   : > { %v1548_v61 = vpop.eup %1547  ;;  %v830_v62 = vadd.f32 %v1951_v60, %v829_v58  ;;  %v1030_v63 = vadd.f32 %v1951_v60, %v1029_v59  ;;  %v831_v0 = vpop.f32.mrb[65].mxu0 }
 0x180   : > { %v1031_v1 = vpop.f32.mrb[65].mxu1  ;;  %v1550_v2 = vpop.eup %1549  ;;  %1178 = vst.msk [vmem:[%s1963_s8 + $0xe8] sm:$0xff] %vm1148_vm1, %v1548_v61 }
 0x181   : > { %1218 = vst.msk [vmem:[%s1963_s8 + $0x228] sm:$0xff] %vm1148_vm1, %v1550_v2  ;;  %1559 = vtanh.f32 %v830_v62 }
 0x182   : > { %1561 = vtanh.f32 %v1030_v63  ;;  %v834_v3 = vpop.f32.mrb[66].mxu0  ;;  %v1034_v4 = vpop.f32.mrb[66].mxu1 }
 0x183   : > { %v1552_v5 = vpop.eup %1551  ;;  %v835_v6 = vadd.f32 %v1951_v60, %v834_v3  ;;  %v1035_v7 = vadd.f32 %v1951_v60, %v1034_v4  ;;  %v836_v8 = vpop.f32.mrb[67].mxu0 }
 0x184   : > { %v1036_v9 = vpop.f32.mrb[67].mxu1  ;;  %v1554_v10 = vpop.eup %1553  ;;  %1179 = vst.msk [vmem:[%s1963_s8 + $0xf0] sm:$0xff] %vm1148_vm1, %v1552_v5 }
 0x185   : > { %1219 = vst.msk [vmem:[%s1963_s8 + $0x230] sm:$0xff] %vm1148_vm1, %v1554_v10  ;;  %1563 = vtanh.f32 %v835_v6 }
 0x186   : > { %1565 = vtanh.f32 %v1035_v7  ;;  %v839_v11 = vpop.f32.mrb[68].mxu0  ;;  %v1039_v12 = vpop.f32.mrb[68].mxu1 }
 0x187   : > { %v1556_v13 = vpop.eup %1555  ;;  %v840_v14 = vadd.f32 %v1951_v60, %v839_v11  ;;  %v1040_v15 = vadd.f32 %v1951_v60, %v1039_v12  ;;  %v841_v16 = vpop.f32.mrb[69].mxu0 }
 0x188   : > { %v1041_v17 = vpop.f32.mrb[69].mxu1  ;;  %v1558_v18 = vpop.eup %1557  ;;  %1180 = vst.msk [vmem:[%s1963_s8 + $0xf8] sm:$0xff] %vm1148_vm1, %v1556_v13 }
 0x189   : > { %1220 = vst.msk [vmem:[%s1963_s8 + $0x238] sm:$0xff] %vm1148_vm1, %v1558_v18  ;;  %1567 = vtanh.f32 %v840_v14 }
 0x18a   : > { %1569 = vtanh.f32 %v1040_v15  ;;  %v844_v19 = vpop.f32.mrb[70].mxu0  ;;  %v1044_v20 = vpop.f32.mrb[70].mxu1 }
 0x18b   : > { %v1560_v21 = vpop.eup %1559  ;;  %v845_v22 = vadd.f32 %v1951_v60, %v844_v19  ;;  %v1045_v23 = vadd.f32 %v1951_v60, %v1044_v20  ;;  %v846_v24 = vpop.f32.mrb[71].mxu0 }
 0x18c   : > { %v1046_v25 = vpop.f32.mrb[71].mxu1  ;;  %v1562_v26 = vpop.eup %1561  ;;  %1181 = vst.msk [vmem:[%s1963_s8 + $0x100] sm:$0xff] %vm1148_vm1, %v1560_v21 }
 0x18d   : > { %1221 = vst.msk [vmem:[%s1963_s8 + $0x240] sm:$0xff] %vm1148_vm1, %v1562_v26  ;;  %1571 = vtanh.f32 %v845_v22 }
 0x18e   : > { %1573 = vtanh.f32 %v1045_v23  ;;  %v849_v27 = vpop.f32.mrb[72].mxu0  ;;  %v1049_v28 = vpop.f32.mrb[72].mxu1 }
 0x18f   : > { %v1564_v29 = vpop.eup %1563  ;;  %v850_v30 = vadd.f32 %v1951_v60, %v849_v27  ;;  %v1050_v31 = vadd.f32 %v1951_v60, %v1049_v28  ;;  %v851_v32 = vpop.f32.mrb[73].mxu0 }
 0x190   : > { %v1051_v33 = vpop.f32.mrb[73].mxu1  ;;  %v1566_v34 = vpop.eup %1565  ;;  %1182 = vst.msk [vmem:[%s1963_s8 + $0x108] sm:$0xff] %vm1148_vm1, %v1564_v29 }
 0x191   : > { %1222 = vst.msk [vmem:[%s1963_s8 + $0x248] sm:$0xff] %vm1148_vm1, %v1566_v34  ;;  %1575 = vtanh.f32 %v850_v30 }
 0x192   : > { %1577 = vtanh.f32 %v1050_v31  ;;  %v854_v35 = vpop.f32.mrb[74].mxu0  ;;  %v1054_v36 = vpop.f32.mrb[74].mxu1 }
 0x193   : > { %v1568_v37 = vpop.eup %1567  ;;  %v855_v38 = vadd.f32 %v1951_v60, %v854_v35  ;;  %v1055_v39 = vadd.f32 %v1951_v60, %v1054_v36  ;;  %v856_v40 = vpop.f32.mrb[75].mxu0 }
 0x194   : > { %v1056_v41 = vpop.f32.mrb[75].mxu1  ;;  %v1570_v42 = vpop.eup %1569  ;;  %1183 = vst.msk [vmem:[%s1963_s8 + $0x110] sm:$0xff] %vm1148_vm1, %v1568_v37 }
 0x195   : > { %1223 = vst.msk [vmem:[%s1963_s8 + $0x250] sm:$0xff] %vm1148_vm1, %v1570_v42  ;;  %1579 = vtanh.f32 %v855_v38 }
 0x196   : > { %1581 = vtanh.f32 %v1055_v39  ;;  %v859_v43 = vpop.f32.mrb[76].mxu0  ;;  %v1059_v44 = vpop.f32.mrb[76].mxu1 }
 0x197   : > { %v1572_v45 = vpop.eup %1571  ;;  %v860_v46 = vadd.f32 %v1951_v60, %v859_v43  ;;  %v1060_v47 = vadd.f32 %v1951_v60, %v1059_v44  ;;  %v861_v48 = vpop.f32.mrb[77].mxu0 }
 0x198   : > { %v1061_v49 = vpop.f32.mrb[77].mxu1  ;;  %v1574_v50 = vpop.eup %1573  ;;  %1184 = vst.msk [vmem:[%s1963_s8 + $0x118] sm:$0xff] %vm1148_vm1, %v1572_v45 }
 0x199   : > { %1224 = vst.msk [vmem:[%s1963_s8 + $0x258] sm:$0xff] %vm1148_vm1, %v1574_v50  ;;  %1583 = vtanh.f32 %v860_v46 }
 0x19a   : > { %1585 = vtanh.f32 %v1060_v47  ;;  %v864_v51 = vpop.f32.mrb[78].mxu0  ;;  %v1064_v52 = vpop.f32.mrb[78].mxu1 }
 0x19b   : > { %v1576_v53 = vpop.eup %1575  ;;  %v865_v54 = vadd.f32 %v1951_v60, %v864_v51  ;;  %v1065_v55 = vadd.f32 %v1951_v60, %v1064_v52  ;;  %v866_v56 = vpop.f32.mrb[79].mxu0 }
 0x19c   : > { %v1066_v57 = vpop.f32.mrb[79].mxu1  ;;  %v1578_v58 = vpop.eup %1577  ;;  %1185 = vst.msk [vmem:[%s1963_s8 + $0x120] sm:$0xff] %vm1148_vm1, %v1576_v53 }
 0x19d   : > { %1225 = vst.msk [vmem:[%s1963_s8 + $0x260] sm:$0xff] %vm1148_vm1, %v1578_v58  ;;  %1587 = vtanh.f32 %v865_v54 }
 0x19e   : > { %1589 = vtanh.f32 %v1065_v55 }
 0x19f   : > { %v1580_v59 = vpop.eup %1579 }
 0x1a0   : > { %v1582_v61 = vpop.eup %1581  ;;  %1186 = vst.msk [vmem:[%s1963_s8 + $0x128] sm:$0xff] %vm1148_vm1, %v1580_v59 }
 0x1a1   : > { %1226 = vst.msk [vmem:[%s1963_s8 + $0x268] sm:$0xff] %vm1148_vm1, %v1582_v61 }
 0x1a3   : > { %v1584_v62 = vpop.eup %1583 }
 0x1a4   : > { %v1586_v63 = vpop.eup %1585  ;;  %1187 = vst.msk [vmem:[%s1963_s8 + $0x130] sm:$0xff] %vm1148_vm1, %v1584_v62 }
 0x1a5   : > { %1227 = vst.msk [vmem:[%s1963_s8 + $0x270] sm:$0xff] %vm1148_vm1, %v1586_v63 }
 0x1a7   : > { %v1588_v60 = vpop.eup %1587 }
 0x1a8   : > { %v1590_v0 = vpop.eup %1589  ;;  %1188 = vst.msk [vmem:[%s1963_s8 + $0x138] sm:$0xff] %vm1148_vm1, %v1588_v60 }
 0x1a9   : > { %1228 = vst.msk [vmem:[%s1963_s8 + $0x278] sm:$0xff] %vm1148_vm1, %v1590_v0 }
 0x1aa PF: > { %s13_s12 = sadd.s32 1, %s1597_s12  }
 0x1ab   : > { %p10_p4 = scmp.ge.s32.totalorder %s13_s12, 4  }
 0x1ad   :  { %12 = sbr.rel (!%p10_p4) target bundleno = 1 (0x1), region = 62 }

</bundles_post_ra>
